<compile_context>
chip_gen: v7x
topology: tpu7x:2x2x1
jax: 0.10.0
libtpu: 0.0.40
codegen_flags: <defaults>
</compile_context>

<pallas_src>
import functools

import jax
import jax.numpy as jnp
from jax import lax
from jax.experimental import pallas as pl
from jax.experimental.pallas import tpu as pltpu


# ------------------------------- helpers ----------------------------------- #

def _round_up(x, m):
    return (x + m - 1) // m * m


def _vmem_limit_bytes(required):
    """Scoped-VMEM limit: generous headroom, capped at 75% of physical VMEM."""
    try:
        cap = pltpu.get_tpu_info().vmem_capacity_bytes
    except Exception:
        cap = 64 * 1024 * 1024          # assume the smallest (v7x, 64 MiB)
    want = max(2 * required, 24 * 1024 * 1024)
    return int(min(want, (cap * 3) // 4))


# ----------------------------- Pallas kernel ------------------------------- #

def _pred_module_kernel(xf_ref, keep_ref, w1_ref, b1_ref, wh_ref, bh_ref,
                        out_ref, y1f_ref, *, H, W, C, npad, n_tanh, lead):
    """Fused conv1+ReLU and [coef|conf|box] head conv for one image.

    xf_ref : (rows_x, C)   flattened zero-padded input, row = a*(W+2)+b
    y1f_ref: (rows_y, C)   VMEM scratch holding y1 (flattened, zeros act as
                           the padding ring for the second conv)
    out_ref: (H*(W+2), npad) head outputs in "padded-width" layout; columns
                           b in {W, W+1} of each flattened row are garbage
                           and are sliced away by the wrapper.
    """
    Wp = W + 2
    M = H * Wp
    shift2 = lead - Wp - 1          # >= 0 because lead = round_up(Wp+1, 8)

    # ---- conv1 + bias + ReLU: 9 shifted-tap matmuls, register accumulation
    acc = None
    for t in range(9):
        i, j = divmod(t, 3)
        xs = xf_ref[pl.ds(i * Wp + j, M), :]          # (M, C)
        wt = w1_ref[pl.ds(t * C, C), :]               # (C, C)
        d = jnp.dot(xs, wt, preferred_element_type=jnp.float32)
        acc = d if acc is None else acc + d
    y1 = jnp.maximum(acc + b1_ref[...], 0.0)
    # Zero the wrap-around garbage columns; they become the zero padding ring
    # that the second conv reads at the left/right image borders.
    y1 = y1 * keep_ref[...]                           # (M, C) * (M, 1)

    # Stash y1 into VMEM with `lead` zero rows in front and zero rows behind,
    # so every tap of the second conv is a plain contiguous row slice.
    y1f_ref[...] = jnp.zeros_like(y1f_ref)
    y1f_ref[pl.ds(lead, M), :] = y1

    # ---- fused heads conv + bias + tanh on the coef lanes
    acc2 = None
    for t in range(9):
        i, j = divmod(t, 3)
        ys = y1f_ref[pl.ds(i * Wp + j + shift2, M), :]   # (M, C)
        wt = wh_ref[pl.ds(t * C, C), :]                  # (C, npad)
        d = jnp.dot(ys, wt, preferred_element_type=jnp.float32)
        acc2 = d if acc2 is None else acc2 + d
    out = acc2 + bh_ref[...]
    lane = lax.broadcasted_iota(jnp.int32, (M, npad), 1)
    out = jnp.where(lane < n_tanh, jnp.tanh(out), out)   # tanh only on coef
    out_ref[...] = out.astype(out_ref.dtype)


# ------------------------- parameter construction -------------------------- #

def init_params(key, num_classes, num_anchors, coefdim, cin=256, scale=0.05):
    """Deterministic synthetic parameters. Conv weights stored as (3,3,Cin,Cout)."""
    def conv(k, cout):
        kw, kb = jax.random.split(k)
        w = scale * jax.random.normal(kw, (3, 3, cin, cout), jnp.float32)
        b = scale * jax.random.normal(kb, (1, cout), jnp.float32)
        return w, b

    k1, k2, k3, k4 = jax.random.split(key, 4)
    w1, b1 = conv(k1, cin)
    wb, bb = conv(k2, num_anchors * 4)
    wc, bc = conv(k3, num_anchors * num_classes)
    wm, bm = conv(k4, num_anchors * coefdim)
    return {"w1": w1, "b1": b1, "w_box": wb, "b_box": bb,
            "w_conf": wc, "b_conf": bc, "w_mask": wm, "b_mask": bm}


def pack_params(params):
    """Hoisted (one-time) weight packing: concat heads as [coef|conf|box],
    pad to a 128-lane multiple, flatten (3,3,Cin,Cout) -> (9*Cin, Cout)."""
    def flat(w):
        return w.reshape(-1, w.shape[-1])

    w_heads = jnp.concatenate(
        [params["w_mask"], params["w_conf"], params["w_box"]], axis=-1)
    b_heads = jnp.concatenate(
        [params["b_mask"], params["b_conf"], params["b_box"]], axis=-1)
    n_real = w_heads.shape[-1]
    npad = _round_up(max(n_real, 128), 128)
    w_heads = jnp.pad(flat(w_heads), ((0, 0), (0, npad - n_real)))
    b_heads = jnp.pad(b_heads, ((0, 0), (0, npad - n_real)))
    return {"w1": flat(params["w1"]), "b1": params["b1"],
            "wh": w_heads, "bh": b_heads}


# ------------------------------- forward ----------------------------------- #

def prediction_module_forward(x_nchw, packed, num_classes, num_anchors, coefdim):
    """Matches Prediction_module.forward. Input is NCHW (PyTorch convention)."""
    N, C, H, W = x_nchw.shape
    Hp, Wp = H + 2, W + 2
    M = H * Wp
    rows_x = _round_up(Hp * Wp + 2, 8)            # covers max conv1 tap read
    lead = _round_up(Wp + 1, 8)                   # aligned front padding of y1
    rows_y = _round_up(lead + M + Wp + 1, 8)      # covers max conv2 tap read
    npad = packed["wh"].shape[-1]
    c_coef = num_anchors * coefdim
    c_conf = num_anchors * num_classes
    c_box = num_anchors * 4

    # Flatten the zero-padded NHWC input to (N, rows_x, C); lane dim = C.
    x = jnp.transpose(x_nchw, (0, 2, 3, 1))
    xf = jnp.pad(x, ((0, 0), (1, 1), (1, 1), (0, 0))).reshape(N, Hp * Wp, C)
    xf = jnp.pad(xf, ((0, 0), (0, rows_x - Hp * Wp), (0, 0)))

    # Constant 0/1 mask zeroing the wrap-garbage columns of each flattened row
    # (constant-folded by XLA: depends only on static shapes).
    keep = ((jnp.arange(M, dtype=jnp.int32) % Wp) < W
            ).astype(jnp.float32).reshape(M, 1)

    kernel = functools.partial(
        _pred_module_kernel, H=H, W=W, C=C, npad=npad, n_tanh=c_coef, lead=lead)

    vmem_need = 4 * (2 * rows_x * C            # input block (double-buffered)
                     + 2 * M * 128             # keep mask
                     + 2 * 9 * C * C           # conv1 weights
                     + 2 * 9 * C * npad        # head weights
                     + 2 * M * npad            # output block
                     + rows_y * C              # y1 scratch
                     + M * C + M * npad        # register-spill temporaries
                     + 16 * (C + npad))        # biases

    out = pl.pallas_call(
        kernel,
        out_shape=jax.ShapeDtypeStruct((N, M, npad), jnp.float32),
        grid_spec=pltpu.PrefetchScalarGridSpec(
            num_scalar_prefetch=0,
            grid=(N,),
            in_specs=[
                pl.BlockSpec((None, rows_x, C), lambda n: (n, 0, 0)),
                pl.BlockSpec((M, 1), lambda n: (0, 0)),
                pl.BlockSpec((9 * C, C), lambda n: (0, 0)),
                pl.BlockSpec((1, C), lambda n: (0, 0)),
                pl.BlockSpec((9 * C, npad), lambda n: (0, 0)),
                pl.BlockSpec((1, npad), lambda n: (0, 0)),
            ],
            out_specs=pl.BlockSpec((None, M, npad), lambda n: (n, 0, 0)),
            scratch_shapes=[pltpu.VMEM((rows_y, C), jnp.float32)],
        ),
        compiler_params=pltpu.CompilerParams(
            dimension_semantics=("parallel",),
            vmem_limit_bytes=_vmem_limit_bytes(vmem_need),
        ),
    )(xf, keep, packed["w1"], packed["b1"], packed["wh"], packed["bh"])

    # Drop the padded-width garbage columns and the padded lanes, then split.
    out = out.reshape(N, H, Wp, npad)[:, :, :W, :]
    A = num_anchors
    coef = out[..., :c_coef].reshape(N, H * W * A, coefdim)
    conf = out[..., c_coef:c_coef + c_conf].reshape(N, H * W * A, num_classes)
    box = out[..., c_coef + c_conf:c_coef + c_conf + c_box].reshape(N, H * W * A, 4)
    return conf, box, coef


# ---------------------------- pure-JAX reference ---------------------------- #

def _ref_forward(x_nchw, params, num_classes, num_anchors, coefdim):
    x = jnp.transpose(x_nchw, (0, 2, 3, 1))
    dn = lax.conv_dimension_numbers(x.shape, (3, 3, 256, 256),
                                    ("NHWC", "HWIO", "NHWC"))

    def conv(inp, w, b):
        return lax.conv_general_dilated(inp, w, (1, 1), "SAME",
                                        dimension_numbers=dn) + b

    N = x.shape[0]
    y1 = jnp.maximum(conv(x, params["w1"], params["b1"]), 0.0)
    conf = conv(y1, params["w_conf"], params["b_conf"]).reshape(N, -1, num_classes)
    box = conv(y1, params["w_box"], params["b_box"]).reshape(N, -1, 4)
    coef = jnp.tanh(conv(y1, params["w_mask"], params["b_mask"]).reshape(N, -1, coefdim))
    return conf, box, coef


# ----------------------------------- main ----------------------------------- #

if __name__ == "__main__":
    num_classes = 8
    num_anchors = 3            # len(cfg.aspect_ratios)
    coefdim = 32
    N, C, H, W = 2, 256, 8, 8  # Conv2d in the module fixes Cin = 256

    key = jax.random.PRNGKey(0)
    kx, kp = jax.random.split(key)
    x = jax.random.normal(kx, (N, C, H, W), jnp.float32)
    params = init_params(kp, num_classes, num_anchors, coefdim)
    packed = pack_params(params)          # one-time, outside the jitted path

    fwd = jax.jit(functools.partial(
        prediction_module_forward,
        num_classes=num_classes, num_anchors=num_anchors, coefdim=coefdim))
    conf, box, coef = fwd(x, packed)
    jax.block_until_ready((conf, box, coef))

    assert conf.shape == (N, H * W * num_anchors, num_classes)
    assert box.shape == (N, H * W * num_anchors, 4)
    assert coef.shape == (N, H * W * num_anchors, coefdim)

    # Numerical check against a pure-JAX conv reference.
    rconf, rbox, rcoef = _ref_forward(x, params, num_classes, num_anchors, coefdim)
    for a, b in ((conf, rconf), (box, rbox), (coef, rcoef)):
        assert jnp.max(jnp.abs(a - b)) < 2e-4

    print("KERNEL_OK")
</pallas_src>

<mosaic_0001>
module attributes {stable_mosaic.version = 11 : i64} {
  func.func @_pred_module_kernel(%arg0: i32, %arg1: memref<1x104x256xf32, #tpu.memory_space<vmem>>, %arg2: memref<80x1xf32, #tpu.memory_space<vmem>>, %arg3: memref<2304x256xf32, #tpu.memory_space<vmem>>, %arg4: memref<1x256xf32, #tpu.memory_space<vmem>>, %arg5: memref<2304x256xf32, #tpu.memory_space<vmem>>, %arg6: memref<1x256xf32, #tpu.memory_space<vmem>>, %arg7: memref<1x80x256xf32, #tpu.memory_space<vmem>>, %arg8: memref<112x256xf32, #tpu.memory_space<vmem>>) attributes {dimension_semantics = [#tpu.dimension_semantics<parallel>], iteration_bounds = array<i64: 2>, scalar_prefetch = 0 : i64, scratch_operands = 1 : i64, tpu.core_type = #tpu.core_type<tc>, window_params = [{transform_indices = @transform_0, window_bounds = array<i64: 1, 104, 256>}, {pipeline_mode = #tpu.pipeline_mode<synchronous>, transform_indices = @transform_1, window_bounds = array<i64: 80, 1>}, {pipeline_mode = #tpu.pipeline_mode<synchronous>, transform_indices = @transform_2, window_bounds = array<i64: 2304, 256>}, {pipeline_mode = #tpu.pipeline_mode<synchronous>, transform_indices = @transform_3, window_bounds = array<i64: 1, 256>}, {pipeline_mode = #tpu.pipeline_mode<synchronous>, transform_indices = @transform_4, window_bounds = array<i64: 2304, 256>}, {pipeline_mode = #tpu.pipeline_mode<synchronous>, transform_indices = @transform_5, window_bounds = array<i64: 1, 256>}, {transform_indices = @transform_6, window_bounds = array<i64: 1, 80, 256>}]} {
    %c0 = arith.constant 0 : index
    %c0_0 = arith.constant 0 : index
    %c0_1 = arith.constant 0 : index
    %0 = vector.load %arg1[%c0, %c0_0, %c0_1] : memref<1x104x256xf32, #tpu.memory_space<vmem>>, vector<1x80x256xf32>
    %1 = vector.shape_cast %0 : vector<1x80x256xf32> to vector<80x256xf32>
    %c0_2 = arith.constant 0 : index
    %c0_3 = arith.constant 0 : index
    %2 = vector.load %arg3[%c0_2, %c0_3] : memref<2304x256xf32, #tpu.memory_space<vmem>>, vector<256x256xf32>
    %cst = arith.constant dense<0.000000e+00> : vector<80x256xf32>
    %3 = tpu.matmul %1, %2, %cst {dimension_numbers = #tpu.dot_dimension_numbers<[1], [0], [0], [1], [0, 0, 1, 1], [], []>} : vector<80x256xf32>, vector<256x256xf32>, vector<80x256xf32> -> vector<80x256xf32>
    %c0_4 = arith.constant 0 : index
    %c1 = arith.constant 1 : index
    %c0_5 = arith.constant 0 : index
    %4 = vector.load %arg1[%c0_4, %c1, %c0_5] : memref<1x104x256xf32, #tpu.memory_space<vmem>>, vector<1x80x256xf32>
    %5 = vector.shape_cast %4 : vector<1x80x256xf32> to vector<80x256xf32>
    %c256 = arith.constant 256 : index
    %c0_6 = arith.constant 0 : index
    %6 = vector.load %arg3[%c256, %c0_6] : memref<2304x256xf32, #tpu.memory_space<vmem>>, vector<256x256xf32>
    %cst_7 = arith.constant dense<0.000000e+00> : vector<80x256xf32>
    %7 = tpu.matmul %5, %6, %cst_7 {dimension_numbers = #tpu.dot_dimension_numbers<[1], [0], [0], [1], [0, 0, 1, 1], [], []>} : vector<80x256xf32>, vector<256x256xf32>, vector<80x256xf32> -> vector<80x256xf32>
    %8 = arith.addf %3, %7 : vector<80x256xf32>
    %c0_8 = arith.constant 0 : index
    %c2 = arith.constant 2 : index
    %c0_9 = arith.constant 0 : index
    %9 = vector.load %arg1[%c0_8, %c2, %c0_9] : memref<1x104x256xf32, #tpu.memory_space<vmem>>, vector<1x80x256xf32>
    %10 = vector.shape_cast %9 : vector<1x80x256xf32> to vector<80x256xf32>
    %c512 = arith.constant 512 : index
    %c0_10 = arith.constant 0 : index
    %11 = vector.load %arg3[%c512, %c0_10] : memref<2304x256xf32, #tpu.memory_space<vmem>>, vector<256x256xf32>
    %cst_11 = arith.constant dense<0.000000e+00> : vector<80x256xf32>
    %12 = tpu.matmul %10, %11, %cst_11 {dimension_numbers = #tpu.dot_dimension_numbers<[1], [0], [0], [1], [0, 0, 1, 1], [], []>} : vector<80x256xf32>, vector<256x256xf32>, vector<80x256xf32> -> vector<80x256xf32>
    %13 = arith.addf %8, %12 : vector<80x256xf32>
    %c0_12 = arith.constant 0 : index
    %c10 = arith.constant 10 : index
    %c0_13 = arith.constant 0 : index
    %14 = vector.load %arg1[%c0_12, %c10, %c0_13] : memref<1x104x256xf32, #tpu.memory_space<vmem>>, vector<1x80x256xf32>
    %15 = vector.shape_cast %14 : vector<1x80x256xf32> to vector<80x256xf32>
    %c768 = arith.constant 768 : index
    %c0_14 = arith.constant 0 : index
    %16 = vector.load %arg3[%c768, %c0_14] : memref<2304x256xf32, #tpu.memory_space<vmem>>, vector<256x256xf32>
    %cst_15 = arith.constant dense<0.000000e+00> : vector<80x256xf32>
    %17 = tpu.matmul %15, %16, %cst_15 {dimension_numbers = #tpu.dot_dimension_numbers<[1], [0], [0], [1], [0, 0, 1, 1], [], []>} : vector<80x256xf32>, vector<256x256xf32>, vector<80x256xf32> -> vector<80x256xf32>
    %18 = arith.addf %13, %17 : vector<80x256xf32>
    %c0_16 = arith.constant 0 : index
    %c11 = arith.constant 11 : index
    %c0_17 = arith.constant 0 : index
    %19 = vector.load %arg1[%c0_16, %c11, %c0_17] : memref<1x104x256xf32, #tpu.memory_space<vmem>>, vector<1x80x256xf32>
    %20 = vector.shape_cast %19 : vector<1x80x256xf32> to vector<80x256xf32>
    %c1024 = arith.constant 1024 : index
    %c0_18 = arith.constant 0 : index
    %21 = vector.load %arg3[%c1024, %c0_18] : memref<2304x256xf32, #tpu.memory_space<vmem>>, vector<256x256xf32>
    %cst_19 = arith.constant dense<0.000000e+00> : vector<80x256xf32>
    %22 = tpu.matmul %20, %21, %cst_19 {dimension_numbers = #tpu.dot_dimension_numbers<[1], [0], [0], [1], [0, 0, 1, 1], [], []>} : vector<80x256xf32>, vector<256x256xf32>, vector<80x256xf32> -> vector<80x256xf32>
    %23 = arith.addf %18, %22 : vector<80x256xf32>
    %c0_20 = arith.constant 0 : index
    %c12 = arith.constant 12 : index
    %c0_21 = arith.constant 0 : index
    %24 = vector.load %arg1[%c0_20, %c12, %c0_21] : memref<1x104x256xf32, #tpu.memory_space<vmem>>, vector<1x80x256xf32>
    %25 = vector.shape_cast %24 : vector<1x80x256xf32> to vector<80x256xf32>
    %c1280 = arith.constant 1280 : index
    %c0_22 = arith.constant 0 : index
    %26 = vector.load %arg3[%c1280, %c0_22] : memref<2304x256xf32, #tpu.memory_space<vmem>>, vector<256x256xf32>
    %cst_23 = arith.constant dense<0.000000e+00> : vector<80x256xf32>
    %27 = tpu.matmul %25, %26, %cst_23 {dimension_numbers = #tpu.dot_dimension_numbers<[1], [0], [0], [1], [0, 0, 1, 1], [], []>} : vector<80x256xf32>, vector<256x256xf32>, vector<80x256xf32> -> vector<80x256xf32>
    %28 = arith.addf %23, %27 : vector<80x256xf32>
    %c0_24 = arith.constant 0 : index
    %c20 = arith.constant 20 : index
    %c0_25 = arith.constant 0 : index
    %29 = vector.load %arg1[%c0_24, %c20, %c0_25] : memref<1x104x256xf32, #tpu.memory_space<vmem>>, vector<1x80x256xf32>
    %30 = vector.shape_cast %29 : vector<1x80x256xf32> to vector<80x256xf32>
    %c1536 = arith.constant 1536 : index
    %c0_26 = arith.constant 0 : index
    %31 = vector.load %arg3[%c1536, %c0_26] : memref<2304x256xf32, #tpu.memory_space<vmem>>, vector<256x256xf32>
    %cst_27 = arith.constant dense<0.000000e+00> : vector<80x256xf32>
    %32 = tpu.matmul %30, %31, %cst_27 {dimension_numbers = #tpu.dot_dimension_numbers<[1], [0], [0], [1], [0, 0, 1, 1], [], []>} : vector<80x256xf32>, vector<256x256xf32>, vector<80x256xf32> -> vector<80x256xf32>
    %33 = arith.addf %28, %32 : vector<80x256xf32>
    %c0_28 = arith.constant 0 : index
    %c21 = arith.constant 21 : index
    %c0_29 = arith.constant 0 : index
    %34 = vector.load %arg1[%c0_28, %c21, %c0_29] : memref<1x104x256xf32, #tpu.memory_space<vmem>>, vector<1x80x256xf32>
    %35 = vector.shape_cast %34 : vector<1x80x256xf32> to vector<80x256xf32>
    %c1792 = arith.constant 1792 : index
    %c0_30 = arith.constant 0 : index
    %36 = vector.load %arg3[%c1792, %c0_30] : memref<2304x256xf32, #tpu.memory_space<vmem>>, vector<256x256xf32>
    %cst_31 = arith.constant dense<0.000000e+00> : vector<80x256xf32>
    %37 = tpu.matmul %35, %36, %cst_31 {dimension_numbers = #tpu.dot_dimension_numbers<[1], [0], [0], [1], [0, 0, 1, 1], [], []>} : vector<80x256xf32>, vector<256x256xf32>, vector<80x256xf32> -> vector<80x256xf32>
    %38 = arith.addf %33, %37 : vector<80x256xf32>
    %c0_32 = arith.constant 0 : index
    %c22 = arith.constant 22 : index
    %c0_33 = arith.constant 0 : index
    %39 = vector.load %arg1[%c0_32, %c22, %c0_33] : memref<1x104x256xf32, #tpu.memory_space<vmem>>, vector<1x80x256xf32>
    %40 = vector.shape_cast %39 : vector<1x80x256xf32> to vector<80x256xf32>
    %c2048 = arith.constant 2048 : index
    %c0_34 = arith.constant 0 : index
    %41 = vector.load %arg3[%c2048, %c0_34] : memref<2304x256xf32, #tpu.memory_space<vmem>>, vector<256x256xf32>
    %cst_35 = arith.constant dense<0.000000e+00> : vector<80x256xf32>
    %42 = tpu.matmul %40, %41, %cst_35 {dimension_numbers = #tpu.dot_dimension_numbers<[1], [0], [0], [1], [0, 0, 1, 1], [], []>} : vector<80x256xf32>, vector<256x256xf32>, vector<80x256xf32> -> vector<80x256xf32>
    %43 = arith.addf %38, %42 : vector<80x256xf32>
    %c0_36 = arith.constant 0 : index
    %c0_37 = arith.constant 0 : index
    %44 = vector.load %arg4[%c0_36, %c0_37] : memref<1x256xf32, #tpu.memory_space<vmem>>, vector<1x256xf32>
    %45 = vector.broadcast %44 : vector<1x256xf32> to vector<80x256xf32>
    %46 = arith.addf %43, %45 : vector<80x256xf32>
    %cst_38 = arith.constant 0.000000e+00 : f32
    %47 = vector.broadcast %cst_38 : f32 to vector<80x256xf32>
    %48 = arith.maximumf %46, %47 : vector<80x256xf32>
    %c0_39 = arith.constant 0 : index
    %c0_40 = arith.constant 0 : index
    %49 = vector.load %arg2[%c0_39, %c0_40] : memref<80x1xf32, #tpu.memory_space<vmem>>, vector<80x1xf32>
    %50 = vector.broadcast %49 : vector<80x1xf32> to vector<80x256xf32>
    %51 = arith.mulf %48, %50 : vector<80x256xf32>
    %cst_41 = arith.constant 0.000000e+00 : f32
    %52 = vector.broadcast %cst_41 : f32 to vector<112x256xf32>
    %c0_42 = arith.constant 0 : index
    %c0_43 = arith.constant 0 : index
    %53 = vector.load %arg8[%c0_42, %c0_43] : memref<112x256xf32, #tpu.memory_space<vmem>>, vector<112x256xf32>
    tpu.vector_store %arg8[%c0_42, %c0_43], %52 {strides = array<i32>} : memref<112x256xf32, #tpu.memory_space<vmem>>, vector<112x256xf32>,
    %c16 = arith.constant 16 : index
    %c0_44 = arith.constant 0 : index
    %54 = vector.load %arg8[%c16, %c0_44] : memref<112x256xf32, #tpu.memory_space<vmem>>, vector<80x256xf32>
    tpu.vector_store %arg8[%c16, %c0_44], %51 {strides = array<i32>} : memref<112x256xf32, #tpu.memory_space<vmem>>, vector<80x256xf32>,
    %c5 = arith.constant 5 : index
    %c0_45 = arith.constant 0 : index
    %55 = vector.load %arg8[%c5, %c0_45] : memref<112x256xf32, #tpu.memory_space<vmem>>, vector<80x256xf32>
    %c0_46 = arith.constant 0 : index
    %c0_47 = arith.constant 0 : index
    %56 = vector.load %arg5[%c0_46, %c0_47] : memref<2304x256xf32, #tpu.memory_space<vmem>>, vector<256x256xf32>
    %cst_48 = arith.constant dense<0.000000e+00> : vector<80x256xf32>
    %57 = tpu.matmul %55, %56, %cst_48 {dimension_numbers = #tpu.dot_dimension_numbers<[1], [0], [0], [1], [0, 0, 1, 1], [], []>} : vector<80x256xf32>, vector<256x256xf32>, vector<80x256xf32> -> vector<80x256xf32>
    %c6 = arith.constant 6 : index
    %c0_49 = arith.constant 0 : index
    %58 = vector.load %arg8[%c6, %c0_49] : memref<112x256xf32, #tpu.memory_space<vmem>>, vector<80x256xf32>
    %c256_50 = arith.constant 256 : index
    %c0_51 = arith.constant 0 : index
    %59 = vector.load %arg5[%c256_50, %c0_51] : memref<2304x256xf32, #tpu.memory_space<vmem>>, vector<256x256xf32>
    %cst_52 = arith.constant dense<0.000000e+00> : vector<80x256xf32>
    %60 = tpu.matmul %58, %59, %cst_52 {dimension_numbers = #tpu.dot_dimension_numbers<[1], [0], [0], [1], [0, 0, 1, 1], [], []>} : vector<80x256xf32>, vector<256x256xf32>, vector<80x256xf32> -> vector<80x256xf32>
    %61 = arith.addf %57, %60 : vector<80x256xf32>
    %c7 = arith.constant 7 : index
    %c0_53 = arith.constant 0 : index
    %62 = vector.load %arg8[%c7, %c0_53] : memref<112x256xf32, #tpu.memory_space<vmem>>, vector<80x256xf32>
    %c512_54 = arith.constant 512 : index
    %c0_55 = arith.constant 0 : index
    %63 = vector.load %arg5[%c512_54, %c0_55] : memref<2304x256xf32, #tpu.memory_space<vmem>>, vector<256x256xf32>
    %cst_56 = arith.constant dense<0.000000e+00> : vector<80x256xf32>
    %64 = tpu.matmul %62, %63, %cst_56 {dimension_numbers = #tpu.dot_dimension_numbers<[1], [0], [0], [1], [0, 0, 1, 1], [], []>} : vector<80x256xf32>, vector<256x256xf32>, vector<80x256xf32> -> vector<80x256xf32>
    %65 = arith.addf %61, %64 : vector<80x256xf32>
    %c15 = arith.constant 15 : index
    %c0_57 = arith.constant 0 : index
    %66 = vector.load %arg8[%c15, %c0_57] : memref<112x256xf32, #tpu.memory_space<vmem>>, vector<80x256xf32>
    %c768_58 = arith.constant 768 : index
    %c0_59 = arith.constant 0 : index
    %67 = vector.load %arg5[%c768_58, %c0_59] : memref<2304x256xf32, #tpu.memory_space<vmem>>, vector<256x256xf32>
    %cst_60 = arith.constant dense<0.000000e+00> : vector<80x256xf32>
    %68 = tpu.matmul %66, %67, %cst_60 {dimension_numbers = #tpu.dot_dimension_numbers<[1], [0], [0], [1], [0, 0, 1, 1], [], []>} : vector<80x256xf32>, vector<256x256xf32>, vector<80x256xf32> -> vector<80x256xf32>
    %69 = arith.addf %65, %68 : vector<80x256xf32>
    %c16_61 = arith.constant 16 : index
    %c0_62 = arith.constant 0 : index
    %70 = vector.load %arg8[%c16_61, %c0_62] : memref<112x256xf32, #tpu.memory_space<vmem>>, vector<80x256xf32>
    %c1024_63 = arith.constant 1024 : index
    %c0_64 = arith.constant 0 : index
    %71 = vector.load %arg5[%c1024_63, %c0_64] : memref<2304x256xf32, #tpu.memory_space<vmem>>, vector<256x256xf32>
    %cst_65 = arith.constant dense<0.000000e+00> : vector<80x256xf32>
    %72 = tpu.matmul %70, %71, %cst_65 {dimension_numbers = #tpu.dot_dimension_numbers<[1], [0], [0], [1], [0, 0, 1, 1], [], []>} : vector<80x256xf32>, vector<256x256xf32>, vector<80x256xf32> -> vector<80x256xf32>
    %73 = arith.addf %69, %72 : vector<80x256xf32>
    %c17 = arith.constant 17 : index
    %c0_66 = arith.constant 0 : index
    %74 = vector.load %arg8[%c17, %c0_66] : memref<112x256xf32, #tpu.memory_space<vmem>>, vector<80x256xf32>
    %c1280_67 = arith.constant 1280 : index
    %c0_68 = arith.constant 0 : index
    %75 = vector.load %arg5[%c1280_67, %c0_68] : memref<2304x256xf32, #tpu.memory_space<vmem>>, vector<256x256xf32>
    %cst_69 = arith.constant dense<0.000000e+00> : vector<80x256xf32>
    %76 = tpu.matmul %74, %75, %cst_69 {dimension_numbers = #tpu.dot_dimension_numbers<[1], [0], [0], [1], [0, 0, 1, 1], [], []>} : vector<80x256xf32>, vector<256x256xf32>, vector<80x256xf32> -> vector<80x256xf32>
    %77 = arith.addf %73, %76 : vector<80x256xf32>
    %c25 = arith.constant 25 : index
    %c0_70 = arith.constant 0 : index
    %78 = vector.load %arg8[%c25, %c0_70] : memref<112x256xf32, #tpu.memory_space<vmem>>, vector<80x256xf32>
    %c1536_71 = arith.constant 1536 : index
    %c0_72 = arith.constant 0 : index
    %79 = vector.load %arg5[%c1536_71, %c0_72] : memref<2304x256xf32, #tpu.memory_space<vmem>>, vector<256x256xf32>
    %cst_73 = arith.constant dense<0.000000e+00> : vector<80x256xf32>
    %80 = tpu.matmul %78, %79, %cst_73 {dimension_numbers = #tpu.dot_dimension_numbers<[1], [0], [0], [1], [0, 0, 1, 1], [], []>} : vector<80x256xf32>, vector<256x256xf32>, vector<80x256xf32> -> vector<80x256xf32>
    %81 = arith.addf %77, %80 : vector<80x256xf32>
    %c26 = arith.constant 26 : index
    %c0_74 = arith.constant 0 : index
    %82 = vector.load %arg8[%c26, %c0_74] : memref<112x256xf32, #tpu.memory_space<vmem>>, vector<80x256xf32>
    %c1792_75 = arith.constant 1792 : index
    %c0_76 = arith.constant 0 : index
    %83 = vector.load %arg5[%c1792_75, %c0_76] : memref<2304x256xf32, #tpu.memory_space<vmem>>, vector<256x256xf32>
    %cst_77 = arith.constant dense<0.000000e+00> : vector<80x256xf32>
    %84 = tpu.matmul %82, %83, %cst_77 {dimension_numbers = #tpu.dot_dimension_numbers<[1], [0], [0], [1], [0, 0, 1, 1], [], []>} : vector<80x256xf32>, vector<256x256xf32>, vector<80x256xf32> -> vector<80x256xf32>
    %85 = arith.addf %81, %84 : vector<80x256xf32>
    %c27 = arith.constant 27 : index
    %c0_78 = arith.constant 0 : index
    %86 = vector.load %arg8[%c27, %c0_78] : memref<112x256xf32, #tpu.memory_space<vmem>>, vector<80x256xf32>
    %c2048_79 = arith.constant 2048 : index
    %c0_80 = arith.constant 0 : index
    %87 = vector.load %arg5[%c2048_79, %c0_80] : memref<2304x256xf32, #tpu.memory_space<vmem>>, vector<256x256xf32>
    %cst_81 = arith.constant dense<0.000000e+00> : vector<80x256xf32>
    %88 = tpu.matmul %86, %87, %cst_81 {dimension_numbers = #tpu.dot_dimension_numbers<[1], [0], [0], [1], [0, 0, 1, 1], [], []>} : vector<80x256xf32>, vector<256x256xf32>, vector<80x256xf32> -> vector<80x256xf32>
    %89 = arith.addf %85, %88 : vector<80x256xf32>
    %c0_82 = arith.constant 0 : index
    %c0_83 = arith.constant 0 : index
    %90 = vector.load %arg6[%c0_82, %c0_83] : memref<1x256xf32, #tpu.memory_space<vmem>>, vector<1x256xf32>
    %91 = vector.broadcast %90 : vector<1x256xf32> to vector<80x256xf32>
    %92 = arith.addf %89, %91 : vector<80x256xf32>
    %93 = tpu.iota {dimensions = array<i32: 1>} : vector<80x256xi32>
    %c96_i32 = arith.constant 96 : i32
    %94 = vector.broadcast %c96_i32 : i32 to vector<80x256xi32>
    %95 = arith.cmpi slt, %93, %94 : vector<80x256xi32>
    %96 = math.tanh %92 : vector<80x256xf32>
    %97 = arith.select %95, %96, %92 : vector<80x256xi1>, vector<80x256xf32>
    %c0_84 = arith.constant 0 : index
    %c0_85 = arith.constant 0 : index
    %c0_86 = arith.constant 0 : index
    %98 = vector.load %arg7[%c0_84, %c0_85, %c0_86] : memref<1x80x256xf32, #tpu.memory_space<vmem>>, vector<1x80x256xf32>
    %99 = vector.shape_cast %98 : vector<1x80x256xf32> to vector<80x256xf32>
    %100 = vector.shape_cast %97 : vector<80x256xf32> to vector<1x80x256xf32>
    tpu.vector_store %arg7[%c0_84, %c0_85, %c0_86], %100 {strides = array<i32>} : memref<1x80x256xf32, #tpu.memory_space<vmem>>, vector<1x80x256xf32>,
    return
  }
  func.func @transform_0(%arg0: i32) -> (i32, i32, i32) {
    %c0_i32 = arith.constant 0 : i32
    %c0_i32_0 = arith.constant 0 : i32
    %c0_i32_1 = arith.constant 0 : i32
    return %arg0, %c0_i32, %c0_i32_0 : i32, i32, i32
  }
  func.func @transform_1(%arg0: i32) -> (i32, i32) {
    %c0_i32 = arith.constant 0 : i32
    %c0_i32_0 = arith.constant 0 : i32
    %c0_i32_1 = arith.constant 0 : i32
    return %c0_i32, %c0_i32_0 : i32, i32
  }
  func.func @transform_2(%arg0: i32) -> (i32, i32) {
    %c0_i32 = arith.constant 0 : i32
    %c0_i32_0 = arith.constant 0 : i32
    %c0_i32_1 = arith.constant 0 : i32
    return %c0_i32, %c0_i32_0 : i32, i32
  }
  func.func @transform_3(%arg0: i32) -> (i32, i32) {
    %c0_i32 = arith.constant 0 : i32
    %c0_i32_0 = arith.constant 0 : i32
    %c0_i32_1 = arith.constant 0 : i32
    return %c0_i32, %c0_i32_0 : i32, i32
  }
  func.func @transform_4(%arg0: i32) -> (i32, i32) {
    %c0_i32 = arith.constant 0 : i32
    %c0_i32_0 = arith.constant 0 : i32
    %c0_i32_1 = arith.constant 0 : i32
    return %c0_i32, %c0_i32_0 : i32, i32
  }
  func.func @transform_5(%arg0: i32) -> (i32, i32) {
    %c0_i32 = arith.constant 0 : i32
    %c0_i32_0 = arith.constant 0 : i32
    %c0_i32_1 = arith.constant 0 : i32
    return %c0_i32, %c0_i32_0 : i32, i32
  }
  func.func @transform_6(%arg0: i32) -> (i32, i32, i32) {
    %c0_i32 = arith.constant 0 : i32
    %c0_i32_0 = arith.constant 0 : i32
    %c0_i32_1 = arith.constant 0 : i32
    return %arg0, %c0_i32, %c0_i32_0 : i32, i32, i32
  }
}

</mosaic_0001>

<bundles_post_ra>
// kernel: prediction_module_forward.1
= control target key start
LH: loop header
LB: loop body
LE: loop exit
PB: predicated region body
PF: predicated region fallthrough
CT: control target
= control target key end

     0   :  { %11 = vsyncpa [#allocation4], 0  ;;  %s9089_s0 = inlined_call_operand.vmem [shape: f32[2,104,256], index: 0, kind: input, shape index: {}]   ;;  %s9090_s1 = inlined_call_operand.vmem [shape: f32[80,1], index: 1, kind: input, shape index: {}]   ;;  %s9091_s2 = inlined_call_operand.hbm [shape: f32[2304,256], index: 2, kind: input, shape index: {}]   ;;  %s9092_s3 = inlined_call_operand.hbm [shape: f32[1,256], index: 3, kind: input, shape index: {}]   ;;  %s9093_s4 = inlined_call_operand.hbm [shape: f32[2304,256], index: 4, kind: input, shape index: {}]   ;;  %s9094_s5 = inlined_call_operand.hbm [shape: f32[1,256], index: 5, kind: input, shape index: {}]   ;;  %s9095_s6 = inlined_call_operand.vmem [shape: f32[2,80,256], index: 6, kind: output, shape index: {}]  }
   0x1   :  { %12 = vsyncpa [#allocation6], 0 }
   0x2   :  { %13 = vsyncpa [#allocation9], 0  ;;  %s7524_s21 = smov 0  }
   0x3 LB: > { %s7481_s22 = smov [#allocation5]   ;;  %s7530_s24 = sadd.s32 4294967295, %s7479_s21   ;;  %s7479_s21 = sphi %s7524_s21, %s19_s21  }
   0x4   : > { %s210_s23 = sshll.u32 %s7481_s22, 4  ;;  %p5747_p0 = scmp.ge.s32.totalorder %s7479_s21, 1  ;;  %s7535_s23 = int_to_ptr.vmem [resolvable:$true] %s210_s23 }
   0x5   : > { %p181_p1 = scmp.lt.s32.totalorder %s7479_s21, 3  ;;  %p9096_p2 = scmp.eq.s32.totalorder %s7530_s24, 0 }
   0x6   : > { %s7482_s26 = smov [#allocation3]   ;;  %s7483_s29 = smov [#allocation7]  }
   0x7   : > { %p7537_p3 = pnand %p5747_p0, %p181_p1  ;;  %s196_s27 = sshll.u32 %s7482_s26, 4  ;;  %s7543_s27 = int_to_ptr.vmem [resolvable:$true] %s196_s27 }
   0x8   : > { %s220_s30 = sshll.u32 %s7483_s29, 4  ;;  %s7484_s7 = smov [#allocation8]   ;;  %s7551_s30 = int_to_ptr.vmem [resolvable:$true] %s220_s30 }
   0x9   : > { %s9115_s25 = scalar_select %p7537_p3, 1, 0 }
   0xa   : > { %p7252_p4 = pneg %p7537_p3  ;;  %s7553_s8 = sshll.u32 %s7484_s7, 4  ;;  %s235_s8 = int_to_ptr.vmem [resolvable:$true] %s7553_s8 }
   0xb   : > { %s7349_s11 = scalar_lea.hbm %s9092_s3, 32 }
   0xc   : > { %p7547_p5 = pnand %p9096_p2, %p7252_p4  ;;  %p7350_p6 = scmp.ne.s32.totalorder %s9092_s3, %s7349_s11 }
   0xd   : > { %p7356_p10 = scmp.lt.u32.totalorder %s7349_s11, %s9092_s3 }
   0xe   : > { %p7563_p7 = pneg %p7547_p5 }
  0x10   : > { %p7352_p8 = pnand %p7563_p7, %p7350_p6 }
  0x12   : > { %p7353_p9 = pneg %p7352_p8 }
  0x14   : > { %p7358_p11 = pnand %p7356_p10, %p7353_p9 }
  0x16   : > { %7361 = shalt.err (!%p7358_p11)
}
  0x17   : > { %s7362_s17 = scalar_lea.vmem %s7535_s23, 32  ;;  %p7370_p1 = scmp.lt.s32.totalorder %s7535_s23, %s7535_s23 }
  0x18   : > { %p7363_p12 = scmp.ne.s32.totalorder %s7535_s23, %s7362_s17  ;;  %p7371_p4 = scmp.lt.s32.totalorder %s7362_s17, %s7362_s17 }
  0x1a   : > { %p7365_p13 = pnand %p7363_p12, %p7563_p7  ;;  %p7372_p6 = por %p7371_p4, %p7370_p1 }
  0x1c   : > { %p7366_p0 = pneg %p7365_p13 }
  0x1e   : > { %p7373_p8 = pnand %p7372_p6, %p7366_p0 }
  0x20   : > { %7376 = shalt.err (!%p7373_p8)
}
  0x21   : > { %7258 = dma.hbm_to_vmem [thread:$0]  (!%p7547_p5), %s9092_s3, 32, %s7535_s23, [#allocation6]  }
  0x22   : > { %s7377_s26 = scalar_lea.hbm %s9091_s2, 73728 }
  0x23   : > { %p7378_p9 = scmp.ne.s32.totalorder %s9091_s2, %s7377_s26  ;;  %p7384_p12 = scmp.lt.u32.totalorder %s7377_s26, %s9091_s2 }
  0x25   : > { %p7380_p10 = pnand %p7378_p9, %p7563_p7 }
  0x27   : > { %p7381_p11 = pneg %p7380_p10 }
  0x29   : > { %p7386_p13 = pnand %p7384_p12, %p7381_p11 }
  0x2b   : > { %7389 = shalt.err (!%p7386_p13)
}
  0x2c   : > { %s7390_s23 = scalar_lea.vmem %s7543_s27, 73728  ;;  %p7398_p6 = scmp.lt.s32.totalorder %s7543_s27, %s7543_s27 }
  0x2d   : > { %p7391_p0 = scmp.ne.s32.totalorder %s7543_s27, %s7390_s23  ;;  %p7399_p8 = scmp.lt.s32.totalorder %s7390_s23, %s7390_s23 }
  0x2f   : > { %p7393_p1 = pnand %p7391_p0, %p7563_p7  ;;  %p7400_p9 = por %p7399_p8, %p7398_p6 }
  0x31   : > { %p7394_p4 = pneg %p7393_p1 }
  0x33   : > { %p7401_p10 = pnand %p7400_p9, %p7394_p4 }
  0x35   : > { %7404 = shalt.err (!%p7401_p10)
}
  0x36   : > { %s7485_s11 = smov 256   ;;  %s7486_s12 = smov 16  }
  0x37   : > { %7255 = dma.hbm_to_vmem [thread:$0]  (!%p7547_p5), %s9091_s2, 73728, %s7543_s27, [#allocation4], %s7485_s11, %s7485_s11, %s7486_s12  }
  0x38   : > { %s7405_s18 = scalar_lea.hbm %s9093_s4, 73728 }
  0x39   : > { %p7406_p11 = scmp.ne.s32.totalorder %s9093_s4, %s7405_s18  ;;  %p7412_p0 = scmp.lt.u32.totalorder %s7405_s18, %s9093_s4 }
  0x3b   : > { %p7408_p12 = pnand %p7406_p11, %p7563_p7 }
  0x3d   : > { %p7409_p13 = pneg %p7408_p12 }
  0x3f   : > { %p7414_p1 = pnand %p7412_p0, %p7409_p13 }
  0x41   : > { %7417 = shalt.err (!%p7414_p1)
}
  0x42   : > { %s7418_s27 = scalar_lea.vmem %s7551_s30, 73728  ;;  %p7426_p9 = scmp.lt.s32.totalorder %s7551_s30, %s7551_s30 }
  0x43   : > { %p7419_p4 = scmp.ne.s32.totalorder %s7551_s30, %s7418_s27  ;;  %p7427_p10 = scmp.lt.s32.totalorder %s7418_s27, %s7418_s27 }
  0x45   : > { %p7421_p6 = pnand %p7419_p4, %p7563_p7  ;;  %p7428_p11 = por %p7427_p10, %p7426_p9 }
  0x47   : > { %p7422_p8 = pneg %p7421_p6 }
  0x49   : > { %p7429_p12 = pnand %p7428_p11, %p7422_p8 }
  0x4b   : > { %7432 = shalt.err (!%p7429_p12)
}
  0x4c   : > { %7261 = dma.hbm_to_vmem [thread:$0]  (!%p7547_p5), %s9093_s4, 73728, %s7551_s30, [#allocation6], %s7485_s11, %s7485_s11, %s7486_s12  }
  0x4d   : > { %s7433_s23 = scalar_lea.hbm %s9094_s5, 32 }
  0x4e   : > { %p7434_p13 = scmp.ne.s32.totalorder %s9094_s5, %s7433_s23  ;;  %p7440_p4 = scmp.lt.u32.totalorder %s7433_s23, %s9094_s5 }
  0x50   : > { %p7436_p0 = pnand %p7434_p13, %p7563_p7 }
  0x52   : > { %p7437_p1 = pneg %p7436_p0 }
  0x54   : > { %p7442_p6 = pnand %p7440_p4, %p7437_p1 }
  0x56   : > { %7445 = shalt.err (!%p7442_p6)
}
  0x57   : > { %s7446_s18 = scalar_lea.vmem %s235_s8, 32  ;;  %p7454_p11 = scmp.lt.s32.totalorder %s235_s8, %s235_s8 }
  0x58   : > { %p7447_p8 = scmp.ne.s32.totalorder %s235_s8, %s7446_s18  ;;  %p7455_p12 = scmp.lt.s32.totalorder %s7446_s18, %s7446_s18 }
  0x5a   : > { %p7449_p9 = pnand %p7447_p8, %p7563_p7  ;;  %p7456_p2 = por %p7455_p12, %p7454_p11 }
  0x5c   : > { %p7450_p10 = pneg %p7449_p9 }
  0x5e   : > { %p7457_p3 = pnand %p7456_p2, %p7450_p10 }
  0x60   : > { %7460 = shalt.err (!%p7457_p3)
}
  0x61   : > { %7264 = dma.hbm_to_vmem [thread:$0]  (!%p7547_p5), %s9094_s5, 32, %s235_s8, [#allocation9]  }
  0x62   : > { %p9118_p13 = scmp.ne.s32.totalorder %s9115_s25, 0 }
  0x64   : > { %255 = sbr.rel (%p9118_p13) target bundleno = 1673 (0x689), region = 44 }
  0x6b   : > { %p9119_p0 = scmp.eq.s32.totalorder %s7530_s24, 0 }
  0x6d   : > { %7466 = dma.done.wait (%p9119_p0), [#allocation4], 73728   ;;  %p9120_p7 = pmov %p9119_p0 }
  0x6e   : > { %p9121_p1 = pmov %p9119_p0 }
  0x6f   : > { %7468 = vsyncadd (%p9120_p7), [#allocation4], 4294893568 }
  0x70   : > { %7470 = dma.done.wait (%p9121_p1), [#allocation6], 73760   ;;  %p9122_p2 = pmov %p9119_p0 }
  0x71   : > { %p9123_p3 = pmov %p9119_p0 }
  0x72   : > { %7472 = vsyncadd (%p9122_p2), [#allocation6], 4294893536 }
  0x73   : > { %7474 = dma.done.wait (%p9123_p3), [#allocation9], 32   ;;  %p9124_p5 = pmov %p9119_p0 }
  0x74   : > { %v396_v0 = vld [vmem:[#allocation3 + $0x208] sm:$0xff]  ;;  %v398_v1 = vld [vmem:[#allocation3 + $0x218] sm:$0xff]  ;;  %v395_v2 = vld [vmem:[#allocation3 + $0x200] sm:$0xff]  ;;  %p297_p4 = scmp.lt.s32.totalorder %s7530_s24, 1  ;;  %vm481_vm0 = vcmask 1046528   ;;  %vm866_vm1 = vcmask 1045504  }
  0x75   : > { %7476 = vsyncadd (%p9124_p5), [#allocation9], 4294967264  ;;  %v5762_v3 = vpack.c.bf16 %v398_v1, %v396_v0  ;;  %v397_v4 = vld [vmem:[#allocation3 + $0x210] sm:$0xff]  ;;  %v400_v5 = vld [vmem:[#allocation3 + $0x228] sm:$0xff]  ;;  %vm1461_vm2 = vcmask 1044480   ;;  %vm1741_vm3 = vcmask 1043456  }
  0x76   : > { %v402_v6 = vld [vmem:[#allocation3 + $0x238] sm:$0xff]  ;;  %v5764_v7 = vpack.c.bf16 %v397_v4, %v395_v2  ;;  %v399_v9 = vld [vmem:[#allocation3 + $0x220] sm:$0xff]  ;;  %v401_v10 = vld [vmem:[#allocation3 + $0x230] sm:$0xff]  ;;  %s9151_s24 = smov (!%p297_p4, %s7530_s24), 1  ;;  %vm2336_vm4 = vcmask 1042432   ;;  %vm2616_vm5 = vcmask 1041408  }
  0x77   : > { %v5766_v8 = vpack.c.bf16 %v402_v6, %v400_v5  ;;  %v404_v11 = vld [vmem:[#allocation3 + $0x248] sm:$0xff]  ;;  %5763 = vmatprep.subr.bf16.mxu0 %v5762_v3  ;;  %v406_v12 = vld [vmem:[#allocation3 + $0x258] sm:$0xff]  ;;  %v5768_v13 = vpack.c.bf16 %v401_v10, %v399_v9  ;;  %v403_v15 = vld [vmem:[#allocation3 + $0x240] sm:$0xff]  ;;  %s7234_s25 = smul.u32 208, %s9151_s24  ;;  %vm3630_vm6 = vcmask 1040384  }
  0x78   : > { %5765 = vmatpush1.bf16.msra.mxu0 %v5764_v7  ;;  %v5770_v14 = vpack.c.bf16 %v406_v12, %v404_v11  ;;  %v405_v16 = vld [vmem:[#allocation3 + $0x250] sm:$0xff]  ;;  %v408_v17 = vld [vmem:[#allocation3 + $0x268] sm:$0xff]  ;;  %v410_v18 = vld [vmem:[#allocation3 + $0x278] sm:$0xff]  ;;  %s7235_s8 = smul.u32 160, %s9151_s24 }
  0x79   : > { %5767 = vmatprep.subr.bf16.mxu0 %v5766_v8  ;;  %v5772_v19 = vpack.c.bf16 %v405_v16, %v403_v15  ;;  %v5774_v20 = vpack.c.bf16 %v410_v18, %v408_v17  ;;  %v407_v21 = vld [vmem:[#allocation3 + $0x260] sm:$0xff]  ;;  %v409_v22 = vld [vmem:[#allocation3 + $0x270] sm:$0xff]  ;;  %v412_v23 = vld [vmem:[#allocation3 + $0x288] sm:$0xff]  ;;  %s7671_s14 = scalar_lea.vmem %s9089_s0, %s7234_s25 }
  0x7a   : > { %v414_v24 = vld [vmem:[#allocation3 + $0x298] sm:$0xff]  ;;  %v5776_v25 = vpack.c.bf16 %v409_v22, %v407_v21  ;;  %v411_v27 = vld [vmem:[#allocation3 + $0x280] sm:$0xff]  ;;  %v413_v28 = vld [vmem:[#allocation3 + $0x290] sm:$0xff]  ;;  %s9020_s19 = scalar_lea.vmem %s9095_s6, %s7235_s8 }
  0x7b   : > { %v5778_v26 = vpack.c.bf16 %v414_v24, %v412_v23  ;;  %v416_v29 = vld [vmem:[#allocation3 + $0x2a8] sm:$0xff]  ;;  %v418_v30 = vld [vmem:[#allocation3 + $0x2b8] sm:$0xff]  ;;  %v5780_v31 = vpack.c.bf16 %v413_v28, %v411_v27  ;;  %v415_v33 = vld [vmem:[#allocation3 + $0x2a0] sm:$0xff] }
  0x7c   : > { %5769 = vmatpush1.bf16.msra.mxu0 %v5768_v13  ;;  %v5782_v32 = vpack.c.bf16 %v418_v30, %v416_v29  ;;  %v417_v34 = vld [vmem:[#allocation3 + $0x2b0] sm:$0xff]  ;;  %v420_v35 = vld [vmem:[#allocation3 + $0x2c8] sm:$0xff]  ;;  %v422_v36 = vld [vmem:[#allocation3 + $0x2d8] sm:$0xff] }
  0x7d   : > { %5771 = vmatprep.subr.bf16.mxu0 %v5770_v14  ;;  %v5784_v37 = vpack.c.bf16 %v417_v34, %v415_v33  ;;  %v419_v38 = vld [vmem:[#allocation3 + $0x2c0] sm:$0xff]  ;;  %v5786_v39 = vpack.c.bf16 %v422_v36, %v420_v35  ;;  %v421_v40 = vld [vmem:[#allocation3 + $0x2d0] sm:$0xff]  ;;  %v7674_v41 = vld [vmem:[%s7671_s14 + $0x18] sm:$0xff] }
  0x7e   : > { %v392_v42 = vld [vmem:[%s7671_s14 + $0x8] sm:$0xfe]  ;;  %v426_v44 = vld [vmem:[#allocation3 + $0x2f8] sm:$0xff]  ;;  %v486_v46 = vrot.slane %v7674_v41, 1  ;;  %v5788_v47 = vpack.c.bf16 %v421_v40, %v419_v38  ;;  %v423_v50 = vld [vmem:[#allocation3 + $0x2e0] sm:$0xff] }
  0x7f   : > { %v424_v43 = vld [vmem:[#allocation3 + $0x2e8] sm:$0xff]  ;;  %v485_v45 = vrot.slane %v392_v42, 1  ;;  %v425_v51 = vld [vmem:[#allocation3 + $0x2f0] sm:$0xff]  ;;  %v430_v53 = vld [vmem:[#allocation3 + $0x318] sm:$0xff] }
  0x80   : > { %5773 = vmatpush1.bf16.msra.mxu0 %v5772_v19  ;;  %v5790_v49 = vpack.c.bf16 %v426_v44, %v424_v43  ;;  %v428_v52 = vld [vmem:[#allocation3 + $0x308] sm:$0xff]  ;;  %v5792_v54 = vpack.c.bf16 %v425_v51, %v423_v50  ;;  %v427_v56 = vld [vmem:[#allocation3 + $0x300] sm:$0xff]  ;;  %v429_v57 = vld [vmem:[#allocation3 + $0x310] sm:$0xff] }
  0x81   : > { %5775 = vmatprep.subr.bf16.mxu0 %v5774_v20  ;;  %v487_v48 = vsel %vm481_vm0, %v485_v45, %v486_v46  ;;  %v5794_v55 = vpack.c.bf16 %v430_v53, %v428_v52  ;;  %v432_v58 = vld [vmem:[#allocation3 + $0x328] sm:$0xff]  ;;  %v434_v59 = vld [vmem:[#allocation3 + $0x338] sm:$0xff]  ;;  %v5796_v60 = vpack.c.bf16 %v429_v57, %v427_v56  ;;  %v431_v62 = vld [vmem:[#allocation3 + $0x320] sm:$0xff] }
  0x82   : > { %608 = vmatprep.mubr.f32.mxu0 %v487_v48  ;;  %v5798_v61 = vpack.c.bf16 %v434_v59, %v432_v58  ;;  %v433_v63 = vld [vmem:[#allocation3 + $0x330] sm:$0xff]  ;;  %v436_v0 = vld [vmem:[#allocation3 + $0x348] sm:$0xff]  ;;  %v438_v1 = vld [vmem:[#allocation3 + $0x358] sm:$0xff] }
  0x83   : > { %v5800_v2 = vpack.c.bf16 %v433_v63, %v431_v62  ;;  %v5802_v3 = vpack.c.bf16 %v438_v1, %v436_v0  ;;  %v435_v4 = vld [vmem:[#allocation3 + $0x340] sm:$0xff]  ;;  %v437_v5 = vld [vmem:[#allocation3 + $0x350] sm:$0xff]  ;;  %v440_v6 = vld [vmem:[#allocation3 + $0x368] sm:$0xff] }
  0x84   : > { %5777 = vmatpush1.bf16.msra.mxu0 %v5776_v25  ;;  %v442_v7 = vld [vmem:[#allocation3 + $0x378] sm:$0xff]  ;;  %v5804_v8 = vpack.c.bf16 %v437_v5, %v435_v4  ;;  %v439_v10 = vld [vmem:[#allocation3 + $0x360] sm:$0xff]  ;;  %v441_v11 = vld [vmem:[#allocation3 + $0x370] sm:$0xff] }
  0x85   : > { %5779 = vmatprep.subr.bf16.mxu0 %v5778_v26  ;;  %v5806_v9 = vpack.c.bf16 %v442_v7, %v440_v6  ;;  %v444_v12 = vld [vmem:[#allocation3 + $0x388] sm:$0xff]  ;;  %v446_v13 = vld [vmem:[#allocation3 + $0x398] sm:$0xff]  ;;  %v5808_v14 = vpack.c.bf16 %v441_v11, %v439_v10  ;;  %v443_v16 = vld [vmem:[#allocation3 + $0x380] sm:$0xff] }
  0x86   : > { %v5810_v15 = vpack.c.bf16 %v446_v13, %v444_v12  ;;  %v445_v17 = vld [vmem:[#allocation3 + $0x390] sm:$0xff]  ;;  %v448_v18 = vld [vmem:[#allocation3 + $0x3a8] sm:$0xff]  ;;  %v450_v19 = vld [vmem:[#allocation3 + $0x3b8] sm:$0xff] }
  0x87   : > { %v5812_v20 = vpack.c.bf16 %v445_v17, %v443_v16  ;;  %v5814_v21 = vpack.c.bf16 %v450_v19, %v448_v18  ;;  %v447_v22 = vld [vmem:[#allocation3 + $0x3a0] sm:$0xff]  ;;  %v449_v23 = vld [vmem:[#allocation3 + $0x3b0] sm:$0xff]  ;;  %v452_v24 = vld [vmem:[#allocation3 + $0x3c8] sm:$0xff] }
  0x88   : > { %5781 = vmatpush1.bf16.msra.mxu0 %v5780_v31  ;;  %v454_v25 = vld [vmem:[#allocation3 + $0x3d8] sm:$0xff]  ;;  %v5816_v26 = vpack.c.bf16 %v449_v23, %v447_v22  ;;  %v451_v28 = vld [vmem:[#allocation3 + $0x3c0] sm:$0xff]  ;;  %v453_v29 = vld [vmem:[#allocation3 + $0x3d0] sm:$0xff] }
  0x89   : > { %5783 = vmatprep.subr.bf16.mxu0 %v5782_v32  ;;  %v5818_v27 = vpack.c.bf16 %v454_v25, %v452_v24  ;;  %v456_v30 = vld [vmem:[#allocation3 + $0x3e8] sm:$0xff]  ;;  %v458_v31 = vld [vmem:[#allocation3 + $0x3f8] sm:$0xff]  ;;  %v5820_v32 = vpack.c.bf16 %v453_v29, %v451_v28  ;;  %v455_v33 = vld [vmem:[#allocation3 + $0x3e0] sm:$0xff] }
  0x8a   : > { %v5822_v34 = vpack.c.bf16 %v458_v31, %v456_v30  ;;  %v457_v35 = vld [vmem:[#allocation3 + $0x3f0] sm:$0xff]  ;;  %v328_v38 = vld [vmem:[#allocation3 + $0x8] sm:$0xff]  ;;  %v7691_v50 = vld [vmem:[%s7671_s14 + $0x20] sm:$0xff] }
  0x8b   : > { %v7682_v36 = vld [vmem:[%s7671_s14 + $0x10] sm:$0xff]  ;;  %v7686_v40 = vld [vmem:[%s7671_s14 + $0x28] sm:$0xff]  ;;  %v5824_v42 = vpack.c.bf16 %v457_v35, %v455_v33  ;;  %v334_v52 = vld [vmem:[#allocation3 + $0x38] sm:$0xff]  ;;  %v488_v56 = vrot.slane %v7691_v50, 1 }
  0x8c   : > { %5785 = vmatpush1.bf16.msra.mxu0 %v5784_v37  ;;  %v391_v37 = vld [vmem:[%s7671_s14] sm:$0xfe]  ;;  %v483_v44 = vrot.slane %v7682_v36, 1  ;;  %v329_v48 = vld [vmem:[#allocation3 + $0x10] sm:$0xff]  ;;  %v332_v51 = vld [vmem:[#allocation3 + $0x28] sm:$0xff] }
  0x8d   : > { %5787 = vmatprep.subr.bf16.mxu0 %v5786_v39  ;;  %v330_v39 = vld [vmem:[#allocation3 + $0x18] sm:$0xff]  ;;  %v482_v43 = vrot.slane %v391_v37, 1  ;;  %v5830_v57 = vpack.c.bf16 %v334_v52, %v332_v51  ;;  %v331_v58 = vld [vmem:[#allocation3 + $0x20] sm:$0xff]  ;;  %v333_v59 = vld [vmem:[#allocation3 + $0x30] sm:$0xff] }
  0x8e   : > { %v5826_v45 = vpack.c.bf16 %v330_v39, %v328_v38  ;;  %v7694_v53 = vld [vmem:[%s7671_s14 + $0x38] sm:$0xff]  ;;  %v7703_v62 = vld [vmem:[%s7671_s14 + $0x30] sm:$0xff]  ;;  %v336_v63 = vld [vmem:[#allocation3 + $0x48] sm:$0xff] }
  0x8f   : > { %v338_v0 = vld [vmem:[#allocation3 + $0x58] sm:$0xff]  ;;  %v7706_v1 = vld [vmem:[%s7671_s14 + $0x48] sm:$0xff]  ;;  %v492_v4 = vrot.slane %v7703_v62, 1  ;;  %v335_v5 = vld [vmem:[#allocation3 + $0x40] sm:$0xff] }
  0x90   : > { %5789 = vmatpush1.bf16.msra.mxu0 %v5788_v47  ;;  %v327_v47 = vld [vmem:[#allocation3] sm:$0xff]  ;;  %v337_v6 = vld [vmem:[#allocation3 + $0x50] sm:$0xff]  ;;  %v340_v10 = vld [vmem:[#allocation3 + $0x68] sm:$0xff] }
  0x91   : > { %5791 = vmatprep.subr.bf16.mxu0 %v5790_v49  ;;  %v490_v49 = vrot.slane %v7686_v40, 1  ;;  %v342_v11 = vld [vmem:[#allocation3 + $0x78] sm:$0xff]  ;;  %v5836_v13 = vpack.c.bf16 %v337_v6, %v335_v5  ;;  %v339_v17 = vld [vmem:[#allocation3 + $0x60] sm:$0xff]  ;;  %v341_v18 = vld [vmem:[#allocation3 + $0x70] sm:$0xff] }
  0x92   : > { %v7716_v12 = vld [vmem:[%s7671_s14 + $0x58] sm:$0xff]  ;;  %v5838_v16 = vpack.c.bf16 %v342_v11, %v340_v10  ;;  %v344_v22 = vld [vmem:[#allocation3 + $0x88] sm:$0xff]  ;;  %v5840_v25 = vpack.c.bf16 %v341_v18, %v339_v17  ;;  %v343_v29 = vld [vmem:[#allocation3 + $0x80] sm:$0xff] }
  0x93   : > { %v346_v23 = vld [vmem:[#allocation3 + $0x98] sm:$0xff]  ;;  %v7726_v24 = vld [vmem:[%s7671_s14 + $0x68] sm:$0xff]  ;;  %v345_v30 = vld [vmem:[#allocation3 + $0x90] sm:$0xff] }
  0x94   : > { %5793 = vmatpush1.bf16.msra.mxu0 %v5792_v54  ;;  %v484_v54 = vsel %vm481_vm0, %v482_v43, %v483_v44  ;;  %v5842_v28 = vpack.c.bf16 %v346_v23, %v344_v22  ;;  %v7733_v33 = vld [vmem:[%s7671_s14 + $0x60] sm:$0xff]  ;;  %v350_v35 = vld [vmem:[#allocation3 + $0xb8] sm:$0xff]  ;;  %v5844_v38 = vpack.c.bf16 %v345_v30, %v343_v29  ;;  %v352_v51 = vld [vmem:[#allocation3 + $0xc8] sm:$0xff] }
  0x95   : > { %5795 = vmatprep.subr.bf16.mxu0 %v5794_v55  ;;  %v5828_v55 = vpack.c.bf16 %v329_v48, %v327_v47  ;;  %v7736_v37 = vld [vmem:[%s7671_s14 + $0x78] sm:$0xff]  ;;  %v357_v10 = vld [vmem:[#allocation3 + $0xf0] sm:$0xff]  ;;  %v394_v17 = vld [vmem:[%s7671_s14 + $0xa8] sm:$0x1] }
  0x96   : > { %v510_v48 = vrot.slane %v7736_v37, 1  ;;  %v354_v52 = vld [vmem:[#allocation3 + $0xd8] sm:$0xff]  ;;  %v359_v23 = vld [vmem:[#allocation3 + $0x100] sm:$0xff]  ;;  %v364_v29 = vld [vmem:[#allocation3 + $0x128] sm:$0xff] }
  0x97   : > { %v366_v30 = vld [vmem:[#allocation3 + $0x138] sm:$0xff] }
  0x98   : > { %5797 = vmatpush1.bf16.msra.mxu0 %v5796_v60  ;;  %v491_v60 = vsel %vm481_vm0, %v486_v46, %v490_v49  ;;  %v5834_v46 = vpack.c.bf16 %v338_v0, %v336_v63  ;;  %v7753_v0 = vld [vmem:[%s7671_s14 + $0x80] sm:$0xff] }
  0x99   : > { %5799 = vmatprep.subr.bf16.mxu0 %v5798_v61  ;;  %v494_v61 = vrot.slane %v7694_v53, 1  ;;  %v512_v6 = vrot.slane %v7753_v0, 1 }
  0x9b   : > { %v495_v7 = vsel %vm481_vm0, %v490_v49, %v494_v61  ;;  %v7743_v49 = vld [vmem:[%s7671_s14 + $0x70] sm:$0xff] }
  0x9c   : > { %5801 = vmatpush1.bf16.msra.mxu0 %v5800_v2  ;;  %v5832_v2 = vpack.c.bf16 %v333_v59, %v331_v58  ;;  %v5850_v58 = vpack.c.bf16 %v354_v52, %v352_v51  ;;  %v351_v59 = vld [vmem:[#allocation3 + $0xc0] sm:$0xff]  ;;  %v369_v52 = vld [vmem:[#allocation3 + $0x150] sm:$0xff] }
  0x9d   : > { %5803 = vmatprep.subr.bf16.mxu0 %v5802_v3  ;;  %v489_v3 = vsel %vm481_vm0, %v483_v44, %v488_v56  ;;  %v347_v44 = vld [vmem:[#allocation3 + $0xa0] sm:$0xff] }
  0x9e   : > { %v367_v51 = vld [vmem:[#allocation3 + $0x140] sm:$0xff] }
  0xa0   : > { %5805 = vmatpush1.bf16.msra.mxu0 %v5804_v8  ;;  %v498_v8 = vrot.slane %v7706_v1, 1 }
  0xa1   : > { %5807 = vmatprep.subr.bf16.mxu0 %v5806_v9  ;;  %v7713_v9 = vld [vmem:[%s7671_s14 + $0x40] sm:$0xff] }
  0xa2   : > { %v499_v19 = vsel %vm481_vm0, %v494_v61, %v498_v8 }
  0xa4   : > { %5809 = vmatpush1.bf16.msra.mxu0 %v5808_v14  ;;  %v493_v14 = vsel %vm481_vm0, %v488_v56, %v492_v4 }
  0xa5   : > { %5811 = vmatprep.subr.bf16.mxu0 %v5810_v15  ;;  %v496_v15 = vrot.slane %v7713_v9, 1 }
  0xa8   : > { %5813 = vmatpush1.bf16.msra.mxu0 %v5812_v20  ;;  %v502_v20 = vrot.slane %v7716_v12, 1 }
  0xa9   : > { %5815 = vmatprep.subr.bf16.mxu0 %v5814_v21  ;;  %v7723_v21 = vld [vmem:[%s7671_s14 + $0x50] sm:$0xff] }
  0xaa   : > { %v503_v31 = vsel %vm481_vm0, %v498_v8, %v502_v20  ;;  %v355_v8 = vld [vmem:[#allocation3 + $0xe0] sm:$0xff] }
  0xab   : > { %v5856_v18 = vpack.c.bf16 %v357_v10, %v355_v8  ;;  %v382_v8 = vld [vmem:[#allocation3 + $0x1b8] sm:$0xff] }
  0xac   : > { %5817 = vmatpush1.bf16.msra.mxu0 %v5816_v26  ;;  %v497_v26 = vsel %vm481_vm0, %v492_v4, %v496_v15  ;;  %v7756_v4 = vld [vmem:[%s7671_s14 + $0x98] sm:$0xff] }
  0xad   : > { %5819 = vmatprep.subr.bf16.mxu0 %v5818_v27  ;;  %v500_v27 = vrot.slane %v7723_v21, 1 }
  0xaf   : > { %v501_v39 = vsel %vm481_vm0, %v496_v15, %v500_v27  ;;  %v360_v15 = vld [vmem:[#allocation3 + $0x108] sm:$0xff] }
  0xb0   : > { %5821 = vmatpush1.bf16.msra.mxu0 %v5820_v32  ;;  %v506_v32 = vrot.slane %v7726_v24, 1 }
  0xb1   : > { %5823 = vmatprep.subr.bf16.mxu0 %v5822_v34  ;;  %v348_v34 = vld [vmem:[#allocation3 + $0xa8] sm:$0xff] }
  0xb2   : > { %v5846_v43 = vpack.c.bf16 %v350_v35, %v348_v34  ;;  %v507_v47 = vsel %vm481_vm0, %v502_v20, %v506_v32  ;;  %v511_v61 = vsel %vm481_vm0, %v506_v32, %v510_v48  ;;  %v5862_v35 = vpack.c.bf16 %v366_v30, %v364_v29  ;;  %v389_v29 = vld [vmem:[#allocation3 + $0x1f0] sm:$0xff]  ;;  %v799_v30 = vld [vmem:[#allocation3 + $0x408] sm:$0xff] }
  0xb4   : > { %5825 = vmatpush1.bf16.msra.mxu0 %v5824_v42  ;;  %v504_v42 = vrot.slane %v7733_v33, 1 }
  0xb5   : > { %5827 = vmatprep.subr.bf16.mxu0 %v5826_v45  ;;  %v349_v45 = vld [vmem:[#allocation3 + $0xb0] sm:$0xff] }
  0xb6   : > { %v505_v56 = vsel %vm481_vm0, %v500_v27, %v504_v42  ;;  %v522_v27 = vrot.slane %v394_v17, 1  ;;  %v386_v17 = vld [vmem:[#allocation3 + $0x1d8] sm:$0xff] }
  0xb7   : > { %609 = vmatmul.mubr.f32.vlgmr.msra.gmra.mrb[0].mxu0 %v484_v54  ;;  %v7746_v54 = vld [vmem:[%s7671_s14 + $0x88] sm:$0xff] }
  0xb8   : > { %5829 = vmatpush1.bf16.msra.mxu0 %v5828_v55  ;;  %614 = vmatprep.mubr.f32.mxu0 %v491_v60  ;;  %v5848_v55 = vpack.c.bf16 %v349_v45, %v347_v44  ;;  %v353_v60 = vld [vmem:[#allocation3 + $0xd0] sm:$0xff]  ;;  %v514_v63 = vrot.slane %v7746_v54, 1  ;;  %v370_v44 = vld [vmem:[#allocation3 + $0x158] sm:$0xff] }
  0xb9   : > { %5831 = vmatprep.subr.bf16.mxu0 %v5830_v57  ;;  %v508_v57 = vrot.slane %v7743_v49, 1 }
  0xba   : > { %v515_v11 = vsel %vm481_vm0, %v510_v48, %v514_v63 }
  0xbb   : > { %615 = vmatmul.mubr.f32.gmra.mrb[2].mxu0 %v489_v3  ;;  %v358_v3 = vld [vmem:[#allocation3 + $0xf8] sm:$0xff]  ;;  %v509_v5 = vsel %vm481_vm0, %v504_v42, %v508_v57 }
  0xbc   : > { %5833 = vmatpush1.bf16.msra.mxu0 %v5832_v2  ;;  %620 = vmatprep.mubr.f32.mxu0 %v495_v7  ;;  %v356_v2 = vld [vmem:[#allocation3 + $0xe8] sm:$0xff] }
  0xbd   : > { %5835 = vmatprep.subr.bf16.mxu0 %v5834_v46  ;;  %v5852_v46 = vpack.c.bf16 %v353_v60, %v351_v59  ;;  %v5854_v7 = vpack.c.bf16 %v358_v3, %v356_v2  ;;  %v371_v60 = vld [vmem:[#allocation3 + $0x160] sm:$0xff]  ;;  %v378_v2 = vld [vmem:[#allocation3 + $0x198] sm:$0xff] }
  0xbf   : > { %621 = vmatmul.mubr.f32.gmra.mrb[4].mxu0 %v493_v14  ;;  %v7763_v14 = vld [vmem:[%s7671_s14 + $0x90] sm:$0xff] }
  0xc0   : > { %5837 = vmatpush1.bf16.msra.mxu0 %v5836_v13  ;;  %626 = vmatprep.mubr.f32.mxu0 %v499_v19  ;;  %v518_v13 = vrot.slane %v7756_v4, 1  ;;  %v513_v19 = vsel %vm481_vm0, %v508_v57, %v512_v6  ;;  %v516_v20 = vrot.slane %v7763_v14, 1  ;;  %v374_v57 = vld [vmem:[#allocation3 + $0x178] sm:$0xff] }
  0xc1   : > { %5839 = vmatprep.subr.bf16.mxu0 %v5838_v16  ;;  %v362_v16 = vld [vmem:[#allocation3 + $0x118] sm:$0xff] }
  0xc2   : > { %v5858_v22 = vpack.c.bf16 %v362_v16, %v360_v15  ;;  %v517_v32 = vsel %vm481_vm0, %v512_v6, %v516_v20  ;;  %v523_v42 = vsel %vm481_vm0, %v518_v13, %v522_v27  ;;  %v377_v6 = vld [vmem:[#allocation3 + $0x190] sm:$0xff]  ;;  %v384_v16 = vld [vmem:[#allocation3 + $0x1c8] sm:$0xff] }
  0xc3   : > { %627 = vmatmul.mubr.f32.gmra.mrb[6].mxu0 %v497_v26  ;;  %v519_v26 = vsel %vm481_vm0, %v514_v63, %v518_v13  ;;  %v376_v63 = vld [vmem:[#allocation3 + $0x188] sm:$0xff]  ;;  %v379_v13 = vld [vmem:[#allocation3 + $0x1a0] sm:$0xff]  ;;  %v381_v15 = vld [vmem:[#allocation3 + $0x1b0] sm:$0xff] }
  0xc4   : > { %5841 = vmatpush1.bf16.msra.mxu0 %v5840_v25  ;;  %632 = vmatprep.mubr.f32.mxu0 %v503_v31  ;;  %v361_v25 = vld [vmem:[#allocation3 + $0x110] sm:$0xff] }
  0xc5   : > { %5843 = vmatprep.subr.bf16.mxu0 %v5842_v28  ;;  %v393_v28 = vld [vmem:[%s7671_s14 + $0xa0] sm:$0x1]  ;;  %v5860_v31 = vpack.c.bf16 %v361_v25, %v359_v23  ;;  %v388_v23 = vld [vmem:[#allocation3 + $0x1e8] sm:$0xff]  ;;  %v390_v25 = vld [vmem:[#allocation3 + $0x1f8] sm:$0xff] }
  0xc6   : > { %v520_v34 = vrot.slane %v393_v28, 1  ;;  %v5886_v27 = vpack.c.bf16 %v390_v25, %v388_v23  ;;  %v387_v28 = vld [vmem:[#allocation3 + $0x1e0] sm:$0xff] }
  0xc7   : > { %633 = vmatmul.mubr.f32.gmra.mrb[8].mxu0 %v501_v39  ;;  %v365_v39 = vld [vmem:[#allocation3 + $0x130] sm:$0xff]  ;;  %v822_v25 = vld [vmem:[#allocation3 + $0x4c0] sm:$0xff] }
  0xc8   : > { %5845 = vmatpush1.bf16.msra.mxu0 %v5844_v38  ;;  %638 = vmatprep.mubr.f32.mxu0 %v507_v47  ;;  %v363_v38 = vld [vmem:[#allocation3 + $0x120] sm:$0xff]  ;;  %v521_v47 = vsel %vm481_vm0, %v516_v20, %v520_v34 }
  0xc9   : > { %5847 = vmatprep.subr.bf16.mxu0 %v5846_v43  ;;  %v368_v43 = vld [vmem:[#allocation3 + $0x148] sm:$0xff]  ;;  %v5864_v45 = vpack.c.bf16 %v365_v39, %v363_v38  ;;  %v383_v20 = vld [vmem:[#allocation3 + $0x1c0] sm:$0xff]  ;;  %v800_v38 = vld [vmem:[#allocation3 + $0x410] sm:$0xff] }
  0xca   : > { %v5866_v48 = vpack.c.bf16 %v370_v44, %v368_v43  ;;  %v803_v39 = vld [vmem:[#allocation3 + $0x428] sm:$0xff]  ;;  %v307_v43 = vld [vmem:[%s7671_s14] sm:$0xff] }
  0xcb   : > { %639 = vmatmul.mubr.f32.gmra.mrb[10].mxu0 %v505_v56  ;;  %v372_v56 = vld [vmem:[#allocation3 + $0x168] sm:$0xff] }
  0xcc   : > { %5849 = vmatpush1.bf16.msra.mxu0 %v5848_v55  ;;  %644 = vmatprep.mubr.f32.mxu0 %v511_v61  ;;  %v308_v55 = vld [vmem:[%s7671_s14 + $0x8] sm:$0xff]  ;;  %v5870_v59 = vpack.c.bf16 %v374_v57, %v372_v56  ;;  %v373_v61 = vld [vmem:[#allocation3 + $0x170] sm:$0xff]  ;;  %v806_v57 = vld [vmem:[#allocation3 + $0x440] sm:$0xff] }
  0xcd   : > { %5851 = vmatprep.subr.bf16.mxu0 %v5850_v58  ;;  %v5868_v58 = vpack.c.bf16 %v369_v52, %v367_v51  ;;  %v5872_v3 = vpack.c.bf16 %v373_v61, %v371_v60  ;;  %v807_v51 = vld [vmem:[#allocation3 + $0x448] sm:$0xff]  ;;  %v809_v52 = vld [vmem:[#allocation3 + $0x458] sm:$0xff] }
  0xce   : > { %v5898_v56 = vpack.c.bf16 %v809_v52, %v807_v51  ;;  %v813_v60 = vld [vmem:[#allocation3 + $0x478] sm:$0xff]  ;;  %v834_v52 = vld [vmem:[#allocation3 + $0x520] sm:$0xff] }
  0xcf   : > { %645 = vmatmul.mubr.f32.gmra.mrb[12].mxu0 %v509_v5  ;;  %v375_v5 = vld [vmem:[#allocation3 + $0x180] sm:$0xff] }
  0xd0   : > { %5853 = vmatpush1.bf16.msra.mxu0 %v5852_v46  ;;  %650 = vmatprep.mubr.f32.mxu0 %v515_v11  ;;  %v5874_v46 = vpack.c.bf16 %v378_v2, %v376_v63  ;;  %v5876_v10 = vpack.c.bf16 %v377_v6, %v375_v5  ;;  %v810_v2 = vld [vmem:[#allocation3 + $0x460] sm:$0xff]  ;;  %v817_v5 = vld [vmem:[#allocation3 + $0x498] sm:$0xff] }
  0xd1   : > { %5855 = vmatprep.subr.bf16.mxu0 %v5854_v7  ;;  %v380_v7 = vld [vmem:[#allocation3 + $0x1a8] sm:$0xff] }
  0xd2   : > { %v5878_v11 = vpack.c.bf16 %v382_v8, %v380_v7  ;;  %v814_v8 = vld [vmem:[#allocation3 + $0x480] sm:$0xff] }
  0xd3   : > { %651 = vmatmul.mubr.f32.gmra.mrb[14].mxu0 %v513_v19  ;;  %v5882_v19 = vpack.c.bf16 %v386_v17, %v384_v16  ;;  %v818_v17 = vld [vmem:[#allocation3 + $0x4a0] sm:$0xff] }
  0xd4   : > { %5857 = vmatpush1.bf16.msra.mxu0 %v5856_v18  ;;  %656 = vmatprep.mubr.f32.mxu0 %v519_v26  ;;  %v5880_v18 = vpack.c.bf16 %v381_v15, %v379_v13  ;;  %v821_v13 = vld [vmem:[#allocation3 + $0x4b8] sm:$0xff] }
  0xd5   : > { %5859 = vmatprep.subr.bf16.mxu0 %v5858_v22  ;;  %v385_v22 = vld [vmem:[#allocation3 + $0x1d0] sm:$0xff] }
  0xd6   : > { %v5884_v26 = vpack.c.bf16 %v385_v22, %v383_v20  ;;  %v825_v20 = vld [vmem:[#allocation3 + $0x4d8] sm:$0xff] }
  0xd7   : > { %657 = vmatmul.mubr.f32.gmra.mrb[16].mxu0 %v517_v32  ;;  %v5888_v32 = vpack.c.bf16 %v389_v29, %v387_v28  ;;  %v829_v28 = vld [vmem:[#allocation3 + $0x4f8] sm:$0xff] }
  0xd8   : > { %5861 = vmatpush1.bf16.msra.mxu0 %v5860_v31  ;;  %662 = vmatprep.mubr.f32.mxu0 %v523_v42  ;;  %v801_v31 = vld [vmem:[#allocation3 + $0x418] sm:$0xff] }
  0xd9   : > { %5863 = vmatprep.subr.bf16.mxu0 %v5862_v35  ;;  %v5890_v34 = vpack.c.bf16 %v801_v31, %v799_v30  ;;  %v798_v35 = vld [vmem:[#allocation3 + $0x400] sm:$0xff]  ;;  %v805_v42 = vld [vmem:[#allocation3 + $0x438] sm:$0xff] }
  0xda   : > { %v5892_v44 = vpack.c.bf16 %v800_v38, %v798_v35  ;;  %v826_v31 = vld [vmem:[#allocation3 + $0x4e0] sm:$0xff]  ;;  %v833_v35 = vld [vmem:[#allocation3 + $0x518] sm:$0xff] }
  0xdb   : > { %663 = vmatmul.mubr.f32.gmra.mrb[18].mxu0 %v521_v47  ;;  %v802_v47 = vld [vmem:[#allocation3 + $0x420] sm:$0xff] }
  0xdc   : > { %5865 = vmatpush1.bf16.msra.mxu0 %v5864_v45  ;;  %733 = vmatprep.mubr.f32.mxu0 %v308_v55  ;;  %v5894_v45 = vpack.c.bf16 %v805_v42, %v803_v39  ;;  %v830_v42 = vld [vmem:[#allocation3 + $0x500] sm:$0xff] }
  0xdd   : > { %5867 = vmatprep.subr.bf16.mxu0 %v5866_v48  ;;  %v804_v48 = vld [vmem:[#allocation3 + $0x430] sm:$0xff] }
  0xde   : > { %v5896_v55 = vpack.c.bf16 %v804_v48, %v802_v47  ;;  %v795_v47 = vld [vmem:[%s7671_s14 + $0x8] sm:$0xfc] }
  0xe0   : > { %5869 = vmatpush1.bf16.msra.mxu0 %v5868_v58  ;;  %v808_v58 = vld [vmem:[#allocation3 + $0x450] sm:$0xff] }
  0xe1   : > { %5871 = vmatprep.subr.bf16.mxu0 %v5870_v59  ;;  %v811_v59 = vld [vmem:[#allocation3 + $0x468] sm:$0xff]  ;;  %v5900_v61 = vpack.c.bf16 %v808_v58, %v806_v57  ;;  %v871_v57 = vrot.slane %v7674_v41, 2 }
  0xe2   : > { %v5902_v63 = vpack.c.bf16 %v813_v60, %v811_v59  ;;  %v839_v58 = vld [vmem:[#allocation3 + $0x548] sm:$0xff]  ;;  %v841_v59 = vld [vmem:[#allocation3 + $0x558] sm:$0xff] }
  0xe4   : > { %5873 = vmatpush1.bf16.msra.mxu0 %v5872_v3  ;;  %v812_v3 = vld [vmem:[#allocation3 + $0x470] sm:$0xff] }
  0xe5   : > { %5875 = vmatprep.subr.bf16.mxu0 %v5874_v46  ;;  %v815_v46 = vld [vmem:[#allocation3 + $0x488] sm:$0xff]  ;;  %v5904_v6 = vpack.c.bf16 %v812_v3, %v810_v2  ;;  %v840_v2 = vld [vmem:[#allocation3 + $0x550] sm:$0xff] }
  0xe6   : > { %v5906_v7 = vpack.c.bf16 %v817_v5, %v815_v46  ;;  %v843_v46 = vld [vmem:[#allocation3 + $0x568] sm:$0xff]  ;;  %v845_v5 = vld [vmem:[#allocation3 + $0x578] sm:$0xff] }
  0xe8   : > { %5877 = vmatpush1.bf16.msra.mxu0 %v5876_v10  ;;  %v816_v10 = vld [vmem:[#allocation3 + $0x490] sm:$0xff] }
  0xe9   : > { %5879 = vmatprep.subr.bf16.mxu0 %v5878_v11  ;;  %v819_v11 = vld [vmem:[#allocation3 + $0x4a8] sm:$0xff]  ;;  %v5908_v15 = vpack.c.bf16 %v816_v10, %v814_v8  ;;  %v842_v8 = vld [vmem:[#allocation3 + $0x560] sm:$0xff]  ;;  %v844_v10 = vld [vmem:[#allocation3 + $0x570] sm:$0xff] }
  0xea   : > { %v5910_v16 = vpack.c.bf16 %v821_v13, %v819_v11  ;;  %v847_v11 = vld [vmem:[#allocation3 + $0x588] sm:$0xff]  ;;  %v849_v13 = vld [vmem:[#allocation3 + $0x598] sm:$0xff] }
  0xec   : > { %5881 = vmatpush1.bf16.msra.mxu0 %v5880_v18  ;;  %v820_v18 = vld [vmem:[#allocation3 + $0x4b0] sm:$0xff] }
  0xed   : > { %5883 = vmatprep.subr.bf16.mxu0 %v5882_v19  ;;  %v823_v19 = vld [vmem:[#allocation3 + $0x4c8] sm:$0xff]  ;;  %v5912_v22 = vpack.c.bf16 %v820_v18, %v818_v17  ;;  %v846_v17 = vld [vmem:[#allocation3 + $0x580] sm:$0xff]  ;;  %v848_v18 = vld [vmem:[#allocation3 + $0x590] sm:$0xff] }
  0xee   : > { %v5914_v23 = vpack.c.bf16 %v825_v20, %v823_v19  ;;  %v851_v19 = vld [vmem:[#allocation3 + $0x5a8] sm:$0xff]  ;;  %v853_v20 = vld [vmem:[#allocation3 + $0x5b8] sm:$0xff] }
  0xf0   : > { %5885 = vmatpush1.bf16.msra.mxu0 %v5884_v26  ;;  %v824_v26 = vld [vmem:[#allocation3 + $0x4d0] sm:$0xff] }
  0xf1   : > { %5887 = vmatprep.subr.bf16.mxu0 %v5886_v27  ;;  %v827_v27 = vld [vmem:[#allocation3 + $0x4e8] sm:$0xff]  ;;  %v5916_v29 = vpack.c.bf16 %v824_v26, %v822_v25  ;;  %v850_v25 = vld [vmem:[#allocation3 + $0x5a0] sm:$0xff]  ;;  %v852_v26 = vld [vmem:[#allocation3 + $0x5b0] sm:$0xff] }
  0xf2   : > { %v5918_v30 = vpack.c.bf16 %v829_v28, %v827_v27  ;;  %v855_v27 = vld [vmem:[#allocation3 + $0x5c8] sm:$0xff]  ;;  %v857_v28 = vld [vmem:[#allocation3 + $0x5d8] sm:$0xff] }
  0xf4   : > { %5889 = vmatpush1.bf16.msra.mxu0 %v5888_v32  ;;  %v828_v32 = vld [vmem:[#allocation3 + $0x4f0] sm:$0xff] }
  0xf5   : > { %5891 = vmatprep.subr.bf16.mxu0 %v5890_v34  ;;  %v831_v34 = vld [vmem:[#allocation3 + $0x508] sm:$0xff]  ;;  %v5920_v38 = vpack.c.bf16 %v828_v32, %v826_v31  ;;  %v854_v31 = vld [vmem:[#allocation3 + $0x5c0] sm:$0xff]  ;;  %v856_v32 = vld [vmem:[#allocation3 + $0x5d0] sm:$0xff] }
  0xf6   : > { %v5922_v39 = vpack.c.bf16 %v833_v35, %v831_v34  ;;  %v859_v34 = vld [vmem:[#allocation3 + $0x5e8] sm:$0xff]  ;;  %v861_v35 = vld [vmem:[#allocation3 + $0x5f8] sm:$0xff] }
  0xf7   : > { %734 = vmatmul.mubr.f32.vlgmr.msra.gmra.mrb[0].mxu0 %v307_v43  ;;  %v832_v43 = vld [vmem:[#allocation3 + $0x510] sm:$0xff] }
  0xf8   : > { %5893 = vmatpush1.bf16.msra.mxu0 %v5892_v44  ;;  %739 = vmatprep.mubr.f32.mxu0 %v7674_v41  ;;  %v835_v44 = vld [vmem:[#allocation3 + $0x528] sm:$0xff]  ;;  %v5924_v48 = vpack.c.bf16 %v832_v43, %v830_v42  ;;  %v858_v42 = vld [vmem:[#allocation3 + $0x5e0] sm:$0xff]  ;;  %v860_v43 = vld [vmem:[#allocation3 + $0x5f0] sm:$0xff] }
  0xf9   : > { %5895 = vmatprep.subr.bf16.mxu0 %v5894_v45  ;;  %v837_v45 = vld [vmem:[#allocation3 + $0x538] sm:$0xff] }
  0xfa   : > { %v5926_v51 = vpack.c.bf16 %v837_v45, %v835_v44  ;;  %v794_v44 = vld [vmem:[%s7671_s14] sm:$0xfc]  ;;  %v1097_v45 = vld [vmem:[#allocation3 + $0x608] sm:$0xff] }
  0xfb   : > { %740 = vmatmul.mubr.f32.gmra.mrb[2].mxu0 %v7682_v36 }
  0xfc   : > { %5897 = vmatpush1.bf16.msra.mxu0 %v5896_v55  ;;  %745 = vmatprep.mubr.f32.mxu0 %v7686_v40  ;;  %v836_v55 = vld [vmem:[#allocation3 + $0x530] sm:$0xff] }
  0xfd   : > { %5899 = vmatprep.subr.bf16.mxu0 %v5898_v56  ;;  %v870_v56 = vrot.slane %v795_v47, 2  ;;  %v5928_v60 = vpack.c.bf16 %v836_v55, %v834_v52  ;;  %v1099_v47 = vld [vmem:[#allocation3 + $0x618] sm:$0xff]  ;;  %v868_v52 = vrot.slane %v7682_v36, 2  ;;  %v1102_v36 = vld [vmem:[#allocation3 + $0x630] sm:$0xff] }
  0xfe   : > { %v5954_v55 = vpack.c.bf16 %v1099_v47, %v1097_v45  ;;  %v1118_v45 = vld [vmem:[#allocation3 + $0x6b0] sm:$0xff] }
  0xff   : > { %746 = vmatmul.mubr.f32.gmra.mrb[4].mxu0 %v7691_v50  ;;  %v872_v3 = vsel %vm866_vm1, %v870_v56, %v871_v57  ;;  %v1096_v56 = vld [vmem:[#allocation3 + $0x600] sm:$0xff] }
 0x100   : > { %5901 = vmatpush1.bf16.msra.mxu0 %v5900_v61  ;;  %751 = vmatprep.mubr.f32.mxu0 %v7694_v53  ;;  %v5930_v61 = vpack.c.bf16 %v841_v59, %v839_v58  ;;  %v1098_v58 = vld [vmem:[#allocation3 + $0x610] sm:$0xff]  ;;  %v7801_v59 = vrot.slane %v7686_v40, 2  ;;  %v879_v40 = vrot.slane %v7694_v53, 2  ;;  %v883_v53 = vrot.slane %v7706_v1, 2 }
 0x101   : > { %5903 = vmatprep.subr.bf16.mxu0 %v5902_v63  ;;  %v838_v63 = vld [vmem:[#allocation3 + $0x540] sm:$0xff] }
 0x102   : > { %v880_v41 = vsel %vm866_vm1, %v7801_v59, %v879_v40 }
 0x103   : > { %752 = vmatmul.mubr.f32.gmra.mrb[6].mxu0 %v7703_v62 }
 0x104   : > { %5905 = vmatpush1.bf16.msra.mxu0 %v5904_v6  ;;  %757 = vmatprep.mubr.f32.mxu0 %v7706_v1  ;;  %v5932_v6 = vpack.c.bf16 %v840_v2, %v838_v63  ;;  %v5956_v2 = vpack.c.bf16 %v1098_v58, %v1096_v56  ;;  %v1113_v1 = vld [vmem:[#allocation3 + $0x688] sm:$0xff]  ;;  %v893_v56 = vrot.slane %v7743_v49, 2  ;;  %v1120_v58 = vld [vmem:[#allocation3 + $0x6c0] sm:$0xff] }
 0x105   : > { %5907 = vmatprep.subr.bf16.mxu0 %v5906_v7  ;;  %v5934_v7 = vpack.c.bf16 %v845_v5, %v843_v46  ;;  %v1100_v5 = vld [vmem:[#allocation3 + $0x620] sm:$0xff] }
 0x107   : > { %758 = vmatmul.mubr.f32.gmra.mrb[8].mxu0 %v7713_v9 }
 0x108   : > { %5909 = vmatpush1.bf16.msra.mxu0 %v5908_v15  ;;  %763 = vmatprep.mubr.f32.mxu0 %v7716_v12  ;;  %v5936_v15 = vpack.c.bf16 %v844_v10, %v842_v8  ;;  %v1107_v8 = vld [vmem:[#allocation3 + $0x658] sm:$0xff]  ;;  %v5960_v10 = vpack.c.bf16 %v1102_v36, %v1100_v5  ;;  %v897_v36 = vrot.slane %v7753_v0, 2 }
 0x109   : > { %5911 = vmatprep.subr.bf16.mxu0 %v5910_v16  ;;  %v5938_v16 = vpack.c.bf16 %v849_v13, %v847_v11  ;;  %v877_v11 = vrot.slane %v7703_v62, 2  ;;  %v881_v62 = vrot.slane %v7713_v9, 2 }
 0x10b   : > { %764 = vmatmul.mubr.f32.gmra.mrb[10].mxu0 %v7723_v21 }
 0x10c   : > { %5913 = vmatpush1.bf16.msra.mxu0 %v5912_v22  ;;  %769 = vmatprep.mubr.f32.mxu0 %v7726_v24  ;;  %v5940_v22 = vpack.c.bf16 %v848_v18, %v846_v17  ;;  %v1111_v17 = vld [vmem:[#allocation3 + $0x678] sm:$0xff] }
 0x10d   : > { %5915 = vmatprep.subr.bf16.mxu0 %v5914_v23  ;;  %v5942_v23 = vpack.c.bf16 %v853_v20, %v851_v19 }
 0x10f   : > { %770 = vmatmul.mubr.f32.gmra.mrb[12].mxu0 %v7733_v33 }
 0x110   : > { %5917 = vmatpush1.bf16.msra.mxu0 %v5916_v29  ;;  %775 = vmatprep.mubr.f32.mxu0 %v7736_v37  ;;  %v5944_v29 = vpack.c.bf16 %v852_v26, %v850_v25  ;;  %v884_v25 = vsel %vm866_vm1, %v879_v40, %v883_v53  ;;  %v887_v26 = vrot.slane %v7716_v12, 2  ;;  %v1119_v12 = vld [vmem:[#allocation3 + $0x6b8] sm:$0xff]  ;;  %v1126_v40 = vld [vmem:[#allocation3 + $0x6f0] sm:$0xff] }
 0x111   : > { %5919 = vmatprep.subr.bf16.mxu0 %v5918_v30  ;;  %v5946_v30 = vpack.c.bf16 %v857_v28, %v855_v27  ;;  %v1115_v27 = vld [vmem:[#allocation3 + $0x698] sm:$0xff] }
 0x112   : > { %v5970_v9 = vpack.c.bf16 %v1115_v27, %v1113_v1  ;;  %v1137_v27 = vld [vmem:[#allocation3 + $0x748] sm:$0xff] }
 0x113   : > { %776 = vmatmul.mubr.f32.gmra.mrb[14].mxu0 %v7743_v49 }
 0x114   : > { %5921 = vmatpush1.bf16.msra.mxu0 %v5920_v38  ;;  %781 = vmatprep.mubr.f32.mxu0 %v7746_v54  ;;  %v5948_v38 = vpack.c.bf16 %v856_v32, %v854_v31  ;;  %v1112_v31 = vld [vmem:[#allocation3 + $0x680] sm:$0xff]  ;;  %v1114_v32 = vld [vmem:[#allocation3 + $0x690] sm:$0xff] }
 0x115   : > { %5923 = vmatprep.subr.bf16.mxu0 %v5922_v39  ;;  %v5950_v39 = vpack.c.bf16 %v861_v35, %v859_v34  ;;  %v888_v34 = vsel %vm866_vm1, %v883_v53, %v887_v26  ;;  %v891_v35 = vrot.slane %v7726_v24, 2  ;;  %v1123_v24 = vld [vmem:[#allocation3 + $0x6d8] sm:$0xff] }
 0x117   : > { %782 = vmatmul.mubr.f32.gmra.mrb[16].mxu0 %v7753_v0  ;;  %v892_v47 = vsel %vm866_vm1, %v887_v26, %v891_v35  ;;  %v901_v0 = vrot.slane %v7763_v14, 2 }
 0x118   : > { %5925 = vmatpush1.bf16.msra.mxu0 %v5924_v48  ;;  %787 = vmatprep.mubr.f32.mxu0 %v7756_v4  ;;  %v5952_v48 = vpack.c.bf16 %v860_v43, %v858_v42  ;;  %v889_v43 = vrot.slane %v7733_v33, 2 }
 0x119   : > { %5927 = vmatprep.subr.bf16.mxu0 %v5926_v51  ;;  %v867_v51 = vrot.slane %v794_v44, 2  ;;  %v1116_v44 = vld [vmem:[#allocation3 + $0x6a0] sm:$0xff] }
 0x11a   : > { %v894_v5 = vsel %vm866_vm1, %v889_v43, %v893_v56 }
 0x11b   : > { %788 = vmatmul.mubr.f32.gmra.mrb[18].mxu0 %v7763_v14  ;;  %v869_v63 = vsel %vm866_vm1, %v867_v51, %v868_v52  ;;  %v1121_v51 = vld [vmem:[#allocation3 + $0x6c8] sm:$0xff] }
 0x11c   : > { %5929 = vmatpush1.bf16.msra.mxu0 %v5928_v60  ;;  %993 = vmatprep.mubr.f32.mxu0 %v872_v3  ;;  %v1101_v60 = vld [vmem:[#allocation3 + $0x628] sm:$0xff]  ;;  %v7805_v3 = vrot.slane %v7691_v50, 2  ;;  %v5978_v33 = vpack.c.bf16 %v1123_v24, %v1121_v51  ;;  %v1146_v51 = vld [vmem:[#allocation3 + $0x790] sm:$0xff] }
 0x11d   : > { %5931 = vmatprep.subr.bf16.mxu0 %v5930_v61  ;;  %v1103_v61 = vld [vmem:[#allocation3 + $0x638] sm:$0xff]  ;;  %v1149_v24 = vld [vmem:[#allocation3 + $0x7a8] sm:$0xff] }
 0x11e   : > { %v5958_v46 = vpack.c.bf16 %v1103_v61, %v1101_v60  ;;  %v874_v50 = vsel %vm866_vm1, %v868_v52, %v7805_v3  ;;  %v878_v19 = vsel %vm866_vm1, %v7805_v3, %v877_v11  ;;  %v5976_v52 = vpack.c.bf16 %v1118_v45, %v1116_v44  ;;  %v1122_v60 = vld [vmem:[#allocation3 + $0x6d0] sm:$0xff]  ;;  %v1147_v44 = vld [vmem:[#allocation3 + $0x798] sm:$0xff] }
 0x120   : > { %5933 = vmatpush1.bf16.msra.mxu0 %v5932_v6  ;;  %v876_v6 = vsel %vm866_vm1, %v871_v57, %v7801_v59  ;;  %v1109_v57 = vld [vmem:[#allocation3 + $0x668] sm:$0xff] }
 0x121   : > { %5935 = vmatprep.subr.bf16.mxu0 %v5934_v7  ;;  %v1105_v7 = vld [vmem:[#allocation3 + $0x648] sm:$0xff]  ;;  %v5966_v20 = vpack.c.bf16 %v1111_v17, %v1109_v57  ;;  %v796_v57 = vld [vmem:[%s7671_s14 + $0xa0] sm:$0x3] }
 0x122   : > { %v5962_v13 = vpack.c.bf16 %v1107_v8, %v1105_v7  ;;  %v903_v8 = vrot.slane %v7756_v4, 2  ;;  %v1133_v17 = vld [vmem:[#allocation3 + $0x728] sm:$0xff] }
 0x124   : > { %5937 = vmatpush1.bf16.msra.mxu0 %v5936_v15  ;;  %v1104_v15 = vld [vmem:[#allocation3 + $0x640] sm:$0xff] }
 0x125   : > { %5939 = vmatprep.subr.bf16.mxu0 %v5938_v16  ;;  %v1106_v16 = vld [vmem:[#allocation3 + $0x650] sm:$0xff] }
 0x126   : > { %v5964_v18 = vpack.c.bf16 %v1106_v16, %v1104_v15  ;;  %v1128_v16 = vld [vmem:[#allocation3 + $0x700] sm:$0xff] }
 0x128   : > { %5941 = vmatpush1.bf16.msra.mxu0 %v5940_v22  ;;  %v1108_v22 = vld [vmem:[#allocation3 + $0x660] sm:$0xff] }
 0x129   : > { %5943 = vmatprep.subr.bf16.mxu0 %v5942_v23  ;;  %v1110_v23 = vld [vmem:[#allocation3 + $0x670] sm:$0xff] }
 0x12a   : > { %v5968_v28 = vpack.c.bf16 %v1110_v23, %v1108_v22  ;;  %v905_v22 = vrot.slane %v796_v57, 2  ;;  %v1132_v23 = vld [vmem:[#allocation3 + $0x720] sm:$0xff]  ;;  %v1400_v57 = vld [vmem:[#allocation3 + $0x838] sm:$0xff] }
 0x12c   : > { %5945 = vmatpush1.bf16.msra.mxu0 %v5944_v29  ;;  %v882_v29 = vsel %vm866_vm1, %v877_v11, %v881_v62 }
 0x12d   : > { %5947 = vmatprep.subr.bf16.mxu0 %v5946_v30  ;;  %v885_v30 = vrot.slane %v7723_v21, 2 }
 0x12f   : > { %v886_v42 = vsel %vm866_vm1, %v881_v62, %v885_v30 }
 0x130   : > { %5949 = vmatpush1.bf16.msra.mxu0 %v5948_v38  ;;  %v1117_v38 = vld [vmem:[#allocation3 + $0x6a8] sm:$0xff] }
 0x131   : > { %5951 = vmatprep.subr.bf16.mxu0 %v5950_v39  ;;  %v5972_v39 = vpack.c.bf16 %v1114_v32, %v1112_v31  ;;  %v5974_v21 = vpack.c.bf16 %v1119_v12, %v1117_v38  ;;  %v1136_v31 = vld [vmem:[#allocation3 + $0x740] sm:$0xff]  ;;  %v1138_v32 = vld [vmem:[#allocation3 + $0x750] sm:$0xff]  ;;  %v1143_v38 = vld [vmem:[#allocation3 + $0x778] sm:$0xff] }
 0x132   : > { %v5996_v12 = vpack.c.bf16 %v1138_v32, %v1136_v31  ;;  %v1401_v31 = vld [vmem:[#allocation3 + $0x840] sm:$0xff]  ;;  %v1403_v32 = vld [vmem:[#allocation3 + $0x850] sm:$0xff] }
 0x134   : > { %5953 = vmatpush1.bf16.msra.mxu0 %v5952_v48  ;;  %v895_v48 = vrot.slane %v7736_v37, 2  ;;  %v1127_v37 = vld [vmem:[#allocation3 + $0x6f8] sm:$0xff] }
 0x135   : > { %5955 = vmatprep.subr.bf16.mxu0 %v5954_v55  ;;  %v890_v55 = vsel %vm866_vm1, %v885_v30, %v889_v43  ;;  %v906_v30 = vsel %vm866_vm1, %v901_v0, %v905_v22  ;;  %v1142_v43 = vld [vmem:[#allocation3 + $0x770] sm:$0xff]  ;;  %v1397_v22 = vld [vmem:[#allocation3 + $0x820] sm:$0xff] }
 0x136   : > { %v896_v61 = vsel %vm866_vm1, %v891_v35, %v895_v48  ;;  %v1141_v35 = vld [vmem:[#allocation3 + $0x768] sm:$0xff] }
 0x137   : > { %994 = vmatmul.mubr.f32.vlgmr.msra.gmra.mrb[0].mxu0 %v869_v63  ;;  %v899_v63 = vrot.slane %v7746_v54, 2  ;;  %v1129_v54 = vld [vmem:[#allocation3 + $0x708] sm:$0xff] }
 0x138   : > { %5957 = vmatpush1.bf16.msra.mxu0 %v5956_v2  ;;  %999 = vmatprep.mubr.f32.mxu0 %v876_v6  ;;  %v1125_v2 = vld [vmem:[#allocation3 + $0x6e8] sm:$0xff]  ;;  %v1124_v6 = vld [vmem:[#allocation3 + $0x6e0] sm:$0xff] }
 0x139   : > { %5959 = vmatprep.subr.bf16.mxu0 %v5958_v46  ;;  %v5980_v46 = vpack.c.bf16 %v1122_v60, %v1120_v58  ;;  %v5982_v49 = vpack.c.bf16 %v1127_v37, %v1125_v2  ;;  %v900_v7 = vsel %vm866_vm1, %v895_v48, %v899_v63  ;;  %v5984_v11 = vpack.c.bf16 %v1126_v40, %v1124_v6  ;;  %v1144_v48 = vld [vmem:[#allocation3 + $0x780] sm:$0xff]  ;;  %v1150_v58 = vld [vmem:[#allocation3 + $0x7b0] sm:$0xff]  ;;  %v1153_v60 = vld [vmem:[#allocation3 + $0x7c8] sm:$0xff] }
 0x13a   : > { %v904_v53 = vsel %vm866_vm1, %v899_v63, %v903_v8  ;;  %v1152_v37 = vld [vmem:[#allocation3 + $0x7c0] sm:$0xff] }
 0x13b   : > { %1000 = vmatmul.mubr.f32.gmra.mrb[2].mxu0 %v874_v50  ;;  %v797_v50 = vld [vmem:[%s7671_s14 + $0xa8] sm:$0x3]  ;;  %v1156_v40 = vld [vmem:[#allocation3 + $0x7e0] sm:$0xff] }
 0x13c   : > { %5961 = vmatpush1.bf16.msra.mxu0 %v5960_v10  ;;  %1005 = vmatprep.mubr.f32.mxu0 %v880_v41  ;;  %v1131_v10 = vld [vmem:[#allocation3 + $0x718] sm:$0xff]  ;;  %v1130_v41 = vld [vmem:[#allocation3 + $0x710] sm:$0xff]  ;;  %v907_v4 = vrot.slane %v797_v50, 2 }
 0x13d   : > { %5963 = vmatprep.subr.bf16.mxu0 %v5962_v13  ;;  %v898_v13 = vsel %vm866_vm1, %v893_v56, %v897_v36  ;;  %v5986_v15 = vpack.c.bf16 %v1131_v10, %v1129_v54  ;;  %v5988_v62 = vpack.c.bf16 %v1130_v41, %v1128_v16  ;;  %v1394_v54 = vld [vmem:[#allocation3 + $0x808] sm:$0xff]  ;;  %v1396_v10 = vld [vmem:[#allocation3 + $0x818] sm:$0xff]  ;;  %v1395_v16 = vld [vmem:[#allocation3 + $0x810] sm:$0xff] }
 0x13e   : > { %v908_v26 = vsel %vm866_vm1, %v903_v8, %v907_v4  ;;  %v1074_v8 = vld [vmem:[%s7671_s14 + $0x10] sm:$0xfc]  ;;  %v7852_v50 = vld [vmem:[%s7671_s14 + $0x38] sm:$0xff]  ;;  %v1398_v4 = vld [vmem:[#allocation3 + $0x828] sm:$0xff] }
 0x13f   : > { %1006 = vmatmul.mubr.f32.gmra.mrb[4].mxu0 %v878_v19  ;;  %v1075_v19 = vld [vmem:[%s7671_s14 + $0x18] sm:$0xfc]  ;;  %v1190_v41 = vrot.slane %v7852_v50, 2 }
 0x140   : > { %5965 = vmatpush1.bf16.msra.mxu0 %v5964_v18  ;;  %1011 = vmatprep.mubr.f32.mxu0 %v884_v25  ;;  %v1135_v18 = vld [vmem:[#allocation3 + $0x738] sm:$0xff]  ;;  %v1134_v25 = vld [vmem:[#allocation3 + $0x730] sm:$0xff]  ;;  %v1185_v1 = vrot.slane %v1075_v19, 2 }
 0x141   : > { %5967 = vmatprep.subr.bf16.mxu0 %v5966_v20  ;;  %v902_v20 = vsel %vm866_vm1, %v897_v36, %v901_v0  ;;  %v5990_v14 = vpack.c.bf16 %v1135_v18, %v1133_v17  ;;  %v1159_v36 = vld [vmem:[#allocation3 + $0x7f8] sm:$0xff]  ;;  %v6018_v0 = vpack.c.bf16 %v1396_v10, %v1394_v54  ;;  %v7859_v17 = vld [vmem:[%s7671_s14 + $0x48] sm:$0xff]  ;;  %v1413_v10 = vld [vmem:[#allocation3 + $0x8a0] sm:$0xff] }
 0x143   : > { %1012 = vmatmul.mubr.f32.gmra.mrb[6].mxu0 %v882_v29  ;;  %v5992_v29 = vpack.c.bf16 %v1134_v25, %v1132_v23  ;;  %v1191_v23 = vsel %vm866_vm1, %v7801_v59, %v1190_v41  ;;  %v1194_v25 = vrot.slane %v7859_v17, 2 }
 0x144   : > { %5969 = vmatpush1.bf16.msra.mxu0 %v5968_v28  ;;  %1017 = vmatprep.mubr.f32.mxu0 %v888_v34  ;;  %v1139_v28 = vld [vmem:[#allocation3 + $0x758] sm:$0xff]  ;;  %v1187_v34 = vsel %vm866_vm1, %v1185_v1, %v7801_v59  ;;  %v1402_v1 = vld [vmem:[#allocation3 + $0x848] sm:$0xff] }
 0x145   : > { %5971 = vmatprep.subr.bf16.mxu0 %v5970_v9  ;;  %v5994_v9 = vpack.c.bf16 %v1139_v28, %v1137_v27  ;;  %v1404_v27 = vld [vmem:[#allocation3 + $0x858] sm:$0xff] }
 0x146   : > { %v7871_v28 = vld [vmem:[%s7671_s14 + $0x58] sm:$0xff]  ;;  %v6026_v59 = vpack.c.bf16 %v1404_v27, %v1402_v1  ;;  %v1422_v1 = vld [vmem:[#allocation3 + $0x8e8] sm:$0xff] }
 0x147   : > { %1018 = vmatmul.mubr.f32.gmra.mrb[8].mxu0 %v886_v42  ;;  %v1140_v42 = vld [vmem:[#allocation3 + $0x760] sm:$0xff]  ;;  %v1424_v27 = vld [vmem:[#allocation3 + $0x8f8] sm:$0xff] }
 0x148   : > { %5973 = vmatpush1.bf16.msra.mxu0 %v5972_v39  ;;  %1023 = vmatprep.mubr.f32.mxu0 %v892_v47  ;;  %v5998_v39 = vpack.c.bf16 %v1143_v38, %v1141_v35  ;;  %v6000_v45 = vpack.c.bf16 %v1142_v43, %v1140_v42  ;;  %v1198_v35 = vrot.slane %v7871_v28, 2  ;;  %v7879_v38 = vld [vmem:[%s7671_s14 + $0x50] sm:$0xff]  ;;  %v7882_v42 = vld [vmem:[%s7671_s14 + $0x68] sm:$0xff] }
 0x149   : > { %5975 = vmatprep.subr.bf16.mxu0 %v5974_v21  ;;  %v1145_v21 = vld [vmem:[#allocation3 + $0x788] sm:$0xff] }
 0x14a   : > { %v6002_v47 = vpack.c.bf16 %v1147_v44, %v1145_v21  ;;  %v1196_v21 = vrot.slane %v7879_v38, 2 }
 0x14b   : > { %1024 = vmatmul.mubr.f32.gmra.mrb[10].mxu0 %v890_v55  ;;  %v6004_v55 = vpack.c.bf16 %v1146_v51, %v1144_v48  ;;  %v1199_v48 = vsel %vm866_vm1, %v1194_v25, %v1198_v35  ;;  %v1202_v51 = vrot.slane %v7882_v42, 2 }
 0x14c   : > { %5977 = vmatpush1.bf16.msra.mxu0 %v5976_v52  ;;  %1029 = vmatprep.mubr.f32.mxu0 %v896_v61  ;;  %v1151_v52 = vld [vmem:[#allocation3 + $0x7b8] sm:$0xff] }
 0x14d   : > { %5979 = vmatprep.subr.bf16.mxu0 %v5978_v33  ;;  %v6006_v56 = vpack.c.bf16 %v1151_v52, %v1149_v24  ;;  %v1148_v33 = vld [vmem:[#allocation3 + $0x7a0] sm:$0xff]  ;;  %v1155_v61 = vld [vmem:[#allocation3 + $0x7d8] sm:$0xff]  ;;  %v1410_v52 = vld [vmem:[#allocation3 + $0x888] sm:$0xff] }
 0x14e   : > { %v6008_v63 = vpack.c.bf16 %v1150_v58, %v1148_v33  ;;  %v6010_v2 = vpack.c.bf16 %v1155_v61, %v1153_v60  ;;  %v7889_v24 = vld [vmem:[%s7671_s14 + $0x60] sm:$0xff] }
 0x14f   : > { %1030 = vmatmul.mubr.f32.gmra.mrb[12].mxu0 %v894_v5  ;;  %v1157_v5 = vld [vmem:[#allocation3 + $0x7e8] sm:$0xff]  ;;  %v1200_v60 = vrot.slane %v7889_v24, 2 }
 0x150   : > { %5981 = vmatpush1.bf16.msra.mxu0 %v5980_v46  ;;  %1035 = vmatprep.mubr.f32.mxu0 %v900_v7  ;;  %v1154_v46 = vld [vmem:[#allocation3 + $0x7d0] sm:$0xff]  ;;  %v6014_v6 = vpack.c.bf16 %v1159_v36, %v1157_v5  ;;  %v1414_v36 = vld [vmem:[#allocation3 + $0x8a8] sm:$0xff] }
 0x151   : > { %5983 = vmatprep.subr.bf16.mxu0 %v5982_v49  ;;  %v6012_v49 = vpack.c.bf16 %v1154_v46, %v1152_v37  ;;  %v1158_v7 = vld [vmem:[#allocation3 + $0x7f0] sm:$0xff]  ;;  %v1203_v37 = vsel %vm866_vm1, %v1198_v35, %v1202_v51 }
 0x152   : > { %v7899_v5 = vld [vmem:[%s7671_s14 + $0x70] sm:$0xff] }
 0x153   : > { %1036 = vmatmul.mubr.f32.gmra.mrb[14].mxu0 %v898_v13  ;;  %v1182_v13 = vrot.slane %v1074_v8, 2  ;;  %v1204_v8 = vrot.slane %v7899_v5, 2 }
 0x154   : > { %5985 = vmatpush1.bf16.msra.mxu0 %v5984_v11  ;;  %1041 = vmatprep.mubr.f32.mxu0 %v904_v53  ;;  %v6016_v11 = vpack.c.bf16 %v1158_v7, %v1156_v40  ;;  %v7856_v53 = vld [vmem:[%s7671_s14 + $0x30] sm:$0xff]  ;;  %v1201_v7 = vsel %vm866_vm1, %v1196_v21, %v1200_v60 }
 0x155   : > { %5987 = vmatprep.subr.bf16.mxu0 %v5986_v15  ;;  %v1393_v15 = vld [vmem:[#allocation3 + $0x800] sm:$0xff]  ;;  %v1184_v18 = vsel %vm866_vm1, %v1182_v13, %v7805_v3 }
 0x156   : > { %v6020_v19 = vpack.c.bf16 %v1395_v16, %v1393_v15  ;;  %v7909_v15 = vld [vmem:[%s7671_s14 + $0x80] sm:$0xff]  ;;  %v1418_v16 = vld [vmem:[#allocation3 + $0x8c8] sm:$0xff] }
 0x157   : > { %1042 = vmatmul.mubr.f32.gmra.mrb[16].mxu0 %v902_v20  ;;  %v6022_v20 = vpack.c.bf16 %v1400_v57, %v1398_v4  ;;  %v7912_v4 = vld [vmem:[%s7671_s14 + $0x98] sm:$0xff] }
 0x158   : > { %5989 = vmatpush1.bf16.msra.mxu0 %v5988_v62  ;;  %1047 = vmatprep.mubr.f32.mxu0 %v908_v26  ;;  %v1188_v62 = vrot.slane %v7856_v53, 2  ;;  %v7868_v26 = vld [vmem:[%s7671_s14 + $0x40] sm:$0xff] }
 0x159   : > { %5991 = vmatprep.subr.bf16.mxu0 %v5990_v14  ;;  %v1399_v14 = vld [vmem:[#allocation3 + $0x830] sm:$0xff] }
 0x15b   : > { %1048 = vmatmul.mubr.f32.gmra.mrb[18].mxu0 %v906_v30  ;;  %v1189_v30 = vsel %vm866_vm1, %v7805_v3, %v1188_v62  ;;  %v6028_v3 = vpack.c.bf16 %v1403_v32, %v1401_v31  ;;  %v6046_v31 = vpack.c.bf16 %v1424_v27, %v1422_v1  ;;  %v1421_v32 = vld [vmem:[#allocation3 + $0x8e0] sm:$0xff]  ;;  %v1439_v1 = vld [vmem:[#allocation3 + $0x970] sm:$0xff]  ;;  %v1442_v27 = vld [vmem:[#allocation3 + $0x988] sm:$0xff] }
 0x15c   : > { %5993 = vmatpush1.bf16.msra.mxu0 %v5992_v29  ;;  %1308 = vmatprep.mubr.f32.mxu0 %v1187_v34  ;;  %v6024_v29 = vpack.c.bf16 %v1399_v14, %v1397_v22  ;;  %v1195_v34 = vsel %vm866_vm1, %v1190_v41, %v1194_v25  ;;  %v1420_v41 = vld [vmem:[#allocation3 + $0x8d8] sm:$0xff]  ;;  %v1419_v22 = vld [vmem:[#allocation3 + $0x8d0] sm:$0xff] }
 0x15d   : > { %5995 = vmatprep.subr.bf16.mxu0 %v5994_v9  ;;  %v1192_v9 = vrot.slane %v7868_v26, 2  ;;  %v7919_v25 = vld [vmem:[%s7671_s14 + $0x90] sm:$0xff] }
 0x15f   : > { %v1193_v43 = vsel %vm866_vm1, %v1188_v62, %v1192_v9  ;;  %v1197_v58 = vsel %vm866_vm1, %v1192_v9, %v1196_v21  ;;  %v6042_v62 = vpack.c.bf16 %v1420_v41, %v1418_v16  ;;  %v1095_v21 = vld [vmem:[%s7671_s14 + $0xb8] sm:$0x3] }
 0x160   : > { %5997 = vmatpush1.bf16.msra.mxu0 %v5996_v12  ;;  %v1406_v12 = vld [vmem:[#allocation3 + $0x868] sm:$0xff] }
 0x161   : > { %5999 = vmatprep.subr.bf16.mxu0 %v5998_v39  ;;  %v1408_v39 = vld [vmem:[#allocation3 + $0x878] sm:$0xff] }
 0x162   : > { %v6030_v44 = vpack.c.bf16 %v1408_v39, %v1406_v12  ;;  %v7929_v39 = vld [vmem:[%s7671_s14 + $0xa0] sm:$0xff] }
 0x164   : > { %6001 = vmatpush1.bf16.msra.mxu0 %v6000_v45  ;;  %v1405_v45 = vld [vmem:[#allocation3 + $0x860] sm:$0xff] }
 0x165   : > { %6003 = vmatprep.subr.bf16.mxu0 %v6002_v47  ;;  %v1407_v47 = vld [vmem:[#allocation3 + $0x870] sm:$0xff] }
 0x166   : > { %v6032_v33 = vpack.c.bf16 %v1407_v47, %v1405_v45  ;;  %v1216_v47 = vrot.slane %v7929_v39, 2 }
 0x168   : > { %6005 = vmatpush1.bf16.msra.mxu0 %v6004_v55  ;;  %v1412_v55 = vld [vmem:[#allocation3 + $0x898] sm:$0xff] }
 0x169   : > { %6007 = vmatprep.subr.bf16.mxu0 %v6006_v56  ;;  %v7892_v56 = vld [vmem:[%s7671_s14 + $0x78] sm:$0xff]  ;;  %v6034_v61 = vpack.c.bf16 %v1412_v55, %v1410_v52  ;;  %v1427_v52 = vld [vmem:[#allocation3 + $0x910] sm:$0xff] }
 0x16a   : > { %v1206_v46 = vrot.slane %v7892_v56, 2 }
 0x16c   : > { %6009 = vmatpush1.bf16.msra.mxu0 %v6008_v63  ;;  %v1409_v63 = vld [vmem:[#allocation3 + $0x880] sm:$0xff]  ;;  %v1207_v13 = vsel %vm866_vm1, %v1202_v51, %v1206_v46 }
 0x16d   : > { %6011 = vmatprep.subr.bf16.mxu0 %v6010_v2  ;;  %v1411_v2 = vld [vmem:[#allocation3 + $0x890] sm:$0xff]  ;;  %v1425_v51 = vld [vmem:[#allocation3 + $0x900] sm:$0xff] }
 0x16e   : > { %v6036_v40 = vpack.c.bf16 %v1411_v2, %v1409_v63  ;;  %v1390_v63 = vld [vmem:[%s7671_s14 + $0x18] sm:$0xf8]  ;;  %v6052_v2 = vpack.c.bf16 %v1427_v52, %v1425_v51  ;;  %v1449_v51 = vld [vmem:[#allocation3 + $0x9c0] sm:$0xff]  ;;  %v1451_v52 = vld [vmem:[#allocation3 + $0x9d0] sm:$0xff] }
 0x170   : > { %6013 = vmatpush1.bf16.msra.mxu0 %v6012_v49  ;;  %v1416_v49 = vld [vmem:[#allocation3 + $0x8b8] sm:$0xff] }
 0x171   : > { %6015 = vmatprep.subr.bf16.mxu0 %v6014_v6  ;;  %v7902_v6 = vld [vmem:[%s7671_s14 + $0x88] sm:$0xff]  ;;  %v6038_v54 = vpack.c.bf16 %v1416_v49, %v1414_v36  ;;  %v1429_v49 = vld [vmem:[#allocation3 + $0x920] sm:$0xff] }
 0x174   : > { %6017 = vmatpush1.bf16.msra.mxu0 %v6016_v11  ;;  %v1415_v11 = vld [vmem:[#allocation3 + $0x8b0] sm:$0xff] }
 0x175   : > { %6019 = vmatprep.subr.bf16.mxu0 %v6018_v0  ;;  %v1210_v0 = vrot.slane %v7902_v6, 2  ;;  %v6040_v57 = vpack.c.bf16 %v1415_v11, %v1413_v10  ;;  %v1434_v11 = vld [vmem:[#allocation3 + $0x948] sm:$0xff] }
 0x177   : > { %1309 = vmatmul.mubr.f32.vlgmr.msra.gmra.mrb[0].mxu0 %v1184_v18  ;;  %v1205_v18 = vsel %vm866_vm1, %v1200_v60, %v1204_v8  ;;  %v1211_v14 = vsel %vm866_vm1, %v1206_v46, %v1210_v0  ;;  %v1430_v60 = vld [vmem:[#allocation3 + $0x928] sm:$0xff] }
 0x178   : > { %6021 = vmatpush1.bf16.msra.mxu0 %v6020_v19  ;;  %1314 = vmatprep.mubr.f32.mxu0 %v1191_v23  ;;  %v1208_v19 = vrot.slane %v7909_v15, 2  ;;  %v1214_v23 = vrot.slane %v7912_v4, 2 }
 0x179   : > { %6023 = vmatprep.subr.bf16.mxu0 %v6022_v20  ;;  %v1417_v20 = vld [vmem:[#allocation3 + $0x8c0] sm:$0xff] }
 0x17a   : > { %v1209_v9 = vsel %vm866_vm1, %v1204_v8, %v1208_v19  ;;  %v1215_v35 = vsel %vm866_vm1, %v1210_v0, %v1214_v23  ;;  %v1465_v8 = vrot.slane %v1390_v63, 3  ;;  %v1455_v63 = vld [vmem:[#allocation3 + $0x9f0] sm:$0xff] }
 0x17b   : > { %1315 = vmatmul.mubr.f32.gmra.mrb[2].mxu0 %v1189_v30  ;;  %v6044_v30 = vpack.c.bf16 %v1419_v22, %v1417_v20  ;;  %v1440_v20 = vld [vmem:[#allocation3 + $0x978] sm:$0xff] }
 0x17c   : > { %6025 = vmatpush1.bf16.msra.mxu0 %v6024_v29  ;;  %1320 = vmatprep.mubr.f32.mxu0 %v1195_v34  ;;  %v7922_v29 = vld [vmem:[%s7671_s14 + $0xa8] sm:$0xff]  ;;  %v1423_v34 = vld [vmem:[#allocation3 + $0x8f0] sm:$0xff] }
 0x17d   : > { %6027 = vmatprep.subr.bf16.mxu0 %v6026_v59  ;;  %v1212_v59 = vrot.slane %v7919_v25, 2  ;;  %v1218_v12 = vrot.slane %v7922_v29, 2 }
 0x17f   : > { %1321 = vmatmul.mubr.f32.gmra.mrb[4].mxu0 %v1193_v43  ;;  %v1428_v43 = vld [vmem:[#allocation3 + $0x918] sm:$0xff]  ;;  %v1213_v45 = vsel %vm866_vm1, %v1208_v19, %v1212_v59  ;;  %v1219_v55 = vsel %vm866_vm1, %v1214_v23, %v1218_v12  ;;  %v1437_v23 = vld [vmem:[#allocation3 + $0x960] sm:$0xff] }
 0x180   : > { %6029 = vmatpush1.bf16.msra.mxu0 %v6028_v3  ;;  %1326 = vmatprep.mubr.f32.mxu0 %v1199_v48  ;;  %v1426_v3 = vld [vmem:[#allocation3 + $0x908] sm:$0xff] }
 0x181   : > { %6031 = vmatprep.subr.bf16.mxu0 %v6030_v44  ;;  %v6048_v44 = vpack.c.bf16 %v1423_v34, %v1421_v32  ;;  %v6050_v48 = vpack.c.bf16 %v1428_v43, %v1426_v3  ;;  %v1443_v32 = vld [vmem:[#allocation3 + $0x990] sm:$0xff]  ;;  %v1446_v34 = vld [vmem:[#allocation3 + $0x9a8] sm:$0xff]  ;;  %v1445_v43 = vld [vmem:[#allocation3 + $0x9a0] sm:$0xff] }
 0x183   : > { %1327 = vmatmul.mubr.f32.gmra.mrb[6].mxu0 %v1197_v58  ;;  %v1094_v58 = vld [vmem:[%s7671_s14 + $0xb0] sm:$0x3] }
 0x184   : > { %6033 = vmatpush1.bf16.msra.mxu0 %v6032_v33  ;;  %1332 = vmatprep.mubr.f32.mxu0 %v1203_v37  ;;  %v1222_v33 = vrot.slane %v1095_v21, 2  ;;  %v1217_v37 = vsel %vm866_vm1, %v1212_v59, %v1216_v47  ;;  %v1220_v46 = vrot.slane %v1094_v58, 2  ;;  %v1447_v21 = vld [vmem:[#allocation3 + $0x9b0] sm:$0xff]  ;;  %v6076_v58 = vpack.c.bf16 %v1451_v52, %v1449_v51 }
 0x185   : > { %6035 = vmatprep.subr.bf16.mxu0 %v6034_v61  ;;  %v1432_v61 = vld [vmem:[#allocation3 + $0x938] sm:$0xff]  ;;  %v1482_v52 = vrot.slane %v7882_v42, 3 }
 0x186   : > { %v6054_v36 = vpack.c.bf16 %v1432_v61, %v1430_v60  ;;  %v1221_v16 = vsel %vm866_vm1, %v1216_v47, %v1220_v46  ;;  %v6072_v47 = vpack.c.bf16 %v1447_v21, %v1445_v43  ;;  %v1453_v61 = vld [vmem:[#allocation3 + $0x9e0] sm:$0xff]  ;;  %v1676_v46 = vld [vmem:[#allocation3 + $0xa18] sm:$0xff] }
 0x187   : > { %1333 = vmatmul.mubr.f32.gmra.mrb[8].mxu0 %v1201_v7  ;;  %v1223_v7 = vsel %vm866_vm1, %v1218_v12, %v1222_v33  ;;  %v1456_v33 = vld [vmem:[#allocation3 + $0x9f8] sm:$0xff] }
 0x188   : > { %6037 = vmatpush1.bf16.msra.mxu0 %v6036_v40  ;;  %1338 = vmatprep.mubr.f32.mxu0 %v1207_v13  ;;  %v1431_v40 = vld [vmem:[#allocation3 + $0x930] sm:$0xff]  ;;  %v1436_v13 = vld [vmem:[#allocation3 + $0x958] sm:$0xff] }
 0x189   : > { %6039 = vmatprep.subr.bf16.mxu0 %v6038_v54  ;;  %v7940_v54 = vld [vmem:[%s7671_s14 + $0x28] sm:$0xff]  ;;  %v6056_v0 = vpack.c.bf16 %v1431_v40, %v1429_v49  ;;  %v6058_v41 = vpack.c.bf16 %v1436_v13, %v1434_v11  ;;  %v7949_v40 = vld [vmem:[%s7671_s14 + $0x20] sm:$0xff]  ;;  %v1675_v13 = vld [vmem:[#allocation3 + $0xa10] sm:$0xff] }
 0x18a   : > { %v1466_v10 = vrot.slane %v7940_v54, 3  ;;  %v1673_v11 = vld [vmem:[#allocation3 + $0xa00] sm:$0xff] }
 0x18b   : > { %1339 = vmatmul.mubr.f32.gmra.mrb[10].mxu0 %v1205_v18  ;;  %v1435_v18 = vld [vmem:[#allocation3 + $0x950] sm:$0xff] }
 0x18c   : > { %6041 = vmatpush1.bf16.msra.mxu0 %v6040_v57  ;;  %1344 = vmatprep.mubr.f32.mxu0 %v1211_v14  ;;  %v1433_v57 = vld [vmem:[#allocation3 + $0x940] sm:$0xff]  ;;  %v1467_v19 = vsel %vm1461_vm2, %v1465_v8, %v1466_v10 }
 0x18d   : > { %6043 = vmatprep.subr.bf16.mxu0 %v6042_v62  ;;  %v1438_v62 = vld [vmem:[#allocation3 + $0x968] sm:$0xff]  ;;  %v6060_v22 = vpack.c.bf16 %v1435_v18, %v1433_v57  ;;  %v6084_v18 = vpack.c.bf16 %v1675_v13, %v1673_v11  ;;  %v1484_v13 = vrot.slane %v7899_v5, 3 }
 0x18e   : > { %v6062_v14 = vpack.c.bf16 %v1440_v20, %v1438_v62  ;;  %v1677_v20 = vld [vmem:[#allocation3 + $0xa20] sm:$0xff] }
 0x18f   : > { %1345 = vmatmul.mubr.f32.gmra.mrb[12].mxu0 %v1209_v9  ;;  %v6064_v9 = vpack.c.bf16 %v1439_v1, %v1437_v23  ;;  %v1474_v23 = vrot.slane %v7859_v17, 3  ;;  %v1682_v1 = vld [vmem:[#allocation3 + $0xa48] sm:$0xff] }
 0x190   : > { %6045 = vmatpush1.bf16.msra.mxu0 %v6044_v30  ;;  %1350 = vmatprep.mubr.f32.mxu0 %v1215_v35  ;;  %v1444_v30 = vld [vmem:[#allocation3 + $0x998] sm:$0xff] }
 0x191   : > { %6047 = vmatprep.subr.bf16.mxu0 %v6046_v31  ;;  %v6066_v59 = vpack.c.bf16 %v1444_v30, %v1442_v27  ;;  %v1441_v31 = vld [vmem:[#allocation3 + $0x980] sm:$0xff]  ;;  %v1448_v35 = vld [vmem:[#allocation3 + $0x9b8] sm:$0xff] }
 0x192   : > { %v6068_v12 = vpack.c.bf16 %v1443_v32, %v1441_v31  ;;  %v6070_v3 = vpack.c.bf16 %v1448_v35, %v1446_v34  ;;  %v1684_v27 = vld [vmem:[#allocation3 + $0xa58] sm:$0xff]  ;;  %v1681_v32 = vld [vmem:[#allocation3 + $0xa40] sm:$0xff]  ;;  %v1683_v34 = vld [vmem:[#allocation3 + $0xa50] sm:$0xff] }
 0x193   : > { %1351 = vmatmul.mubr.f32.gmra.mrb[14].mxu0 %v1213_v45  ;;  %v1452_v45 = vld [vmem:[#allocation3 + $0x9d8] sm:$0xff]  ;;  %v6090_v31 = vpack.c.bf16 %v1684_v27, %v1682_v1  ;;  %v6092_v43 = vpack.c.bf16 %v1683_v34, %v1681_v32  ;;  %v1697_v1 = vld [vmem:[#allocation3 + $0xac0] sm:$0xff]  ;;  %v1699_v27 = vld [vmem:[#allocation3 + $0xad0] sm:$0xff] }
 0x194   : > { %6049 = vmatpush1.bf16.msra.mxu0 %v6048_v44  ;;  %1356 = vmatprep.mubr.f32.mxu0 %v1219_v55  ;;  %v1450_v44 = vld [vmem:[#allocation3 + $0x9c8] sm:$0xff]  ;;  %v6108_v32 = vpack.c.bf16 %v1699_v27, %v1697_v1  ;;  %v1720_v27 = vld [vmem:[#allocation3 + $0xb78] sm:$0xff] }
 0x195   : > { %6051 = vmatprep.subr.bf16.mxu0 %v6050_v48  ;;  %v6074_v48 = vpack.c.bf16 %v1452_v45, %v1450_v44  ;;  %v1454_v55 = vld [vmem:[#allocation3 + $0x9e8] sm:$0xff]  ;;  %v1476_v44 = vrot.slane %v7879_v38, 3 }
 0x196   : > { %v6078_v60 = vpack.c.bf16 %v1456_v33, %v1454_v55  ;;  %v1690_v55 = vld [vmem:[#allocation3 + $0xa88] sm:$0xff]  ;;  %v1692_v33 = vld [vmem:[#allocation3 + $0xa98] sm:$0xff] }
 0x197   : > { %1357 = vmatmul.mubr.f32.gmra.mrb[16].mxu0 %v1217_v37  ;;  %v1674_v37 = vld [vmem:[#allocation3 + $0xa08] sm:$0xff] }
 0x198   : > { %6053 = vmatpush1.bf16.msra.mxu0 %v6052_v2  ;;  %1362 = vmatprep.mubr.f32.mxu0 %v1223_v7  ;;  %v1389_v2 = vld [vmem:[%s7671_s14 + $0x10] sm:$0xf8]  ;;  %v1463_v7 = vrot.slane %v7949_v40, 3  ;;  %v6082_v8 = vpack.c.bf16 %v1676_v46, %v1674_v37  ;;  %v1718_v1 = vld [vmem:[#allocation3 + $0xb68] sm:$0xff] }
 0x199   : > { %6055 = vmatprep.subr.bf16.mxu0 %v6054_v36  ;;  %v6080_v36 = vpack.c.bf16 %v1455_v63, %v1453_v61  ;;  %v1462_v49 = vrot.slane %v1389_v2, 3  ;;  %v1480_v61 = vrot.slane %v7889_v24, 3  ;;  %v6098_v63 = vpack.c.bf16 %v1692_v33, %v1690_v55  ;;  %v1689_v2 = vld [vmem:[#allocation3 + $0xa80] sm:$0xff]  ;;  %v1691_v37 = vld [vmem:[#allocation3 + $0xa90] sm:$0xff] }
 0x19a   : > { %v1705_v33 = vld [vmem:[#allocation3 + $0xb00] sm:$0xff] }
 0x19b   : > { %1363 = vmatmul.mubr.f32.gmra.mrb[18].mxu0 %v1221_v16  ;;  %v1678_v16 = vld [vmem:[#allocation3 + $0xa28] sm:$0xff]  ;;  %v1464_v57 = vsel %vm1461_vm2, %v1462_v49, %v1463_v7  ;;  %v1481_v11 = vsel %vm1461_vm2, %v1476_v44, %v1480_v61 }
 0x19c   : > { %6057 = vmatpush1.bf16.msra.mxu0 %v6056_v0  ;;  %1588 = vmatprep.mubr.f32.mxu0 %v1467_v19  ;;  %v1470_v0 = vrot.slane %v7852_v50, 3  ;;  %v1468_v19 = vrot.slane %v7856_v53, 3  ;;  %v1694_v49 = vld [vmem:[#allocation3 + $0xaa8] sm:$0xff] }
 0x19d   : > { %6059 = vmatprep.subr.bf16.mxu0 %v6058_v41  ;;  %v1680_v41 = vld [vmem:[#allocation3 + $0xa38] sm:$0xff] }
 0x19e   : > { %v6086_v62 = vpack.c.bf16 %v1680_v41, %v1678_v16  ;;  %v1475_v35 = vsel %vm1461_vm2, %v1470_v0, %v1474_v23  ;;  %v1693_v16 = vld [vmem:[#allocation3 + $0xaa0] sm:$0xff]  ;;  %v1695_v41 = vld [vmem:[#allocation3 + $0xab0] sm:$0xff] }
 0x1a0   : > { %6061 = vmatpush1.bf16.msra.mxu0 %v6060_v22  ;;  %v1679_v22 = vld [vmem:[#allocation3 + $0xa30] sm:$0xff] }
 0x1a1   : > { %6063 = vmatprep.subr.bf16.mxu0 %v6062_v14  ;;  %v1471_v14 = vsel %vm1461_vm2, %v1466_v10, %v1470_v0  ;;  %v6088_v30 = vpack.c.bf16 %v1679_v22, %v1677_v20  ;;  %v1478_v10 = vrot.slane %v7871_v28, 3  ;;  %v6104_v20 = vpack.c.bf16 %v1695_v41, %v1693_v16 }
 0x1a2   : > { %v1485_v22 = vsel %vm1461_vm2, %v1480_v61, %v1484_v13  ;;  %v1746_v41 = vrot.slane %v7940_v54, 4 }
 0x1a3   : > { %v1479_v51 = vsel %vm1461_vm2, %v1474_v23, %v1478_v10  ;;  %v1483_v46 = vsel %vm1461_vm2, %v1478_v10, %v1482_v52 }
 0x1a4   : > { %6065 = vmatpush1.bf16.msra.mxu0 %v6064_v9  ;;  %v1469_v9 = vsel %vm1461_vm2, %v1463_v7, %v1468_v19  ;;  %v1696_v7 = vld [vmem:[#allocation3 + $0xab8] sm:$0xff] }
 0x1a5   : > { %6067 = vmatprep.subr.bf16.mxu0 %v6066_v59  ;;  %v1472_v59 = vrot.slane %v7868_v26, 3  ;;  %v6102_v0 = vpack.c.bf16 %v1696_v7, %v1694_v49 }
 0x1a7   : > { %v1473_v21 = vsel %vm1461_vm2, %v1468_v19, %v1472_v59  ;;  %v1698_v19 = vld [vmem:[#allocation3 + $0xac8] sm:$0xff] }
 0x1a8   : > { %6069 = vmatpush1.bf16.msra.mxu0 %v6068_v12  ;;  %v1686_v12 = vld [vmem:[#allocation3 + $0xa68] sm:$0xff] }
 0x1a9   : > { %6071 = vmatprep.subr.bf16.mxu0 %v6070_v3  ;;  %v1688_v3 = vld [vmem:[#allocation3 + $0xa78] sm:$0xff] }
 0x1aa   : > { %v6094_v45 = vpack.c.bf16 %v1688_v3, %v1686_v12  ;;  %v1701_v12 = vld [vmem:[#allocation3 + $0xae0] sm:$0xff]  ;;  %v1703_v3 = vld [vmem:[#allocation3 + $0xaf0] sm:$0xff] }
 0x1ac   : > { %6073 = vmatpush1.bf16.msra.mxu0 %v6072_v47  ;;  %v1685_v47 = vld [vmem:[#allocation3 + $0xa60] sm:$0xff] }
 0x1ad   : > { %6075 = vmatprep.subr.bf16.mxu0 %v6074_v48  ;;  %v1687_v48 = vld [vmem:[#allocation3 + $0xa70] sm:$0xff] }
 0x1b0   : > { %6077 = vmatpush1.bf16.msra.mxu0 %v6076_v58  ;;  %v6096_v58 = vpack.c.bf16 %v1687_v48, %v1685_v47  ;;  %v1392_v47 = vld [vmem:[%s7671_s14 + $0xb8] sm:$0x7]  ;;  %v6112_v48 = vpack.c.bf16 %v1703_v3, %v1701_v12  ;;  %v1721_v12 = vld [vmem:[#allocation3 + $0xb80] sm:$0xff]  ;;  %v1723_v3 = vld [vmem:[#allocation3 + $0xb90] sm:$0xff] }
 0x1b1   : > { %6079 = vmatprep.subr.bf16.mxu0 %v6078_v60  ;;  %v1477_v60 = vsel %vm1461_vm2, %v1472_v59, %v1476_v44  ;;  %v1702_v59 = vld [vmem:[#allocation3 + $0xae8] sm:$0xff]  ;;  %v1502_v61 = vrot.slane %v1392_v47, 3  ;;  %v1725_v47 = vld [vmem:[#allocation3 + $0xba0] sm:$0xff] }
 0x1b2   : > { %v1706_v44 = vld [vmem:[#allocation3 + $0xb08] sm:$0xff] }
 0x1b4   : > { %6081 = vmatpush1.bf16.msra.mxu0 %v6080_v36  ;;  %v1486_v36 = vrot.slane %v7892_v56, 3 }
 0x1b5   : > { %6083 = vmatprep.subr.bf16.mxu0 %v6082_v8  ;;  %v6100_v8 = vpack.c.bf16 %v1691_v37, %v1689_v2  ;;  %v1710_v2 = vld [vmem:[#allocation3 + $0xb28] sm:$0xff]  ;;  %v1712_v37 = vld [vmem:[#allocation3 + $0xb38] sm:$0xff] }
 0x1b7   : > { %1589 = vmatmul.mubr.f32.vlgmr.msra.gmra.mrb[0].mxu0 %v1464_v57  ;;  %v1487_v57 = vsel %vm1461_vm2, %v1482_v52, %v1486_v36  ;;  %v1496_v52 = vrot.slane %v7929_v39, 3 }
 0x1b8   : > { %6085 = vmatpush1.bf16.msra.mxu0 %v6084_v18  ;;  %1594 = vmatprep.mubr.f32.mxu0 %v1471_v14  ;;  %v1490_v18 = vrot.slane %v7902_v6, 3  ;;  %v1488_v14 = vrot.slane %v7909_v15, 3 }
 0x1b9   : > { %6087 = vmatprep.subr.bf16.mxu0 %v6086_v62  ;;  %v1700_v62 = vld [vmem:[#allocation3 + $0xad8] sm:$0xff] }
 0x1ba   : > { %v6106_v23 = vpack.c.bf16 %v1700_v62, %v1698_v19  ;;  %v1489_v34 = vsel %vm1461_vm2, %v1484_v13, %v1488_v14  ;;  %v1711_v13 = vld [vmem:[#allocation3 + $0xb30] sm:$0xff] }
 0x1bb   : > { %1595 = vmatmul.mubr.f32.gmra.mrb[2].mxu0 %v1469_v9  ;;  %v1494_v9 = vrot.slane %v7912_v4, 3 }
 0x1bc   : > { %6089 = vmatpush1.bf16.msra.mxu0 %v6088_v30  ;;  %1600 = vmatprep.mubr.f32.mxu0 %v1475_v35  ;;  %v1491_v30 = vsel %vm1461_vm2, %v1486_v36, %v1490_v18  ;;  %v1492_v35 = vrot.slane %v7919_v25, 3 }
 0x1bd   : > { %6091 = vmatprep.subr.bf16.mxu0 %v6090_v31  ;;  %v1704_v31 = vld [vmem:[#allocation3 + $0xaf8] sm:$0xff] }
 0x1be   : > { %v6110_v10 = vpack.c.bf16 %v1704_v31, %v1702_v59  ;;  %v1497_v49 = vsel %vm1461_vm2, %v1492_v35, %v1496_v52  ;;  %v1717_v59 = vld [vmem:[#allocation3 + $0xb60] sm:$0xff]  ;;  %v1719_v31 = vld [vmem:[#allocation3 + $0xb70] sm:$0xff] }
 0x1bf   : > { %1601 = vmatmul.mubr.f32.gmra.mrb[4].mxu0 %v1473_v21  ;;  %v1498_v21 = vrot.slane %v7922_v29, 3 }
 0x1c0   : > { %6093 = vmatpush1.bf16.msra.mxu0 %v6092_v43  ;;  %1606 = vmatprep.mubr.f32.mxu0 %v1479_v51  ;;  %v1495_v43 = vsel %vm1461_vm2, %v1490_v18, %v1494_v9  ;;  %v1493_v51 = vsel %vm1461_vm2, %v1488_v14, %v1492_v35  ;;  %v1716_v18 = vld [vmem:[#allocation3 + $0xb58] sm:$0xff]  ;;  %v1715_v14 = vld [vmem:[#allocation3 + $0xb50] sm:$0xff]  ;;  %v6128_v35 = vpack.c.bf16 %v1719_v31, %v1717_v59  ;;  %v1980_v59 = vld [vmem:[#allocation3 + $0xc48] sm:$0xff] }
 0x1c1   : > { %6095 = vmatprep.subr.bf16.mxu0 %v6094_v45  ;;  %v1708_v45 = vld [vmem:[#allocation3 + $0xb18] sm:$0xff] }
 0x1c2   : > { %v6114_v55 = vpack.c.bf16 %v1708_v45, %v1706_v44  ;;  %v6132_v44 = vpack.c.bf16 %v1723_v3, %v1721_v12  ;;  %v1984_v12 = vld [vmem:[#allocation3 + $0xc68] sm:$0xff] }
 0x1c3   : > { %1607 = vmatmul.mubr.f32.gmra.mrb[6].mxu0 %v1477_v60  ;;  %v1499_v60 = vsel %vm1461_vm2, %v1494_v9, %v1498_v21  ;;  %v6126_v9 = vpack.c.bf16 %v1720_v27, %v1718_v1  ;;  %v1975_v27 = vld [vmem:[#allocation3 + $0xc20] sm:$0xff] }
 0x1c4   : > { %6097 = vmatpush1.bf16.msra.mxu0 %v6096_v58  ;;  %1612 = vmatprep.mubr.f32.mxu0 %v1483_v46  ;;  %v1707_v58 = vld [vmem:[#allocation3 + $0xb10] sm:$0xff]  ;;  %v1670_v46 = vld [vmem:[%s7671_s14 + $0x18] sm:$0xf0] }
 0x1c5   : > { %6099 = vmatprep.subr.bf16.mxu0 %v6098_v63  ;;  %v1391_v63 = vld [vmem:[%s7671_s14 + $0xb0] sm:$0x7]  ;;  %v6116_v36 = vpack.c.bf16 %v1707_v58, %v1705_v33  ;;  %v1745_v16 = vrot.slane %v1670_v46, 4  ;;  %v1729_v58 = vld [vmem:[#allocation3 + $0xbc0] sm:$0xff] }
 0x1c6   : > { %v1500_v7 = vrot.slane %v1391_v63, 3  ;;  %v1736_v63 = vld [vmem:[#allocation3 + $0xbf8] sm:$0xff]  ;;  %v1733_v46 = vld [vmem:[#allocation3 + $0xbe0] sm:$0xff] }
 0x1c7   : > { %1613 = vmatmul.mubr.f32.gmra.mrb[8].mxu0 %v1481_v11  ;;  %v1709_v11 = vld [vmem:[#allocation3 + $0xb20] sm:$0xff] }
 0x1c8   : > { %6101 = vmatpush1.bf16.msra.mxu0 %v6100_v8  ;;  %1618 = vmatprep.mubr.f32.mxu0 %v1487_v57  ;;  %v6118_v8 = vpack.c.bf16 %v1712_v37, %v1710_v2  ;;  %v1714_v57 = vld [vmem:[#allocation3 + $0xb48] sm:$0xff]  ;;  %v6120_v19 = vpack.c.bf16 %v1711_v13, %v1709_v11  ;;  %v1501_v62 = vsel %vm1461_vm2, %v1496_v52, %v1500_v7  ;;  %v1732_v52 = vld [vmem:[#allocation3 + $0xbd8] sm:$0xff] }
 0x1c9   : > { %6103 = vmatprep.subr.bf16.mxu0 %v6102_v0  ;;  %v1503_v0 = vsel %vm1461_vm2, %v1498_v21, %v1502_v61  ;;  %v1728_v21 = vld [vmem:[#allocation3 + $0xbb8] sm:$0xff]  ;;  %v1734_v61 = vld [vmem:[#allocation3 + $0xbe8] sm:$0xff] }
 0x1ca   : > { %v6142_v37 = vpack.c.bf16 %v1736_v63, %v1734_v61  ;;  %v1972_v7 = vld [vmem:[#allocation3 + $0xc08] sm:$0xff]  ;;  %v1766_v63 = vrot.slane %v7892_v56, 4  ;;  %v1998_v56 = vld [vmem:[#allocation3 + $0xcd8] sm:$0xff] }
 0x1cb   : > { %1619 = vmatmul.mubr.f32.gmra.mrb[10].mxu0 %v1485_v22  ;;  %v1713_v22 = vld [vmem:[#allocation3 + $0xb40] sm:$0xff] }
 0x1cc   : > { %6105 = vmatpush1.bf16.msra.mxu0 %v6104_v20  ;;  %1624 = vmatprep.mubr.f32.mxu0 %v1491_v30  ;;  %v6122_v20 = vpack.c.bf16 %v1716_v18, %v1714_v57  ;;  %v6124_v30 = vpack.c.bf16 %v1715_v14, %v1713_v22  ;;  %v1971_v57 = vld [vmem:[#allocation3 + $0xc00] sm:$0xff]  ;;  %v1973_v18 = vld [vmem:[#allocation3 + $0xc10] sm:$0xff] }
 0x1cd   : > { %6107 = vmatprep.subr.bf16.mxu0 %v6106_v23  ;;  %v1747_v23 = vsel %vm1741_vm3, %v1745_v16, %v1746_v41  ;;  %v6148_v14 = vpack.c.bf16 %v1973_v18, %v1971_v57  ;;  %v1768_v57 = vrot.slane %v7909_v15, 4  ;;  %v1995_v18 = vld [vmem:[#allocation3 + $0xcc0] sm:$0xff] }
 0x1cf   : > { %1625 = vmatmul.mubr.f32.gmra.mrb[12].mxu0 %v1489_v34  ;;  %v1724_v34 = vld [vmem:[#allocation3 + $0xb98] sm:$0xff] }
 0x1d0   : > { %6109 = vmatpush1.bf16.msra.mxu0 %v6108_v32  ;;  %1630 = vmatprep.mubr.f32.mxu0 %v1495_v43  ;;  %v1722_v32 = vld [vmem:[#allocation3 + $0xb88] sm:$0xff] }
 0x1d1   : > { %6111 = vmatprep.subr.bf16.mxu0 %v6110_v10  ;;  %v6130_v10 = vpack.c.bf16 %v1724_v34, %v1722_v32  ;;  %v1726_v43 = vld [vmem:[#allocation3 + $0xba8] sm:$0xff] }
 0x1d2   : > { %v6134_v45 = vpack.c.bf16 %v1728_v21, %v1726_v43  ;;  %v1756_v21 = vrot.slane %v7879_v38, 4 }
 0x1d3   : > { %1631 = vmatmul.mubr.f32.gmra.mrb[14].mxu0 %v1493_v51  ;;  %v1730_v51 = vld [vmem:[#allocation3 + $0xbc8] sm:$0xff] }
 0x1d4   : > { %6113 = vmatpush1.bf16.msra.mxu0 %v6112_v48  ;;  %1636 = vmatprep.mubr.f32.mxu0 %v1499_v60  ;;  %v1727_v48 = vld [vmem:[#allocation3 + $0xbb0] sm:$0xff]  ;;  %v6138_v33 = vpack.c.bf16 %v1732_v52, %v1730_v51  ;;  %v1988_v51 = vld [vmem:[#allocation3 + $0xc88] sm:$0xff] }
 0x1d5   : > { %6115 = vmatprep.subr.bf16.mxu0 %v6114_v55  ;;  %v6136_v55 = vpack.c.bf16 %v1727_v48, %v1725_v47  ;;  %v1731_v60 = vld [vmem:[#allocation3 + $0xbd0] sm:$0xff]  ;;  %v1762_v48 = vrot.slane %v7882_v42, 4  ;;  %v1994_v42 = vld [vmem:[#allocation3 + $0xcb8] sm:$0xff] }
 0x1d6   : > { %v6140_v2 = vpack.c.bf16 %v1731_v60, %v1729_v58  ;;  %v1987_v58 = vld [vmem:[#allocation3 + $0xc80] sm:$0xff]  ;;  %v1989_v60 = vld [vmem:[#allocation3 + $0xc90] sm:$0xff] }
 0x1d7   : > { %1637 = vmatmul.mubr.f32.gmra.mrb[16].mxu0 %v1497_v49  ;;  %v1669_v49 = vld [vmem:[%s7671_s14 + $0x10] sm:$0xf0] }
 0x1d8   : > { %6117 = vmatpush1.bf16.msra.mxu0 %v6116_v36  ;;  %1642 = vmatprep.mubr.f32.mxu0 %v1503_v0  ;;  %v1735_v36 = vld [vmem:[#allocation3 + $0xbf0] sm:$0xff]  ;;  %v1742_v13 = vrot.slane %v1669_v49, 4  ;;  %v1743_v0 = vrot.slane %v7949_v40, 4  ;;  %v1991_v49 = vld [vmem:[#allocation3 + $0xca0] sm:$0xff] }
 0x1d9   : > { %6119 = vmatprep.subr.bf16.mxu0 %v6118_v8  ;;  %v1974_v8 = vld [vmem:[#allocation3 + $0xc18] sm:$0xff]  ;;  %v6144_v11 = vpack.c.bf16 %v1735_v36, %v1733_v46  ;;  %v1764_v36 = vrot.slane %v7899_v5, 4 }
 0x1da   : > { %v6146_v16 = vpack.c.bf16 %v1974_v8, %v1972_v7  ;;  %v1744_v22 = vsel %vm1741_vm3, %v1742_v13, %v1743_v0  ;;  %v1993_v7 = vld [vmem:[#allocation3 + $0xcb0] sm:$0xff]  ;;  %v1767_v8 = vsel %vm1741_vm3, %v1762_v48, %v1766_v63  ;;  %v1996_v13 = vld [vmem:[#allocation3 + $0xcc8] sm:$0xff] }
 0x1db   : > { %1643 = vmatmul.mubr.f32.gmra.mrb[18].mxu0 %v1501_v62  ;;  %v1976_v62 = vld [vmem:[#allocation3 + $0xc28] sm:$0xff]  ;;  %v6170_v5 = vpack.c.bf16 %v1998_v56, %v1996_v13  ;;  %v2021_v13 = vld [vmem:[#allocation3 + $0xd90] sm:$0xff] }
 0x1dc   : > { %6121 = vmatpush1.bf16.msra.mxu0 %v6120_v19  ;;  %1868 = vmatprep.mubr.f32.mxu0 %v1747_v23  ;;  %v1750_v19 = vrot.slane %v7852_v50, 4  ;;  %v1748_v23 = vrot.slane %v7856_v53, 4  ;;  %v1982_v50 = vld [vmem:[#allocation3 + $0xc58] sm:$0xff]  ;;  %v1752_v53 = vrot.slane %v7868_v26, 4  ;;  %v2024_v56 = vld [vmem:[#allocation3 + $0xda8] sm:$0xff] }
 0x1dd   : > { %6123 = vmatprep.subr.bf16.mxu0 %v6122_v20  ;;  %v1978_v20 = vld [vmem:[#allocation3 + $0xc38] sm:$0xff]  ;;  %v6154_v34 = vpack.c.bf16 %v1982_v50, %v1980_v59 }
 0x1de   : > { %v6150_v1 = vpack.c.bf16 %v1978_v20, %v1976_v62  ;;  %v1751_v40 = vsel %vm1741_vm3, %v1746_v41, %v1750_v19  ;;  %v1749_v32 = vsel %vm1741_vm3, %v1743_v0, %v1748_v23  ;;  %v1758_v41 = vrot.slane %v7871_v28, 4  ;;  %v1990_v28 = vld [vmem:[#allocation3 + $0xc98] sm:$0xff] }
 0x1df   : > { %v1753_v43 = vsel %vm1741_vm3, %v1748_v23, %v1752_v53  ;;  %v6162_v38 = vpack.c.bf16 %v1990_v28, %v1988_v51  ;;  %v6168_v0 = vpack.c.bf16 %v1993_v7, %v1991_v49  ;;  %v1774_v20 = vrot.slane %v7912_v4, 4  ;;  %v2004_v4 = vld [vmem:[#allocation3 + $0xd08] sm:$0xff]  ;;  %v2006_v59 = vld [vmem:[#allocation3 + $0xd18] sm:$0xff] }
 0x1e0   : > { %6125 = vmatpush1.bf16.msra.mxu0 %v6124_v30  ;;  %v1977_v30 = vld [vmem:[#allocation3 + $0xc30] sm:$0xff]  ;;  %v1763_v61 = vsel %vm1741_vm3, %v1758_v41, %v1762_v48  ;;  %v1769_v23 = vsel %vm1741_vm3, %v1764_v36, %v1768_v57  ;;  %v1672_v50 = vld [vmem:[%s7671_s14 + $0xb8] sm:$0xf]  ;;  %v2012_v28 = vld [vmem:[#allocation3 + $0xd48] sm:$0xff] }
 0x1e1   : > { %6127 = vmatprep.subr.bf16.mxu0 %v6126_v9  ;;  %v1754_v9 = vrot.slane %v7859_v17, 4  ;;  %v6152_v31 = vpack.c.bf16 %v1977_v30, %v1975_v27  ;;  %v1986_v17 = vld [vmem:[#allocation3 + $0xc78] sm:$0xff]  ;;  %v1999_v27 = vld [vmem:[#allocation3 + $0xce0] sm:$0xff]  ;;  %v2001_v30 = vld [vmem:[#allocation3 + $0xcf0] sm:$0xff] }
 0x1e2   : > { %v6158_v26 = vpack.c.bf16 %v1986_v17, %v1984_v12  ;;  %v2010_v12 = vld [vmem:[#allocation3 + $0xd38] sm:$0xff]  ;;  %v1950_v17 = vld [vmem:[%s7671_s14 + $0x28] sm:$0xf0] }
 0x1e3   : > { %v1755_v54 = vsel %vm1741_vm3, %v1750_v19, %v1754_v9  ;;  %v1759_v47 = vsel %vm1741_vm3, %v1754_v9, %v1758_v41  ;;  %v1997_v19 = vld [vmem:[#allocation3 + $0xcd0] sm:$0xff]  ;;  %v1778_v9 = vrot.slane %v7922_v29, 4  ;;  %v2060_v48 = vrot.slane %v1950_v17, 4  ;;  %v2022_v49 = vld [vmem:[#allocation3 + $0xd98] sm:$0xff] }
 0x1e4   : > { %6129 = vmatpush1.bf16.msra.mxu0 %v6128_v35  ;;  %v1979_v35 = vld [vmem:[#allocation3 + $0xc40] sm:$0xff]  ;;  %v1671_v41 = vld [vmem:[%s7671_s14 + $0xb0] sm:$0xf]  ;;  %v8058_v17 = vld [vmem:[%s7671_s14 + $0x58] sm:$0xff] }
 0x1e5   : > { %6131 = vmatprep.subr.bf16.mxu0 %v6130_v10  ;;  %v1981_v10 = vld [vmem:[#allocation3 + $0xc50] sm:$0xff]  ;;  %v1779_v29 = vsel %vm1741_vm3, %v1774_v20, %v1778_v9 }
 0x1e6   : > { %v6156_v3 = vpack.c.bf16 %v1981_v10, %v1979_v35  ;;  %v2005_v35 = vld [vmem:[#allocation3 + $0xd10] sm:$0xff]  ;;  %v2008_v10 = vld [vmem:[#allocation3 + $0xd28] sm:$0xff] }
 0x1e8   : > { %6133 = vmatpush1.bf16.msra.mxu0 %v6132_v44  ;;  %v1983_v44 = vld [vmem:[#allocation3 + $0xc60] sm:$0xff] }
 0x1e9   : > { %6135 = vmatprep.subr.bf16.mxu0 %v6134_v45  ;;  %v1985_v45 = vld [vmem:[#allocation3 + $0xc70] sm:$0xff] }
 0x1ea   : > { %v6160_v52 = vpack.c.bf16 %v1985_v45, %v1983_v44  ;;  %v2007_v44 = vld [vmem:[#allocation3 + $0xd20] sm:$0xff]  ;;  %v2009_v45 = vld [vmem:[#allocation3 + $0xd30] sm:$0xff] }
 0x1ec   : > { %6137 = vmatpush1.bf16.msra.mxu0 %v6136_v55  ;;  %v1757_v55 = vsel %vm1741_vm3, %v1752_v53, %v1756_v21  ;;  %v1776_v53 = vrot.slane %v7929_v39, 4  ;;  %v6182_v39 = vpack.c.bf16 %v2010_v12, %v2008_v10  ;;  %v2270_v10 = vld [vmem:[#allocation3 + $0xe10] sm:$0xff]  ;;  %v2275_v12 = vld [vmem:[#allocation3 + $0xe38] sm:$0xff] }
 0x1ed   : > { %6139 = vmatprep.subr.bf16.mxu0 %v6138_v33  ;;  %v1760_v33 = vrot.slane %v7889_v24, 4 }
 0x1ef   : > { %v1761_v46 = vsel %vm1741_vm3, %v1756_v21, %v1760_v33 }
 0x1f0   : > { %6141 = vmatpush1.bf16.msra.mxu0 %v6140_v2  ;;  %v1992_v2 = vld [vmem:[#allocation3 + $0xca8] sm:$0xff] }
 0x1f1   : > { %6143 = vmatprep.subr.bf16.mxu0 %v6142_v37  ;;  %v6164_v37 = vpack.c.bf16 %v1989_v60, %v1987_v58  ;;  %v6166_v24 = vpack.c.bf16 %v1994_v42, %v1992_v2  ;;  %v2011_v58 = vld [vmem:[#allocation3 + $0xd40] sm:$0xff]  ;;  %v2013_v60 = vld [vmem:[#allocation3 + $0xd50] sm:$0xff]  ;;  %v2018_v2 = vld [vmem:[#allocation3 + $0xd78] sm:$0xff] }
 0x1f2   : > { %v6188_v42 = vpack.c.bf16 %v2013_v60, %v2011_v58 }
 0x1f4   : > { %6145 = vmatpush1.bf16.msra.mxu0 %v6144_v11  ;;  %v1770_v11 = vrot.slane %v7902_v6, 4  ;;  %v2002_v6 = vld [vmem:[#allocation3 + $0xcf8] sm:$0xff] }
 0x1f5   : > { %6147 = vmatprep.subr.bf16.mxu0 %v6146_v16  ;;  %v1765_v16 = vsel %vm1741_vm3, %v1760_v33, %v1764_v36  ;;  %v2017_v36 = vld [vmem:[#allocation3 + $0xd70] sm:$0xff] }
 0x1f6   : > { %v1771_v62 = vsel %vm1741_vm3, %v1766_v63, %v1770_v11  ;;  %v2016_v63 = vld [vmem:[#allocation3 + $0xd68] sm:$0xff] }
 0x1f7   : > { %1869 = vmatmul.mubr.f32.vlgmr.msra.gmra.mrb[0].mxu0 %v1744_v22  ;;  %v2000_v22 = vld [vmem:[#allocation3 + $0xce8] sm:$0xff] }
 0x1f8   : > { %6149 = vmatpush1.bf16.msra.mxu0 %v6148_v14  ;;  %1874 = vmatprep.mubr.f32.mxu0 %v1751_v40  ;;  %v6172_v14 = vpack.c.bf16 %v1997_v19, %v1995_v18  ;;  %v6174_v15 = vpack.c.bf16 %v2002_v6, %v2000_v22  ;;  %v1775_v40 = vsel %vm1741_vm3, %v1770_v11, %v1774_v20  ;;  %v2019_v11 = vld [vmem:[#allocation3 + $0xd80] sm:$0xff]  ;;  %v2025_v18 = vld [vmem:[#allocation3 + $0xdb0] sm:$0xff]  ;;  %v2028_v19 = vld [vmem:[#allocation3 + $0xdc8] sm:$0xff] }
 0x1f9   : > { %6151 = vmatprep.subr.bf16.mxu0 %v6150_v1  ;;  %v1772_v1 = vrot.slane %v7919_v25, 4  ;;  %v2027_v6 = vld [vmem:[#allocation3 + $0xdc0] sm:$0xff] }
 0x1fb   : > { %1875 = vmatmul.mubr.f32.gmra.mrb[2].mxu0 %v1749_v32  ;;  %v2003_v32 = vld [vmem:[#allocation3 + $0xd00] sm:$0xff]  ;;  %v1773_v25 = vsel %vm1741_vm3, %v1768_v57, %v1772_v1  ;;  %v1777_v21 = vsel %vm1741_vm3, %v1772_v1, %v1776_v53  ;;  %v2034_v1 = vld [vmem:[#allocation3 + $0xdf8] sm:$0xff] }
 0x1fc   : > { %6153 = vmatpush1.bf16.msra.mxu0 %v6152_v31  ;;  %1880 = vmatprep.mubr.f32.mxu0 %v1755_v54  ;;  %v6176_v31 = vpack.c.bf16 %v2001_v30, %v1999_v27  ;;  %v1782_v54 = vrot.slane %v1672_v50, 4  ;;  %v2031_v27 = vld [vmem:[#allocation3 + $0xde0] sm:$0xff]  ;;  %v2271_v50 = vld [vmem:[#allocation3 + $0xe18] sm:$0xff] }
 0x1fd   : > { %6155 = vmatprep.subr.bf16.mxu0 %v6154_v34  ;;  %v6178_v34 = vpack.c.bf16 %v2006_v59, %v2004_v4  ;;  %v8047_v4 = vld [vmem:[%s7671_s14 + $0x30] sm:$0xff]  ;;  %v2269_v59 = vld [vmem:[#allocation3 + $0xe08] sm:$0xff] }
 0x1ff   : > { %1881 = vmatmul.mubr.f32.gmra.mrb[4].mxu0 %v1753_v43  ;;  %v6180_v43 = vpack.c.bf16 %v2005_v35, %v2003_v32  ;;  %v2268_v35 = vld [vmem:[#allocation3 + $0xe00] sm:$0xff] }
 0x200   : > { %6157 = vmatpush1.bf16.msra.mxu0 %v6156_v3  ;;  %1886 = vmatprep.mubr.f32.mxu0 %v1759_v47  ;;  %v8036_v3 = vld [vmem:[%s7671_s14 + $0x38] sm:$0xff]  ;;  %v1783_v47 = vsel %vm1741_vm3, %v1778_v9, %v1782_v54  ;;  %v1949_v9 = vld [vmem:[%s7671_s14 + $0x20] sm:$0xf0] }
 0x201   : > { %6159 = vmatprep.subr.bf16.mxu0 %v6158_v26  ;;  %v1780_v26 = vrot.slane %v1671_v41, 4  ;;  %v2061_v51 = vrot.slane %v8036_v3, 4  ;;  %v8055_v54 = vld [vmem:[%s7671_s14 + $0x40] sm:$0xff]  ;;  %v2273_v41 = vld [vmem:[#allocation3 + $0xe28] sm:$0xff] }
 0x203   : > { %1887 = vmatmul.mubr.f32.gmra.mrb[6].mxu0 %v1757_v55  ;;  %v6184_v55 = vpack.c.bf16 %v2009_v45, %v2007_v44  ;;  %v1781_v33 = vsel %vm1741_vm3, %v1776_v53, %v1780_v26  ;;  %v2058_v53 = vrot.slane %v8047_v4, 4  ;;  %v2063_v26 = vrot.slane %v8055_v54, 4  ;;  %v2272_v44 = vld [vmem:[#allocation3 + $0xe20] sm:$0xff]  ;;  %v2274_v45 = vld [vmem:[#allocation3 + $0xe30] sm:$0xff] }
 0x204   : > { %6161 = vmatpush1.bf16.msra.mxu0 %v6160_v52  ;;  %1892 = vmatprep.mubr.f32.mxu0 %v1763_v61  ;;  %v2014_v52 = vld [vmem:[#allocation3 + $0xd58] sm:$0xff]  ;;  %v2062_v61 = vsel %vm1741_vm3, %v2060_v48, %v2061_v51  ;;  %v2069_v48 = vrot.slane %v8058_v17, 4 }
 0x205   : > { %6163 = vmatprep.subr.bf16.mxu0 %v6162_v38  ;;  %v6186_v38 = vpack.c.bf16 %v2014_v52, %v2012_v28  ;;  %v8067_v28 = vld [vmem:[%s7671_s14 + $0x50] sm:$0xff]  ;;  %v2277_v52 = vld [vmem:[#allocation3 + $0xe48] sm:$0xff]  ;;  %v2064_v58 = vsel %vm1741_vm3, %v2058_v53, %v2063_v26 }
 0x206   : > { %v2067_v60 = vrot.slane %v8067_v28, 4 }
 0x207   : > { %1893 = vmatmul.mubr.f32.gmra.mrb[8].mxu0 %v1761_v46  ;;  %v2015_v46 = vld [vmem:[#allocation3 + $0xd60] sm:$0xff] }
 0x208   : > { %6165 = vmatpush1.bf16.msra.mxu0 %v6164_v37  ;;  %1898 = vmatprep.mubr.f32.mxu0 %v1767_v8  ;;  %v6190_v37 = vpack.c.bf16 %v2018_v2, %v2016_v63  ;;  %v6192_v7 = vpack.c.bf16 %v2017_v36, %v2015_v46  ;;  %v2278_v63 = vld [vmem:[#allocation3 + $0xe50] sm:$0xff]  ;;  %v2281_v46 = vld [vmem:[#allocation3 + $0xe68] sm:$0xff]  ;;  %v2283_v36 = vld [vmem:[#allocation3 + $0xe78] sm:$0xff] }
 0x209   : > { %6167 = vmatprep.subr.bf16.mxu0 %v6166_v24  ;;  %v2020_v24 = vld [vmem:[#allocation3 + $0xd88] sm:$0xff] }
 0x20a   : > { %v6194_v8 = vpack.c.bf16 %v2022_v49, %v2020_v24  ;;  %v8080_v24 = vld [vmem:[%s7671_s14 + $0x78] sm:$0xff] }
 0x20b   : > { %1899 = vmatmul.mubr.f32.gmra.mrb[10].mxu0 %v1765_v16  ;;  %v6196_v16 = vpack.c.bf16 %v2021_v13, %v2019_v11  ;;  %v6222_v11 = vpack.c.bf16 %v2283_v36, %v2281_v46  ;;  %v2280_v13 = vld [vmem:[#allocation3 + $0xe60] sm:$0xff]  ;;  %v2298_v46 = vld [vmem:[#allocation3 + $0xef0] sm:$0xff] }
 0x20c   : > { %6169 = vmatpush1.bf16.msra.mxu0 %v6168_v0  ;;  %1904 = vmatprep.mubr.f32.mxu0 %v1771_v62  ;;  %v2026_v0 = vld [vmem:[#allocation3 + $0xdb8] sm:$0xff] }
 0x20d   : > { %6171 = vmatprep.subr.bf16.mxu0 %v6170_v5  ;;  %v6198_v57 = vpack.c.bf16 %v2026_v0, %v2024_v56  ;;  %v2023_v5 = vld [vmem:[#allocation3 + $0xda0] sm:$0xff]  ;;  %v2030_v62 = vld [vmem:[#allocation3 + $0xdd8] sm:$0xff]  ;;  %v2282_v56 = vld [vmem:[#allocation3 + $0xe70] sm:$0xff] }
 0x20e   : > { %v6200_v20 = vpack.c.bf16 %v2025_v18, %v2023_v5  ;;  %v6202_v22 = vpack.c.bf16 %v2030_v62, %v2028_v19  ;;  %v2285_v5 = vld [vmem:[#allocation3 + $0xe88] sm:$0xff]  ;;  %v2287_v18 = vld [vmem:[#allocation3 + $0xe98] sm:$0xff]  ;;  %v6224_v62 = vpack.c.bf16 %v2282_v56, %v2280_v13 }
 0x20f   : > { %1905 = vmatmul.mubr.f32.gmra.mrb[12].mxu0 %v1769_v23  ;;  %v2032_v23 = vld [vmem:[#allocation3 + $0xde8] sm:$0xff] }
 0x210   : > { %6173 = vmatpush1.bf16.msra.mxu0 %v6172_v14  ;;  %1910 = vmatprep.mubr.f32.mxu0 %v1775_v40  ;;  %v2029_v14 = vld [vmem:[#allocation3 + $0xdd0] sm:$0xff]  ;;  %v6206_v30 = vpack.c.bf16 %v2034_v1, %v2032_v23  ;;  %v8090_v19 = vld [vmem:[%s7671_s14 + $0x88] sm:$0xff] }
 0x211   : > { %6175 = vmatprep.subr.bf16.mxu0 %v6174_v15  ;;  %v6204_v15 = vpack.c.bf16 %v2029_v14, %v2027_v6  ;;  %v2033_v40 = vld [vmem:[#allocation3 + $0xdf0] sm:$0xff]  ;;  %v6226_v6 = vpack.c.bf16 %v2287_v18, %v2285_v5  ;;  %v2284_v14 = vld [vmem:[#allocation3 + $0xe80] sm:$0xff]  ;;  %v1970_v13 = vld [vmem:[%s7671_s14 + $0xc8] sm:$0xf] }
 0x212   : > { %v6208_v32 = vpack.c.bf16 %v2033_v40, %v2031_v27  ;;  %v2286_v23 = vld [vmem:[#allocation3 + $0xe90] sm:$0xff]  ;;  %v8097_v27 = vld [vmem:[%s7671_s14 + $0x80] sm:$0xff]  ;;  %v2291_v40 = vld [vmem:[#allocation3 + $0xeb8] sm:$0xff] }
 0x213   : > { %1911 = vmatmul.mubr.f32.gmra.mrb[14].mxu0 %v1773_v25  ;;  %v2057_v25 = vrot.slane %v1949_v9, 4  ;;  %v8100_v9 = vld [vmem:[%s7671_s14 + $0x98] sm:$0xff]  ;;  %v2300_v18 = vld [vmem:[#allocation3 + $0xf00] sm:$0xff] }
 0x214   : > { %6177 = vmatpush1.bf16.msra.mxu0 %v6176_v31  ;;  %1916 = vmatprep.mubr.f32.mxu0 %v1779_v29  ;;  %v8050_v31 = vld [vmem:[%s7671_s14 + $0x48] sm:$0xff] }
 0x215   : > { %6179 = vmatprep.subr.bf16.mxu0 %v6178_v34  ;;  %v6210_v34 = vpack.c.bf16 %v2271_v50, %v2269_v59  ;;  %v2065_v29 = vrot.slane %v8050_v31, 4  ;;  %v6228_v59 = vpack.c.bf16 %v2286_v23, %v2284_v14  ;;  %v2305_v14 = vld [vmem:[#allocation3 + $0xf28] sm:$0xff]  ;;  %v2307_v23 = vld [vmem:[#allocation3 + $0xf38] sm:$0xff] }
 0x217   : > { %1917 = vmatmul.mubr.f32.gmra.mrb[16].mxu0 %v1777_v21  ;;  %v6212_v21 = vpack.c.bf16 %v2270_v10, %v2268_v35  ;;  %v2070_v2 = vsel %vm1741_vm3, %v2065_v29, %v2069_v48  ;;  %v2085_v10 = vrot.slane %v8100_v9, 4 }
 0x218   : > { %6181 = vmatpush1.bf16.msra.mxu0 %v6180_v43  ;;  %1922 = vmatprep.mubr.f32.mxu0 %v1783_v47  ;;  %v2059_v43 = vsel %vm1741_vm3, %v2057_v25, %v2058_v53  ;;  %v2066_v47 = vsel %vm1741_vm3, %v2061_v51, %v2065_v29  ;;  %v2288_v53 = vld [vmem:[#allocation3 + $0xea0] sm:$0xff]  ;;  %v8107_v29 = vld [vmem:[%s7671_s14 + $0x90] sm:$0xff] }
 0x219   : > { %6183 = vmatprep.subr.bf16.mxu0 %v6182_v39  ;;  %v6214_v39 = vpack.c.bf16 %v2275_v12, %v2273_v41  ;;  %v2293_v41 = vld [vmem:[#allocation3 + $0xec8] sm:$0xff]  ;;  %v2295_v12 = vld [vmem:[#allocation3 + $0xed8] sm:$0xff] }
 0x21b   : > { %1923 = vmatmul.mubr.f32.gmra.mrb[18].mxu0 %v1781_v33  ;;  %v8070_v33 = vld [vmem:[%s7671_s14 + $0x68] sm:$0xff] }
 0x21c   : > { %6185 = vmatpush1.bf16.msra.mxu0 %v6184_v55  ;;  %2183 = vmatprep.mubr.f32.mxu0 %v2062_v61  ;;  %v2279_v55 = vld [vmem:[#allocation3 + $0xe58] sm:$0xff]  ;;  %v2276_v61 = vld [vmem:[#allocation3 + $0xe40] sm:$0xff] }
 0x21d   : > { %6187 = vmatprep.subr.bf16.mxu0 %v6186_v38  ;;  %v6216_v38 = vpack.c.bf16 %v2274_v45, %v2272_v44  ;;  %v6218_v51 = vpack.c.bf16 %v2279_v55, %v2277_v52  ;;  %v6220_v49 = vpack.c.bf16 %v2278_v63, %v2276_v61  ;;  %v6234_v44 = vpack.c.bf16 %v2295_v12, %v2293_v41  ;;  %v2292_v45 = vld [vmem:[#allocation3 + $0xec0] sm:$0xff] }
 0x21e   : > { %v8117_v55 = vld [vmem:[%s7671_s14 + $0xa0] sm:$0xff] }
 0x21f   : > { %v2087_v63 = vrot.slane %v8117_v55, 4 }
 0x220   : > { %6189 = vmatpush1.bf16.msra.mxu0 %v6188_v42  ;;  %v2073_v42 = vrot.slane %v8070_v33, 4 }
 0x221   : > { %6191 = vmatprep.subr.bf16.mxu0 %v6190_v37  ;;  %v8077_v37 = vld [vmem:[%s7671_s14 + $0x60] sm:$0xff] }
 0x222   : > { %v2074_v0 = vsel %vm1741_vm3, %v2069_v48, %v2073_v42 }
 0x224   : > { %6193 = vmatpush1.bf16.msra.mxu0 %v6192_v7  ;;  %v2068_v7 = vsel %vm1741_vm3, %v2063_v26, %v2067_v60 }
 0x225   : > { %6195 = vmatprep.subr.bf16.mxu0 %v6194_v8  ;;  %v2071_v8 = vrot.slane %v8077_v37, 4 }
 0x228   : > { %6197 = vmatpush1.bf16.msra.mxu0 %v6196_v16  ;;  %v2077_v16 = vrot.slane %v8080_v24, 4 }
 0x229   : > { %6199 = vmatprep.subr.bf16.mxu0 %v6198_v57  ;;  %v8087_v57 = vld [vmem:[%s7671_s14 + $0x70] sm:$0xff] }
 0x22a   : > { %v2078_v1 = vsel %vm1741_vm3, %v2073_v42, %v2077_v16  ;;  %v2296_v42 = vld [vmem:[#allocation3 + $0xee0] sm:$0xff] }
 0x22b   : > { %v6240_v56 = vpack.c.bf16 %v2298_v46, %v2296_v42  ;;  %v7487_v42 = vmov 0   ;;  %v2877_v46 = vld [vmem:[%s9090_s1 + $0x8] sm:$0xff] }
 0x22c   : > { %6201 = vmatpush1.bf16.msra.mxu0 %v6200_v20  ;;  %v2072_v20 = vsel %vm1741_vm3, %v2067_v60, %v2071_v8  ;;  %v8120_v60 = vld [vmem:[%s7671_s14 + $0xb8] sm:$0xff]  ;;  %7289 = vset.pattern.permute.xlu0 %v7487_v42 }
 0x22d   : > { %6203 = vmatprep.subr.bf16.mxu0 %v6202_v22  ;;  %v2075_v22 = vrot.slane %v8087_v57, 4  ;;  %7290 = vset.pattern.permute.xlu1 %v7487_v42  ;;  %v3113_v42 = vld [vmem:[#allocation7 + $0x298] sm:$0xff] }
 0x22f   : > { %v2076_v50 = vsel %vm1741_vm3, %v2071_v8, %v2075_v22  ;;  %v2301_v8 = vld [vmem:[#allocation3 + $0xf08] sm:$0xff] }
 0x230   : > { %6205 = vmatpush1.bf16.msra.mxu0 %v6204_v15  ;;  %v2081_v15 = vrot.slane %v8090_v19, 4 }
 0x231   : > { %6207 = vmatprep.subr.bf16.mxu0 %v6206_v30  ;;  %v2289_v30 = vld [vmem:[#allocation3 + $0xea8] sm:$0xff] }
 0x232   : > { %v6230_v25 = vpack.c.bf16 %v2291_v40, %v2289_v30  ;;  %v2082_v35 = vsel %vm1741_vm3, %v2077_v16, %v2081_v15  ;;  %v2086_v48 = vsel %vm1741_vm3, %v2081_v15, %v2085_v10 }
 0x234   : > { %6209 = vmatpush1.bf16.msra.mxu0 %v6208_v32  ;;  %v2079_v32 = vrot.slane %v8097_v27, 4 }
 0x235   : > { %6211 = vmatprep.subr.bf16.mxu0 %v6210_v34  ;;  %v2290_v34 = vld [vmem:[#allocation3 + $0xeb0] sm:$0xff] }
 0x236   : > { %v2080_v26 = vsel %vm1741_vm3, %v2075_v22, %v2079_v32  ;;  %v2097_v22 = vrot.slane %v1970_v13, 4  ;;  %v2316_v13 = vld [vmem:[#allocation3 + $0xf80] sm:$0xff] }
 0x237   : > { %2184 = vmatmul.mubr.f32.vlgmr.msra.gmra.mrb[0].mxu0 %v2059_v43  ;;  %v8110_v43 = vld [vmem:[%s7671_s14 + $0xa8] sm:$0xff] }
 0x238   : > { %6213 = vmatpush1.bf16.msra.mxu0 %v6212_v21  ;;  %2189 = vmatprep.mubr.f32.mxu0 %v2066_v47  ;;  %v6232_v21 = vpack.c.bf16 %v2290_v34, %v2288_v53  ;;  %v2294_v47 = vld [vmem:[#allocation3 + $0xed0] sm:$0xff]  ;;  %v2089_v52 = vrot.slane %v8110_v43, 4  ;;  %v2341_v34 = vrot.slane %v8036_v3, 5 }
 0x239   : > { %6215 = vmatprep.subr.bf16.mxu0 %v6214_v39  ;;  %v2083_v39 = vrot.slane %v8107_v29, 4 }
 0x23a   : > { %v2090_v36 = vsel %vm1741_vm3, %v2085_v10, %v2089_v52  ;;  %v2311_v10 = vld [vmem:[#allocation3 + $0xf58] sm:$0xff] }
 0x23b   : > { %2190 = vmatmul.mubr.f32.gmra.mrb[2].mxu0 %v2064_v58  ;;  %v2299_v58 = vld [vmem:[#allocation3 + $0xef8] sm:$0xff]  ;;  %v2084_v61 = vsel %vm1741_vm3, %v2079_v32, %v2083_v39  ;;  %v2306_v32 = vld [vmem:[#allocation3 + $0xf30] sm:$0xff] }
 0x23c   : > { %6217 = vmatpush1.bf16.msra.mxu0 %v6216_v38  ;;  %2195 = vmatprep.mubr.f32.mxu0 %v2070_v2  ;;  %v2297_v38 = vld [vmem:[#allocation3 + $0xee8] sm:$0xff] }
 0x23d   : > { %6219 = vmatprep.subr.bf16.mxu0 %v6218_v51  ;;  %v6236_v51 = vpack.c.bf16 %v2294_v47, %v2292_v45  ;;  %v6238_v2 = vpack.c.bf16 %v2299_v58, %v2297_v38  ;;  %v2313_v45 = vld [vmem:[#allocation3 + $0xf68] sm:$0xff]  ;;  %v2315_v47 = vld [vmem:[#allocation3 + $0xf78] sm:$0xff]  ;;  %v2312_v38 = vld [vmem:[#allocation3 + $0xf60] sm:$0xff] }
 0x23e   : > { %v2314_v58 = vld [vmem:[#allocation3 + $0xf70] sm:$0xff] }
 0x23f   : > { %2196 = vmatmul.mubr.f32.gmra.mrb[4].mxu0 %v2068_v7  ;;  %v8127_v7 = vld [vmem:[%s7671_s14 + $0xb0] sm:$0xff] }
 0x240   : > { %6221 = vmatpush1.bf16.msra.mxu0 %v6220_v49  ;;  %2201 = vmatprep.mubr.f32.mxu0 %v2074_v0  ;;  %v2093_v49 = vrot.slane %v8120_v60, 4  ;;  %v2088_v0 = vsel %vm1741_vm3, %v2083_v39, %v2087_v63  ;;  %v2091_v16 = vrot.slane %v8127_v7, 4  ;;  %v2310_v39 = vld [vmem:[#allocation3 + $0xf50] sm:$0xff] }
 0x241   : > { %6223 = vmatprep.subr.bf16.mxu0 %v6222_v11  ;;  %v2303_v11 = vld [vmem:[#allocation3 + $0xf18] sm:$0xff] }
 0x242   : > { %v6242_v5 = vpack.c.bf16 %v2303_v11, %v2301_v8  ;;  %v2092_v30 = vsel %vm1741_vm3, %v2087_v63, %v2091_v16  ;;  %v2317_v63 = vld [vmem:[#allocation3 + $0xf88] sm:$0xff]  ;;  %v3097_v8 = vld [vmem:[#allocation7 + $0x218] sm:$0xff]  ;;  %v7488_v11 = vmov 0.0  }
 0x243   : > { %2202 = vmatmul.mubr.f32.gmra.mrb[6].mxu0 %v2072_v20  ;;  %v2094_v20 = vsel %vm1741_vm3, %v2089_v52, %v2093_v49  ;;  %2957 = vst [vmem:[#allocation2 + $0x8] sm:$0xff] %v7488_v11  ;;  %2959 = vst [vmem:[#allocation2 + $0x18] sm:$0xff] %v7488_v11 }
 0x244   : > { %6225 = vmatpush1.bf16.msra.mxu0 %v6224_v62  ;;  %2207 = vmatprep.mubr.f32.mxu0 %v2078_v1  ;;  %v2302_v62 = vld [vmem:[#allocation3 + $0xf10] sm:$0xff]  ;;  %v2265_v1 = vld [vmem:[%s7671_s14 + $0x28] sm:$0xe0]  ;;  %2956 = vst [vmem:[#allocation2] sm:$0xff] %v7488_v11  ;;  %2958 = vst [vmem:[#allocation2 + $0x10] sm:$0xff] %v7488_v11 }
 0x245   : > { %6227 = vmatprep.subr.bf16.mxu0 %v6226_v6  ;;  %v1969_v6 = vld [vmem:[%s7671_s14 + $0xc0] sm:$0xf]  ;;  %v6244_v15 = vpack.c.bf16 %v2302_v62, %v2300_v18  ;;  %v2340_v53 = vrot.slane %v2265_v1, 5  ;;  %2980 = vst [vmem:[#allocation2 + $0xc0] sm:$0xff] %v7488_v11  ;;  %2981 = vst [vmem:[#allocation2 + $0xc8] sm:$0xff] %v7488_v11  ;;  %v6256_v18 = vpack.c.bf16 %v2314_v58, %v2312_v38 }
 0x246   : > { %v2095_v40 = vrot.slane %v1969_v6, 4  ;;  %2982 = vst [vmem:[#allocation2 + $0xd0] sm:$0xff] %v7488_v11  ;;  %2983 = vst [vmem:[#allocation2 + $0xd8] sm:$0xff] %v7488_v11  ;;  %v3100_v6 = vld [vmem:[#allocation7 + $0x230] sm:$0xff]  ;;  %v3106_v58 = vld [vmem:[#allocation7 + $0x260] sm:$0xff] }
 0x247   : > { %2208 = vmatmul.mubr.f32.gmra.mrb[8].mxu0 %v2076_v50  ;;  %v2304_v50 = vld [vmem:[#allocation3 + $0xf20] sm:$0xff] }
 0x248   : > { %6229 = vmatpush1.bf16.msra.mxu0 %v6228_v59  ;;  %2213 = vmatprep.mubr.f32.mxu0 %v2082_v35  ;;  %v6246_v59 = vpack.c.bf16 %v2307_v23, %v2305_v14  ;;  %v2309_v35 = vld [vmem:[#allocation3 + $0xf48] sm:$0xff]  ;;  %v6248_v41 = vpack.c.bf16 %v2306_v32, %v2304_v50  ;;  %v2096_v12 = vsel %vm1741_vm3, %v2091_v16, %v2095_v40  ;;  %v3096_v16 = vld [vmem:[#allocation7 + $0x210] sm:$0xff]  ;;  %v2880_v32 = vld [vmem:[%s9090_s1 + $0x20] sm:$0xff] }
 0x249   : > { %6231 = vmatprep.subr.bf16.mxu0 %v6230_v25  ;;  %v2098_v25 = vsel %vm1741_vm3, %v2093_v49, %v2097_v22  ;;  %v3095_v49 = vld [vmem:[#allocation7 + $0x208] sm:$0xff]  ;;  %v3098_v22 = vld [vmem:[#allocation7 + $0x220] sm:$0xff] }
 0x24a   : > { %v2318_v23 = vld [vmem:[#allocation3 + $0xf90] sm:$0xff]  ;;  %v2321_v40 = vld [vmem:[#allocation3 + $0xfa8] sm:$0xff]  ;;  %v6344_v50 = vpack.c.bf16 %v3100_v6, %v3098_v22  ;;  %v3117_v6 = vld [vmem:[#allocation7 + $0x2b8] sm:$0xff] }
 0x24b   : > { %2214 = vmatmul.mubr.f32.gmra.mrb[10].mxu0 %v2080_v26  ;;  %v2308_v26 = vld [vmem:[#allocation3 + $0xf40] sm:$0xff]  ;;  %v3115_v22 = vld [vmem:[#allocation7 + $0x2a8] sm:$0xff] }
 0x24c   : > { %6233 = vmatpush1.bf16.msra.mxu0 %v6232_v21  ;;  %2219 = vmatprep.mubr.f32.mxu0 %v2086_v48  ;;  %v6250_v21 = vpack.c.bf16 %v2311_v10, %v2309_v35  ;;  %v2876_v48 = vld [vmem:[%s9090_s1] sm:$0xff]  ;;  %v6252_v52 = vpack.c.bf16 %v2310_v39, %v2308_v26  ;;  %v3104_v35 = vld [vmem:[#allocation7 + $0x250] sm:$0xff]  ;;  %v6260_v10 = vpack.c.bf16 %v2318_v23, %v2316_v13 }
 0x24d   : > { %6235 = vmatprep.subr.bf16.mxu0 %v6234_v44  ;;  %v2342_v44 = vsel %vm2336_vm4, %v2340_v53, %v2341_v34  ;;  %2888 = vperm.xlu0 %7289, %v2876_v48   ;;  %v3102_v53 = vld [vmem:[#allocation7 + $0x240] sm:$0xff]  ;;  %v2331_v13 = vld [vmem:[#allocation3 + $0xff8] sm:$0xff] }
 0x24e   : > { %v2320_v39 = vld [vmem:[#allocation3 + $0xfa0] sm:$0xff]  ;;  %v6348_v48 = vpack.c.bf16 %v3104_v35, %v3102_v53 }
 0x24f   : > { %2220 = vmatmul.mubr.f32.gmra.mrb[12].mxu0 %v2084_v61  ;;  %v6254_v61 = vpack.c.bf16 %v2315_v47, %v2313_v45  ;;  %v2325_v45 = vld [vmem:[#allocation3 + $0xfc8] sm:$0xff]  ;;  %v2327_v47 = vld [vmem:[#allocation3 + $0xfd8] sm:$0xff]  ;;  %v2328_v23 = vld [vmem:[#allocation3 + $0xfe0] sm:$0xff] }
 0x250   : > { %6237 = vmatpush1.bf16.msra.mxu0 %v6236_v51  ;;  %2225 = vmatprep.mubr.f32.mxu0 %v2090_v36  ;;  %v2878_v51 = vld [vmem:[%s9090_s1 + $0x10] sm:$0xff]  ;;  %v2879_v36 = vld [vmem:[%s9090_s1 + $0x18] sm:$0xff] }
 0x251   : > { %6239 = vmatprep.subr.bf16.mxu0 %v6238_v2  ;;  %v2319_v2 = vld [vmem:[#allocation3 + $0xf98] sm:$0xff]  ;;  %2898 = vperm.xlu1 %7290, %v2878_v51  }
 0x252   : > { %v6258_v14 = vpack.c.bf16 %v2319_v2, %v2317_v63  ;;  %2893 = vperm.xlu0 %7289, %v2877_v46   ;;  %v3108_v51 = vld [vmem:[#allocation7 + $0x270] sm:$0xff]  ;;  %v3111_v2 = vld [vmem:[#allocation7 + $0x288] sm:$0xff]  ;;  %v6266_v46 = vpack.c.bf16 %v2327_v47, %v2325_v45 }
 0x253   : > { %2226 = vmatmul.mubr.f32.gmra.mrb[14].mxu0 %v2088_v0  ;;  %v3094_v0 = vld [vmem:[#allocation7 + $0x200] sm:$0xff]  ;;  %v2883_v63 = vld [vmem:[%s9090_s1 + $0x38] sm:$0xff] }
 0x254   : > { %6241 = vmatpush1.bf16.msra.mxu0 %v6240_v56  ;;  %2231 = vmatprep.mubr.f32.mxu0 %v2094_v20  ;;  %v6338_v56 = vpack.c.bf16 %v3097_v8, %v3095_v49  ;;  %v6340_v62 = vpack.c.bf16 %v3096_v16, %v3094_v0  ;;  %v3101_v20 = vld [vmem:[#allocation7 + $0x238] sm:$0xff]  ;;  %v2326_v49 = vld [vmem:[#allocation3 + $0xfd0] sm:$0xff]  ;;  %v2329_v8 = vld [vmem:[#allocation3 + $0xfe8] sm:$0xff]  ;;  %v6354_v16 = vpack.c.bf16 %v3113_v42, %v3111_v2  ;;  %v2343_v2 = vrot.slane %v8055_v54, 5 }
 0x255   : > { %6243 = vmatprep.subr.bf16.mxu0 %v6242_v5  ;;  %v3099_v5 = vld [vmem:[#allocation7 + $0x228] sm:$0xff]  ;;  %2903 = vperm.xlu1 %7290, %v2879_v36   ;;  %v2324_v36 = vld [vmem:[#allocation3 + $0xfc0] sm:$0xff]  ;;  %v2555_v47 = vld [vmem:[#allocation3 + $0x1038] sm:$0xff] }
 0x256   : > { %6339 = vmatprep.subr.bf16.mxu1 %v6338_v56  ;;  %v6342_v1 = vpack.c.bf16 %v3101_v20, %v3099_v5  ;;  %2908 = vperm.xlu0 %7289, %v2880_v32   ;;  %v6352_v56 = vpack.c.bf16 %v3108_v51, %v3106_v58  ;;  %v2884_v0 = vld [vmem:[%s9090_s1 + $0x40] sm:$0xff]  ;;  %v2885_v20 = vld [vmem:[%s9090_s1 + $0x48] sm:$0xff]  ;;  %v3120_v51 = vld [vmem:[#allocation7 + $0x2d0] sm:$0xff] }
 0x257   : > { %2232 = vmatmul.mubr.f32.gmra.mrb[16].mxu0 %v2092_v30  ;;  %v3105_v30 = vld [vmem:[#allocation7 + $0x258] sm:$0xff]  ;;  %6341 = vmatpush1.bf16.msra.mxu1 %v6340_v62  ;;  %v3110_v5 = vld [vmem:[#allocation7 + $0x280] sm:$0xff]  ;;  %v6268_v62 = vpack.c.bf16 %v2326_v49, %v2324_v36  ;;  %v3123_v42 = vld [vmem:[#allocation7 + $0x2e8] sm:$0xff] }
 0x258   : > { %6245 = vmatpush1.bf16.msra.mxu0 %v6244_v15  ;;  %2237 = vmatprep.mubr.f32.mxu0 %v2098_v25  ;;  %v3103_v15 = vld [vmem:[#allocation7 + $0x248] sm:$0xff]  ;;  %v3114_v32 = vld [vmem:[#allocation7 + $0x2a0] sm:$0xff] }
 0x259   : > { %6247 = vmatprep.subr.bf16.mxu0 %v6246_v59  ;;  %v2323_v59 = vld [vmem:[#allocation3 + $0xfb8] sm:$0xff]  ;;  %6343 = vmatprep.subr.bf16.mxu1 %v6342_v1  ;;  %v6346_v25 = vpack.c.bf16 %v3105_v30, %v3103_v15  ;;  %v2330_v1 = vld [vmem:[#allocation3 + $0xff0] sm:$0xff]  ;;  %v2264_v15 = vld [vmem:[%s7671_s14 + $0x20] sm:$0xe0] }
 0x25a   : > { %v6262_v26 = vpack.c.bf16 %v2323_v59, %v2321_v40  ;;  %v2549_v30 = vld [vmem:[#allocation3 + $0x1008] sm:$0xff]  ;;  %v2551_v40 = vld [vmem:[#allocation3 + $0x1018] sm:$0xff]  ;;  %v6272_v53 = vpack.c.bf16 %v2330_v1, %v2328_v23  ;;  %v2337_v35 = vrot.slane %v2264_v15, 5  ;;  %v2552_v49 = vld [vmem:[#allocation3 + $0x1020] sm:$0xff]  ;;  %v2353_v15 = vrot.slane %v8070_v33, 5 }
 0x25b   : > { %2238 = vmatmul.mubr.f32.gmra.mrb[18].mxu0 %v2096_v12  ;;  %v3107_v12 = vld [vmem:[#allocation7 + $0x268] sm:$0xff]  ;;  %6345 = vmatpush1.bf16.msra.mxu1 %v6344_v50  ;;  %v6358_v50 = vpack.c.bf16 %v3117_v6, %v3115_v22  ;;  %v3118_v58 = vld [vmem:[#allocation7 + $0x2c0] sm:$0xff]  ;;  %v3129_v22 = vld [vmem:[#allocation7 + $0x318] sm:$0xff] }
 0x25c   : > { %6249 = vmatpush1.bf16.msra.mxu0 %v6248_v41  ;;  %2463 = vmatprep.mubr.f32.mxu0 %v2342_v44  ;;  %v2881_v41 = vld [vmem:[%s9090_s1 + $0x28] sm:$0xff]  ;;  %v2322_v44 = vld [vmem:[#allocation3 + $0xfb0] sm:$0xff] }
 0x25d   : > { %6251 = vmatprep.subr.bf16.mxu0 %v6250_v21  ;;  %v3109_v21 = vld [vmem:[#allocation7 + $0x278] sm:$0xff]  ;;  %2913 = vperm.xlu1 %7290, %v2881_v41   ;;  %v3119_v41 = vld [vmem:[#allocation7 + $0x2c8] sm:$0xff] }
 0x25e   : > { %6347 = vmatprep.subr.bf16.mxu1 %v6346_v25  ;;  %v6350_v38 = vpack.c.bf16 %v3109_v21, %v3107_v12  ;;  %v3116_v25 = vld [vmem:[#allocation7 + $0x2b0] sm:$0xff]  ;;  %v3121_v12 = vld [vmem:[#allocation7 + $0x2d8] sm:$0xff]  ;;  %v6274_v21 = vpack.c.bf16 %v2551_v40, %v2549_v30  ;;  %v2553_v45 = vld [vmem:[#allocation3 + $0x1028] sm:$0xff] }
 0x25f   : > { %6349 = vmatpush1.bf16.msra.mxu1 %v6348_v48  ;;  %v6360_v48 = vpack.c.bf16 %v3116_v25, %v3114_v32  ;;  %v6278_v36 = vpack.c.bf16 %v2555_v47, %v2553_v45  ;;  %v2558_v23 = vld [vmem:[#allocation3 + $0x1050] sm:$0xff]  ;;  %v2561_v30 = vld [vmem:[#allocation3 + $0x1068] sm:$0xff]  ;;  %v2563_v40 = vld [vmem:[#allocation3 + $0x1078] sm:$0xff] }
 0x260   : > { %6253 = vmatpush1.bf16.msra.mxu0 %v6252_v52  ;;  %v2882_v52 = vld [vmem:[%s9090_s1 + $0x30] sm:$0xff]  ;;  %6351 = vmatprep.subr.bf16.mxu1 %v6350_v38  ;;  %v6362_v38 = vpack.c.bf16 %v3121_v12, %v3119_v41  ;;  %v3126_v32 = vld [vmem:[#allocation7 + $0x300] sm:$0xff]  ;;  %v3133_v41 = vld [vmem:[#allocation7 + $0x338] sm:$0xff]  ;;  %v6286_v33 = vpack.c.bf16 %v2563_v40, %v2561_v30 }
 0x261   : > { %6255 = vmatprep.subr.bf16.mxu0 %v6254_v61  ;;  %v6264_v61 = vpack.c.bf16 %v2322_v44, %v2320_v39  ;;  %2918 = vperm.xlu0 %7289, %v2882_v52   ;;  %v2550_v39 = vld [vmem:[#allocation3 + $0x1010] sm:$0xff]  ;;  %v2345_v44 = vrot.slane %v8050_v31, 5  ;;  %v8184_v52 = vrot.slane %v7488_v11, 6  ;;  %v3125_v31 = vld [vmem:[#allocation7 + $0x2f8] sm:$0xff] }
 0x262   : > { %2923 = vperm.xlu1 %7290, %v2883_v63   ;;  %v2560_v12 = vld [vmem:[#allocation3 + $0x1060] sm:$0xff]  ;;  %v2567_v45 = vld [vmem:[#allocation3 + $0x1098] sm:$0xff]  ;;  %v3143_v30 = vld [vmem:[#allocation7 + $0x388] sm:$0xff] }
 0x263   : > { %6353 = vmatpush1.bf16.msra.mxu1 %v6352_v56  ;;  %v2346_v11 = vsel %vm2336_vm4, %v2341_v34, %v2345_v44  ;;  %v2557_v56 = vld [vmem:[#allocation3 + $0x1048] sm:$0xff]  ;;  %v3145_v40 = vld [vmem:[#allocation7 + $0x398] sm:$0xff] }
 0x264   : > { %6257 = vmatpush1.bf16.msra.mxu0 %v6256_v18  ;;  %v3112_v18 = vld [vmem:[#allocation7 + $0x290] sm:$0xff]  ;;  %6355 = vmatprep.subr.bf16.mxu1 %v6354_v16  ;;  %v6364_v16 = vpack.c.bf16 %v3120_v51, %v3118_v58  ;;  %v3127_v34 = vld [vmem:[#allocation7 + $0x308] sm:$0xff] }
 0x265   : > { %6259 = vmatprep.subr.bf16.mxu0 %v6258_v14  ;;  %v6270_v14 = vpack.c.bf16 %v2331_v13, %v2329_v8  ;;  %2928 = vperm.xlu0 %7289, %v2884_v0   ;;  %v6356_v59 = vpack.c.bf16 %v3112_v18, %v3110_v5  ;;  %v2554_v8 = vld [vmem:[#allocation3 + $0x1030] sm:$0xff]  ;;  %v2349_v13 = vrot.slane %v8058_v17, 5  ;;  %v2559_v0 = vld [vmem:[#allocation3 + $0x1058] sm:$0xff]  ;;  %v6366_v5 = vpack.c.bf16 %v3125_v31, %v3123_v42  ;;  %v3122_v18 = vld [vmem:[#allocation7 + $0x2e0] sm:$0xff] }
 0x266   : > { %2933 = vperm.xlu1 %7290, %v2885_v20   ;;  %v6280_v20 = vpack.c.bf16 %v2554_v8, %v2552_v49  ;;  %v2347_v17 = vrot.slane %v8067_v28, 5  ;;  %v6282_v6 = vpack.c.bf16 %v2559_v0, %v2557_v56  ;;  %v3128_v28 = vld [vmem:[#allocation7 + $0x310] sm:$0xff] }
 0x267   : > { %6357 = vmatpush1.bf16.msra.mxu1 %v6356_v59  ;;  %v2350_v1 = vsel %vm2336_vm4, %v2345_v44, %v2349_v13  ;;  %v2565_v44 = vld [vmem:[#allocation3 + $0x1088] sm:$0xff]  ;;  %v6372_v47 = vpack.c.bf16 %v3128_v28, %v3126_v32  ;;  %v3132_v58 = vld [vmem:[#allocation7 + $0x330] sm:$0xff]  ;;  %v2369_v28 = vrot.slane %v8110_v43, 5 }
 0x268   : > { %6261 = vmatpush1.bf16.msra.mxu0 %v6260_v10  ;;  %v2338_v10 = vrot.slane %v8047_v4, 5  ;;  %6359 = vmatprep.subr.bf16.mxu1 %v6358_v50  ;;  %v3091_v4 = vld [vmem:[#allocation2 + $0x8] sm:$0xc0]  ;;  %v6370_v50 = vpack.c.bf16 %v3129_v22, %v3127_v34  ;;  %v2566_v42 = vld [vmem:[#allocation3 + $0x1090] sm:$0xff]  ;;  %v2571_v49 = vld [vmem:[#allocation3 + $0x10b8] sm:$0xff] }
 0x269   : > { %6263 = vmatprep.subr.bf16.mxu0 %v6262_v26  ;;  %v2548_v26 = vld [vmem:[#allocation3 + $0x1000] sm:$0xff]  ;;  %v3136_v56 = vld [vmem:[#allocation7 + $0x350] sm:$0xff] }
 0x26a   : > { %v6276_v63 = vpack.c.bf16 %v2550_v39, %v2548_v26  ;;  %v2344_v3 = vsel %vm2336_vm4, %v2338_v10, %v2343_v2  ;;  %v2354_v26 = vsel %vm2336_vm4, %v2349_v13, %v2353_v15  ;;  %v2357_v39 = vrot.slane %v8080_v24, 5  ;;  %v3134_v13 = vld [vmem:[#allocation7 + $0x340] sm:$0xff]  ;;  %v2575_v34 = vld [vmem:[#allocation3 + $0x10d8] sm:$0xff] }
 0x26b   : > { %6361 = vmatpush1.bf16.msra.mxu1 %v6360_v48  ;;  %v6290_v24 = vpack.c.bf16 %v2567_v45, %v2565_v44  ;;  %v6380_v22 = vpack.c.bf16 %v3136_v56, %v3134_v13  ;;  %v2576_v44 = vld [vmem:[#allocation3 + $0x10e0] sm:$0xff]  ;;  %v2578_v45 = vld [vmem:[#allocation3 + $0x10f0] sm:$0xff]  ;;  %v2585_v13 = vld [vmem:[#allocation3 + $0x1128] sm:$0xff] }
 0x26c   : > { %6265 = vmatpush1.bf16.msra.mxu0 %v6264_v61  ;;  %v2339_v61 = vsel %vm2336_vm4, %v2337_v35, %v2338_v10  ;;  %6363 = vmatprep.subr.bf16.mxu1 %v6362_v38  ;;  %v2351_v35 = vrot.slane %v8077_v37, 5  ;;  %v3131_v10 = vld [vmem:[#allocation7 + $0x328] sm:$0xff]  ;;  %v3130_v38 = vld [vmem:[#allocation7 + $0x320] sm:$0xff]  ;;  %v2358_v31 = vsel %vm2336_vm4, %v2353_v15, %v2357_v39  ;;  %v2363_v15 = vrot.slane %v8107_v29, 5  ;;  %v2587_v56 = vld [vmem:[#allocation3 + $0x1138] sm:$0xff] }
 0x26d   : > { %6267 = vmatprep.subr.bf16.mxu0 %v6266_v46  ;;  %v3183_v46 = vrot.slane %v3091_v4, 6  ;;  %v6374_v48 = vpack.c.bf16 %v3133_v41, %v3131_v10  ;;  %v2355_v4 = vrot.slane %v8087_v57, 5  ;;  %v6376_v8 = vpack.c.bf16 %v3132_v58, %v3130_v38  ;;  %v3142_v41 = vld [vmem:[#allocation7 + $0x380] sm:$0xff]  ;;  %v2583_v58 = vld [vmem:[#allocation3 + $0x1118] sm:$0xff] }
 0x26e   : > { %v2352_v51 = vsel %vm2336_vm4, %v2347_v17, %v2351_v35  ;;  %v6386_v10 = vpack.c.bf16 %v3145_v40, %v3143_v30  ;;  %v2581_v38 = vld [vmem:[#allocation3 + $0x1108] sm:$0xff] }
 0x26f   : > { %v3185_v54 = vsel %vm2616_vm5, %v3183_v46, %v8184_v52  ;;  %6365 = vmatpush1.bf16.msra.mxu1 %v6364_v16  ;;  %v2361_v46 = vrot.slane %v8090_v19, 5  ;;  %v2356_v0 = vsel %vm2336_vm4, %v2351_v35, %v2355_v4  ;;  %v2359_v16 = vrot.slane %v8097_v27, 5  ;;  %v3154_v40 = vld [vmem:[#allocation7 + $0x3e0] sm:$0xff] }
 0x270   : > { %6269 = vmatpush1.bf16.msra.mxu0 %v6268_v62  ;;  %v3124_v62 = vld [vmem:[#allocation7 + $0x2f0] sm:$0xff]  ;;  %3306 = vmatprep.mubr.f32.mxu1 %v3185_v54  ;;  %v3139_v54 = vld [vmem:[#allocation7 + $0x368] sm:$0xff] }
 0x271   : > { %6271 = vmatprep.subr.bf16.mxu0 %v6270_v14  ;;  %v2556_v14 = vld [vmem:[#allocation3 + $0x1040] sm:$0xff]  ;;  %v6368_v59 = vpack.c.bf16 %v3124_v62, %v3122_v18  ;;  %6367 = vmatprep.subr.bf16.mxu1 %v6366_v5  ;;  %v2570_v62 = vld [vmem:[#allocation3 + $0x10b0] sm:$0xff] }
 0x272   : > { %v6284_v25 = vpack.c.bf16 %v2558_v23, %v2556_v14  ;;  %v3141_v5 = vld [vmem:[#allocation7 + $0x378] sm:$0xff]  ;;  %v3138_v14 = vld [vmem:[#allocation7 + $0x360] sm:$0xff]  ;;  %v3140_v23 = vld [vmem:[#allocation7 + $0x370] sm:$0xff] }
 0x273   : > { %6369 = vmatpush1.bf16.msra.mxu1 %v6368_v59  ;;  %v2568_v18 = vld [vmem:[#allocation3 + $0x10a0] sm:$0xff]  ;;  %v6384_v35 = vpack.c.bf16 %v3140_v23, %v3138_v14  ;;  %v8227_v14 = vld [vmem:[%s7671_s14 + $0x38] sm:$0xff] }
 0x274   : > { %6273 = vmatpush1.bf16.msra.mxu0 %v6272_v53  ;;  %v2348_v53 = vsel %vm2336_vm4, %v2343_v2, %v2347_v17  ;;  %6371 = vmatprep.subr.bf16.mxu1 %v6370_v50  ;;  %v2564_v2 = vld [vmem:[#allocation3 + $0x1080] sm:$0xff]  ;;  %v2573_v17 = vld [vmem:[#allocation3 + $0x10c8] sm:$0xff]  ;;  %v6296_v27 = vpack.c.bf16 %v2570_v62, %v2568_v18  ;;  %v2574_v50 = vld [vmem:[#allocation3 + $0x10d0] sm:$0xff]  ;;  %v2621_v23 = vrot.slane %v8227_v14, 6 }
 0x275   : > { %6275 = vmatprep.subr.bf16.mxu0 %v6274_v21  ;;  %v2562_v21 = vld [vmem:[#allocation3 + $0x1070] sm:$0xff]  ;;  %v6292_v57 = vpack.c.bf16 %v2566_v42, %v2564_v2  ;;  %v2572_v59 = vld [vmem:[#allocation3 + $0x10c0] sm:$0xff]  ;;  %v2371_v2 = vrot.slane %v8127_v7, 5 }
 0x276   : > { %v6288_v37 = vpack.c.bf16 %v2562_v21, %v2560_v12  ;;  %v6300_v29 = vpack.c.bf16 %v2574_v50, %v2572_v59  ;;  %v2364_v12 = vsel %vm2336_vm4, %v2359_v16, %v2363_v15  ;;  %v2367_v21 = vrot.slane %v8117_v55, 5  ;;  %v3146_v55 = vld [vmem:[#allocation7 + $0x3a0] sm:$0xff]  ;;  %v3153_v42 = vld [vmem:[#allocation7 + $0x3d8] sm:$0xff]  ;;  %v3155_v62 = vld [vmem:[#allocation7 + $0x3e8] sm:$0xff] }
 0x277   : > { %2464 = vmatmul.mubr.f32.vlgmr.msra.gmra.mrb[0].mxu0 %v2339_v61  ;;  %v3135_v61 = vld [vmem:[#allocation7 + $0x348] sm:$0xff]  ;;  %6373 = vmatpush1.bf16.msra.mxu1 %v6372_v47  ;;  %v3150_v7 = vld [vmem:[#allocation7 + $0x3c0] sm:$0xff] }
 0x278   : > { %6277 = vmatpush1.bf16.msra.mxu0 %v6276_v63  ;;  %2469 = vmatprep.mubr.f32.mxu0 %v2346_v11  ;;  %v3137_v63 = vld [vmem:[#allocation7 + $0x358] sm:$0xff]  ;;  %v3090_v59 = vld [vmem:[#allocation2] sm:$0xc0] }
 0x279   : > { %6279 = vmatprep.subr.bf16.mxu0 %v6278_v36  ;;  %v2569_v36 = vld [vmem:[#allocation3 + $0x10a8] sm:$0xff]  ;;  %6375 = vmatprep.subr.bf16.mxu1 %v6374_v48  ;;  %v6378_v11 = vpack.c.bf16 %v3137_v63, %v3135_v61  ;;  %v2373_v48 = vrot.slane %v8120_v60, 5  ;;  %v3148_v61 = vld [vmem:[#allocation7 + $0x3b0] sm:$0xff]  ;;  %v6304_v63 = vpack.c.bf16 %v2578_v45, %v2576_v44 }
 0x27a   : > { %v6294_v19 = vpack.c.bf16 %v2571_v49, %v2569_v36  ;;  %v3151_v60 = vld [vmem:[#allocation7 + $0x3c8] sm:$0xff] }
 0x27b   : > { %2470 = vmatmul.mubr.f32.gmra.mrb[2].mxu0 %v2344_v3  ;;  %v2365_v3 = vrot.slane %v8100_v9, 5  ;;  %6377 = vmatpush1.bf16.msra.mxu1 %v6376_v8  ;;  %v6298_v9 = vpack.c.bf16 %v2575_v34, %v2573_v17  ;;  %v2582_v36 = vld [vmem:[#allocation3 + $0x1110] sm:$0xff]  ;;  %v2374_v49 = vsel %vm2336_vm4, %v2369_v28, %v2373_v48  ;;  %v2584_v17 = vld [vmem:[#allocation3 + $0x1120] sm:$0xff] }
 0x27c   : > { %6281 = vmatpush1.bf16.msra.mxu0 %v6280_v20  ;;  %2475 = vmatprep.mubr.f32.mxu0 %v2350_v1  ;;  %v2362_v20 = vsel %vm2336_vm4, %v2357_v39, %v2361_v46  ;;  %v2360_v1 = vsel %vm2336_vm4, %v2355_v4, %v2359_v16  ;;  %v3149_v39 = vld [vmem:[#allocation7 + $0x3b8] sm:$0xff]  ;;  %v6394_v16 = vpack.c.bf16 %v3153_v42, %v3151_v60  ;;  %v2586_v34 = vld [vmem:[#allocation3 + $0x1130] sm:$0xff] }
 0x27d   : > { %6283 = vmatprep.subr.bf16.mxu0 %v6282_v6  ;;  %6379 = vmatprep.subr.bf16.mxu1 %v6378_v11  ;;  %v6382_v6 = vpack.c.bf16 %v3141_v5, %v3139_v54  ;;  %v2366_v32 = vsel %vm2336_vm4, %v2361_v46, %v2365_v3  ;;  %v2370_v47 = vsel %vm2336_vm4, %v2365_v3, %v2369_v28  ;;  %v2580_v46 = vld [vmem:[#allocation3 + $0x1100] sm:$0xff]  ;;  %v3152_v54 = vld [vmem:[#allocation7 + $0x3d0] sm:$0xff]  ;;  %v3027_v28 = vld [vmem:[#allocation7 + $0x8] sm:$0xff] }
 0x27e   : > { %v2266_v11 = vld [vmem:[%s7671_s14 + $0xc0] sm:$0x1f]  ;;  %v6308_v5 = vpack.c.bf16 %v2582_v36, %v2580_v46  ;;  %v6310_v3 = vpack.c.bf16 %v2587_v56, %v2585_v13  ;;  %v6312_v50 = vpack.c.bf16 %v2586_v34, %v2584_v17  ;;  %v3031_v45 = vld [vmem:[#allocation7 + $0x28] sm:$0xff] }
 0x27f   : > { %2476 = vmatmul.mubr.f32.gmra.mrb[4].mxu0 %v2348_v53  ;;  %v2579_v53 = vld [vmem:[#allocation3 + $0x10f8] sm:$0xff]  ;;  %6381 = vmatpush1.bf16.msra.mxu1 %v6380_v22  ;;  %v2375_v18 = vrot.slane %v2266_v11, 5  ;;  %v3035_v60 = vld [vmem:[#allocation7 + $0x48] sm:$0xff]  ;;  %v2596_v46 = vld [vmem:[#allocation3 + $0x1180] sm:$0xff] }
 0x280   : > { %6285 = vmatpush1.bf16.msra.mxu0 %v6284_v25  ;;  %2481 = vmatprep.mubr.f32.mxu0 %v2354_v26  ;;  %v2577_v25 = vld [vmem:[#allocation3 + $0x10e8] sm:$0xff]  ;;  %v3037_v42 = vld [vmem:[#allocation7 + $0x58] sm:$0xff]  ;;  %v2598_v36 = vld [vmem:[#allocation3 + $0x1190] sm:$0xff] }
 0x281   : > { %6287 = vmatprep.subr.bf16.mxu0 %v6286_v33  ;;  %6383 = vmatprep.subr.bf16.mxu1 %v6382_v6  ;;  %v3144_v33 = vld [vmem:[#allocation7 + $0x390] sm:$0xff]  ;;  %v3147_v26 = vld [vmem:[#allocation7 + $0x3a8] sm:$0xff]  ;;  %v6302_v43 = vpack.c.bf16 %v2579_v53, %v2577_v25  ;;  %v3029_v25 = vld [vmem:[#allocation7 + $0x18] sm:$0xff]  ;;  %v6410_v13 = vpack.c.bf16 %v3037_v42, %v3035_v60  ;;  %v6324_v56 = vpack.c.bf16 %v2598_v36, %v2596_v46 }
 0x282   : > { %v6390_v4 = vpack.c.bf16 %v3149_v39, %v3147_v26  ;;  %v6402_v26 = vpack.c.bf16 %v3029_v25, %v3027_v28  ;;  %v3026_v39 = vld [vmem:[#allocation7] sm:$0xff]  ;;  %v7326_v60 = vld [vmem:[%s7671_s14 + $0x90] sm:$0xff] }
 0x283   : > { %2482 = vmatmul.mubr.f32.gmra.mrb[6].mxu0 %v2352_v51  ;;  %6385 = vmatpush1.bf16.msra.mxu1 %v6384_v35  ;;  %v6388_v51 = vpack.c.bf16 %v3144_v33, %v3142_v41  ;;  %v2588_v35 = vld [vmem:[#allocation3 + $0x1140] sm:$0xff]  ;;  %v2593_v33 = vld [vmem:[#allocation3 + $0x1168] sm:$0xff]  ;;  %v2643_v42 = vrot.slane %v7326_v60, 6 }
 0x284   : > { %6289 = vmatpush1.bf16.msra.mxu0 %v6288_v37  ;;  %2487 = vmatprep.mubr.f32.mxu0 %v2358_v31  ;;  %v2267_v37 = vld [vmem:[%s7671_s14 + $0xc8] sm:$0x1f]  ;;  %v6306_v31 = vpack.c.bf16 %v2583_v58, %v2581_v38  ;;  %v2592_v38 = vld [vmem:[#allocation3 + $0x1160] sm:$0xff]  ;;  %v2594_v58 = vld [vmem:[#allocation3 + $0x1170] sm:$0xff] }
 0x285   : > { %6291 = vmatprep.subr.bf16.mxu0 %v6290_v24  ;;  %6387 = vmatprep.subr.bf16.mxu1 %v6386_v10  ;;  %v2368_v24 = vsel %vm2336_vm4, %v2363_v15, %v2367_v21  ;;  %v2377_v8 = vrot.slane %v2267_v37, 5  ;;  %v6396_v15 = vpack.c.bf16 %v3152_v54, %v3150_v7  ;;  %v2590_v10 = vld [vmem:[#allocation3 + $0x1150] sm:$0xff]  ;;  %v2597_v37 = vld [vmem:[#allocation3 + $0x1188] sm:$0xff]  ;;  %v2607_v54 = vld [vmem:[#allocation3 + $0x11d8] sm:$0xff] }
 0x286   : > { %v6316_v44 = vpack.c.bf16 %v2590_v10, %v2588_v35  ;;  %v2605_v7 = vld [vmem:[#allocation3 + $0x11c8] sm:$0xff] }
 0x287   : > { %2488 = vmatmul.mubr.f32.gmra.mrb[8].mxu0 %v2356_v0  ;;  %6389 = vmatpush1.bf16.msra.mxu1 %v6388_v51  ;;  %v6392_v0 = vpack.c.bf16 %v3148_v61, %v3146_v55  ;;  %v2378_v22 = vsel %vm2336_vm4, %v2373_v48, %v2377_v8  ;;  %v2599_v51 = vld [vmem:[#allocation3 + $0x1198] sm:$0xff]  ;;  %v7327_v46 = vld [vmem:[%s7671_s14 + $0xa8] sm:$0xff] }
 0x288   : > { %6293 = vmatpush1.bf16.msra.mxu0 %v6292_v57  ;;  %2493 = vmatprep.mubr.f32.mxu0 %v2362_v20  ;;  %v2545_v57 = vld [vmem:[%s7671_s14 + $0x28] sm:$0xc0]  ;;  %v3157_v20 = vld [vmem:[#allocation7 + $0x3f8] sm:$0xff]  ;;  %v2649_v36 = vrot.slane %v7327_v46, 6 }
 0x289   : > { %6295 = vmatprep.subr.bf16.mxu0 %v6294_v19  ;;  %6391 = vmatprep.subr.bf16.mxu1 %v6390_v4  ;;  %v2372_v19 = vsel %vm2336_vm4, %v2367_v21, %v2371_v2  ;;  %v2620_v6 = vrot.slane %v2545_v57, 6  ;;  %v6398_v30 = vpack.c.bf16 %v3157_v20, %v3155_v62  ;;  %v3180_v21 = vrot.slane %v3090_v59, 6  ;;  %v2603_v8 = vld [vmem:[#allocation3 + $0x11b8] sm:$0xff]  ;;  %v2606_v62 = vld [vmem:[#allocation3 + $0x11d0] sm:$0xff]  ;;  %v2609_v20 = vld [vmem:[#allocation3 + $0x11e8] sm:$0xff] }
 0x28b   : > { %2494 = vmatmul.mubr.f32.gmra.mrb[10].mxu0 %v2360_v1  ;;  %v2591_v1 = vld [vmem:[#allocation3 + $0x1158] sm:$0xff]  ;;  %6393 = vmatpush1.bf16.msra.mxu1 %v6392_v0  ;;  %v2622_v41 = vsel %vm2616_vm5, %v2620_v6, %v2621_v23  ;;  %v3182_v4 = vsel %vm2616_vm5, %v3180_v21, %v8184_v52  ;;  %v2600_v0 = vld [vmem:[#allocation3 + $0x11a0] sm:$0xff]  ;;  %v2610_v6 = vld [vmem:[#allocation3 + $0x11f0] sm:$0xff] }
 0x28c   : > { %6297 = vmatpush1.bf16.msra.mxu0 %v6296_v27  ;;  %2499 = vmatprep.mubr.f32.mxu0 %v2366_v32  ;;  %v2589_v27 = vld [vmem:[#allocation3 + $0x1148] sm:$0xff]  ;;  %v2376_v32 = vsel %vm2336_vm4, %v2371_v2, %v2375_v18  ;;  %v6320_v2 = vpack.c.bf16 %v2594_v58, %v2592_v38  ;;  %v2604_v18 = vld [vmem:[#allocation3 + $0x11c0] sm:$0xff] }
 0x28d   : > { %6299 = vmatprep.subr.bf16.mxu0 %v6298_v9  ;;  %6395 = vmatprep.subr.bf16.mxu1 %v6394_v16  ;;  %v3156_v9 = vld [vmem:[#allocation7 + $0x3f0] sm:$0xff]  ;;  %v6314_v53 = vpack.c.bf16 %v2591_v1, %v2589_v27  ;;  %v6332_v17 = vpack.c.bf16 %v2606_v62, %v2604_v18  ;;  %v2544_v27 = vld [vmem:[%s7671_s14 + $0x20] sm:$0xc0]  ;;  %v7323_v58 = vld [vmem:[%s7671_s14 + $0x88] sm:$0xff] }
 0x28e   : > { %v2602_v16 = vld [vmem:[#allocation3 + $0x11b0] sm:$0xff]  ;;  %v2546_v18 = vld [vmem:[%s7671_s14 + $0xc0] sm:$0x3f] }
 0x28f   : > { %2500 = vmatmul.mubr.f32.gmra.mrb[12].mxu0 %v2364_v12  ;;  %6397 = vmatpush1.bf16.msra.mxu1 %v6396_v15  ;;  %v6400_v12 = vpack.c.bf16 %v3156_v9, %v3154_v40  ;;  %v2617_v15 = vrot.slane %v2544_v27, 6  ;;  %v7315_v9 = vld [vmem:[%s7671_s14 + $0x48] sm:$0xff] }
 0x290   : > { %6301 = vmatpush1.bf16.msra.mxu0 %v6300_v29  ;;  %2505 = vmatprep.mubr.f32.mxu0 %v2370_v47  ;;  %v2595_v29 = vld [vmem:[#allocation3 + $0x1178] sm:$0xff]  ;;  %v2625_v59 = vrot.slane %v7315_v9, 6  ;;  %v3039_v27 = vld [vmem:[#allocation7 + $0x68] sm:$0xff] }
 0x291   : > { %6303 = vmatprep.subr.bf16.mxu0 %v6302_v43  ;;  %6399 = vmatprep.subr.bf16.mxu1 %v6398_v30  ;;  %v3028_v43 = vld [vmem:[#allocation7 + $0x10] sm:$0xff]  ;;  %v3033_v47 = vld [vmem:[#allocation7 + $0x38] sm:$0xff]  ;;  %v6318_v48 = vpack.c.bf16 %v2595_v29, %v2593_v33 }
 0x292   : > { %v6404_v55 = vpack.c.bf16 %v3028_v43, %v3026_v39  ;;  %v6406_v61 = vpack.c.bf16 %v3033_v47, %v3031_v45  ;;  %v7314_v30 = vld [vmem:[%s7671_s14 + $0x30] sm:$0xff]  ;;  %v2626_v25 = vsel %vm2616_vm5, %v2621_v23, %v2625_v59  ;;  %v7320_v23 = vld [vmem:[%s7671_s14 + $0x60] sm:$0xff]  ;;  %v7321_v43 = vld [vmem:[%s7671_s14 + $0x78] sm:$0xff] }
 0x293   : > { %2506 = vmatmul.mubr.f32.gmra.mrb[14].mxu0 %v2368_v24  ;;  %6401 = vmatpush1.bf16.msra.mxu1 %v6400_v12  ;;  %v3032_v24 = vld [vmem:[#allocation7 + $0x30] sm:$0xff]  ;;  %v2618_v40 = vrot.slane %v7314_v30, 6  ;;  %v7319_v12 = vld [vmem:[%s7671_s14 + $0x68] sm:$0xff] }
 0x294   : > { %6305 = vmatpush1.bf16.msra.mxu0 %v6304_v63  ;;  %2511 = vmatprep.mubr.f32.mxu0 %v2374_v49  ;;  %v3030_v63 = vld [vmem:[#allocation7 + $0x20] sm:$0xff]  ;;  %v2633_v21 = vrot.slane %v7319_v12, 6  ;;  %v7322_v47 = vld [vmem:[%s7671_s14 + $0x70] sm:$0xff] }
 0x295   : > { %6307 = vmatprep.subr.bf16.mxu0 %v6306_v31  ;;  %6403 = vmatprep.subr.bf16.mxu1 %v6402_v26  ;;  %v6322_v31 = vpack.c.bf16 %v2599_v51, %v2597_v37  ;;  %v2601_v49 = vld [vmem:[#allocation3 + $0x11a8] sm:$0xff]  ;;  %v6408_v11 = vpack.c.bf16 %v3032_v24, %v3030_v63  ;;  %v2631_v26 = vrot.slane %v7320_v23, 6  ;;  %v2641_v37 = vrot.slane %v7323_v58, 6  ;;  %v7325_v63 = vld [vmem:[%s7671_s14 + $0x98] sm:$0xff] }
 0x296   : > { %3307 = vmatmul.mubr.f32.vlgmr.msra.gmra.mrb[0].mxu1 %v3182_v4  ;;  %v6326_v57 = vpack.c.bf16 %v2603_v8, %v2601_v49  ;;  %v7324_v4 = vld [vmem:[%s7671_s14 + $0x80] sm:$0xff]  ;;  %v2645_v24 = vrot.slane %v7325_v63, 6 }
 0x297   : > { %2512 = vmatmul.mubr.f32.gmra.mrb[16].mxu0 %v2372_v19  ;;  %6405 = vmatpush1.bf16.msra.mxu1 %v6404_v55  ;;  %v6330_v19 = vpack.c.bf16 %v2607_v54, %v2605_v7  ;;  %v2639_v55 = vrot.slane %v7324_v4, 6  ;;  %v7328_v8 = vld [vmem:[%s7671_s14 + $0xa0] sm:$0xff]  ;;  %v7330_v7 = vld [vmem:[%s7671_s14 + $0xb0] sm:$0xff] }
 0x298   : > { %6309 = vmatpush1.bf16.msra.mxu0 %v6308_v5  ;;  %2517 = vmatprep.mubr.f32.mxu0 %v2378_v22  ;;  %v6328_v5 = vpack.c.bf16 %v2602_v16, %v2600_v0  ;;  %v2608_v22 = vld [vmem:[#allocation3 + $0x11e0] sm:$0xff]  ;;  %v2547_v0 = vld [vmem:[%s7671_s14 + $0xc8] sm:$0x3f]  ;;  %v2651_v54 = vrot.slane %v7330_v7, 6 }
 0x299   : > { %6311 = vmatprep.subr.bf16.mxu0 %v6310_v3  ;;  %6407 = vmatprep.subr.bf16.mxu1 %v6406_v61  ;;  %v2611_v3 = vld [vmem:[#allocation3 + $0x11f8] sm:$0xff]  ;;  %v6336_v1 = vpack.c.bf16 %v2610_v6, %v2608_v22  ;;  %v2644_v49 = vsel %vm2616_vm5, %v2639_v55, %v2643_v42  ;;  %v3038_v30 = vld [vmem:[#allocation7 + $0x60] sm:$0xff] }
 0x29a   : > { %v6334_v34 = vpack.c.bf16 %v2611_v3, %v2609_v20  ;;  %v2655_v20 = vrot.slane %v2546_v18, 6  ;;  %v3036_v22 = vld [vmem:[#allocation7 + $0x50] sm:$0xff]  ;;  %v3070_v7 = vld [vmem:[#allocation7 + $0x160] sm:$0xff]  ;;  %v3077_v18 = vld [vmem:[#allocation7 + $0x198] sm:$0xff] }
 0x29b   : > { %2518 = vmatmul.mubr.f32.gmra.mrb[18].mxu0 %v2376_v32  ;;  %6409 = vmatpush1.bf16.msra.mxu1 %v6408_v11  ;;  %v7316_v32 = vld [vmem:[%s7671_s14 + $0x40] sm:$0xff]  ;;  %v2647_v11 = vrot.slane %v7328_v8, 6 }
 0x29c   : > { %6313 = vmatpush1.bf16.msra.mxu0 %v6312_v50  ;;  %2743 = vmatprep.mubr.f32.mxu0 %v2622_v41  ;;  %v2619_v50 = vsel %vm2616_vm5, %v2617_v15, %v2618_v40  ;;  %v2623_v28 = vrot.slane %v7316_v32, 6  ;;  %v7318_v41 = vld [vmem:[%s7671_s14 + $0x50] sm:$0xff] }
 0x29d   : > { %6315 = vmatprep.subr.bf16.mxu0 %v6314_v53  ;;  %6411 = vmatprep.subr.bf16.mxu1 %v6410_v13  ;;  %v7317_v53 = vld [vmem:[%s7671_s14 + $0x58] sm:$0xff]  ;;  %v2627_v33 = vrot.slane %v7318_v41, 6  ;;  %v2650_v13 = vsel %vm2616_vm5, %v2645_v24, %v2649_v36  ;;  %v2648_v16 = vsel %vm2616_vm5, %v2643_v42, %v2647_v11  ;;  %v2652_v62 = vsel %vm2616_vm5, %v2647_v11, %v2651_v54  ;;  %v3062_v42 = vld [vmem:[#allocation7 + $0x120] sm:$0xff] }
 0x29e   : > { %v2629_v35 = vrot.slane %v7317_v53, 6  ;;  %v2624_v10 = vsel %vm2616_vm5, %v2618_v40, %v2623_v28  ;;  %v3040_v40 = vld [vmem:[#allocation7 + $0x70] sm:$0xff]  ;;  %v3066_v11 = vld [vmem:[#allocation7 + $0x140] sm:$0xff] }
 0x29f   : > { %v2628_v14 = vsel %vm2616_vm5, %v2623_v28, %v2627_v33  ;;  %v2632_v45 = vsel %vm2616_vm5, %v2627_v33, %v2631_v26  ;;  %v6416_v9 = vpack.c.bf16 %v3040_v40, %v3038_v30  ;;  %v3042_v28 = vld [vmem:[#allocation7 + $0x80] sm:$0xff]  ;;  %v3083_v30 = vld [vmem:[#allocation7 + $0x1c8] sm:$0xff]  ;;  %v3085_v40 = vld [vmem:[#allocation7 + $0x1d8] sm:$0xff] }
 0x2a0   : > { %6317 = vmatpush1.bf16.msra.mxu0 %v6316_v44  ;;  %v2630_v29 = vsel %vm2616_vm5, %v2625_v59, %v2629_v35  ;;  %v2634_v39 = vsel %vm2616_vm5, %v2629_v35, %v2633_v21  ;;  %v2637_v44 = vrot.slane %v7321_v43, 6  ;;  %v3043_v59 = vld [vmem:[#allocation7 + $0x88] sm:$0xff]  ;;  %v3046_v33 = vld [vmem:[#allocation7 + $0xa0] sm:$0xff] }
 0x2a1   : > { %6319 = vmatprep.subr.bf16.mxu0 %v6318_v48  ;;  %v2635_v48 = vrot.slane %v7322_v47, 6  ;;  %v3047_v35 = vld [vmem:[#allocation7 + $0xa8] sm:$0xff] }
 0x2a2   : > { %v2638_v38 = vsel %vm2616_vm5, %v2633_v21, %v2637_v44  ;;  %v2642_v61 = vsel %vm2616_vm5, %v2637_v44, %v2641_v37  ;;  %v3051_v21 = vld [vmem:[#allocation7 + $0xc8] sm:$0xff] }
 0x2a3   : > { %v2636_v51 = vsel %vm2616_vm5, %v2631_v26, %v2635_v48  ;;  %v3050_v26 = vld [vmem:[#allocation7 + $0xc0] sm:$0xff]  ;;  %v3055_v44 = vld [vmem:[#allocation7 + $0xe8] sm:$0xff] }
 0x2a4   : > { %6321 = vmatpush1.bf16.msra.mxu0 %v6320_v2  ;;  %v2640_v2 = vsel %vm2616_vm5, %v2635_v48, %v2639_v55  ;;  %v3054_v48 = vld [vmem:[#allocation7 + $0xe0] sm:$0xff] }
 0x2a5   : > { %6323 = vmatprep.subr.bf16.mxu0 %v6322_v31  ;;  %v2646_v31 = vsel %vm2616_vm5, %v2641_v37, %v2645_v24  ;;  %v3059_v37 = vld [vmem:[#allocation7 + $0x108] sm:$0xff]  ;;  %v3058_v55 = vld [vmem:[#allocation7 + $0x100] sm:$0xff] }
 0x2a6   : > { %v3063_v24 = vld [vmem:[#allocation7 + $0x128] sm:$0xff] }
 0x2a8   : > { %6325 = vmatpush1.bf16.msra.mxu0 %v6324_v56  ;;  %v7329_v56 = vld [vmem:[%s7671_s14 + $0xb8] sm:$0xff] }
 0x2a9   : > { %6327 = vmatprep.subr.bf16.mxu0 %v6326_v57  ;;  %v2653_v57 = vrot.slane %v7329_v56, 6 }
 0x2ac   : > { %6329 = vmatpush1.bf16.msra.mxu0 %v6328_v5  ;;  %v2654_v5 = vsel %vm2616_vm5, %v2649_v36, %v2653_v57  ;;  %v3067_v36 = vld [vmem:[#allocation7 + $0x148] sm:$0xff] }
 0x2ad   : > { %6331 = vmatprep.subr.bf16.mxu0 %v6330_v19  ;;  %v2657_v19 = vrot.slane %v2547_v0, 6  ;;  %v3073_v0 = vld [vmem:[#allocation7 + $0x178] sm:$0xff] }
 0x2af   : > { %v2658_v3 = vsel %vm2616_vm5, %v2653_v57, %v2657_v19  ;;  %v3071_v57 = vld [vmem:[#allocation7 + $0x168] sm:$0xff] }
 0x2b0   : > { %6333 = vmatpush1.bf16.msra.mxu0 %v6332_v17  ;;  %v2656_v17 = vsel %vm2616_vm5, %v2651_v54, %v2655_v20  ;;  %v3072_v54 = vld [vmem:[#allocation7 + $0x170] sm:$0xff]  ;;  %v3075_v19 = vld [vmem:[#allocation7 + $0x188] sm:$0xff]  ;;  %v3074_v20 = vld [vmem:[#allocation7 + $0x180] sm:$0xff] }
 0x2b1   : > { %6335 = vmatprep.subr.bf16.mxu0 %v6334_v34  ;;  %v3034_v34 = vld [vmem:[#allocation7 + $0x40] sm:$0xff] }
 0x2b2   : > { %v6412_v6 = vpack.c.bf16 %v3036_v22, %v3034_v34  ;;  %v3079_v34 = vld [vmem:[#allocation7 + $0x1a8] sm:$0xff]  ;;  %v3081_v22 = vld [vmem:[#allocation7 + $0x1b8] sm:$0xff] }
 0x2b4   : > { %6337 = vmatpush1.bf16.msra.mxu0 %v6336_v1  ;;  %6413 = vmatpush1.bf16.msra.mxu1 %v6412_v6  ;;  %v3041_v1 = vld [vmem:[#allocation7 + $0x78] sm:$0xff]  ;;  %v6454_v6 = vpack.c.bf16 %v3081_v22, %v3079_v34 }
 0x2b5   : > { %v6414_v15 = vpack.c.bf16 %v3041_v1, %v3039_v27  ;;  %v3078_v27 = vld [vmem:[#allocation7 + $0x1a0] sm:$0xff]  ;;  %v3080_v1 = vld [vmem:[#allocation7 + $0x1b0] sm:$0xff] }
 0x2b7   : > { %2744 = vmatmul.mubr.f32.vlgmr.msra.gmra.mrb[0].mxu0 %v2619_v50  ;;  %6415 = vmatprep.subr.bf16.mxu1 %v6414_v15  ;;  %v3045_v50 = vld [vmem:[#allocation7 + $0x98] sm:$0xff]  ;;  %v6456_v15 = vpack.c.bf16 %v3080_v1, %v3078_v27 }
 0x2b8   : > { %2749 = vmatprep.mubr.f32.mxu0 %v2626_v25  ;;  %6417 = vmatpush1.bf16.msra.mxu1 %v6416_v9  ;;  %v6418_v32 = vpack.c.bf16 %v3045_v50, %v3043_v59  ;;  %v3044_v25 = vld [vmem:[#allocation7 + $0x90] sm:$0xff]  ;;  %v3082_v9 = vld [vmem:[#allocation7 + $0x1c0] sm:$0xff]  ;;  %v6458_v59 = vpack.c.bf16 %v3085_v40, %v3083_v30 }
 0x2b9   : > { %v6420_v53 = vpack.c.bf16 %v3044_v25, %v3042_v28  ;;  %v3084_v50 = vld [vmem:[#allocation7 + $0x1d0] sm:$0xff]  ;;  %v3087_v28 = vld [vmem:[#allocation7 + $0x1e8] sm:$0xff]  ;;  %v3089_v25 = vld [vmem:[#allocation7 + $0x1f8] sm:$0xff] }
 0x2ba   : > { %6419 = vmatprep.subr.bf16.mxu1 %v6418_v32  ;;  %v6460_v32 = vpack.c.bf16 %v3084_v50, %v3082_v9 }
 0x2bb   : > { %2750 = vmatmul.mubr.f32.gmra.mrb[2].mxu0 %v2624_v10  ;;  %v3049_v10 = vld [vmem:[#allocation7 + $0xb8] sm:$0xff] }
 0x2bc   : > { %2755 = vmatprep.mubr.f32.mxu0 %v2630_v29  ;;  %6421 = vmatpush1.bf16.msra.mxu1 %v6420_v53  ;;  %v6422_v41 = vpack.c.bf16 %v3049_v10, %v3047_v35  ;;  %v3048_v29 = vld [vmem:[#allocation7 + $0xb0] sm:$0xff]  ;;  %v6462_v53 = vpack.c.bf16 %v3089_v25, %v3087_v28  ;;  %v3086_v35 = vld [vmem:[#allocation7 + $0x1e0] sm:$0xff] }
 0x2bd   : > { %v6424_v12 = vpack.c.bf16 %v3048_v29, %v3046_v33  ;;  %v3088_v10 = vld [vmem:[#allocation7 + $0x1f0] sm:$0xff]  ;;  %v3563_v33 = vld [vmem:[#allocation7 + $0x408] sm:$0xff]  ;;  %v3565_v29 = vld [vmem:[#allocation7 + $0x418] sm:$0xff] }
 0x2be   : > { %6423 = vmatprep.subr.bf16.mxu1 %v6422_v41  ;;  %v6464_v41 = vpack.c.bf16 %v3088_v10, %v3086_v35 }
 0x2bf   : > { %2756 = vmatmul.mubr.f32.gmra.mrb[4].mxu0 %v2628_v14  ;;  %v3053_v14 = vld [vmem:[#allocation7 + $0xd8] sm:$0xff] }
 0x2c0   : > { %2761 = vmatprep.mubr.f32.mxu0 %v2634_v39  ;;  %6425 = vmatpush1.bf16.msra.mxu1 %v6424_v12  ;;  %v6426_v23 = vpack.c.bf16 %v3053_v14, %v3051_v21  ;;  %v3052_v39 = vld [vmem:[#allocation7 + $0xd0] sm:$0xff]  ;;  %v6466_v12 = vpack.c.bf16 %v3565_v29, %v3563_v33  ;;  %v9098_v21 = vlaneseq }
 0x2c1   : > { %v6428_v43 = vpack.c.bf16 %v3052_v39, %v3050_v26  ;;  %v2824_v26 = vld [vmem:[#allocation5] sm:$0x3] }
 0x2c2   : > { %6427 = vmatprep.subr.bf16.mxu1 %v6426_v23  ;;  %v8278_v14 = vshrl.u32 %v9098_v21, 7  ;;  %v3609_v21 = vld [vmem:[#allocation7 + $0x578] sm:$0xff] }
 0x2c3   : > { %2762 = vmatmul.mubr.f32.gmra.mrb[6].mxu0 %v2632_v45  ;;  %v3057_v45 = vld [vmem:[#allocation7 + $0xf8] sm:$0xff] }
 0x2c4   : > { %2767 = vmatprep.mubr.f32.mxu0 %v2638_v38  ;;  %6429 = vmatpush1.bf16.msra.mxu1 %v6428_v43  ;;  %v6430_v47 = vpack.c.bf16 %v3057_v45, %v3055_v44  ;;  %v3056_v38 = vld [vmem:[#allocation7 + $0xf0] sm:$0xff]  ;;  %9125 = vst [vmem:[#allocation13_spill] sm:$0xff] %v8278_v14  ;;  %v9100_v23 = vsub.s32 0, %v8278_v14  ;;  %v9099_v39 = vsub.s32 1, %v8278_v14  ;;  %v3622_v14 = vld [vmem:[#allocation7 + $0x5e0] sm:$0xff] }
 0x2c5   : > { %v6432_v58 = vpack.c.bf16 %v3056_v38, %v3054_v48 }
 0x2c6   : > { %6431 = vmatprep.subr.bf16.mxu1 %v6430_v47  ;;  %v8284_v43 = vrot.slane %v2824_v26, %v9100_v23  ;;  %v8288_v44 = vrot.slane %v2824_v26, %v9099_v39 }
 0x2c7   : > { %2768 = vmatmul.mubr.f32.gmra.mrb[8].mxu0 %v2636_v51  ;;  %v3061_v51 = vld [vmem:[#allocation7 + $0x118] sm:$0xff] }
 0x2c8   : > { %2773 = vmatprep.mubr.f32.mxu0 %v2642_v61  ;;  %6433 = vmatpush1.bf16.msra.mxu1 %v6432_v58  ;;  %v6434_v4 = vpack.c.bf16 %v3061_v51, %v3059_v37  ;;  %v3060_v61 = vld [vmem:[#allocation7 + $0x110] sm:$0xff] }
 0x2c9   : > { %v6436_v63 = vpack.c.bf16 %v3060_v61, %v3058_v55 }
 0x2ca   : > { %6435 = vmatprep.subr.bf16.mxu1 %v6434_v4 }
 0x2cb   : > { %2774 = vmatmul.mubr.f32.gmra.mrb[10].mxu0 %v2640_v2  ;;  %v3065_v2 = vld [vmem:[#allocation7 + $0x138] sm:$0xff] }
 0x2cc   : > { %2779 = vmatprep.mubr.f32.mxu0 %v2646_v31  ;;  %6437 = vmatpush1.bf16.msra.mxu1 %v6436_v63  ;;  %v6438_v60 = vpack.c.bf16 %v3065_v2, %v3063_v24  ;;  %v3064_v31 = vld [vmem:[#allocation7 + $0x130] sm:$0xff]  ;;  %v2889_v38 = vpop.permute.xlu0 %2888 }
 0x2cd   : > { %v6440_v46 = vpack.c.bf16 %v3064_v31, %v3062_v42 }
 0x2ce   : > { %6439 = vmatprep.subr.bf16.mxu1 %v6438_v60 }
 0x2cf   : > { %2780 = vmatmul.mubr.f32.gmra.mrb[12].mxu0 %v2644_v49  ;;  %v3069_v49 = vld [vmem:[#allocation7 + $0x158] sm:$0xff] }
 0x2d0   : > { %2785 = vmatprep.mubr.f32.mxu0 %v2650_v13  ;;  %6441 = vmatpush1.bf16.msra.mxu1 %v6440_v46  ;;  %v6442_v8 = vpack.c.bf16 %v3069_v49, %v3067_v36  ;;  %v3068_v13 = vld [vmem:[#allocation7 + $0x150] sm:$0xff] }
 0x2d1   : > { %v6444_v56 = vpack.c.bf16 %v3068_v13, %v3066_v11  ;;  %v2894_v31 = vpop.permute.xlu0 %2893 }
 0x2d2   : > { %6443 = vmatprep.subr.bf16.mxu1 %v6442_v8 }
 0x2d3   : > { %2786 = vmatmul.mubr.f32.gmra.mrb[14].mxu0 %v2648_v16  ;;  %v6446_v16 = vpack.c.bf16 %v3073_v0, %v3071_v57  ;;  %v2899_v0 = vpop.permute.xlu1 %2898 }
 0x2d4   : > { %2791 = vmatprep.mubr.f32.mxu0 %v2654_v5  ;;  %6445 = vmatpush1.bf16.msra.mxu1 %v6444_v56  ;;  %v6448_v5 = vpack.c.bf16 %v3072_v54, %v3070_v7 }
 0x2d5   : > { %6447 = vmatprep.subr.bf16.mxu1 %v6446_v16 }
 0x2d7   : > { %2792 = vmatmul.mubr.f32.gmra.mrb[16].mxu0 %v2652_v62  ;;  %v6450_v62 = vpack.c.bf16 %v3077_v18, %v3075_v19  ;;  %v2904_v35 = vpop.permute.xlu1 %2903 }
 0x2d8   : > { %2797 = vmatprep.mubr.f32.mxu0 %v2658_v3  ;;  %6449 = vmatpush1.bf16.msra.mxu1 %v6448_v5  ;;  %v3076_v3 = vld [vmem:[#allocation7 + $0x190] sm:$0xff] }
 0x2d9   : > { %6451 = vmatprep.subr.bf16.mxu1 %v6450_v62 }
 0x2db   : > { %2798 = vmatmul.mubr.f32.gmra.mrb[18].mxu0 %v2656_v17  ;;  %v6452_v17 = vpack.c.bf16 %v3076_v3, %v3074_v20 }
 0x2dd   : > { %6453 = vmatpush1.bf16.msra.mxu1 %v6452_v17 }
 0x2de   : > { %6455 = vmatprep.subr.bf16.mxu1 %v6454_v6 }
 0x2e1   : > { %6457 = vmatpush1.bf16.msra.mxu1 %v6456_v15 }
 0x2e2   : > { %6459 = vmatprep.subr.bf16.mxu1 %v6458_v59 }
 0x2e5   : > { %6461 = vmatpush1.bf16.msra.mxu1 %v6460_v32 }
 0x2e6   : > { %6463 = vmatprep.subr.bf16.mxu1 %v6462_v53 }
 0x2e9   : > { %6465 = vmatpush1.bf16.msra.mxu1 %v6464_v41 }
 0x2ea   : > { %6467 = vmatprep.subr.bf16.mxu1 %v6466_v12 }
 0x38a   : > { %v2745_v45 = vpop.f32.mrb[0].mxu0 }
 0x38b   : > { %v2836_v47 = vadd.f32 %v8284_v43, %v2745_v45  ;;  %v2747_v48 = vpop.f32.mrb[1].mxu0 }
 0x38c   : > { %v2837_v58 = vadd.f32 %v8288_v44, %v2747_v48 }
 0x38d   : > { %v2856_v37 = vmax.f32 %v2836_v47, 0.0 }
 0x38e   : > { %v2857_v51 = vmax.f32 %v2837_v58, 0.0  ;;  %v2751_v4 = vpop.f32.mrb[2].mxu0 }
 0x38f   : > { %v8292_v55 = vmul.f32 %v2889_v38, %v2856_v37  ;;  %v2838_v61 = vadd.f32 %v8284_v43, %v2751_v4  ;;  %v2753_v63 = vpop.f32.mrb[3].mxu0 }
 0x390   : > { %v8295_v24 = vmul.f32 %v2889_v38, %v2857_v51  ;;  %v2839_v2 = vadd.f32 %v8288_v44, %v2753_v63 }
 0x391   : > { %2984 = vst [vmem:[#allocation2 + $0x20] sm:$0xff] %v8292_v55  ;;  %v2858_v60 = vmax.f32 %v2838_v61, 0.0  ;;  %v3186_v42 = vrot.slane %v8292_v55, 6  ;;  %v3377_v56 = vrot.slane %v8292_v55, 5  ;;  %v9109_v57 = vrot.slane %v8292_v55, 7 }
 0x392   : > { %2985 = vst [vmem:[#allocation2 + $0x28] sm:$0xff] %v8295_v24  ;;  %v2859_v46 = vmax.f32 %v2839_v2, 0.0  ;;  %v2757_v36 = vpop.f32.mrb[4].mxu0  ;;  %v3188_v49 = vrot.slane %v8295_v24, 6  ;;  %v3379_v5 = vrot.slane %v8295_v24, 5  ;;  %v9110_v6 = vrot.slane %v8295_v24, 7 }
 0x393   : > { %v8302_v8 = vmul.f32 %v2894_v31, %v2858_v60  ;;  %v2840_v11 = vadd.f32 %v8284_v43, %v2757_v36  ;;  %v2759_v13 = vpop.f32.mrb[5].mxu0  ;;  %v3187_v18 = vsel %vm2616_vm5, %v8184_v52, %v3186_v42 }
 0x394   : > { %v8307_v16 = vmul.f32 %v2894_v31, %v2859_v46  ;;  %v2841_v7 = vadd.f32 %v8288_v44, %v2759_v13  ;;  %v3189_v54 = vsel %vm2616_vm5, %v8184_v52, %v3188_v49 }
 0x395   : > { %2986 = vst [vmem:[#allocation2 + $0x30] sm:$0xff] %v8302_v8  ;;  %v2860_v19 = vmax.f32 %v2840_v11, 0.0  ;;  %3312 = vmatprep.mubr.f32.mxu1 %v3189_v54  ;;  %v3190_v62 = vrot.slane %v8302_v8, 6  ;;  %v3381_v20 = vrot.slane %v8302_v8, 5  ;;  %v3641_v12 = vrot.slane %v8302_v8, 7 }
 0x396   : > { %2987 = vst [vmem:[#allocation2 + $0x38] sm:$0xff] %v8307_v16  ;;  %v2861_v3 = vmax.f32 %v2841_v7, 0.0  ;;  %v2763_v17 = vpop.f32.mrb[6].mxu0  ;;  %3313 = vmatmul.mubr.f32.gmra.mrb[2].mxu1 %v3187_v18  ;;  %v3192_v34 = vrot.slane %v8307_v16, 6  ;;  %v3383_v22 = vrot.slane %v8307_v16, 5  ;;  %v3643_v53 = vrot.slane %v8307_v16, 7 }
 0x397   : > { %v8322_v27 = vmul.f32 %v2899_v0, %v2860_v19  ;;  %v2842_v1 = vadd.f32 %v8284_v43, %v2763_v17  ;;  %v2765_v52 = vpop.f32.mrb[7].mxu0  ;;  %v3191_v15 = vsel %vm2616_vm5, %v3186_v42, %v3190_v62  ;;  %v8329_v30 = vsel %vm2336_vm4, %v3377_v56, %v3381_v20  ;;  %v2909_v42 = vpop.permute.xlu0 %2908 }
 0x398   : > { %v8331_v40 = vmul.f32 %v2899_v0, %v2861_v3  ;;  %v2843_v9 = vadd.f32 %v8288_v44, %v2765_v52  ;;  %v3193_v59 = vsel %vm2616_vm5, %v3188_v49, %v3192_v34  ;;  %v8338_v50 = vsel %vm2336_vm4, %v3379_v5, %v3383_v22  ;;  %v2914_v52 = vpop.permute.xlu1 %2913 }
 0x399   : > { %2988 = vst [vmem:[#allocation2 + $0x40] sm:$0xff] %v8322_v27  ;;  %v2862_v32 = vmax.f32 %v2842_v1, 0.0  ;;  %3318 = vmatprep.mubr.f32.mxu1 %v3193_v59  ;;  %v3194_v28 = vrot.slane %v8322_v27, 6  ;;  %v3385_v25 = vrot.slane %v8322_v27, 5  ;;  %v8370_v60 = vsel %vm3630_vm6, %v9110_v6, %v3643_v53 }
 0x39a   : > { %2989 = vst [vmem:[#allocation2 + $0x48] sm:$0xff] %v8331_v40  ;;  %v2863_v10 = vmax.f32 %v2843_v9, 0.0  ;;  %v2769_v41 = vpop.f32.mrb[8].mxu0  ;;  %3319 = vmatmul.mubr.f32.gmra.mrb[4].mxu1 %v3191_v15  ;;  %v3196_v33 = vrot.slane %v8331_v40, 6  ;;  %v3387_v29 = vrot.slane %v8331_v40, 5  ;;  %v8380_v11 = vsel %vm3630_vm6, %v9109_v57, %v3641_v12  ;;  %v3625_v57 = vld [vmem:[#allocation7 + $0x5f8] sm:$0xff] }
 0x39b   : > { %v8348_v26 = vmul.f32 %v2904_v35, %v2862_v32  ;;  %v2844_v45 = vadd.f32 %v8284_v43, %v2769_v41  ;;  %v2771_v47 = vpop.f32.mrb[9].mxu0  ;;  %v3195_v48 = vsel %vm2616_vm5, %v3190_v62, %v3194_v28  ;;  %v8353_v38 = vsel %vm2336_vm4, %v3381_v20, %v3385_v25 }
 0x39c   : > { %v8355_v58 = vmul.f32 %v2904_v35, %v2863_v10  ;;  %v2845_v37 = vadd.f32 %v8288_v44, %v2771_v47  ;;  %v3197_v51 = vsel %vm2616_vm5, %v3192_v34, %v3196_v33  ;;  %v8360_v4 = vsel %vm2336_vm4, %v3383_v22, %v3387_v29 }
 0x39d   : > { %2990 = vst [vmem:[#allocation2 + $0x50] sm:$0xff] %v8348_v26  ;;  %v2864_v61 = vmax.f32 %v2844_v45, 0.0  ;;  %3324 = vmatprep.mubr.f32.mxu1 %v3197_v51  ;;  %v3198_v63 = vrot.slane %v8348_v26, 6  ;;  %v3389_v2 = vrot.slane %v8348_v26, 5  ;;  %v3647_v1 = vrot.slane %v8331_v40, 7 }
 0x39e   : > { %2991 = vst [vmem:[#allocation2 + $0x58] sm:$0xff] %v8355_v58  ;;  %v2865_v31 = vmax.f32 %v2845_v37, 0.0  ;;  %v2775_v46 = vpop.f32.mrb[10].mxu0  ;;  %3325 = vmatmul.mubr.f32.gmra.mrb[6].mxu1 %v3195_v48  ;;  %v3200_v36 = vrot.slane %v8355_v58, 6  ;;  %v3391_v49 = vrot.slane %v8355_v58, 5 }
 0x39f   : > { %v8382_v13 = vmul.f32 %v2909_v42, %v2864_v61  ;;  %v2846_v0 = vadd.f32 %v8284_v43, %v2775_v46  ;;  %v2777_v7 = vpop.f32.mrb[11].mxu0  ;;  %v3199_v54 = vsel %vm2616_vm5, %v3194_v28, %v3198_v63  ;;  %v8387_v19 = vsel %vm2336_vm4, %v3385_v25, %v3389_v2 }
 0x3a0   : > { %v8389_v18 = vmul.f32 %v2909_v42, %v2865_v31  ;;  %v2847_v62 = vadd.f32 %v8288_v44, %v2777_v7  ;;  %v3201_v20 = vsel %vm2616_vm5, %v3196_v33, %v3200_v36  ;;  %v8394_v3 = vsel %vm2336_vm4, %v3387_v29, %v3391_v49 }
 0x3a1   : > { %2992 = vst [vmem:[#allocation2 + $0x60] sm:$0xff] %v8382_v13  ;;  %v2866_v17 = vmax.f32 %v2846_v0, 0.0  ;;  %3330 = vmatprep.mubr.f32.mxu1 %v3201_v20  ;;  %v3202_v34 = vrot.slane %v8382_v13, 6  ;;  %v3393_v22 = vrot.slane %v8382_v13, 5  ;;  %v3645_v28 = vrot.slane %v8322_v27, 7 }
 0x3a2   : > { %2993 = vst [vmem:[#allocation2 + $0x68] sm:$0xff] %v8389_v18  ;;  %v2867_v15 = vmax.f32 %v2847_v62, 0.0  ;;  %v2781_v9 = vpop.f32.mrb[12].mxu0  ;;  %3331 = vmatmul.mubr.f32.gmra.mrb[8].mxu1 %v3199_v54  ;;  %v3204_v59 = vrot.slane %v8389_v18, 6  ;;  %v3395_v32 = vrot.slane %v8389_v18, 5 }
 0x3a3   : > { %v8404_v25 = vmul.f32 %v2914_v52, %v2866_v17  ;;  %v2848_v35 = vadd.f32 %v8284_v43, %v2781_v9  ;;  %v2783_v10 = vpop.f32.mrb[13].mxu0  ;;  %v3203_v41 = vsel %vm2616_vm5, %v3198_v63, %v3202_v34  ;;  %v8409_v33 = vsel %vm2336_vm4, %v3389_v2, %v3393_v22  ;;  %v2919_v2 = vpop.permute.xlu0 %2918 }
 0x3a4   : > { %v8411_v29 = vmul.f32 %v2914_v52, %v2867_v15  ;;  %v2849_v45 = vadd.f32 %v8288_v44, %v2783_v10  ;;  %v3205_v47 = vsel %vm2616_vm5, %v3200_v36, %v3204_v59  ;;  %v8416_v48 = vsel %vm2336_vm4, %v3391_v49, %v3395_v32  ;;  %v2924_v15 = vpop.permute.xlu1 %2923 }
 0x3a5   : > { %2994 = vst [vmem:[#allocation2 + $0x70] sm:$0xff] %v8404_v25  ;;  %v2868_v37 = vmax.f32 %v2848_v35, 0.0  ;;  %3336 = vmatprep.mubr.f32.mxu1 %v3205_v47  ;;  %v3206_v51 = vrot.slane %v8404_v25, 6  ;;  %v3397_v61 = vrot.slane %v8404_v25, 5  ;;  %v8426_v63 = vsel %vm3630_vm6, %v3643_v53, %v3647_v1 }
 0x3a6   : > { %2995 = vst [vmem:[#allocation2 + $0x78] sm:$0xff] %v8411_v29  ;;  %v2869_v42 = vmax.f32 %v2849_v45, 0.0  ;;  %v2787_v31 = vpop.f32.mrb[14].mxu0  ;;  %3337 = vmatmul.mubr.f32.gmra.mrb[10].mxu1 %v3203_v41  ;;  %v3208_v46 = vrot.slane %v8411_v29, 6  ;;  %v3399_v36 = vrot.slane %v8411_v29, 5  ;;  %v8436_v49 = vsel %vm3630_vm6, %v3641_v12, %v3645_v28 }
 0x3a7   : > { %v8438_v16 = vmul.f32 %v2919_v2, %v2868_v37  ;;  %v2850_v53 = vadd.f32 %v8284_v43, %v2787_v31  ;;  %v2789_v0 = vpop.f32.mrb[15].mxu0  ;;  %v3207_v7 = vsel %vm2616_vm5, %v3202_v34, %v3206_v51  ;;  %v8443_v54 = vsel %vm2336_vm4, %v3393_v22, %v3397_v61 }
 0x3a8   : > { %v8445_v62 = vmul.f32 %v2919_v2, %v2869_v42  ;;  %v2851_v20 = vadd.f32 %v8288_v44, %v2789_v0  ;;  %v3209_v17 = vsel %vm2616_vm5, %v3204_v59, %v3208_v46  ;;  %v8450_v8 = vsel %vm2336_vm4, %v3395_v32, %v3399_v36 }
 0x3a9   : > { %2996 = vst [vmem:[#allocation2 + $0x80] sm:$0xff] %v8438_v16  ;;  %v2870_v12 = vmax.f32 %v2850_v53, 0.0  ;;  %3342 = vmatprep.mubr.f32.mxu1 %v3209_v17  ;;  %v3210_v52 = vrot.slane %v8438_v16, 6  ;;  %v3401_v34 = vrot.slane %v8438_v16, 5  ;;  %v3651_v22 = vrot.slane %v8355_v58, 7 }
 0x3aa   : > { %2997 = vst [vmem:[#allocation2 + $0x88] sm:$0xff] %v8445_v62  ;;  %v2871_v9 = vmax.f32 %v2851_v20, 0.0  ;;  %v2793_v35 = vpop.f32.mrb[16].mxu0  ;;  %3343 = vmatmul.mubr.f32.gmra.mrb[12].mxu1 %v3207_v7  ;;  %v3212_v59 = vrot.slane %v8445_v62, 6  ;;  %v3403_v32 = vrot.slane %v8445_v62, 5  ;;  %v3649_v10 = vrot.slane %v8348_v26, 7  ;;  %v2929_v7 = vpop.permute.xlu0 %2928 }
 0x3ab   : > { %v8460_v41 = vmul.f32 %v2924_v15, %v2870_v12  ;;  %v2852_v45 = vadd.f32 %v8284_v43, %v2793_v35  ;;  %v2795_v47 = vpop.f32.mrb[17].mxu0  ;;  %v3211_v37 = vsel %vm2616_vm5, %v3206_v51, %v3210_v52  ;;  %v8465_v58 = vsel %vm2336_vm4, %v3397_v61, %v3401_v34 }
 0x3ac   : > { %v8467_v2 = vmul.f32 %v2924_v15, %v2871_v9  ;;  %v2853_v42 = vadd.f32 %v8288_v44, %v2795_v47  ;;  %v3213_v31 = vsel %vm2616_vm5, %v3208_v46, %v3212_v59  ;;  %v8472_v53 = vsel %vm2336_vm4, %v3399_v36, %v3403_v32 }
 0x3ad   : > { %2998 = vst [vmem:[#allocation2 + $0x90] sm:$0xff] %v8460_v41  ;;  %v2872_v26 = vmax.f32 %v2852_v45, 0.0  ;;  %3348 = vmatprep.mubr.f32.mxu1 %v3213_v31  ;;  %v3214_v0 = vrot.slane %v8460_v41, 6  ;;  %v3405_v51 = vrot.slane %v8460_v41, 5  ;;  %v8480_v61 = vsel %vm3630_vm6, %v3647_v1, %v3651_v22 }
 0x3ae   : > { %2999 = vst [vmem:[#allocation2 + $0x98] sm:$0xff] %v8467_v2  ;;  %v2873_v46 = vmax.f32 %v2853_v42, 0.0  ;;  %v2799_v20 = vpop.f32.mrb[18].mxu0  ;;  %3349 = vmatmul.mubr.f32.gmra.mrb[14].mxu1 %v3211_v37  ;;  %v3216_v36 = vrot.slane %v8467_v2, 6  ;;  %v3407_v17 = vrot.slane %v8467_v2, 5  ;;  %v8488_v12 = vsel %vm3630_vm6, %v3645_v28, %v3649_v10  ;;  %v2934_v37 = vpop.permute.xlu1 %2933 }
 0x3af   : > { %v2952_v15 = vmul.f32 %v2929_v7, %v2872_v26  ;;  %v2854_v40 = vadd.f32 %v8284_v43, %v2799_v20  ;;  %v2801_v1 = vpop.f32.mrb[19].mxu0  ;;  %v3215_v9 = vsel %vm2616_vm5, %v3210_v52, %v3214_v0  ;;  %v8497_v35 = vsel %vm2336_vm4, %v3401_v34, %v3405_v51 }
 0x3b0   : > { %v2953_v45 = vmul.f32 %v2929_v7, %v2873_v46  ;;  %v2855_v47 = vadd.f32 %v8288_v44, %v2801_v1  ;;  %v3217_v27 = vsel %vm2616_vm5, %v3212_v59, %v3216_v36  ;;  %v8504_v28 = vsel %vm2336_vm4, %v3403_v32, %v3407_v17  ;;  %v3005_v46 = vld [vmem:[#allocation2 + $0x8] sm:$0xe0] }
 0x3b1   : > { %3000 = vst [vmem:[#allocation2 + $0xa0] sm:$0xff] %v2952_v15  ;;  %v2874_v43 = vmax.f32 %v2854_v40, 0.0  ;;  %3354 = vmatprep.mubr.f32.mxu1 %v3217_v27  ;;  %v3655_v52 = vrot.slane %v8389_v18, 7  ;;  %v3653_v34 = vrot.slane %v8382_v13, 7  ;;  %v3659_v44 = vrot.slane %v8411_v29, 7 }
 0x3b2   : > { %3001 = vst [vmem:[#allocation2 + $0xa8] sm:$0xff] %v2953_v45  ;;  %v2875_v42 = vmax.f32 %v2855_v47, 0.0  ;;  %3355 = vmatmul.mubr.f32.gmra.mrb[16].mxu1 %v3215_v9  ;;  %v3657_v32 = vrot.slane %v8404_v25, 7  ;;  %v3663_v13 = vrot.slane %v8445_v62, 7  ;;  %v3661_v29 = vrot.slane %v8438_v16, 7 }
 0x3b3   : > { %v2954_v31 = vmul.f32 %v2934_v37, %v2874_v43  ;;  %v8510_v59 = vsel %vm3630_vm6, %v3651_v22, %v3655_v52  ;;  %v8514_v7 = vsel %vm3630_vm6, %v3649_v10, %v3653_v34  ;;  %v8517_v18 = vsel %vm3630_vm6, %v3655_v52, %v3659_v44  ;;  %v3004_v9 = vld [vmem:[#allocation2] sm:$0xe0]  ;;  %v8542_v43 = vld [vmem:[#allocation2 + $0x8] sm:$0xff] }
 0x3b4   : > { %v2955_v26 = vmul.f32 %v2934_v37, %v2875_v42  ;;  %v8520_v20 = vsel %vm3630_vm6, %v3653_v34, %v3657_v32  ;;  %v9104_v22 = vrot.slane %v8467_v2, 7  ;;  %v9103_v25 = vrot.slane %v8460_v41, 7 }
 0x3b5   : > { %3002 = vst [vmem:[#allocation2 + $0xb0] sm:$0xff] %v2954_v31  ;;  %v8527_v10 = vsel %vm3630_vm6, %v3659_v44, %v3663_v13  ;;  %v8530_v15 = vsel %vm3630_vm6, %v3657_v32, %v3661_v29  ;;  %v3374_v1 = vrot.slane %v3005_v46, 5  ;;  %v3375_v52 = vrot.slane %v8542_v43, 5  ;;  %v3562_v44 = vld [vmem:[#allocation7 + $0x400] sm:$0xff]  ;;  %v3564_v31 = vld [vmem:[#allocation7 + $0x410] sm:$0xff]  ;;  %v3569_v46 = vld [vmem:[#allocation7 + $0x438] sm:$0xff] }
 0x3b6   : > { %3003 = vst [vmem:[#allocation2 + $0xb8] sm:$0xff] %v2955_v26  ;;  %v8535_v62 = vsel %vm3630_vm6, %v3663_v13, %v9104_v22  ;;  %v8540_v16 = vsel %vm3630_vm6, %v3661_v29, %v9103_v25  ;;  %v3371_v37 = vrot.slane %v3004_v9, 5  ;;  %v3567_v26 = vld [vmem:[#allocation7 + $0x428] sm:$0xff]  ;;  %v6468_v29 = vpack.c.bf16 %v3564_v31, %v3562_v44  ;;  %v3566_v9 = vld [vmem:[#allocation7 + $0x420] sm:$0xff]  ;;  %v3577_v31 = vld [vmem:[#allocation7 + $0x478] sm:$0xff] }
 0x3b7   : > { %v3376_v34 = vsel %vm2336_vm4, %v3374_v1, %v3375_v52  ;;  %v3380_v1 = vsel %vm2336_vm4, %v3375_v52, %v3379_v5  ;;  %v3575_v44 = vld [vmem:[#allocation7 + $0x468] sm:$0xff] }
 0x3b8   : > { %v3092_v40 = vld [vmem:[#allocation2 + $0xa0] sm:$0x3f]  ;;  %v3373_v13 = vsel %vm2336_vm4, %v3371_v37, %v3375_v52  ;;  %v3378_v37 = vsel %vm2336_vm4, %v3375_v52, %v3377_v56  ;;  %v6478_v5 = vpack.c.bf16 %v3577_v31, %v3575_v44 }
 0x3b9   : > { %v3093_v45 = vld [vmem:[#allocation2 + $0xa8] sm:$0x3f]  ;;  %v3218_v47 = vrot.slane %v3092_v40, 6  ;;  %v6470_v40 = vpack.c.bf16 %v3569_v46, %v3567_v26  ;;  %v3576_v46 = vld [vmem:[#allocation7 + $0x470] sm:$0xff]  ;;  %v3593_v44 = vld [vmem:[#allocation7 + $0x4f8] sm:$0xff] }
 0x3ba   : > { %v3220_v27 = vrot.slane %v3093_v45, 6  ;;  %v3568_v45 = vld [vmem:[#allocation7 + $0x430] sm:$0xff]  ;;  %v3574_v26 = vld [vmem:[#allocation7 + $0x460] sm:$0xff] }
 0x3bb   : > { %v3219_v32 = vsel %vm2616_vm5, %v3214_v0, %v3218_v47  ;;  %v6472_v0 = vpack.c.bf16 %v3568_v45, %v3566_v9  ;;  %v3578_v52 = vld [vmem:[#allocation7 + $0x480] sm:$0xff]  ;;  %v3580_v9 = vld [vmem:[#allocation7 + $0x490] sm:$0xff]  ;;  %v3583_v45 = vld [vmem:[#allocation7 + $0x4a8] sm:$0xff] }
 0x3bc   : > { %v3221_v42 = vsel %vm2616_vm5, %v3216_v36, %v3220_v27  ;;  %v3571_v36 = vld [vmem:[#allocation7 + $0x448] sm:$0xff]  ;;  %v3573_v27 = vld [vmem:[#allocation7 + $0x458] sm:$0xff] }
 0x3bd   : > { %3360 = vmatprep.mubr.f32.mxu1 %v3221_v42  ;;  %v6474_v47 = vpack.c.bf16 %v3573_v27, %v3571_v36  ;;  %v3570_v42 = vld [vmem:[#allocation7 + $0x440] sm:$0xff]  ;;  %v3585_v36 = vld [vmem:[#allocation7 + $0x4b8] sm:$0xff] }
 0x3be   : > { %3361 = vmatmul.mubr.f32.gmra.mrb[18].mxu1 %v3219_v32  ;;  %v6486_v27 = vpack.c.bf16 %v3585_v36, %v3583_v45  ;;  %v8572_v45 = vld [vmem:[#allocation7 + $0x548] sm:$0xff] }
 0x3bf   : > { %3497 = vmatprep.mubr.f32.mxu1 %v3376_v34  ;;  %v3572_v34 = vld [vmem:[#allocation7 + $0x450] sm:$0xff]  ;;  %v3559_v36 = vld [vmem:[#allocation2 + $0x8] sm:$0x80] }
 0x3c0   : > { %v6476_v32 = vpack.c.bf16 %v3572_v34, %v3570_v42  ;;  %v3586_v34 = vld [vmem:[#allocation7 + $0x4c0] sm:$0xff] }
 0x3c2   : > { %3498 = vmatmul.mubr.f32.vlgmr.msra.gmra.mrb[0].mxu1 %v3373_v13  ;;  %v3579_v13 = vld [vmem:[#allocation7 + $0x488] sm:$0xff] }
 0x3c3   : > { %6469 = vmatpush1.bf16.msra.mxu1 %v6468_v29  ;;  %3503 = vmatprep.mubr.f32.mxu1 %v3380_v1  ;;  %v3581_v29 = vld [vmem:[#allocation7 + $0x498] sm:$0xff]  ;;  %v3582_v1 = vld [vmem:[#allocation7 + $0x4a0] sm:$0xff] }
 0x3c4   : > { %6471 = vmatprep.subr.bf16.mxu1 %v6470_v40  ;;  %v6480_v40 = vpack.c.bf16 %v3576_v46, %v3574_v26  ;;  %v6482_v56 = vpack.c.bf16 %v3581_v29, %v3579_v13  ;;  %v3597_v26 = vld [vmem:[#allocation7 + $0x518] sm:$0xff]  ;;  %v3596_v46 = vld [vmem:[#allocation7 + $0x510] sm:$0xff]  ;;  %v3025_v29 = vld [vmem:[#allocation2 + $0xa8] sm:$0x1f] }
 0x3c6   : > { %3504 = vmatmul.mubr.f32.gmra.mrb[2].mxu1 %v3378_v37  ;;  %v3591_v37 = vld [vmem:[#allocation7 + $0x4e8] sm:$0xff] }
 0x3c7   : > { %6473 = vmatpush1.bf16.msra.mxu1 %v6472_v0  ;;  %3509 = vmatprep.mubr.f32.mxu1 %v8338_v50  ;;  %v6484_v50 = vpack.c.bf16 %v3580_v9, %v3578_v52  ;;  %v3587_v0 = vld [vmem:[#allocation7 + $0x4c8] sm:$0xff]  ;;  %v6494_v31 = vpack.c.bf16 %v3593_v44, %v3591_v37  ;;  %v8568_v52 = vld [vmem:[#allocation7 + $0x520] sm:$0xff]  ;;  %v8570_v9 = vld [vmem:[#allocation7 + $0x530] sm:$0xff]  ;;  %v3634_v37 = vrot.slane %v3559_v36, 7 }
 0x3c8   : > { %6475 = vmatprep.subr.bf16.mxu1 %v6474_v47  ;;  %v3589_v47 = vld [vmem:[#allocation7 + $0x4d8] sm:$0xff]  ;;  %v8591_v44 = vld [vmem:[#allocation2 + $0x70] sm:$0xff] }
 0x3c9   : > { %v6490_v42 = vpack.c.bf16 %v3589_v47, %v3587_v0  ;;  %v8584_v0 = vrot.slane %v8542_v43, 7  ;;  %v8586_v47 = vld [vmem:[#allocation2 + $0x60] sm:$0xff] }
 0x3ca   : > { %3510 = vmatmul.mubr.f32.gmra.mrb[4].mxu1 %v8329_v30  ;;  %v3584_v30 = vld [vmem:[#allocation7 + $0x4b0] sm:$0xff] }
 0x3cb   : > { %6477 = vmatpush1.bf16.msra.mxu1 %v6476_v32  ;;  %3515 = vmatprep.mubr.f32.mxu1 %v8360_v4  ;;  %v6488_v4 = vpack.c.bf16 %v3584_v30, %v3582_v1  ;;  %v3590_v32 = vld [vmem:[#allocation7 + $0x4e0] sm:$0xff]  ;;  %v3411_v1 = vrot.slane %v3025_v29, 5  ;;  %v3605_v30 = vld [vmem:[#allocation7 + $0x558] sm:$0xff]  ;;  %v8612_v29 = vld [vmem:[#allocation2 + $0x90] sm:$0xff] }
 0x3cc   : > { %6479 = vmatprep.subr.bf16.mxu1 %v6478_v5  ;;  %v3595_v5 = vld [vmem:[#allocation7 + $0x508] sm:$0xff] }
 0x3ce   : > { %3516 = vmatmul.mubr.f32.gmra.mrb[6].mxu1 %v8353_v38  ;;  %v3588_v38 = vld [vmem:[#allocation7 + $0x4d0] sm:$0xff] }
 0x3cf   : > { %6481 = vmatpush1.bf16.msra.mxu1 %v6480_v40  ;;  %3521 = vmatprep.mubr.f32.mxu1 %v8394_v3  ;;  %v6492_v3 = vpack.c.bf16 %v3588_v38, %v3586_v34  ;;  %v3601_v40 = vld [vmem:[#allocation7 + $0x538] sm:$0xff] }
 0x3d0   : > { %6483 = vmatprep.subr.bf16.mxu1 %v6482_v56  ;;  %v3024_v56 = vld [vmem:[#allocation2 + $0xa0] sm:$0x1f] }
 0x3d1   : > { %v3409_v38 = vrot.slane %v3024_v56, 5 }
 0x3d2   : > { %3522 = vmatmul.mubr.f32.gmra.mrb[8].mxu1 %v8387_v19  ;;  %v3592_v19 = vld [vmem:[#allocation7 + $0x4f0] sm:$0xff] }
 0x3d3   : > { %6485 = vmatpush1.bf16.msra.mxu1 %v6484_v50  ;;  %3527 = vmatprep.mubr.f32.mxu1 %v8416_v48  ;;  %v3594_v48 = vld [vmem:[#allocation7 + $0x500] sm:$0xff]  ;;  %v6496_v13 = vpack.c.bf16 %v3592_v19, %v3590_v32  ;;  %v8576_v50 = vld [vmem:[#allocation2 + $0x58] sm:$0xff]  ;;  %v6506_v19 = vpack.c.bf16 %v3605_v30, %v8572_v45  ;;  %v3410_v36 = vsel %vm2336_vm4, %v3405_v51, %v3409_v38 }
 0x3d4   : > { %6487 = vmatprep.subr.bf16.mxu1 %v6486_v27  ;;  %v8578_v27 = vld [vmem:[#allocation2 + $0x50] sm:$0xff]  ;;  %v9101_v43 = vrot.slane %v8576_v50, 2  ;;  %v9107_v22 = vrot.slane %v8576_v50, 3 }
 0x3d5   : > { %v3604_v30 = vld [vmem:[#allocation7 + $0x550] sm:$0xff] }
 0x3d6   : > { %3528 = vmatmul.mubr.f32.gmra.mrb[10].mxu1 %v8409_v33  ;;  %v3599_v33 = vld [vmem:[#allocation7 + $0x528] sm:$0xff] }
 0x3d7   : > { %6489 = vmatpush1.bf16.msra.mxu1 %v6488_v4  ;;  %3533 = vmatprep.mubr.f32.mxu1 %v8450_v8  ;;  %v6498_v8 = vpack.c.bf16 %v3597_v26, %v3595_v5  ;;  %v8588_v4 = vld [vmem:[#allocation2 + $0x78] sm:$0xff]  ;;  %v6502_v34 = vpack.c.bf16 %v3601_v40, %v3599_v33  ;;  %v8602_v5 = vld [vmem:[#allocation2 + $0x80] sm:$0xff]  ;;  %v8614_v33 = vld [vmem:[#allocation2 + $0xa8] sm:$0xff] }
 0x3d8   : > { %6491 = vmatprep.subr.bf16.mxu1 %v6490_v42  ;;  %v6500_v42 = vpack.c.bf16 %v3596_v46, %v3594_v48  ;;  %v8604_v26 = vld [vmem:[#allocation2 + $0x98] sm:$0xff]  ;;  %v5076_v48 = vrot.slane %v8586_v47, 2  ;;  %v5082_v46 = vrot.slane %v8588_v4, 2  ;;  %v8616_v40 = vld [vmem:[#allocation2 + $0xa0] sm:$0xff]  ;;  %v9106_v39 = vrot.slane %v8614_v33, 2 }
 0x3d9   : > { %v9105_v51 = vrot.slane %v8616_v40, 2 }
 0x3da   : > { %3534 = vmatmul.mubr.f32.gmra.mrb[12].mxu1 %v8443_v54  ;;  %v8574_v54 = vld [vmem:[#allocation2 + $0x40] sm:$0xff] }
 0x3db   : > { %6493 = vmatpush1.bf16.msra.mxu1 %v6492_v3  ;;  %3539 = vmatprep.mubr.f32.mxu1 %v8472_v53  ;;  %v8580_v53 = vld [vmem:[#allocation2 + $0x68] sm:$0xff]  ;;  %v9102_v3 = vrot.slane %v8574_v54, 2 }
 0x3dc   : > { %6495 = vmatprep.subr.bf16.mxu1 %v6494_v31  ;;  %v5072_v31 = vrot.slane %v8578_v27, 2  ;;  %v5078_v32 = vrot.slane %v8580_v53, 2 }
 0x3de   : > { %3540 = vmatmul.mubr.f32.gmra.mrb[14].mxu1 %v8465_v58  ;;  %v8593_v58 = vld [vmem:[#allocation2 + $0x88] sm:$0xff]  ;;  %v8626_v56 = vsel %vm866_vm1, %v9101_v43, %v5078_v32 }
 0x3df   : > { %6497 = vmatpush1.bf16.msra.mxu1 %v6496_v13  ;;  %3545 = vmatprep.mubr.f32.mxu1 %v8504_v28  ;;  %v6504_v28 = vpack.c.bf16 %v8570_v9, %v8568_v52  ;;  %v3412_v13 = vsel %vm2336_vm4, %v3407_v17, %v3411_v1  ;;  %v3636_v17 = vsel %vm3630_vm6, %v3634_v37, %v8584_v0  ;;  %v5086_v45 = vrot.slane %v8593_v58, 2  ;;  %v3602_v1 = vld [vmem:[#allocation7 + $0x540] sm:$0xff] }
 0x3e0   : > { %6499 = vmatprep.subr.bf16.mxu1 %v6498_v8  ;;  %v8621_v8 = vsel %vm866_vm1, %v9102_v3, %v5072_v31  ;;  %v8632_v52 = vsel %vm866_vm1, %v5072_v31, %v5076_v48  ;;  %v8635_v9 = vsel %vm866_vm1, %v5078_v32, %v5082_v46  ;;  %v5084_v37 = vrot.slane %v8602_v5, 2  ;;  %v3606_v43 = vld [vmem:[#allocation7 + $0x560] sm:$0xff]  ;;  %v3608_v3 = vld [vmem:[#allocation7 + $0x570] sm:$0xff] }
 0x3e1   : > { %v5090_v31 = vrot.slane %v8604_v26, 2  ;;  %v8647_v32 = vsel %vm866_vm1, %v5082_v46, %v5086_v45  ;;  %v6508_v23 = vpack.c.bf16 %v3604_v30, %v3602_v1  ;;  %v6512_v1 = vpack.c.bf16 %v3608_v3, %v3606_v43  ;;  %v3610_v30 = vld [vmem:[#allocation7 + $0x580] sm:$0xff]  ;;  %v3617_v3 = vld [vmem:[#allocation7 + $0x5b8] sm:$0xff] }
 0x3e2   : > { %3546 = vmatmul.mubr.f32.gmra.mrb[16].mxu1 %v8497_v35  ;;  %v5080_v35 = vrot.slane %v8591_v44, 2 }
 0x3e3   : > { %6501 = vmatpush1.bf16.msra.mxu1 %v6500_v42  ;;  %3551 = vmatprep.mubr.f32.mxu1 %v3412_v13  ;;  %v3607_v13 = vld [vmem:[#allocation7 + $0x568] sm:$0xff]  ;;  %v8664_v25 = vsel %vm866_vm1, %v5090_v31, %v9106_v39 }
 0x3e4   : > { %6503 = vmatprep.subr.bf16.mxu1 %v6502_v34  ;;  %v8642_v42 = vsel %vm866_vm1, %v5076_v48, %v5080_v35  ;;  %v5088_v34 = vrot.slane %v8612_v29, 2  ;;  %v8653_v38 = vsel %vm866_vm1, %v5080_v35, %v5084_v37  ;;  %v8656_v48 = vsel %vm866_vm1, %v5086_v45, %v5090_v31  ;;  %v3613_v45 = vld [vmem:[#allocation7 + $0x598] sm:$0xff]  ;;  %v3615_v39 = vld [vmem:[#allocation7 + $0x5a8] sm:$0xff] }
 0x3e5   : > { %v5351_v31 = vrot.slane %v8578_v27, 3 }
 0x3e6   : > { %3552 = vmatmul.mubr.f32.gmra.mrb[18].mxu1 %v3410_v36  ;;  %v8659_v46 = vsel %vm866_vm1, %v5084_v37, %v5088_v34  ;;  %v6510_v36 = vpack.c.bf16 %v3609_v21, %v3607_v13  ;;  %v8669_v35 = vsel %vm866_vm1, %v5088_v34, %v9105_v51  ;;  %v9108_v37 = vrot.slane %v8574_v54, 3 }
 0x3e7   : > { %6505 = vmatpush1.bf16.msra.mxu1 %v6504_v28  ;;  %3757 = vmatprep.mubr.f32.mxu1 %v3636_v17  ;;  %v3611_v28 = vld [vmem:[#allocation7 + $0x588] sm:$0xff]  ;;  %v3612_v17 = vld [vmem:[#allocation7 + $0x590] sm:$0xff]  ;;  %v5355_v21 = vrot.slane %v8586_v47, 3  ;;  %v5361_v13 = vrot.slane %v8588_v4, 3  ;;  %v5359_v47 = vrot.slane %v8591_v44, 3  ;;  %v5365_v4 = vrot.slane %v8593_v58, 3 }
 0x3e8   : > { %6507 = vmatprep.subr.bf16.mxu1 %v6506_v19  ;;  %v5357_v19 = vrot.slane %v8580_v53, 3  ;;  %v6514_v34 = vpack.c.bf16 %v3613_v45, %v3611_v28  ;;  %v6516_v51 = vpack.c.bf16 %v3612_v17, %v3610_v30  ;;  %v8680_v43 = vsel %vm1461_vm2, %v9108_v37, %v5351_v31 }
 0x3e9   : > { %v8688_v27 = vsel %vm1461_vm2, %v5351_v31, %v5355_v21  ;;  %v5369_v28 = vrot.slane %v8604_v26, 3  ;;  %v5367_v45 = vrot.slane %v8612_v29, 3  ;;  %v9113_v30 = vrot.slane %v8614_v33, 3  ;;  %v3621_v26 = vld [vmem:[#allocation7 + $0x5d8] sm:$0xff] }
 0x3ea   : > { %v8691_v53 = vsel %vm1461_vm2, %v5357_v19, %v5361_v13  ;;  %v9114_v17 = vrot.slane %v8616_v40, 3  ;;  %v6518_v31 = vpack.c.bf16 %v3617_v3, %v3615_v39  ;;  %v8701_v37 = vsel %vm1461_vm2, %v5355_v21, %v5359_v47  ;;  %v3618_v3 = vld [vmem:[#allocation7 + $0x5c0] sm:$0xff] }
 0x3eb   : > { %6509 = vmatpush1.bf16.msra.mxu1 %v6508_v23  ;;  %v8685_v23 = vsel %vm1461_vm2, %v9107_v22, %v5357_v19  ;;  %v3614_v22 = vld [vmem:[#allocation7 + $0x5a0] sm:$0xff]  ;;  %v3616_v19 = vld [vmem:[#allocation7 + $0x5b0] sm:$0xff]  ;;  %v8704_v44 = vsel %vm1461_vm2, %v5361_v13, %v5365_v4  ;;  %v8710_v29 = vsel %vm1461_vm2, %v5365_v4, %v5369_v28  ;;  %v8718_v39 = vsel %vm1461_vm2, %v5369_v28, %v9113_v30  ;;  %v3623_v4 = vld [vmem:[#allocation7 + $0x5e8] sm:$0xff] }
 0x3ec   : > { %6511 = vmatprep.subr.bf16.mxu1 %v6510_v36  ;;  %v5363_v36 = vrot.slane %v8602_v5, 3  ;;  %v3619_v5 = vld [vmem:[#allocation7 + $0x5c8] sm:$0xff]  ;;  %9126 = vst [vmem:[#allocation14_spill] sm:$0xff] %v8710_v29  ;;  %9128 = vst [vmem:[#allocation16_spill] sm:$0xff] %v8718_v39  ;;  %v8723_v21 = vsel %vm1461_vm2, %v5367_v45, %v9114_v17  ;;  %v6520_v13 = vpack.c.bf16 %v3616_v19, %v3614_v22  ;;  %v3624_v28 = vld [vmem:[#allocation7 + $0x5f0] sm:$0xff] }
 0x3ed   : > { %9129 = vst [vmem:[#allocation17_spill] sm:$0xff] %v8723_v21  ;;  %v6526_v6 = vpack.c.bf16 %v3625_v57, %v3623_v4  ;;  %v3558_v30 = vld [vmem:[#allocation2] sm:$0x80]  ;;  %v3861_v39 = vld [vmem:[#allocation7 + $0x608] sm:$0xff]  ;;  %v3871_v4 = vld [vmem:[#allocation7 + $0x658] sm:$0xff] }
 0x3ee   : > { %v8707_v58 = vsel %vm1461_vm2, %v5359_v47, %v5363_v36  ;;  %v3620_v47 = vld [vmem:[#allocation7 + $0x5d0] sm:$0xff]  ;;  %v3631_v17 = vrot.slane %v3558_v30, 7  ;;  %v3865_v19 = vld [vmem:[#allocation7 + $0x628] sm:$0xff] }
 0x3ef   : > { %6513 = vmatpush1.bf16.msra.mxu1 %v6512_v1  ;;  %v8713_v1 = vsel %vm1461_vm2, %v5363_v36, %v5367_v45  ;;  %v6524_v36 = vpack.c.bf16 %v3620_v47, %v3618_v3  ;;  %v6528_v45 = vpack.c.bf16 %v3624_v28, %v3622_v14  ;;  %v3866_v3 = vld [vmem:[#allocation7 + $0x630] sm:$0xff]  ;;  %v3869_v47 = vld [vmem:[#allocation7 + $0x648] sm:$0xff]  ;;  %v9130_v14 = vrot.slane %v8295_v24, 7 }
 0x3f0   : > { %6515 = vmatprep.subr.bf16.mxu1 %v6514_v34  ;;  %9127 = vst [vmem:[#allocation15_spill] sm:$0xff] %v8713_v1  ;;  %v6522_v34 = vpack.c.bf16 %v3621_v26, %v3619_v5  ;;  %v3863_v1 = vld [vmem:[#allocation7 + $0x618] sm:$0xff]  ;;  %v3633_v26 = vsel %vm3630_vm6, %v3631_v17, %v8584_v0  ;;  %v3870_v17 = vld [vmem:[#allocation7 + $0x650] sm:$0xff] }
 0x3f1   : > { %v6530_v22 = vpack.c.bf16 %v3863_v1, %v3861_v39  ;;  %v3867_v5 = vld [vmem:[#allocation7 + $0x638] sm:$0xff]  ;;  %v6538_v1 = vpack.c.bf16 %v3871_v4, %v3869_v47  ;;  %v3868_v39 = vld [vmem:[#allocation7 + $0x640] sm:$0xff]  ;;  %v3858_v21 = vld [vmem:[#allocation2 + $0xb0] sm:$0x7f] }
 0x3f2   : > { %v6534_v57 = vpack.c.bf16 %v3867_v5, %v3865_v19  ;;  %v6540_v24 = vpack.c.bf16 %v3870_v17, %v3868_v39  ;;  %v3874_v19 = vld [vmem:[#allocation7 + $0x670] sm:$0xff]  ;;  %v3877_v5 = vld [vmem:[#allocation7 + $0x688] sm:$0xff]  ;;  %v3880_v4 = vld [vmem:[#allocation7 + $0x6a0] sm:$0xff] }
 0x3f3   : > { %6517 = vmatpush1.bf16.msra.mxu1 %v6516_v51  ;;  %v3860_v51 = vld [vmem:[#allocation7 + $0x600] sm:$0xff]  ;;  %v3889_v39 = vld [vmem:[#allocation7 + $0x6e8] sm:$0xff] }
 0x3f4   : > { %6519 = vmatprep.subr.bf16.mxu1 %v6518_v31  ;;  %v3862_v31 = vld [vmem:[#allocation7 + $0x610] sm:$0xff] }
 0x3f7   : > { %6521 = vmatpush1.bf16.msra.mxu1 %v6520_v13  ;;  %v6532_v13 = vpack.c.bf16 %v3862_v31, %v3860_v51  ;;  %v3872_v31 = vld [vmem:[#allocation7 + $0x660] sm:$0xff] }
 0x3f8   : > { %6523 = vmatprep.subr.bf16.mxu1 %v6522_v34  ;;  %v3864_v34 = vld [vmem:[#allocation7 + $0x620] sm:$0xff] }
 0x3f9   : > { %v6536_v30 = vpack.c.bf16 %v3866_v3, %v3864_v34  ;;  %v3881_v34 = vld [vmem:[#allocation7 + $0x6a8] sm:$0xff] }
 0x3fb   : > { %6525 = vmatpush1.bf16.msra.mxu1 %v6524_v36  ;;  %v9131_v36 = vrot.slane %v8292_v55, 7  ;;  %v6544_v55 = vpack.c.bf16 %v3874_v19, %v3872_v31  ;;  %v3894_v31 = vld [vmem:[#allocation7 + $0x710] sm:$0xff]  ;;  %v3899_v19 = vld [vmem:[#allocation7 + $0x738] sm:$0xff] }
 0x3fc   : > { %6527 = vmatprep.subr.bf16.mxu1 %v6526_v6  ;;  %v3640_v6 = vsel %vm3630_vm6, %v8584_v0, %v9130_v14  ;;  %v3885_v14 = vld [vmem:[#allocation7 + $0x6c8] sm:$0xff] }
 0x3fd   : > { %v3638_v28 = vsel %vm3630_vm6, %v8584_v0, %v9131_v36 }
 0x3ff   : > { %6529 = vmatpush1.bf16.msra.mxu1 %v6528_v45  ;;  %v3873_v45 = vld [vmem:[#allocation7 + $0x668] sm:$0xff] }
 0x400   : > { %6531 = vmatprep.subr.bf16.mxu1 %v6530_v22  ;;  %v3875_v22 = vld [vmem:[#allocation7 + $0x678] sm:$0xff] }
 0x401   : > { %v6542_v51 = vpack.c.bf16 %v3875_v22, %v3873_v45  ;;  %v3893_v45 = vld [vmem:[#allocation7 + $0x708] sm:$0xff] }
 0x402   : > { %3758 = vmatmul.mubr.f32.vlgmr.msra.gmra.mrb[0].mxu1 %v3633_v26  ;;  %v3879_v26 = vld [vmem:[#allocation7 + $0x698] sm:$0xff] }
 0x403   : > { %3763 = vmatprep.mubr.f32.mxu1 %v3640_v6  ;;  %6533 = vmatpush1.bf16.msra.mxu1 %v6532_v13  ;;  %v6546_v0 = vpack.c.bf16 %v3879_v26, %v3877_v5  ;;  %v3876_v13 = vld [vmem:[#allocation7 + $0x680] sm:$0xff] }
 0x404   : > { %6535 = vmatprep.subr.bf16.mxu1 %v6534_v57  ;;  %v3878_v57 = vld [vmem:[#allocation7 + $0x690] sm:$0xff]  ;;  %v3560_v26 = vld [vmem:[#allocation2 + $0xa0] sm:$0x7f] }
 0x405   : > { %v6548_v3 = vpack.c.bf16 %v3878_v57, %v3876_v13  ;;  %v3896_v13 = vld [vmem:[#allocation7 + $0x720] sm:$0xff]  ;;  %v3898_v57 = vld [vmem:[#allocation7 + $0x730] sm:$0xff] }
 0x406   : > { %3764 = vmatmul.mubr.f32.gmra.mrb[2].mxu1 %v3638_v28  ;;  %v3888_v28 = vld [vmem:[#allocation7 + $0x6e0] sm:$0xff] }
 0x407   : > { %3769 = vmatprep.mubr.f32.mxu1 %v8370_v60  ;;  %6537 = vmatpush1.bf16.msra.mxu1 %v6536_v30  ;;  %v3883_v60 = vld [vmem:[#allocation7 + $0x6b8] sm:$0xff] }
 0x408   : > { %6539 = vmatprep.subr.bf16.mxu1 %v6538_v1  ;;  %v6550_v47 = vpack.c.bf16 %v3883_v60, %v3881_v34  ;;  %v3884_v1 = vld [vmem:[#allocation7 + $0x6c0] sm:$0xff]  ;;  %v3669_v34 = vrot.slane %v3560_v26, 7  ;;  %v3901_v60 = vld [vmem:[#allocation7 + $0x748] sm:$0xff]  ;;  %v3919_v26 = vld [vmem:[#allocation7 + $0x7d8] sm:$0xff] }
 0x40a   : > { %3770 = vmatmul.mubr.f32.gmra.mrb[4].mxu1 %v8380_v11  ;;  %v3882_v11 = vld [vmem:[#allocation7 + $0x6b0] sm:$0xff] }
 0x40b   : > { %3775 = vmatprep.mubr.f32.mxu1 %v8426_v63  ;;  %6541 = vmatpush1.bf16.msra.mxu1 %v6540_v24  ;;  %v3887_v63 = vld [vmem:[#allocation7 + $0x6d8] sm:$0xff]  ;;  %v6552_v6 = vpack.c.bf16 %v3882_v11, %v3880_v4  ;;  %v3561_v24 = vld [vmem:[#allocation2 + $0xa8] sm:$0x7f]  ;;  %v6568_v11 = vpack.c.bf16 %v3898_v57, %v3896_v13  ;;  %v3918_v13 = vld [vmem:[#allocation7 + $0x7d0] sm:$0xff] }
 0x40c   : > { %6543 = vmatprep.subr.bf16.mxu1 %v6542_v51  ;;  %v6554_v30 = vpack.c.bf16 %v3887_v63, %v3885_v14  ;;  %v3671_v5 = vrot.slane %v3561_v24, 7  ;;  %v3900_v63 = vld [vmem:[#allocation7 + $0x740] sm:$0xff]  ;;  %v3913_v24 = vld [vmem:[#allocation7 + $0x7a8] sm:$0xff] }
 0x40d   : > { %v3921_v57 = vld [vmem:[#allocation7 + $0x7e8] sm:$0xff] }
 0x40e   : > { %3776 = vmatmul.mubr.f32.gmra.mrb[6].mxu1 %v8436_v49  ;;  %v3886_v49 = vld [vmem:[#allocation7 + $0x6d0] sm:$0xff] }
 0x40f   : > { %3781 = vmatprep.mubr.f32.mxu1 %v8480_v61  ;;  %6545 = vmatpush1.bf16.msra.mxu1 %v6544_v55  ;;  %v3891_v61 = vld [vmem:[#allocation7 + $0x6f8] sm:$0xff]  ;;  %v6556_v17 = vpack.c.bf16 %v3886_v49, %v3884_v1  ;;  %v3905_v49 = vld [vmem:[#allocation7 + $0x768] sm:$0xff] }
 0x410   : > { %6547 = vmatprep.subr.bf16.mxu1 %v6546_v0  ;;  %v6558_v36 = vpack.c.bf16 %v3891_v61, %v3889_v39  ;;  %v8748_v0 = vld [vmem:[#allocation2 + $0x28] sm:$0xff] }
 0x412   : > { %3782 = vmatmul.mubr.f32.gmra.mrb[8].mxu1 %v8488_v12  ;;  %v3890_v12 = vld [vmem:[#allocation7 + $0x6f0] sm:$0xff] }
 0x413   : > { %3787 = vmatprep.mubr.f32.mxu1 %v8510_v59  ;;  %6549 = vmatpush1.bf16.msra.mxu1 %v6548_v3  ;;  %v3895_v59 = vld [vmem:[#allocation7 + $0x718] sm:$0xff]  ;;  %v6560_v22 = vpack.c.bf16 %v3890_v12, %v3888_v28  ;;  %v3909_v28 = vld [vmem:[#allocation7 + $0x788] sm:$0xff] }
 0x414   : > { %6551 = vmatprep.subr.bf16.mxu1 %v6550_v47  ;;  %v6562_v51 = vpack.c.bf16 %v3895_v59, %v3893_v45  ;;  %v3903_v3 = vld [vmem:[#allocation7 + $0x758] sm:$0xff]  ;;  %v3908_v59 = vld [vmem:[#allocation7 + $0x780] sm:$0xff] }
 0x415   : > { %v6570_v14 = vpack.c.bf16 %v3903_v3, %v3901_v60  ;;  %v3911_v12 = vld [vmem:[#allocation7 + $0x798] sm:$0xff] }
 0x416   : > { %3788 = vmatmul.mubr.f32.gmra.mrb[10].mxu1 %v8514_v7  ;;  %v3892_v7 = vld [vmem:[#allocation7 + $0x700] sm:$0xff]  ;;  %v6578_v45 = vpack.c.bf16 %v3911_v12, %v3909_v28  ;;  %v8767_v28 = vld [vmem:[#allocation2 + $0x30] sm:$0xff] }
 0x417   : > { %3793 = vmatprep.mubr.f32.mxu1 %v8517_v18  ;;  %6553 = vmatpush1.bf16.msra.mxu1 %v6552_v6  ;;  %v3897_v18 = vld [vmem:[#allocation7 + $0x728] sm:$0xff]  ;;  %v6564_v55 = vpack.c.bf16 %v3894_v31, %v3892_v7  ;;  %v3902_v6 = vld [vmem:[#allocation7 + $0x750] sm:$0xff] }
 0x418   : > { %6555 = vmatprep.subr.bf16.mxu1 %v6554_v30  ;;  %v9133_v30 = vrot.slane %v8460_v41, 7  ;;  %v6572_v39 = vpack.c.bf16 %v3902_v6, %v3900_v63  ;;  %v8761_v63 = vld [vmem:[#allocation2 + $0x20] sm:$0xff] }
 0x41a   : > { %3794 = vmatmul.mubr.f32.gmra.mrb[12].mxu1 %v8520_v20  ;;  %v3839_v20 = vld [vmem:[#allocation2 + $0x18] sm:$0x80]  ;;  %v3670_v1 = vsel %vm3630_vm6, %v9133_v30, %v3669_v34 }
 0x41b   : > { %3799 = vmatprep.mubr.f32.mxu1 %v8527_v10  ;;  %6557 = vmatpush1.bf16.msra.mxu1 %v6556_v17  ;;  %v6566_v10 = vpack.c.bf16 %v3899_v19, %v3897_v18  ;;  %v3949_v4 = vrot.slane %v3839_v20, 7  ;;  %v3904_v17 = vld [vmem:[#allocation7 + $0x760] sm:$0xff]  ;;  %v3914_v19 = vld [vmem:[#allocation7 + $0x7b0] sm:$0xff]  ;;  %v3923_v34 = vld [vmem:[#allocation7 + $0x7f8] sm:$0xff] }
 0x41c   : > { %6559 = vmatprep.subr.bf16.mxu1 %v6558_v36  ;;  %v3906_v36 = vld [vmem:[#allocation7 + $0x770] sm:$0xff]  ;;  %v3912_v18 = vld [vmem:[#allocation7 + $0x7a0] sm:$0xff]  ;;  %v6590_v3 = vpack.c.bf16 %v3923_v34, %v3921_v57 }
 0x41d   : > { %v6576_v41 = vpack.c.bf16 %v3906_v36, %v3904_v17  ;;  %v8763_v30 = vld [vmem:[#allocation2 + $0x38] sm:$0xff] }
 0x41e   : > { %3800 = vmatmul.mubr.f32.gmra.mrb[14].mxu1 %v8530_v15  ;;  %v9132_v15 = vrot.slane %v8467_v2, 7  ;;  %v4162_v17 = vld [vmem:[#allocation7 + $0x838] sm:$0xff]  ;;  %v3954_v36 = vrot.slane %v8763_v30, 7 }
 0x41f   : > { %3805 = vmatprep.mubr.f32.mxu1 %v8535_v62  ;;  %6561 = vmatpush1.bf16.msra.mxu1 %v6560_v22  ;;  %v3950_v62 = vrot.slane %v8748_v0, 7  ;;  %v3910_v22 = vld [vmem:[#allocation7 + $0x790] sm:$0xff] }
 0x420   : > { %6563 = vmatprep.subr.bf16.mxu1 %v6562_v51  ;;  %v3672_v47 = vsel %vm3630_vm6, %v9132_v15, %v3671_v5  ;;  %v3915_v51 = vld [vmem:[#allocation7 + $0x7b8] sm:$0xff]  ;;  %v6580_v7 = vpack.c.bf16 %v3910_v22, %v3908_v59  ;;  %v3917_v5 = vld [vmem:[#allocation7 + $0x7c8] sm:$0xff]  ;;  %v3920_v15 = vld [vmem:[#allocation7 + $0x7e0] sm:$0xff] }
 0x421   : > { %v3951_v2 = vsel %vm3630_vm6, %v3949_v4, %v3950_v62  ;;  %v6582_v31 = vpack.c.bf16 %v3915_v51, %v3913_v24  ;;  %v6586_v20 = vpack.c.bf16 %v3919_v26, %v3917_v5  ;;  %v4156_v4 = vld [vmem:[#allocation7 + $0x808] sm:$0xff]  ;;  %v4159_v59 = vld [vmem:[#allocation7 + $0x820] sm:$0xff]  ;;  %v4161_v22 = vld [vmem:[#allocation7 + $0x830] sm:$0xff]  ;;  %v3952_v51 = vrot.slane %v8767_v28, 7 }
 0x422   : > { %3806 = vmatmul.mubr.f32.gmra.mrb[16].mxu1 %v8540_v16  ;;  %v3907_v16 = vld [vmem:[#allocation7 + $0x778] sm:$0xff]  ;;  %v6600_v26 = vpack.c.bf16 %v4161_v22, %v4159_v59  ;;  %v4171_v22 = vld [vmem:[#allocation7 + $0x880] sm:$0xff] }
 0x423   : > { %3811 = vmatprep.mubr.f32.mxu1 %v3672_v47  ;;  %6565 = vmatpush1.bf16.msra.mxu1 %v6564_v55  ;;  %v6574_v61 = vpack.c.bf16 %v3907_v16, %v3905_v49  ;;  %v6584_v55 = vpack.c.bf16 %v3914_v19, %v3912_v18  ;;  %v3922_v47 = vld [vmem:[#allocation7 + $0x7f0] sm:$0xff]  ;;  %v4155_v49 = vld [vmem:[#allocation7 + $0x800] sm:$0xff]  ;;  %v3955_v18 = vsel %vm3630_vm6, %v3950_v62, %v3954_v36 }
 0x424   : > { %6567 = vmatprep.subr.bf16.mxu1 %v6566_v10  ;;  %v3916_v10 = vld [vmem:[#allocation7 + $0x7c0] sm:$0xff]  ;;  %v6592_v6 = vpack.c.bf16 %v3922_v47, %v3920_v15  ;;  %v4157_v16 = vld [vmem:[#allocation7 + $0x810] sm:$0xff] }
 0x425   : > { %v6588_v60 = vpack.c.bf16 %v3918_v13, %v3916_v10  ;;  %v6596_v12 = vpack.c.bf16 %v4157_v16, %v4155_v49  ;;  %v8777_v5 = vld [vmem:[#allocation2 + $0x40] sm:$0xff]  ;;  %v4165_v13 = vld [vmem:[#allocation7 + $0x850] sm:$0xff] }
 0x426   : > { %3812 = vmatmul.mubr.f32.gmra.mrb[18].mxu1 %v3670_v1  ;;  %v4163_v10 = vld [vmem:[#allocation7 + $0x840] sm:$0xff]  ;;  %v3956_v34 = vrot.slane %v8777_v5, 7  ;;  %v8785_v47 = vld [vmem:[#allocation2 + $0x50] sm:$0xff] }
 0x427   : > { %6569 = vmatpush1.bf16.msra.mxu1 %v6568_v11  ;;  %4072 = vmatprep.mubr.f32.mxu1 %v3951_v2  ;;  %v4158_v11 = vld [vmem:[#allocation7 + $0x818] sm:$0xff]  ;;  %v3960_v16 = vrot.slane %v8785_v47, 7 }
 0x428   : > { %6571 = vmatprep.subr.bf16.mxu1 %v6570_v14  ;;  %v3838_v14 = vld [vmem:[#allocation2 + $0x10] sm:$0x80]  ;;  %v6594_v1 = vpack.c.bf16 %v4158_v11, %v4156_v4  ;;  %v6604_v4 = vpack.c.bf16 %v4165_v13, %v4163_v10  ;;  %v8787_v11 = vld [vmem:[#allocation2 + $0x68] sm:$0xff]  ;;  %v3957_v49 = vsel %vm3630_vm6, %v3952_v51, %v3956_v34 }
 0x429   : > { %v3946_v2 = vrot.slane %v3838_v14, 7  ;;  %v8803_v13 = vld [vmem:[#allocation2 + $0x88] sm:$0xff] }
 0x42b   : > { %6573 = vmatpush1.bf16.msra.mxu1 %v6572_v39  ;;  %v3947_v39 = vrot.slane %v8761_v63, 7 }
 0x42c   : > { %6575 = vmatprep.subr.bf16.mxu1 %v6574_v61  ;;  %v4160_v61 = vld [vmem:[#allocation7 + $0x828] sm:$0xff] }
 0x42d   : > { %v3948_v24 = vsel %vm3630_vm6, %v3946_v2, %v3947_v39  ;;  %v3953_v57 = vsel %vm3630_vm6, %v3947_v39, %v3952_v51  ;;  %v4172_v2 = vld [vmem:[#allocation7 + $0x888] sm:$0xff]  ;;  %v4174_v39 = vld [vmem:[#allocation7 + $0x898] sm:$0xff]  ;;  %v3961_v51 = vsel %vm3630_vm6, %v3956_v34, %v3960_v16  ;;  %v4177_v34 = vld [vmem:[#allocation7 + $0x8b0] sm:$0xff] }
 0x42e   : > { %v6610_v59 = vpack.c.bf16 %v4174_v39, %v4172_v2  ;;  %v8811_v2 = vld [vmem:[#allocation2 + $0x98] sm:$0xff] }
 0x42f   : > { %6577 = vmatpush1.bf16.msra.mxu1 %v6576_v41  ;;  %v8769_v41 = vld [vmem:[#allocation2 + $0x48] sm:$0xff] }
 0x430   : > { %6579 = vmatprep.subr.bf16.mxu1 %v6578_v45  ;;  %v6598_v45 = vpack.c.bf16 %v4162_v17, %v4160_v61  ;;  %v3958_v19 = vrot.slane %v8769_v41, 7  ;;  %v3966_v17 = vrot.slane %v8787_v11, 7 }
 0x432   : > { %v3959_v62 = vsel %vm3630_vm6, %v3954_v36, %v3958_v19  ;;  %v8793_v36 = vld [vmem:[#allocation2 + $0x60] sm:$0xff] }
 0x433   : > { %6581 = vmatpush1.bf16.msra.mxu1 %v6580_v7  ;;  %v4164_v7 = vld [vmem:[#allocation7 + $0x848] sm:$0xff] }
 0x434   : > { %6583 = vmatprep.subr.bf16.mxu1 %v6582_v31  ;;  %v4166_v31 = vld [vmem:[#allocation7 + $0x858] sm:$0xff] }
 0x437   : > { %6585 = vmatpush1.bf16.msra.mxu1 %v6584_v55  ;;  %v8779_v55 = vld [vmem:[#allocation2 + $0x58] sm:$0xff] }
 0x438   : > { %6587 = vmatprep.subr.bf16.mxu1 %v6586_v20  ;;  %v6602_v20 = vpack.c.bf16 %v4166_v31, %v4164_v7  ;;  %v3962_v15 = vrot.slane %v8779_v55, 7  ;;  %v3964_v7 = vrot.slane %v8793_v36, 7  ;;  %v4176_v31 = vld [vmem:[#allocation7 + $0x8a8] sm:$0xff] }
 0x43a   : > { %v3963_v61 = vsel %vm3630_vm6, %v3958_v19, %v3962_v15  ;;  %v3967_v19 = vsel %vm3630_vm6, %v3962_v15, %v3966_v17 }
 0x43b   : > { %6589 = vmatpush1.bf16.msra.mxu1 %v6588_v60  ;;  %v4168_v60 = vld [vmem:[#allocation7 + $0x868] sm:$0xff] }
 0x43c   : > { %6591 = vmatprep.subr.bf16.mxu1 %v6590_v3  ;;  %v4170_v3 = vld [vmem:[#allocation7 + $0x878] sm:$0xff] }
 0x43d   : > { %v6606_v14 = vpack.c.bf16 %v4170_v3, %v4168_v60  ;;  %v4175_v60 = vld [vmem:[#allocation7 + $0x8a0] sm:$0xff]  ;;  %v3965_v3 = vsel %vm3630_vm6, %v3960_v16, %v3964_v7  ;;  %v4181_v16 = vld [vmem:[#allocation7 + $0x8d0] sm:$0xff] }
 0x43f   : > { %6593 = vmatpush1.bf16.msra.mxu1 %v6592_v6  ;;  %v4167_v6 = vld [vmem:[#allocation7 + $0x860] sm:$0xff] }
 0x440   : > { %6595 = vmatprep.subr.bf16.mxu1 %v6594_v1  ;;  %v4169_v1 = vld [vmem:[#allocation7 + $0x870] sm:$0xff] }
 0x442   : > { %4073 = vmatmul.mubr.f32.vlgmr.msra.gmra.mrb[0].mxu1 %v3948_v24  ;;  %v4173_v24 = vld [vmem:[#allocation7 + $0x890] sm:$0xff] }
 0x443   : > { %4078 = vmatprep.mubr.f32.mxu1 %v3955_v18  ;;  %6597 = vmatpush1.bf16.msra.mxu1 %v6596_v12  ;;  %v6608_v12 = vpack.c.bf16 %v4169_v1, %v4167_v6  ;;  %v4178_v18 = vld [vmem:[#allocation7 + $0x8b8] sm:$0xff]  ;;  %v6612_v10 = vpack.c.bf16 %v4173_v24, %v4171_v22  ;;  %v3974_v6 = vrot.slane %v8803_v13, 7  ;;  %v4184_v22 = vld [vmem:[#allocation7 + $0x8e8] sm:$0xff] }
 0x444   : > { %6599 = vmatprep.subr.bf16.mxu1 %v6598_v45  ;;  %v8795_v45 = vld [vmem:[#allocation2 + $0x78] sm:$0xff]  ;;  %v8809_v1 = vld [vmem:[#allocation2 + $0x80] sm:$0xff] }
 0x445   : > { %v4186_v24 = vld [vmem:[#allocation7 + $0x8f8] sm:$0xff] }
 0x446   : > { %4079 = vmatmul.mubr.f32.gmra.mrb[2].mxu1 %v3953_v57  ;;  %v6614_v57 = vpack.c.bf16 %v4178_v18, %v4176_v31  ;;  %v8817_v31 = vld [vmem:[#allocation2 + $0x90] sm:$0xff] }
 0x447   : > { %4084 = vmatprep.mubr.f32.mxu1 %v3959_v62  ;;  %6601 = vmatpush1.bf16.msra.mxu1 %v6600_v26  ;;  %v3970_v26 = vrot.slane %v8795_v45, 7 }
 0x448   : > { %6603 = vmatprep.subr.bf16.mxu1 %v6602_v20  ;;  %v8801_v20 = vld [vmem:[#allocation2 + $0x70] sm:$0xff] }
 0x449   : > { %v3968_v62 = vrot.slane %v8801_v20, 7  ;;  %v3971_v15 = vsel %vm3630_vm6, %v3966_v17, %v3970_v26  ;;  %v3975_v17 = vsel %vm3630_vm6, %v3970_v26, %v3974_v6 }
 0x44a   : > { %4085 = vmatmul.mubr.f32.gmra.mrb[4].mxu1 %v3957_v49  ;;  %v6616_v49 = vpack.c.bf16 %v4177_v34, %v4175_v60  ;;  %v3976_v34 = vrot.slane %v8817_v31, 7 }
 0x44b   : > { %4090 = vmatprep.mubr.f32.mxu1 %v3963_v61  ;;  %6605 = vmatpush1.bf16.msra.mxu1 %v6604_v4  ;;  %v4180_v4 = vld [vmem:[#allocation7 + $0x8c8] sm:$0xff]  ;;  %v4179_v61 = vld [vmem:[#allocation7 + $0x8c0] sm:$0xff] }
 0x44c   : > { %6607 = vmatprep.subr.bf16.mxu1 %v6606_v14  ;;  %v4182_v14 = vld [vmem:[#allocation7 + $0x8d8] sm:$0xff]  ;;  %v6620_v18 = vpack.c.bf16 %v4181_v16, %v4179_v61  ;;  %v4187_v16 = vld [vmem:[#allocation7 + $0x900] sm:$0xff] }
 0x44d   : > { %v6618_v39 = vpack.c.bf16 %v4182_v14, %v4180_v4  ;;  %v4190_v4 = vld [vmem:[#allocation7 + $0x918] sm:$0xff] }
 0x44e   : > { %4091 = vmatmul.mubr.f32.gmra.mrb[6].mxu1 %v3961_v51  ;;  %v3978_v51 = vrot.slane %v8811_v2, 7 }
 0x44f   : > { %4096 = vmatprep.mubr.f32.mxu1 %v3967_v19  ;;  %6609 = vmatpush1.bf16.msra.mxu1 %v6608_v12  ;;  %v3969_v12 = vsel %vm3630_vm6, %v3964_v7, %v3968_v62  ;;  %v8819_v19 = vld [vmem:[#allocation2 + $0xa8] sm:$0xff]  ;;  %v4185_v7 = vld [vmem:[#allocation7 + $0x8f0] sm:$0xff] }
 0x450   : > { %6611 = vmatprep.subr.bf16.mxu1 %v6610_v59  ;;  %v3972_v59 = vrot.slane %v8809_v1, 7  ;;  %v3979_v26 = vsel %vm3630_vm6, %v3974_v6, %v3978_v51  ;;  %v3982_v14 = vrot.slane %v8819_v19, 7 }
 0x452   : > { %4097 = vmatmul.mubr.f32.gmra.mrb[8].mxu1 %v3965_v3  ;;  %v3973_v60 = vsel %vm3630_vm6, %v3968_v62, %v3972_v59  ;;  %v4188_v3 = vld [vmem:[#allocation7 + $0x908] sm:$0xff]  ;;  %v3977_v62 = vsel %vm3630_vm6, %v3972_v59, %v3976_v34  ;;  %v3983_v6 = vsel %vm3630_vm6, %v3978_v51, %v3982_v14 }
 0x453   : > { %4102 = vmatprep.mubr.f32.mxu1 %v3971_v15  ;;  %6613 = vmatpush1.bf16.msra.mxu1 %v6612_v10  ;;  %v6622_v10 = vpack.c.bf16 %v4186_v24, %v4184_v22  ;;  %v8825_v15 = vld [vmem:[#allocation2 + $0xa0] sm:$0xff]  ;;  %v6626_v61 = vpack.c.bf16 %v4190_v4, %v4188_v3  ;;  %v4192_v24 = vld [vmem:[#allocation7 + $0x928] sm:$0xff]  ;;  %v3984_v4 = vrot.slane %v3858_v21, 7 }
 0x454   : > { %6615 = vmatprep.subr.bf16.mxu1 %v6614_v57  ;;  %v4183_v57 = vld [vmem:[#allocation7 + $0x8e0] sm:$0xff]  ;;  %v3980_v22 = vrot.slane %v8825_v15, 7  ;;  %v4196_v59 = vld [vmem:[#allocation7 + $0x948] sm:$0xff] }
 0x456   : > { %4103 = vmatmul.mubr.f32.gmra.mrb[10].mxu1 %v3969_v12  ;;  %v4189_v12 = vld [vmem:[#allocation7 + $0x910] sm:$0xff]  ;;  %v3981_v3 = vsel %vm3630_vm6, %v3976_v34, %v3980_v22 }
 0x457   : > { %4108 = vmatprep.mubr.f32.mxu1 %v3975_v17  ;;  %6617 = vmatpush1.bf16.msra.mxu1 %v6616_v49  ;;  %v6624_v49 = vpack.c.bf16 %v4185_v7, %v4183_v57  ;;  %v4194_v17 = vld [vmem:[#allocation7 + $0x938] sm:$0xff]  ;;  %v4193_v7 = vld [vmem:[#allocation7 + $0x930] sm:$0xff] }
 0x458   : > { %6619 = vmatprep.subr.bf16.mxu1 %v6618_v39  ;;  %v3859_v39 = vld [vmem:[#allocation2 + $0xb8] sm:$0x7f]  ;;  %v6630_v57 = vpack.c.bf16 %v4194_v17, %v4192_v24  ;;  %v4199_v24 = vld [vmem:[#allocation7 + $0x960] sm:$0xff] }
 0x459   : > { %v4206_v17 = vld [vmem:[#allocation7 + $0x998] sm:$0xff] }
 0x45a   : > { %4109 = vmatmul.mubr.f32.gmra.mrb[12].mxu1 %v3973_v60  ;;  %v3986_v60 = vrot.slane %v3859_v39, 7 }
 0x45b   : > { %4114 = vmatprep.mubr.f32.mxu1 %v3979_v26  ;;  %6621 = vmatpush1.bf16.msra.mxu1 %v6620_v18  ;;  %v6628_v18 = vpack.c.bf16 %v4189_v12, %v4187_v16  ;;  %v4198_v26 = vld [vmem:[#allocation7 + $0x958] sm:$0xff]  ;;  %v4200_v16 = vld [vmem:[#allocation7 + $0x968] sm:$0xff] }
 0x45c   : > { %6623 = vmatprep.subr.bf16.mxu1 %v6622_v10  ;;  %v4191_v10 = vld [vmem:[#allocation7 + $0x920] sm:$0xff]  ;;  %v3987_v29 = vsel %vm3630_vm6, %v3982_v14, %v3986_v60  ;;  %v6634_v39 = vpack.c.bf16 %v4198_v26, %v4196_v59  ;;  %v4202_v12 = vld [vmem:[#allocation7 + $0x978] sm:$0xff]  ;;  %v4201_v14 = vld [vmem:[#allocation7 + $0x970] sm:$0xff] }
 0x45d   : > { %v6632_v51 = vpack.c.bf16 %v4193_v7, %v4191_v10  ;;  %v6638_v34 = vpack.c.bf16 %v4202_v12, %v4200_v16  ;;  %v4210_v10 = vld [vmem:[#allocation7 + $0x9b8] sm:$0xff]  ;;  %v4212_v59 = vld [vmem:[#allocation7 + $0x9c8] sm:$0xff] }
 0x45e   : > { %4115 = vmatmul.mubr.f32.gmra.mrb[14].mxu1 %v3977_v62  ;;  %v4195_v62 = vld [vmem:[#allocation7 + $0x940] sm:$0xff]  ;;  %v4214_v26 = vld [vmem:[#allocation7 + $0x9d8] sm:$0xff] }
 0x45f   : > { %4120 = vmatprep.mubr.f32.mxu1 %v3983_v6  ;;  %6625 = vmatpush1.bf16.msra.mxu1 %v6624_v49  ;;  %v4197_v49 = vld [vmem:[#allocation7 + $0x950] sm:$0xff]  ;;  %v6640_v6 = vpack.c.bf16 %v4201_v14, %v4199_v24  ;;  %v4218_v16 = vld [vmem:[#allocation7 + $0x9f8] sm:$0xff]  ;;  %v4387_v14 = vld [vmem:[#allocation7 + $0xa08] sm:$0xff] }
 0x460   : > { %6627 = vmatprep.subr.bf16.mxu1 %v6626_v61  ;;  %v3985_v61 = vsel %vm3630_vm6, %v3980_v22, %v3984_v4  ;;  %v6636_v21 = vpack.c.bf16 %v4197_v49, %v4195_v62  ;;  %v4208_v22 = vld [vmem:[#allocation7 + $0x9a8] sm:$0xff]  ;;  %v4209_v4 = vld [vmem:[#allocation7 + $0x9b0] sm:$0xff]  ;;  %v4211_v62 = vld [vmem:[#allocation7 + $0x9c0] sm:$0xff] }
 0x461   : > { %v4213_v49 = vld [vmem:[#allocation7 + $0x9d0] sm:$0xff] }
 0x462   : > { %4121 = vmatmul.mubr.f32.gmra.mrb[16].mxu1 %v3981_v3  ;;  %v6646_v3 = vpack.c.bf16 %v4210_v10, %v4208_v22  ;;  %v6652_v12 = vpack.c.bf16 %v4213_v49, %v4211_v62  ;;  %v4217_v24 = vld [vmem:[#allocation7 + $0x9f0] sm:$0xff]  ;;  %v4393_v22 = vld [vmem:[#allocation7 + $0xa38] sm:$0xff]  ;;  %v4399_v49 = vld [vmem:[#allocation7 + $0xa68] sm:$0xff] }
 0x463   : > { %4126 = vmatprep.mubr.f32.mxu1 %v3987_v29  ;;  %6629 = vmatpush1.bf16.msra.mxu1 %v6628_v18  ;;  %v4204_v29 = vld [vmem:[#allocation7 + $0x988] sm:$0xff]  ;;  %v4203_v18 = vld [vmem:[#allocation7 + $0x980] sm:$0xff]  ;;  %v4396_v62 = vld [vmem:[#allocation7 + $0xa50] sm:$0xff] }
 0x464   : > { %6631 = vmatprep.subr.bf16.mxu1 %v6630_v57  ;;  %v6642_v60 = vpack.c.bf16 %v4206_v17, %v4204_v29  ;;  %v4205_v57 = vld [vmem:[#allocation7 + $0x990] sm:$0xff]  ;;  %v4389_v29 = vld [vmem:[#allocation7 + $0xa18] sm:$0xff] }
 0x465   : > { %v6644_v7 = vpack.c.bf16 %v4205_v57, %v4203_v18  ;;  %v4388_v18 = vld [vmem:[#allocation7 + $0xa10] sm:$0xff]  ;;  %v4391_v57 = vld [vmem:[#allocation7 + $0xa28] sm:$0xff] }
 0x466   : > { %4127 = vmatmul.mubr.f32.gmra.mrb[18].mxu1 %v3985_v61  ;;  %v4216_v61 = vld [vmem:[#allocation7 + $0x9e8] sm:$0xff] }
 0x467   : > { %6633 = vmatpush1.bf16.msra.mxu1 %v6632_v51  ;;  %4283 = vmatprep.mubr.f32.mxu1 %v8748_v0  ;;  %v4207_v0 = vld [vmem:[#allocation7 + $0x9a0] sm:$0xff] }
 0x468   : > { %6635 = vmatprep.subr.bf16.mxu1 %v6634_v39  ;;  %v6648_v51 = vpack.c.bf16 %v4209_v4, %v4207_v0  ;;  %v6650_v39 = vpack.c.bf16 %v4214_v26, %v4212_v59  ;;  %v4392_v0 = vld [vmem:[#allocation7 + $0xa30] sm:$0xff]  ;;  %v4395_v4 = vld [vmem:[#allocation7 + $0xa48] sm:$0xff]  ;;  %v4397_v59 = vld [vmem:[#allocation7 + $0xa58] sm:$0xff] }
 0x46b   : > { %6637 = vmatpush1.bf16.msra.mxu1 %v6636_v21  ;;  %v6654_v21 = vpack.c.bf16 %v4218_v16, %v4216_v61  ;;  %v4401_v61 = vld [vmem:[#allocation7 + $0xa78] sm:$0xff] }
 0x46c   : > { %6639 = vmatprep.subr.bf16.mxu1 %v6638_v34  ;;  %v4215_v34 = vld [vmem:[#allocation7 + $0x9e0] sm:$0xff] }
 0x46d   : > { %v6656_v17 = vpack.c.bf16 %v4217_v24, %v4215_v34  ;;  %v4403_v34 = vld [vmem:[#allocation7 + $0xa88] sm:$0xff]  ;;  %v4405_v24 = vld [vmem:[#allocation7 + $0xa98] sm:$0xff] }
 0x46f   : > { %6641 = vmatpush1.bf16.msra.mxu1 %v6640_v6  ;;  %v6658_v6 = vpack.c.bf16 %v4389_v29, %v4387_v14  ;;  %v6674_v29 = vpack.c.bf16 %v4405_v24, %v4403_v34 }
 0x470   : > { %6643 = vmatprep.subr.bf16.mxu1 %v6642_v60  ;;  %v4386_v60 = vld [vmem:[#allocation7 + $0xa00] sm:$0xff] }
 0x471   : > { %v6660_v10 = vpack.c.bf16 %v4388_v18, %v4386_v60  ;;  %v4407_v60 = vld [vmem:[#allocation7 + $0xaa8] sm:$0xff]  ;;  %v4409_v18 = vld [vmem:[#allocation7 + $0xab8] sm:$0xff] }
 0x473   : > { %6645 = vmatpush1.bf16.msra.mxu1 %v6644_v7  ;;  %v6662_v7 = vpack.c.bf16 %v4393_v22, %v4391_v57  ;;  %v6678_v22 = vpack.c.bf16 %v4409_v18, %v4407_v60 }
 0x474   : > { %6647 = vmatprep.subr.bf16.mxu1 %v6646_v3  ;;  %v4390_v3 = vld [vmem:[#allocation7 + $0xa20] sm:$0xff] }
 0x475   : > { %v6664_v26 = vpack.c.bf16 %v4392_v0, %v4390_v3  ;;  %v4411_v3 = vld [vmem:[#allocation7 + $0xac8] sm:$0xff]  ;;  %v4413_v0 = vld [vmem:[#allocation7 + $0xad8] sm:$0xff] }
 0x477   : > { %6649 = vmatpush1.bf16.msra.mxu1 %v6648_v51  ;;  %v6666_v51 = vpack.c.bf16 %v4397_v59, %v4395_v4  ;;  %v6682_v59 = vpack.c.bf16 %v4413_v0, %v4411_v3  ;;  %v4429_v3 = vld [vmem:[#allocation7 + $0xb58] sm:$0xff] }
 0x478   : > { %6651 = vmatprep.subr.bf16.mxu1 %v6650_v39  ;;  %v4394_v39 = vld [vmem:[#allocation7 + $0xa40] sm:$0xff]  ;;  %v8851_v0 = vld [vmem:[#allocation2 + $0xb8] sm:$0xff] }
 0x479   : > { %v6668_v16 = vpack.c.bf16 %v4396_v62, %v4394_v39  ;;  %v4415_v39 = vld [vmem:[#allocation7 + $0xae8] sm:$0xff]  ;;  %v4417_v62 = vld [vmem:[#allocation7 + $0xaf8] sm:$0xff] }
 0x47b   : > { %6653 = vmatpush1.bf16.msra.mxu1 %v6652_v12  ;;  %v6670_v12 = vpack.c.bf16 %v4401_v61, %v4399_v49  ;;  %v6686_v61 = vpack.c.bf16 %v4417_v62, %v4415_v39  ;;  %v4426_v39 = vld [vmem:[#allocation7 + $0xb40] sm:$0xff]  ;;  %v4428_v62 = vld [vmem:[#allocation7 + $0xb50] sm:$0xff] }
 0x47c   : > { %6655 = vmatprep.subr.bf16.mxu1 %v6654_v21  ;;  %v4398_v21 = vld [vmem:[#allocation7 + $0xa60] sm:$0xff] }
 0x47f   : > { %6657 = vmatpush1.bf16.msra.mxu1 %v6656_v17  ;;  %v4402_v17 = vld [vmem:[#allocation7 + $0xa80] sm:$0xff] }
 0x480   : > { %6659 = vmatprep.subr.bf16.mxu1 %v6658_v6  ;;  %v4404_v6 = vld [vmem:[#allocation7 + $0xa90] sm:$0xff] }
 0x481   : > { %v6676_v57 = vpack.c.bf16 %v4404_v6, %v4402_v17  ;;  %v4423_v17 = vld [vmem:[#allocation7 + $0xb28] sm:$0xff]  ;;  %v4425_v6 = vld [vmem:[#allocation7 + $0xb38] sm:$0xff] }
 0x482   : > { %4284 = vmatmul.mubr.f32.vlgmr.msra.gmra.mrb[0].mxu1 %v8761_v63  ;;  %v4400_v63 = vld [vmem:[#allocation7 + $0xa70] sm:$0xff]  ;;  %v6694_v18 = vpack.c.bf16 %v4425_v6, %v4423_v17 }
 0x483   : > { %4289 = vmatprep.mubr.f32.mxu1 %v8763_v30  ;;  %6661 = vmatpush1.bf16.msra.mxu1 %v6660_v10  ;;  %v6672_v14 = vpack.c.bf16 %v4400_v63, %v4398_v21  ;;  %v4406_v10 = vld [vmem:[#allocation7 + $0xaa0] sm:$0xff]  ;;  %v4419_v21 = vld [vmem:[#allocation7 + $0xb08] sm:$0xff]  ;;  %v4421_v63 = vld [vmem:[#allocation7 + $0xb18] sm:$0xff] }
 0x484   : > { %6663 = vmatprep.subr.bf16.mxu1 %v6662_v7  ;;  %v4408_v7 = vld [vmem:[#allocation7 + $0xab0] sm:$0xff]  ;;  %v6690_v24 = vpack.c.bf16 %v4421_v63, %v4419_v21  ;;  %v6700_v21 = vpack.c.bf16 %v4428_v62, %v4426_v39 }
 0x485   : > { %v6680_v4 = vpack.c.bf16 %v4408_v7, %v4406_v10  ;;  %v4365_v10 = vld [vmem:[#allocation2 + $0x28] sm:$0xfe] }
 0x486   : > { %4290 = vmatmul.mubr.f32.gmra.mrb[2].mxu1 %v8767_v28  ;;  %v4427_v7 = vld [vmem:[#allocation7 + $0xb48] sm:$0xff] }
 0x487   : > { %4295 = vmatprep.mubr.f32.mxu1 %v8769_v41  ;;  %6665 = vmatpush1.bf16.msra.mxu1 %v6664_v26  ;;  %v4410_v26 = vld [vmem:[#allocation7 + $0xac0] sm:$0xff] }
 0x488   : > { %6667 = vmatprep.subr.bf16.mxu1 %v6666_v51  ;;  %v4412_v51 = vld [vmem:[#allocation7 + $0xad0] sm:$0xff] }
 0x489   : > { %v6684_v49 = vpack.c.bf16 %v4412_v51, %v4410_v26  ;;  %v4475_v26 = vrot.slane %v4365_v10, 1  ;;  %v6698_v51 = vpack.c.bf16 %v4429_v3, %v4427_v7  ;;  %v4438_v3 = vld [vmem:[#allocation7 + $0xba0] sm:$0xff] }
 0x48a   : > { %4296 = vmatmul.mubr.f32.gmra.mrb[4].mxu1 %v8777_v5 }
 0x48b   : > { %4301 = vmatprep.mubr.f32.mxu1 %v8779_v55  ;;  %6669 = vmatpush1.bf16.msra.mxu1 %v6668_v16  ;;  %v4414_v16 = vld [vmem:[#allocation7 + $0xae0] sm:$0xff] }
 0x48c   : > { %6671 = vmatprep.subr.bf16.mxu1 %v6670_v12  ;;  %v4416_v12 = vld [vmem:[#allocation7 + $0xaf0] sm:$0xff] }
 0x48d   : > { %v6688_v34 = vpack.c.bf16 %v4416_v12, %v4414_v16  ;;  %v4433_v16 = vld [vmem:[#allocation7 + $0xb78] sm:$0xff] }
 0x48e   : > { %4302 = vmatmul.mubr.f32.gmra.mrb[6].mxu1 %v8785_v47 }
 0x48f   : > { %4307 = vmatprep.mubr.f32.mxu1 %v8787_v11  ;;  %6673 = vmatpush1.bf16.msra.mxu1 %v6672_v14  ;;  %v4418_v14 = vld [vmem:[#allocation7 + $0xb00] sm:$0xff] }
 0x490   : > { %6675 = vmatprep.subr.bf16.mxu1 %v6674_v29  ;;  %v4420_v29 = vld [vmem:[#allocation7 + $0xb10] sm:$0xff] }
 0x491   : > { %v6692_v60 = vpack.c.bf16 %v4420_v29, %v4418_v14  ;;  %v4435_v14 = vld [vmem:[#allocation7 + $0xb88] sm:$0xff]  ;;  %v4437_v29 = vld [vmem:[#allocation7 + $0xb98] sm:$0xff] }
 0x492   : > { %4308 = vmatmul.mubr.f32.gmra.mrb[8].mxu1 %v8793_v36  ;;  %v6706_v6 = vpack.c.bf16 %v4437_v29, %v4435_v14  ;;  %v4448_v14 = vld [vmem:[#allocation7 + $0xbf0] sm:$0xff]  ;;  %v4702_v29 = vld [vmem:[#allocation7 + $0xc08] sm:$0xff] }
 0x493   : > { %4313 = vmatprep.mubr.f32.mxu1 %v8795_v45  ;;  %6677 = vmatpush1.bf16.msra.mxu1 %v6676_v57  ;;  %v4422_v57 = vld [vmem:[#allocation7 + $0xb20] sm:$0xff] }
 0x494   : > { %6679 = vmatprep.subr.bf16.mxu1 %v6678_v22  ;;  %v4424_v22 = vld [vmem:[#allocation7 + $0xb30] sm:$0xff] }
 0x496   : > { %4314 = vmatmul.mubr.f32.gmra.mrb[10].mxu1 %v8801_v20 }
 0x497   : > { %4319 = vmatprep.mubr.f32.mxu1 %v8803_v13  ;;  %6681 = vmatpush1.bf16.msra.mxu1 %v6680_v4  ;;  %v4476_v4 = vrot.slane %v8763_v30, 1 }
 0x498   : > { %6683 = vmatprep.subr.bf16.mxu1 %v6682_v59  ;;  %v6696_v59 = vpack.c.bf16 %v4424_v22, %v4422_v57  ;;  %v4439_v57 = vld [vmem:[#allocation7 + $0xba8] sm:$0xff]  ;;  %v4441_v22 = vld [vmem:[#allocation7 + $0xbb8] sm:$0xff] }
 0x499   : > { %v4477_v12 = vsel %vm481_vm0, %v4475_v26, %v4476_v4  ;;  %v6710_v7 = vpack.c.bf16 %v4441_v22, %v4439_v57  ;;  %v4443_v26 = vld [vmem:[#allocation7 + $0xbc8] sm:$0xff]  ;;  %v4701_v57 = vld [vmem:[#allocation7 + $0xc00] sm:$0xff]  ;;  %v4703_v22 = vld [vmem:[#allocation7 + $0xc10] sm:$0xff] }
 0x49a   : > { %4320 = vmatmul.mubr.f32.gmra.mrb[12].mxu1 %v8809_v1 }
 0x49b   : > { %4325 = vmatprep.mubr.f32.mxu1 %v8811_v2  ;;  %6685 = vmatpush1.bf16.msra.mxu1 %v6684_v49  ;;  %v8855_v49 = vld [vmem:[#allocation2 + $0xb0] sm:$0xff] }
 0x49c   : > { %6687 = vmatprep.subr.bf16.mxu1 %v6686_v61  ;;  %v4431_v61 = vld [vmem:[#allocation7 + $0xb68] sm:$0xff] }
 0x49d   : > { %v6702_v63 = vpack.c.bf16 %v4433_v16, %v4431_v61  ;;  %v4442_v61 = vld [vmem:[#allocation7 + $0xbc0] sm:$0xff]  ;;  %v4444_v16 = vld [vmem:[#allocation7 + $0xbd0] sm:$0xff] }
 0x49e   : > { %4326 = vmatmul.mubr.f32.gmra.mrb[14].mxu1 %v8817_v31 }
 0x49f   : > { %4331 = vmatprep.mubr.f32.mxu1 %v8819_v19  ;;  %6689 = vmatpush1.bf16.msra.mxu1 %v6688_v34  ;;  %v4430_v34 = vld [vmem:[#allocation7 + $0xb60] sm:$0xff] }
 0x4a0   : > { %6691 = vmatprep.subr.bf16.mxu1 %v6690_v24  ;;  %v4432_v24 = vld [vmem:[#allocation7 + $0xb70] sm:$0xff] }
 0x4a1   : > { %v6704_v17 = vpack.c.bf16 %v4432_v24, %v4430_v34  ;;  %v4446_v24 = vld [vmem:[#allocation7 + $0xbe0] sm:$0xff] }
 0x4a2   : > { %4332 = vmatmul.mubr.f32.gmra.mrb[16].mxu1 %v8825_v15 }
 0x4a3   : > { %4337 = vmatprep.mubr.f32.mxu1 %v8851_v0  ;;  %6693 = vmatpush1.bf16.msra.mxu1 %v6692_v60  ;;  %v4434_v60 = vld [vmem:[#allocation7 + $0xb80] sm:$0xff] }
 0x4a4   : > { %6695 = vmatprep.subr.bf16.mxu1 %v6694_v18  ;;  %v4436_v18 = vld [vmem:[#allocation7 + $0xb90] sm:$0xff] }
 0x4a5   : > { %v6708_v10 = vpack.c.bf16 %v4436_v18, %v4434_v60  ;;  %v4364_v60 = vld [vmem:[#allocation2 + $0x20] sm:$0xfe] }
 0x4a6   : > { %4338 = vmatmul.mubr.f32.gmra.mrb[18].mxu1 %v8855_v49 }
 0x4a7   : > { %6697 = vmatpush1.bf16.msra.mxu1 %v6696_v59  ;;  %4598 = vmatprep.mubr.f32.mxu1 %v4477_v12  ;;  %v4440_v59 = vld [vmem:[#allocation7 + $0xbb0] sm:$0xff]  ;;  %v4447_v12 = vld [vmem:[#allocation7 + $0xbe8] sm:$0xff] }
 0x4a8   : > { %6699 = vmatprep.subr.bf16.mxu1 %v6698_v51  ;;  %v4445_v51 = vld [vmem:[#allocation7 + $0xbd8] sm:$0xff]  ;;  %v6712_v39 = vpack.c.bf16 %v4440_v59, %v4438_v3  ;;  %v8863_v59 = vrot.slane %v8769_v41, 1  ;;  %v4484_v41 = vrot.slane %v8779_v55, 1 }
 0x4a9   : > { %v6714_v62 = vpack.c.bf16 %v4445_v51, %v4443_v26  ;;  %v4708_v3 = vld [vmem:[#allocation7 + $0xc38] sm:$0xff]  ;;  %v4472_v26 = vrot.slane %v4364_v60, 1  ;;  %v6724_v51 = vpack.c.bf16 %v4703_v22, %v4701_v57  ;;  %v4713_v57 = vld [vmem:[#allocation7 + $0xc60] sm:$0xff]  ;;  %v4715_v22 = vld [vmem:[#allocation7 + $0xc70] sm:$0xff] }
 0x4aa   : > { %v4716_v60 = vld [vmem:[#allocation7 + $0xc78] sm:$0xff]  ;;  %v4485_v30 = vsel %vm481_vm0, %v8863_v59, %v4484_v41 }
 0x4ab   : > { %6701 = vmatpush1.bf16.msra.mxu1 %v6700_v21  ;;  %v4449_v21 = vld [vmem:[#allocation7 + $0xbf8] sm:$0xff] }
 0x4ac   : > { %6703 = vmatprep.subr.bf16.mxu1 %v6702_v63  ;;  %v6716_v63 = vpack.c.bf16 %v4444_v16, %v4442_v61  ;;  %v6718_v34 = vpack.c.bf16 %v4449_v21, %v4447_v12  ;;  %v4707_v61 = vld [vmem:[#allocation7 + $0xc30] sm:$0xff]  ;;  %v4478_v12 = vrot.slane %v8777_v5, 1  ;;  %v4710_v21 = vld [vmem:[#allocation7 + $0xc48] sm:$0xff]  ;;  %v4482_v5 = vrot.slane %v8785_v47, 1 }
 0x4ad   : > { %v4718_v47 = vld [vmem:[#allocation7 + $0xc88] sm:$0xff] }
 0x4af   : > { %6705 = vmatpush1.bf16.msra.mxu1 %v6704_v17  ;;  %v4704_v17 = vld [vmem:[#allocation7 + $0xc18] sm:$0xff] }
 0x4b0   : > { %6707 = vmatprep.subr.bf16.mxu1 %v6706_v6  ;;  %v6720_v6 = vpack.c.bf16 %v4448_v14, %v4446_v24  ;;  %v6722_v18 = vpack.c.bf16 %v4704_v17, %v4702_v29  ;;  %v4709_v14 = vld [vmem:[#allocation7 + $0xc40] sm:$0xff]  ;;  %v4711_v29 = vld [vmem:[#allocation7 + $0xc50] sm:$0xff] }
 0x4b1   : > { %v6732_v55 = vpack.c.bf16 %v4711_v29, %v4709_v14  ;;  %v4494_v29 = vrot.slane %v8809_v1, 1  ;;  %v4732_v1 = vld [vmem:[#allocation7 + $0xcf8] sm:$0xff] }
 0x4b3   : > { %6709 = vmatpush1.bf16.msra.mxu1 %v6708_v10  ;;  %v4473_v10 = vrot.slane %v8767_v28, 1  ;;  %v4481_v28 = vsel %vm481_vm0, %v4476_v4, %v8863_v59  ;;  %v4488_v4 = vrot.slane %v8787_v11, 1  ;;  %v6736_v11 = vpack.c.bf16 %v4715_v22, %v4713_v57  ;;  %v4730_v57 = vld [vmem:[#allocation7 + $0xce8] sm:$0xff] }
 0x4b4   : > { %6711 = vmatprep.subr.bf16.mxu1 %v6710_v7  ;;  %v4706_v7 = vld [vmem:[#allocation7 + $0xc28] sm:$0xff] }
 0x4b5   : > { %v4474_v16 = vsel %vm481_vm0, %v4472_v26, %v4473_v10  ;;  %v4479_v17 = vsel %vm481_vm0, %v4473_v10, %v4478_v12  ;;  %v4486_v10 = vrot.slane %v8793_v36, 1  ;;  %v4489_v26 = vsel %vm481_vm0, %v4484_v41, %v4488_v4  ;;  %v4724_v36 = vld [vmem:[#allocation7 + $0xcb8] sm:$0xff] }
 0x4b7   : > { %6713 = vmatpush1.bf16.msra.mxu1 %v6712_v39  ;;  %v6726_v39 = vpack.c.bf16 %v4708_v3, %v4706_v7  ;;  %v4483_v7 = vsel %vm481_vm0, %v4478_v12, %v4482_v5  ;;  %v4720_v3 = vld [vmem:[#allocation7 + $0xc98] sm:$0xff]  ;;  %v4490_v12 = vrot.slane %v8801_v20, 1 }
 0x4b8   : > { %6715 = vmatprep.subr.bf16.mxu1 %v6714_v62  ;;  %v4705_v62 = vld [vmem:[#allocation7 + $0xc20] sm:$0xff]  ;;  %v4728_v20 = vld [vmem:[#allocation7 + $0xcd8] sm:$0xff] }
 0x4b9   : > { %v4491_v14 = vsel %vm481_vm0, %v4486_v10, %v4490_v12 }
 0x4bb   : > { %6717 = vmatpush1.bf16.msra.mxu1 %v6716_v63  ;;  %v4712_v63 = vld [vmem:[#allocation7 + $0xc58] sm:$0xff] }
 0x4bc   : > { %6719 = vmatprep.subr.bf16.mxu1 %v6718_v34  ;;  %v6728_v34 = vpack.c.bf16 %v4707_v61, %v4705_v62  ;;  %v6730_v24 = vpack.c.bf16 %v4712_v63, %v4710_v21  ;;  %v4717_v62 = vld [vmem:[#allocation7 + $0xc80] sm:$0xff]  ;;  %v4719_v61 = vld [vmem:[#allocation7 + $0xc90] sm:$0xff]  ;;  %v4722_v21 = vld [vmem:[#allocation7 + $0xca8] sm:$0xff] }
 0x4bd   : > { %v6742_v41 = vpack.c.bf16 %v4724_v36, %v4722_v21  ;;  %v4735_v21 = vld [vmem:[#allocation7 + $0xd10] sm:$0xff] }
 0x4bf   : > { %6721 = vmatpush1.bf16.msra.mxu1 %v6720_v6  ;;  %v4714_v6 = vld [vmem:[#allocation7 + $0xc68] sm:$0xff] }
 0x4c0   : > { %6723 = vmatprep.subr.bf16.mxu1 %v6722_v18  ;;  %v6734_v18 = vpack.c.bf16 %v4716_v60, %v4714_v6  ;;  %v4500_v6 = vrot.slane %v8811_v2, 1 }
 0x4c2   : > { %4599 = vmatmul.mubr.f32.vlgmr.msra.gmra.mrb[0].mxu1 %v4474_v16  ;;  %v4487_v16 = vsel %vm481_vm0, %v4482_v5, %v4486_v10  ;;  %v6750_v10 = vpack.c.bf16 %v4732_v1, %v4730_v57  ;;  %v4741_v57 = vld [vmem:[#allocation7 + $0xd40] sm:$0xff]  ;;  %v4743_v1 = vld [vmem:[#allocation7 + $0xd50] sm:$0xff] }
 0x4c3   : > { %4604 = vmatprep.mubr.f32.mxu1 %v4481_v28  ;;  %6725 = vmatpush1.bf16.msra.mxu1 %v6724_v51  ;;  %v4492_v51 = vrot.slane %v8795_v45, 1  ;;  %v4496_v28 = vrot.slane %v8803_v13, 1  ;;  %v6740_v45 = vpack.c.bf16 %v4719_v61, %v4717_v62  ;;  %v8897_v62 = vrot.slane %v8851_v0, 1  ;;  %v4385_v61 = vld [vmem:[#allocation2 + $0xc8] sm:$0x1] }
 0x4c4   : > { %6727 = vmatprep.subr.bf16.mxu1 %v6726_v39  ;;  %v6738_v39 = vpack.c.bf16 %v4720_v3, %v4718_v47  ;;  %v4729_v47 = vld [vmem:[#allocation7 + $0xce0] sm:$0xff]  ;;  %v4731_v3 = vld [vmem:[#allocation7 + $0xcf0] sm:$0xff] }
 0x4c5   : > { %v4493_v63 = vsel %vm481_vm0, %v4488_v4, %v4492_v51  ;;  %v4497_v5 = vsel %vm481_vm0, %v4492_v51, %v4496_v28  ;;  %v4727_v4 = vld [vmem:[#allocation7 + $0xcd0] sm:$0xff]  ;;  %v4501_v22 = vsel %vm481_vm0, %v4496_v28, %v4500_v6  ;;  %v4502_v51 = vrot.slane %v8825_v15, 1  ;;  %v4740_v28 = vld [vmem:[#allocation7 + $0xd38] sm:$0xff] }
 0x4c6   : > { %4605 = vmatmul.mubr.f32.gmra.mrb[2].mxu1 %v4479_v17  ;;  %v4726_v17 = vld [vmem:[#allocation7 + $0xcc8] sm:$0xff]  ;;  %v8901_v15 = vrot.slane %v8855_v49, 1 }
 0x4c7   : > { %4610 = vmatprep.mubr.f32.mxu1 %v4485_v30  ;;  %6729 = vmatpush1.bf16.msra.mxu1 %v6728_v34  ;;  %v4721_v34 = vld [vmem:[#allocation7 + $0xca0] sm:$0xff]  ;;  %v6746_v60 = vpack.c.bf16 %v4728_v20, %v4726_v17  ;;  %v4739_v17 = vld [vmem:[#allocation7 + $0xd30] sm:$0xff] }
 0x4c8   : > { %6731 = vmatprep.subr.bf16.mxu1 %v6730_v24  ;;  %v4723_v24 = vld [vmem:[#allocation7 + $0xcb0] sm:$0xff]  ;;  %v4725_v30 = vld [vmem:[#allocation7 + $0xcc0] sm:$0xff]  ;;  %v4507_v20 = vsel %vm481_vm0, %v4502_v51, %v8901_v15 }
 0x4c9   : > { %v6744_v13 = vpack.c.bf16 %v4723_v24, %v4721_v34  ;;  %v6748_v2 = vpack.c.bf16 %v4727_v4, %v4725_v30  ;;  %v4384_v34 = vld [vmem:[#allocation2 + $0xc0] sm:$0x1] }
 0x4ca   : > { %4611 = vmatmul.mubr.f32.gmra.mrb[4].mxu1 %v4483_v7  ;;  %v4504_v7 = vrot.slane %v8819_v19, 1  ;;  %v6752_v19 = vpack.c.bf16 %v4731_v3, %v4729_v47  ;;  %v6764_v47 = vpack.c.bf16 %v4743_v1, %v4741_v57  ;;  %v4679_v57 = vld [vmem:[#allocation2 + $0x30] sm:$0xfe] }
 0x4cb   : > { %4616 = vmatprep.mubr.f32.mxu1 %v4489_v26  ;;  %6733 = vmatpush1.bf16.msra.mxu1 %v6732_v55  ;;  %v4495_v55 = vsel %vm481_vm0, %v4490_v12, %v4494_v29  ;;  %v4733_v12 = vld [vmem:[#allocation7 + $0xd00] sm:$0xff] }
 0x4cc   : > { %6735 = vmatprep.subr.bf16.mxu1 %v6734_v18  ;;  %v4498_v18 = vrot.slane %v8817_v31, 1  ;;  %v4736_v31 = vld [vmem:[#allocation7 + $0xd18] sm:$0xff]  ;;  %v6756_v24 = vpack.c.bf16 %v4735_v21, %v4733_v12  ;;  %v4754_v12 = vld [vmem:[#allocation7 + $0xda8] sm:$0xff] }
 0x4cd   : > { %v4756_v21 = vld [vmem:[#allocation7 + $0xdb8] sm:$0xff] }
 0x4ce   : > { %4617 = vmatmul.mubr.f32.gmra.mrb[6].mxu1 %v4487_v16  ;;  %v4499_v26 = vsel %vm481_vm0, %v4494_v29, %v4498_v18  ;;  %v4503_v36 = vsel %vm481_vm0, %v4498_v18, %v4502_v51  ;;  %v4737_v29 = vld [vmem:[#allocation7 + $0xd20] sm:$0xff]  ;;  %v4747_v51 = vld [vmem:[#allocation7 + $0xd70] sm:$0xff] }
 0x4cf   : > { %4622 = vmatprep.mubr.f32.mxu1 %v4493_v63  ;;  %6737 = vmatpush1.bf16.msra.mxu1 %v6736_v11  ;;  %v4734_v11 = vld [vmem:[#allocation7 + $0xd08] sm:$0xff]  ;;  %v6760_v4 = vpack.c.bf16 %v4739_v17, %v4737_v29  ;;  %v4757_v29 = vld [vmem:[#allocation7 + $0xdc0] sm:$0xff]  ;;  %v4759_v17 = vld [vmem:[#allocation7 + $0xdd0] sm:$0xff] }
 0x4d0   : > { %6739 = vmatprep.subr.bf16.mxu1 %v6738_v39  ;;  %v4505_v39 = vsel %vm481_vm0, %v4500_v6, %v4504_v7  ;;  %v6754_v16 = vpack.c.bf16 %v4736_v31, %v4734_v11  ;;  %v4738_v63 = vld [vmem:[#allocation7 + $0xd28] sm:$0xff]  ;;  %v4680_v6 = vld [vmem:[#allocation2 + $0x38] sm:$0xfe] }
 0x4d1   : > { %v4750_v11 = vld [vmem:[#allocation7 + $0xd88] sm:$0xff]  ;;  %v4752_v31 = vld [vmem:[#allocation7 + $0xd98] sm:$0xff] }
 0x4d2   : > { %4623 = vmatmul.mubr.f32.gmra.mrb[8].mxu1 %v4491_v14  ;;  %v6758_v14 = vpack.c.bf16 %v4740_v28, %v4738_v63  ;;  %v6774_v63 = vpack.c.bf16 %v4756_v21, %v4754_v12  ;;  %v4753_v28 = vld [vmem:[#allocation7 + $0xda0] sm:$0xff]  ;;  %v7334_v12 = vld [vmem:[#allocation2 + $0x50] sm:$0xff] }
 0x4d3   : > { %4628 = vmatprep.mubr.f32.mxu1 %v4497_v5  ;;  %6741 = vmatpush1.bf16.msra.mxu1 %v6740_v45  ;;  %v4509_v45 = vsel %vm481_vm0, %v4504_v7, %v8897_v62  ;;  %v4510_v5 = vrot.slane %v4384_v34, 1  ;;  %v4746_v7 = vld [vmem:[#allocation7 + $0xd68] sm:$0xff]  ;;  %v4760_v34 = vld [vmem:[#allocation7 + $0xdd8] sm:$0xff]  ;;  %v4793_v21 = vrot.slane %v7334_v12, 1 }
 0x4d4   : > { %6743 = vmatprep.subr.bf16.mxu1 %v6742_v41  ;;  %v4512_v41 = vrot.slane %v4385_v61, 1  ;;  %v4749_v61 = vld [vmem:[#allocation7 + $0xd80] sm:$0xff]  ;;  %v5019_v12 = vld [vmem:[#allocation7 + $0xea8] sm:$0xff] }
 0x4d6   : > { %4629 = vmatmul.mubr.f32.gmra.mrb[10].mxu1 %v4495_v55  ;;  %v4513_v30 = vsel %vm481_vm0, %v8897_v62, %v4512_v41  ;;  %v4790_v55 = vrot.slane %v4680_v6, 1  ;;  %v4758_v41 = vld [vmem:[#allocation7 + $0xdc8] sm:$0xff]  ;;  %v6780_v6 = vpack.c.bf16 %v4759_v17, %v4757_v29  ;;  %v5008_v29 = vld [vmem:[#allocation7 + $0xe50] sm:$0xff] }
 0x4d7   : > { %4634 = vmatprep.mubr.f32.mxu1 %v4501_v22  ;;  %6745 = vmatpush1.bf16.msra.mxu1 %v6744_v13  ;;  %v4742_v13 = vld [vmem:[#allocation7 + $0xd48] sm:$0xff]  ;;  %v4511_v22 = vsel %vm481_vm0, %v8901_v15, %v4510_v5  ;;  %v4764_v5 = vld [vmem:[#allocation7 + $0xdf8] sm:$0xff] }
 0x4d8   : > { %6747 = vmatprep.subr.bf16.mxu1 %v6746_v60  ;;  %v4744_v60 = vld [vmem:[#allocation7 + $0xd58] sm:$0xff] }
 0x4d9   : > { %v6762_v18 = vpack.c.bf16 %v4744_v60, %v4742_v13  ;;  %v4761_v60 = vld [vmem:[#allocation7 + $0xde0] sm:$0xff] }
 0x4da   : > { %4635 = vmatmul.mubr.f32.gmra.mrb[12].mxu1 %v4499_v26  ;;  %v4745_v26 = vld [vmem:[#allocation7 + $0xd60] sm:$0xff] }
 0x4db   : > { %4640 = vmatprep.mubr.f32.mxu1 %v4505_v39  ;;  %6749 = vmatpush1.bf16.msra.mxu1 %v6748_v2  ;;  %v4748_v2 = vld [vmem:[#allocation7 + $0xd78] sm:$0xff]  ;;  %v6768_v39 = vpack.c.bf16 %v4747_v51, %v4745_v26 }
 0x4dc   : > { %6751 = vmatprep.subr.bf16.mxu1 %v6750_v10  ;;  %v4792_v10 = vsel %vm481_vm0, %v4790_v55, %v8863_v59  ;;  %v6766_v3 = vpack.c.bf16 %v4748_v2, %v4746_v7  ;;  %v5001_v55 = vld [vmem:[#allocation7 + $0xe18] sm:$0xff]  ;;  %v5000_v7 = vld [vmem:[#allocation7 + $0xe10] sm:$0xff] }
 0x4dd   : > { %v7332_v2 = vld [vmem:[#allocation2 + $0x40] sm:$0xff]  ;;  %v7333_v26 = vld [vmem:[#allocation2 + $0x58] sm:$0xff] }
 0x4de   : > { %4641 = vmatmul.mubr.f32.gmra.mrb[14].mxu1 %v4503_v36  ;;  %v4795_v51 = vrot.slane %v7333_v26, 1 }
 0x4df   : > { %4646 = vmatprep.mubr.f32.mxu1 %v4509_v45  ;;  %6753 = vmatpush1.bf16.msra.mxu1 %v6752_v19  ;;  %v6770_v19 = vpack.c.bf16 %v4752_v31, %v4750_v11  ;;  %v4755_v45 = vld [vmem:[#allocation7 + $0xdb0] sm:$0xff]  ;;  %v4787_v11 = vrot.slane %v4679_v57, 1 }
 0x4e0   : > { %6755 = vmatprep.subr.bf16.mxu1 %v6754_v16  ;;  %v4751_v16 = vld [vmem:[#allocation7 + $0xd90] sm:$0xff] }
 0x4e1   : > { %v6772_v36 = vpack.c.bf16 %v4751_v16, %v4749_v61  ;;  %v5004_v61 = vld [vmem:[#allocation7 + $0xe30] sm:$0xff] }
 0x4e2   : > { %4647 = vmatmul.mubr.f32.gmra.mrb[16].mxu1 %v4507_v20  ;;  %v4762_v20 = vld [vmem:[#allocation7 + $0xde8] sm:$0xff]  ;;  %v5012_v57 = vld [vmem:[#allocation7 + $0xe70] sm:$0xff] }
 0x4e3   : > { %4652 = vmatprep.mubr.f32.mxu1 %v4513_v30  ;;  %6757 = vmatpush1.bf16.msra.mxu1 %v6756_v24  ;;  %v6776_v24 = vpack.c.bf16 %v4755_v45, %v4753_v28  ;;  %v6782_v13 = vpack.c.bf16 %v4764_v5, %v4762_v20  ;;  %v4763_v30 = vld [vmem:[#allocation7 + $0xdf0] sm:$0xff]  ;;  %v4796_v28 = vsel %vm481_vm0, %v8863_v59, %v4795_v51  ;;  %v7335_v45 = vld [vmem:[#allocation2 + $0x68] sm:$0xff]  ;;  %v7336_v20 = vld [vmem:[#allocation2 + $0x60] sm:$0xff] }
 0x4e4   : > { %6759 = vmatprep.subr.bf16.mxu1 %v6758_v14  ;;  %v6778_v14 = vpack.c.bf16 %v4760_v34, %v4758_v41  ;;  %v4799_v41 = vrot.slane %v7335_v45, 1  ;;  %v4797_v5 = vrot.slane %v7336_v20, 1  ;;  %v5023_v20 = vld [vmem:[#allocation7 + $0xec8] sm:$0xff] }
 0x4e6   : > { %4653 = vmatmul.mubr.f32.gmra.mrb[18].mxu1 %v4511_v22  ;;  %v4998_v22 = vld [vmem:[#allocation7 + $0xe00] sm:$0xff] }
 0x4e7   : > { %6761 = vmatpush1.bf16.msra.mxu1 %v6760_v4  ;;  %4913 = vmatprep.mubr.f32.mxu1 %v4792_v10  ;;  %v4999_v4 = vld [vmem:[#allocation7 + $0xe08] sm:$0xff]  ;;  %v4788_v10 = vrot.slane %v7332_v2, 1  ;;  %v6788_v31 = vpack.c.bf16 %v5000_v7, %v4998_v22 }
 0x4e8   : > { %6763 = vmatprep.subr.bf16.mxu1 %v6762_v18  ;;  %v6784_v18 = vpack.c.bf16 %v4763_v30, %v4761_v60  ;;  %v6786_v1 = vpack.c.bf16 %v5001_v55, %v4999_v4  ;;  %v4800_v60 = vsel %vm481_vm0, %v4795_v51, %v4799_v41  ;;  %v7337_v30 = vld [vmem:[#allocation2 + $0x78] sm:$0xff]  ;;  %v7338_v22 = vld [vmem:[#allocation2 + $0x70] sm:$0xff] }
 0x4e9   : > { %v4789_v16 = vsel %vm481_vm0, %v4787_v11, %v4788_v10  ;;  %v4794_v17 = vsel %vm481_vm0, %v4788_v10, %v4793_v21  ;;  %v4803_v59 = vrot.slane %v7337_v30, 1  ;;  %v4801_v7 = vrot.slane %v7338_v22, 1  ;;  %v5015_v2 = vld [vmem:[#allocation7 + $0xe88] sm:$0xff]  ;;  %v5017_v10 = vld [vmem:[#allocation7 + $0xe98] sm:$0xff] }
 0x4ea   : > { %v6802_v11 = vpack.c.bf16 %v5017_v10, %v5015_v2  ;;  %v5027_v22 = vld [vmem:[#allocation7 + $0xee8] sm:$0xff] }
 0x4eb   : > { %6765 = vmatpush1.bf16.msra.mxu1 %v6764_v47  ;;  %v5003_v47 = vld [vmem:[#allocation7 + $0xe28] sm:$0xff] }
 0x4ec   : > { %6767 = vmatprep.subr.bf16.mxu1 %v6766_v3  ;;  %v5005_v3 = vld [vmem:[#allocation7 + $0xe38] sm:$0xff] }
 0x4ef   : > { %6769 = vmatpush1.bf16.msra.mxu1 %v6768_v39  ;;  %v6790_v39 = vpack.c.bf16 %v5005_v3, %v5003_v47  ;;  %v4804_v47 = vsel %vm481_vm0, %v4799_v41, %v4803_v59  ;;  %v7339_v3 = vld [vmem:[#allocation2 + $0x88] sm:$0xff] }
 0x4f0   : > { %6771 = vmatprep.subr.bf16.mxu1 %v6770_v19  ;;  %v5002_v19 = vld [vmem:[#allocation7 + $0xe20] sm:$0xff]  ;;  %v4807_v26 = vrot.slane %v7339_v3, 1 }
 0x4f1   : > { %v6792_v34 = vpack.c.bf16 %v5004_v61, %v5002_v19  ;;  %v4802_v19 = vsel %vm481_vm0, %v4797_v5, %v4801_v7  ;;  %v7340_v61 = vld [vmem:[#allocation2 + $0x80] sm:$0xff] }
 0x4f2   : > { %v5026_v3 = vld [vmem:[#allocation7 + $0xee0] sm:$0xff] }
 0x4f3   : > { %6773 = vmatpush1.bf16.msra.mxu1 %v6772_v36  ;;  %v5007_v36 = vld [vmem:[#allocation7 + $0xe48] sm:$0xff] }
 0x4f4   : > { %6775 = vmatprep.subr.bf16.mxu1 %v6774_v63  ;;  %v5009_v63 = vld [vmem:[#allocation7 + $0xe58] sm:$0xff] }
 0x4f7   : > { %6777 = vmatpush1.bf16.msra.mxu1 %v6776_v24  ;;  %v6794_v24 = vpack.c.bf16 %v5009_v63, %v5007_v36  ;;  %v4808_v36 = vsel %vm481_vm0, %v4803_v59, %v4807_v26  ;;  %v7341_v63 = vld [vmem:[#allocation2 + $0x98] sm:$0xff] }
 0x4f8   : > { %6779 = vmatprep.subr.bf16.mxu1 %v6778_v14  ;;  %v5006_v14 = vld [vmem:[#allocation7 + $0xe40] sm:$0xff] }
 0x4f9   : > { %v6796_v4 = vpack.c.bf16 %v5008_v29, %v5006_v14  ;;  %v7342_v29 = vld [vmem:[#allocation2 + $0x90] sm:$0xff] }
 0x4fb   : > { %6781 = vmatpush1.bf16.msra.mxu1 %v6780_v6  ;;  %v5011_v6 = vld [vmem:[#allocation7 + $0xe68] sm:$0xff] }
 0x4fc   : > { %6783 = vmatprep.subr.bf16.mxu1 %v6782_v13  ;;  %v5013_v13 = vld [vmem:[#allocation7 + $0xe78] sm:$0xff] }
 0x4fd   : > { %v6798_v55 = vpack.c.bf16 %v5013_v13, %v5011_v6  ;;  %v7343_v13 = vld [vmem:[#allocation2 + $0xa8] sm:$0xff] }
 0x4ff   : > { %6785 = vmatpush1.bf16.msra.mxu1 %v6784_v18  ;;  %v5010_v18 = vld [vmem:[#allocation7 + $0xe60] sm:$0xff] }
 0x500   : > { %6787 = vmatprep.subr.bf16.mxu1 %v6786_v1  ;;  %v4798_v1 = vsel %vm481_vm0, %v4793_v21, %v4797_v5  ;;  %v6800_v51 = vpack.c.bf16 %v5012_v57, %v5010_v18  ;;  %v5021_v21 = vld [vmem:[#allocation7 + $0xeb8] sm:$0xff] }
 0x501   : > { %v6806_v41 = vpack.c.bf16 %v5021_v21, %v5019_v12  ;;  %v5025_v5 = vld [vmem:[#allocation7 + $0xed8] sm:$0xff] }
 0x502   : > { %4914 = vmatmul.mubr.f32.vlgmr.msra.gmra.mrb[0].mxu1 %v4789_v16  ;;  %v4805_v16 = vrot.slane %v7340_v61, 1  ;;  %v6810_v59 = vpack.c.bf16 %v5025_v5, %v5023_v20  ;;  %v7344_v57 = vld [vmem:[#allocation2 + $0xa0] sm:$0xff]  ;;  %v8929_v61 = vld [vmem:[#allocation2 + $0x8] sm:$0xff] }
 0x503   : > { %4919 = vmatprep.mubr.f32.mxu1 %v4796_v28  ;;  %6789 = vmatpush1.bf16.msra.mxu1 %v6788_v31  ;;  %v5014_v31 = vld [vmem:[#allocation7 + $0xe80] sm:$0xff]  ;;  %v4811_v28 = vrot.slane %v7341_v63, 1  ;;  %v5032_v63 = vld [vmem:[#allocation7 + $0xf10] sm:$0xff] }
 0x504   : > { %6791 = vmatprep.subr.bf16.mxu1 %v6790_v39  ;;  %v5016_v39 = vld [vmem:[#allocation7 + $0xe90] sm:$0xff]  ;;  %v4806_v14 = vsel %vm481_vm0, %v4801_v7, %v4805_v16  ;;  %v5029_v7 = vld [vmem:[#allocation7 + $0xef8] sm:$0xff] }
 0x505   : > { %v6804_v45 = vpack.c.bf16 %v5016_v39, %v5014_v31  ;;  %v4812_v6 = vsel %vm481_vm0, %v4807_v26, %v4811_v28  ;;  %v5028_v26 = vld [vmem:[#allocation7 + $0xef0] sm:$0xff]  ;;  %v5033_v31 = vld [vmem:[#allocation7 + $0xf18] sm:$0xff] }
 0x506   : > { %4920 = vmatmul.mubr.f32.gmra.mrb[2].mxu1 %v4794_v17  ;;  %v4809_v17 = vrot.slane %v7342_v29, 1  ;;  %v4700_v39 = vld [vmem:[#allocation2 + $0xd8] sm:$0x1]  ;;  %v6816_v12 = vpack.c.bf16 %v5028_v26, %v5026_v3 }
 0x507   : > { %4925 = vmatprep.mubr.f32.mxu1 %v4800_v60  ;;  %6793 = vmatpush1.bf16.msra.mxu1 %v6792_v34  ;;  %v5018_v34 = vld [vmem:[#allocation7 + $0xea0] sm:$0xff]  ;;  %v4815_v60 = vrot.slane %v7343_v13, 1  ;;  %v5036_v13 = vld [vmem:[#allocation7 + $0xf30] sm:$0xff] }
 0x508   : > { %6795 = vmatprep.subr.bf16.mxu1 %v6794_v24  ;;  %v5020_v24 = vld [vmem:[#allocation7 + $0xeb0] sm:$0xff]  ;;  %v4810_v18 = vsel %vm481_vm0, %v4805_v16, %v4809_v17  ;;  %v4823_v16 = vrot.slane %v8929_v61, 1 }
 0x509   : > { %v6808_v30 = vpack.c.bf16 %v5020_v24, %v5018_v34  ;;  %v4816_v2 = vsel %vm481_vm0, %v4811_v28, %v4815_v60  ;;  %v4827_v28 = vrot.slane %v4700_v39, 1  ;;  %v5035_v34 = vld [vmem:[#allocation7 + $0xf28] sm:$0xff]  ;;  %v5037_v24 = vld [vmem:[#allocation7 + $0xf38] sm:$0xff] }
 0x50a   : > { %4926 = vmatmul.mubr.f32.gmra.mrb[4].mxu1 %v4798_v1  ;;  %v4813_v1 = vrot.slane %v7344_v57, 1  ;;  %v6822_v5 = vpack.c.bf16 %v5037_v24, %v5035_v34  ;;  %v5049_v39 = vld [vmem:[#allocation7 + $0xf98] sm:$0xff]  ;;  %v5052_v34 = vld [vmem:[#allocation7 + $0xfb0] sm:$0xff]  ;;  %v5055_v24 = vld [vmem:[#allocation7 + $0xfc8] sm:$0xff] }
 0x50b   : > { %4931 = vmatprep.mubr.f32.mxu1 %v4804_v47  ;;  %6797 = vmatpush1.bf16.msra.mxu1 %v6796_v4  ;;  %v5022_v4 = vld [vmem:[#allocation7 + $0xec0] sm:$0xff]  ;;  %v6814_v47 = vpack.c.bf16 %v5029_v7, %v5027_v22  ;;  %v4828_v20 = vsel %vm481_vm0, %v4823_v16, %v4827_v28 }
 0x50c   : > { %6799 = vmatprep.subr.bf16.mxu1 %v6798_v55  ;;  %v5024_v55 = vld [vmem:[#allocation7 + $0xed0] sm:$0xff]  ;;  %v5038_v7 = vld [vmem:[#allocation7 + $0xf40] sm:$0xff] }
 0x50d   : > { %v6812_v10 = vpack.c.bf16 %v5024_v55, %v5022_v4  ;;  %v5041_v4 = vld [vmem:[#allocation7 + $0xf58] sm:$0xff]  ;;  %v8939_v55 = vld [vmem:[#allocation2 + $0x48] sm:$0xff] }
 0x50e   : > { %4932 = vmatmul.mubr.f32.gmra.mrb[6].mxu1 %v4802_v19  ;;  %v4820_v19 = vsel %vm481_vm0, %v4815_v60, %v8897_v62  ;;  %v4822_v60 = vsel %vm481_vm0, %v8901_v15, %v4823_v16 }
 0x50f   : > { %4937 = vmatprep.mubr.f32.mxu1 %v4808_v36  ;;  %6801 = vmatpush1.bf16.msra.mxu1 %v6800_v51  ;;  %v4814_v51 = vsel %vm481_vm0, %v4809_v17, %v4813_v1  ;;  %v5030_v36 = vld [vmem:[#allocation7 + $0xf00] sm:$0xff] }
 0x510   : > { %6803 = vmatprep.subr.bf16.mxu1 %v6802_v11  ;;  %v5031_v11 = vld [vmem:[#allocation7 + $0xf08] sm:$0xff]  ;;  %v6820_v29 = vpack.c.bf16 %v5032_v63, %v5030_v36  ;;  %v5053_v63 = vld [vmem:[#allocation7 + $0xfb8] sm:$0xff] }
 0x511   : > { %v6818_v21 = vpack.c.bf16 %v5033_v31, %v5031_v11  ;;  %v5044_v11 = vld [vmem:[#allocation7 + $0xf70] sm:$0xff]  ;;  %v5047_v31 = vld [vmem:[#allocation7 + $0xf88] sm:$0xff] }
 0x512   : > { %4938 = vmatmul.mubr.f32.gmra.mrb[8].mxu1 %v4806_v14  ;;  %v4824_v14 = vsel %vm481_vm0, %v8897_v62, %v4823_v16  ;;  %v5070_v62 = vrot.slane %v8939_v55, 2  ;;  %v5051_v36 = vld [vmem:[#allocation7 + $0xfa8] sm:$0xff] }
 0x513   : > { %4943 = vmatprep.mubr.f32.mxu1 %v4812_v6  ;;  %6805 = vmatpush1.bf16.msra.mxu1 %v6804_v45  ;;  %v4699_v45 = vld [vmem:[#allocation2 + $0xd0] sm:$0x1]  ;;  %v5034_v6 = vld [vmem:[#allocation7 + $0xf20] sm:$0xff] }
 0x514   : > { %6807 = vmatprep.subr.bf16.mxu1 %v6806_v41  ;;  %v4818_v41 = vsel %vm481_vm0, %v4813_v1, %v8901_v15  ;;  %v4825_v17 = vrot.slane %v4699_v45, 1  ;;  %v6824_v57 = vpack.c.bf16 %v5036_v13, %v5034_v6  ;;  %v5045_v15 = vld [vmem:[#allocation7 + $0xf78] sm:$0xff]  ;;  %v6838_v45 = vpack.c.bf16 %v5053_v63, %v5051_v36  ;;  %v5059_v6 = vld [vmem:[#allocation7 + $0xfe8] sm:$0xff] }
 0x515   : > { %v5061_v13 = vld [vmem:[#allocation7 + $0xff8] sm:$0xff] }
 0x516   : > { %4944 = vmatmul.mubr.f32.gmra.mrb[10].mxu1 %v4810_v18  ;;  %v4826_v18 = vsel %vm481_vm0, %v4823_v16, %v4825_v17  ;;  %v6834_v16 = vpack.c.bf16 %v5049_v39, %v5047_v31  ;;  %v5283_v31 = vld [vmem:[#allocation7 + $0x1030] sm:$0xff]  ;;  %v9134_v39 = vrot.slane %v8574_v54, 2 }
 0x517   : > { %4949 = vmatprep.mubr.f32.mxu1 %v4816_v2  ;;  %6809 = vmatpush1.bf16.msra.mxu1 %v6808_v30  ;;  %v4995_v30 = vld [vmem:[#allocation2 + $0x38] sm:$0xfc]  ;;  %v5040_v2 = vld [vmem:[#allocation7 + $0xf50] sm:$0xff] }
 0x518   : > { %6811 = vmatprep.subr.bf16.mxu1 %v6810_v59  ;;  %v5039_v59 = vld [vmem:[#allocation7 + $0xf48] sm:$0xff]  ;;  %v5069_v1 = vrot.slane %v4995_v30, 2  ;;  %v6828_v3 = vpack.c.bf16 %v5040_v2, %v5038_v7  ;;  %v6846_v30 = vpack.c.bf16 %v5061_v13, %v5059_v6  ;;  %v5277_v2 = vld [vmem:[#allocation7 + $0x1000] sm:$0xff] }
 0x519   : > { %v6826_v22 = vpack.c.bf16 %v5041_v4, %v5039_v59  ;;  %v5058_v59 = vld [vmem:[#allocation7 + $0xfe0] sm:$0xff]  ;;  %v5060_v4 = vld [vmem:[#allocation7 + $0xff0] sm:$0xff] }
 0x51a   : > { %4950 = vmatmul.mubr.f32.gmra.mrb[12].mxu1 %v4814_v51  ;;  %v5042_v51 = vld [vmem:[#allocation7 + $0xf60] sm:$0xff] }
 0x51b   : > { %4955 = vmatprep.mubr.f32.mxu1 %v4820_v19  ;;  %6813 = vmatpush1.bf16.msra.mxu1 %v6812_v10  ;;  %v5043_v10 = vld [vmem:[#allocation7 + $0xf68] sm:$0xff]  ;;  %v6832_v19 = vpack.c.bf16 %v5044_v11, %v5042_v51  ;;  %v5281_v11 = vld [vmem:[#allocation7 + $0x1020] sm:$0xff] }
 0x51c   : > { %6815 = vmatprep.subr.bf16.mxu1 %v6814_v47  ;;  %v5071_v47 = vsel %vm866_vm1, %v5069_v1, %v5070_v62  ;;  %v6830_v26 = vpack.c.bf16 %v5045_v15, %v5043_v10  ;;  %v6848_v1 = vpack.c.bf16 %v5060_v4, %v5058_v59  ;;  %v5279_v10 = vld [vmem:[#allocation7 + $0x1010] sm:$0xff]  ;;  %v5282_v15 = vld [vmem:[#allocation7 + $0x1028] sm:$0xff]  ;;  %v6856_v63 = vpack.c.bf16 %v5283_v31, %v5281_v11 }
 0x51d   : > { %v4997_v11 = vld [vmem:[#allocation2 + $0xd8] sm:$0x3]  ;;  %v9136_v31 = vrot.slane %v8614_v33, 2 }
 0x51e   : > { %4956 = vmatmul.mubr.f32.gmra.mrb[14].mxu1 %v4818_v41  ;;  %v5050_v41 = vld [vmem:[#allocation7 + $0xfa0] sm:$0xff] }
 0x51f   : > { %4961 = vmatprep.mubr.f32.mxu1 %v4824_v14  ;;  %6817 = vmatpush1.bf16.msra.mxu1 %v6816_v12  ;;  %v5046_v12 = vld [vmem:[#allocation7 + $0xf80] sm:$0xff]  ;;  %v5057_v14 = vld [vmem:[#allocation7 + $0xfd8] sm:$0xff] }
 0x520   : > { %6819 = vmatprep.subr.bf16.mxu1 %v6818_v21  ;;  %v5048_v21 = vld [vmem:[#allocation7 + $0xf90] sm:$0xff]  ;;  %v6842_v17 = vpack.c.bf16 %v5057_v14, %v5055_v24  ;;  %v5292_v24 = vld [vmem:[#allocation7 + $0x1078] sm:$0xff] }
 0x521   : > { %v6836_v28 = vpack.c.bf16 %v5048_v21, %v5046_v12  ;;  %v5288_v12 = vld [vmem:[#allocation7 + $0x1058] sm:$0xff]  ;;  %v9135_v21 = vrot.slane %v8576_v50, 2 }
 0x522   : > { %4962 = vmatmul.mubr.f32.gmra.mrb[16].mxu1 %v4822_v60 }
 0x523   : > { %6821 = vmatpush1.bf16.msra.mxu1 %v6820_v29  ;;  %4967 = vmatprep.mubr.f32.mxu1 %v4828_v20  ;;  %v6840_v29 = vpack.c.bf16 %v5052_v34, %v5050_v41  ;;  %v5054_v20 = vld [vmem:[#allocation7 + $0xfc0] sm:$0xff]  ;;  %v5075_v36 = vsel %vm866_vm1, %v5070_v62, %v9135_v21  ;;  %v5287_v41 = vld [vmem:[#allocation7 + $0x1050] sm:$0xff]  ;;  %v5290_v34 = vld [vmem:[#allocation7 + $0x1068] sm:$0xff]  ;;  %v9137_v21 = vrot.slane %v8616_v40, 2 }
 0x524   : > { %6823 = vmatprep.subr.bf16.mxu1 %v6822_v5  ;;  %v5056_v5 = vld [vmem:[#allocation7 + $0xfd0] sm:$0xff]  ;;  %v5294_v62 = vld [vmem:[#allocation7 + $0x1088] sm:$0xff] }
 0x525   : > { %v6844_v60 = vpack.c.bf16 %v5056_v5, %v5054_v20  ;;  %v5291_v20 = vld [vmem:[#allocation7 + $0x1070] sm:$0xff]  ;;  %v5296_v5 = vld [vmem:[#allocation7 + $0x1098] sm:$0xff] }
 0x526   : > { %4968 = vmatmul.mubr.f32.gmra.mrb[18].mxu1 %v4826_v18  ;;  %v5278_v18 = vld [vmem:[#allocation7 + $0x1008] sm:$0xff]  ;;  %v6866_v13 = vpack.c.bf16 %v5296_v5, %v5294_v62  ;;  %v5320_v5 = vld [vmem:[#allocation7 + $0x1158] sm:$0xff] }
 0x527   : > { %6825 = vmatpush1.bf16.msra.mxu1 %v6824_v57  ;;  %5192 = vmatprep.mubr.f32.mxu1 %v5071_v47  ;;  %v5280_v57 = vld [vmem:[#allocation7 + $0x1018] sm:$0xff]  ;;  %v5318_v62 = vld [vmem:[#allocation7 + $0x1148] sm:$0xff] }
 0x528   : > { %6827 = vmatprep.subr.bf16.mxu1 %v6826_v22  ;;  %v4994_v22 = vld [vmem:[#allocation2 + $0x30] sm:$0xfc]  ;;  %v6850_v7 = vpack.c.bf16 %v5280_v57, %v5278_v18  ;;  %v5284_v47 = vld [vmem:[#allocation7 + $0x1038] sm:$0xff]  ;;  %v5297_v18 = vld [vmem:[#allocation7 + $0x10a0] sm:$0xff] }
 0x529   : > { %v6854_v51 = vpack.c.bf16 %v5284_v47, %v5282_v15  ;;  %v5302_v57 = vld [vmem:[#allocation7 + $0x10c8] sm:$0xff]  ;;  %v5305_v47 = vld [vmem:[#allocation7 + $0x10e0] sm:$0xff] }
 0x52b   : > { %6829 = vmatpush1.bf16.msra.mxu1 %v6828_v3  ;;  %v5066_v3 = vrot.slane %v4994_v22, 2 }
 0x52c   : > { %6831 = vmatprep.subr.bf16.mxu1 %v6830_v26  ;;  %v6852_v26 = vpack.c.bf16 %v5279_v10, %v5277_v2  ;;  %v5306_v2 = vld [vmem:[#allocation7 + $0x10e8] sm:$0xff]  ;;  %v5098_v10 = vrot.slane %v8851_v0, 2  ;;  %v5102_v0 = vrot.slane %v8929_v61, 2 }
 0x52f   : > { %6833 = vmatpush1.bf16.msra.mxu1 %v6832_v19  ;;  %v5068_v19 = vsel %vm866_vm1, %v5066_v3, %v9134_v39  ;;  %v5096_v3 = vrot.slane %v8855_v49, 2  ;;  %v4996_v49 = vld [vmem:[#allocation2 + $0xd0] sm:$0x3] }
 0x530   : > { %6835 = vmatprep.subr.bf16.mxu1 %v6834_v16  ;;  %v5286_v16 = vld [vmem:[#allocation7 + $0x1048] sm:$0xff] }
 0x533   : > { %6837 = vmatpush1.bf16.msra.mxu1 %v6836_v28  ;;  %v6858_v28 = vpack.c.bf16 %v5288_v12, %v5286_v16  ;;  %v5311_v16 = vld [vmem:[#allocation7 + $0x1110] sm:$0xff]  ;;  %v5106_v12 = vrot.slane %v4997_v11, 2  ;;  %v5336_v11 = vld [vmem:[#allocation7 + $0x11d8] sm:$0xff] }
 0x534   : > { %6839 = vmatprep.subr.bf16.mxu1 %v6838_v45  ;;  %v5285_v45 = vld [vmem:[#allocation7 + $0x1040] sm:$0xff] }
 0x535   : > { %v6860_v14 = vpack.c.bf16 %v5287_v41, %v5285_v45  ;;  %v5104_v41 = vrot.slane %v4996_v49, 2  ;;  %v5337_v49 = vld [vmem:[#allocation7 + $0x11e0] sm:$0xff] }
 0x537   : > { %6841 = vmatpush1.bf16.msra.mxu1 %v6840_v29  ;;  %v6862_v29 = vpack.c.bf16 %v5292_v24, %v5290_v34  ;;  %v5107_v34 = vsel %vm866_vm1, %v5102_v0, %v5106_v12 }
 0x538   : > { %6843 = vmatprep.subr.bf16.mxu1 %v6842_v17  ;;  %v5289_v17 = vld [vmem:[#allocation7 + $0x1060] sm:$0xff] }
 0x539   : > { %v6864_v6 = vpack.c.bf16 %v5291_v20, %v5289_v17  ;;  %v5101_v17 = vsel %vm866_vm1, %v5096_v3, %v5102_v0  ;;  %v5274_v20 = vld [vmem:[#allocation2 + $0x38] sm:$0xf8] }
 0x53b   : > { %6845 = vmatpush1.bf16.msra.mxu1 %v6844_v60  ;;  %v5293_v60 = vld [vmem:[#allocation7 + $0x1080] sm:$0xff] }
 0x53c   : > { %6847 = vmatprep.subr.bf16.mxu1 %v6846_v30  ;;  %v5298_v30 = vld [vmem:[#allocation7 + $0x10a8] sm:$0xff] }
 0x53f   : > { %6849 = vmatpush1.bf16.msra.mxu1 %v6848_v1 }
 0x540   : > { %6851 = vmatprep.subr.bf16.mxu1 %v6850_v7  ;;  %v5301_v7 = vld [vmem:[#allocation7 + $0x10c0] sm:$0xff] }
 0x542   : > { %5193 = vmatmul.mubr.f32.vlgmr.msra.gmra.mrb[0].mxu1 %v5068_v19  ;;  %v5309_v19 = vld [vmem:[#allocation7 + $0x1100] sm:$0xff] }
 0x543   : > { %5198 = vmatprep.mubr.f32.mxu1 %v5075_v36  ;;  %6853 = vmatpush1.bf16.msra.mxu1 %v6852_v26  ;;  %v5310_v26 = vld [vmem:[#allocation7 + $0x1108] sm:$0xff]  ;;  %v5097_v36 = vsel %vm866_vm1, %v9137_v21, %v5096_v3  ;;  %v6884_v45 = vpack.c.bf16 %v5311_v16, %v5309_v19  ;;  %v5329_v3 = vld [vmem:[#allocation7 + $0x11a0] sm:$0xff]  ;;  %v5340_v19 = vld [vmem:[#allocation7 + $0x11f8] sm:$0xff] }
 0x544   : > { %6855 = vmatprep.subr.bf16.mxu1 %v6854_v51  ;;  %v5312_v51 = vld [vmem:[#allocation7 + $0x1118] sm:$0xff]  ;;  %v5339_v21 = vld [vmem:[#allocation7 + $0x11f0] sm:$0xff] }
 0x545   : > { %v6882_v39 = vpack.c.bf16 %v5312_v51, %v5310_v26  ;;  %v5331_v26 = vld [vmem:[#allocation7 + $0x11b0] sm:$0xff]  ;;  %v5334_v51 = vld [vmem:[#allocation7 + $0x11c8] sm:$0xff] }
 0x546   : > { %5199 = vmatmul.mubr.f32.gmra.mrb[2].mxu1 %v8621_v8  ;;  %v5295_v8 = vld [vmem:[#allocation7 + $0x1090] sm:$0xff] }
 0x547   : > { %5204 = vmatprep.mubr.f32.mxu1 %v8626_v56  ;;  %6857 = vmatpush1.bf16.msra.mxu1 %v6856_v63  ;;  %v5300_v56 = vld [vmem:[#allocation7 + $0x10b8] sm:$0xff]  ;;  %v6868_v59 = vpack.c.bf16 %v5295_v8, %v5293_v60  ;;  %v5348_v8 = vrot.slane %v5274_v20, 3  ;;  %v5275_v20 = vld [vmem:[#allocation2 + $0xd0] sm:$0x7] }
 0x548   : > { %6859 = vmatprep.subr.bf16.mxu1 %v6858_v28  ;;  %v6870_v4 = vpack.c.bf16 %v5300_v56, %v5298_v30  ;;  %v5316_v63 = vld [vmem:[#allocation7 + $0x1138] sm:$0xff]  ;;  %v5103_v28 = vsel %vm866_vm1, %v5098_v10, %v5102_v0  ;;  %v6890_v30 = vpack.c.bf16 %v5320_v5, %v5318_v62  ;;  %v5317_v56 = vld [vmem:[#allocation7 + $0x1140] sm:$0xff]  ;;  %v9145_v62 = vrot.slane %v8616_v40, 3 }
 0x54a   : > { %5205 = vmatmul.mubr.f32.gmra.mrb[4].mxu1 %v8632_v52  ;;  %v5299_v52 = vld [vmem:[#allocation7 + $0x10b0] sm:$0xff] }
 0x54b   : > { %5210 = vmatprep.mubr.f32.mxu1 %v8635_v9  ;;  %6861 = vmatpush1.bf16.msra.mxu1 %v6860_v14  ;;  %v5304_v9 = vld [vmem:[#allocation7 + $0x10d8] sm:$0xff]  ;;  %v6872_v1 = vpack.c.bf16 %v5299_v52, %v5297_v18  ;;  %v5313_v14 = vld [vmem:[#allocation7 + $0x1120] sm:$0xff] }
 0x54c   : > { %6863 = vmatprep.subr.bf16.mxu1 %v6862_v29  ;;  %v6874_v22 = vpack.c.bf16 %v5304_v9, %v5302_v57  ;;  %v5315_v29 = vld [vmem:[#allocation7 + $0x1130] sm:$0xff]  ;;  %v5324_v18 = vld [vmem:[#allocation7 + $0x1178] sm:$0xff]  ;;  %v5321_v9 = vld [vmem:[#allocation7 + $0x1160] sm:$0xff] }
 0x54d   : > { %v6888_v60 = vpack.c.bf16 %v5315_v29, %v5313_v14  ;;  %v9142_v29 = vld [vmem:[#allocation16_spill] sm:$0xff] }
 0x54e   : > { %5211 = vmatmul.mubr.f32.gmra.mrb[6].mxu1 %v8642_v42  ;;  %v5303_v42 = vld [vmem:[#allocation7 + $0x10d0] sm:$0xff] }
 0x54f   : > { %5216 = vmatprep.mubr.f32.mxu1 %v8647_v32  ;;  %6865 = vmatpush1.bf16.msra.mxu1 %v6864_v6  ;;  %v5308_v32 = vld [vmem:[#allocation7 + $0x10f8] sm:$0xff]  ;;  %v6876_v15 = vpack.c.bf16 %v5303_v42, %v5301_v7  ;;  %v5349_v6 = vrot.slane %v8939_v55, 3 }
 0x550   : > { %6867 = vmatprep.subr.bf16.mxu1 %v6866_v13  ;;  %v5105_v13 = vsel %vm866_vm1, %v5102_v0, %v5104_v41  ;;  %v5328_v7 = vld [vmem:[#allocation7 + $0x1198] sm:$0xff]  ;;  %v5333_v0 = vld [vmem:[#allocation7 + $0x11c0] sm:$0xff]  ;;  %v9139_v41 = vrot.slane %v8576_v50, 3 }
 0x551   : > { %v5350_v52 = vsel %vm1461_vm2, %v5348_v8, %v5349_v6  ;;  %v9141_v50 = vld [vmem:[#allocation15_spill] sm:$0xff]  ;;  %v5552_v8 = vld [vmem:[#allocation8] sm:$0x3] }
 0x552   : > { %5217 = vmatmul.mubr.f32.gmra.mrb[8].mxu1 %v8653_v38  ;;  %v6878_v38 = vpack.c.bf16 %v5308_v32, %v5306_v2  ;;  %v5325_v32 = vld [vmem:[#allocation7 + $0x1180] sm:$0xff] }
 0x553   : > { %5222 = vmatprep.mubr.f32.mxu1 %v8656_v48  ;;  %6869 = vmatpush1.bf16.msra.mxu1 %v6868_v59  ;;  %v5307_v48 = vld [vmem:[#allocation7 + $0x10f0] sm:$0xff] }
 0x554   : > { %6871 = vmatprep.subr.bf16.mxu1 %v6870_v4  ;;  %v5319_v59 = vld [vmem:[#allocation7 + $0x1150] sm:$0xff]  ;;  %v5322_v4 = vld [vmem:[#allocation7 + $0x1168] sm:$0xff] }
 0x555   : > { %v6892_v57 = vpack.c.bf16 %v5319_v59, %v5317_v56  ;;  %v6894_v55 = vpack.c.bf16 %v5324_v18, %v5322_v4 }
 0x556   : > { %5223 = vmatmul.mubr.f32.gmra.mrb[10].mxu1 %v8659_v46  ;;  %v5099_v46 = vsel %vm866_vm1, %v9136_v31, %v5098_v10  ;;  %v5327_v10 = vld [vmem:[#allocation7 + $0x1190] sm:$0xff]  ;;  %v6904_v31 = vpack.c.bf16 %v5331_v26, %v5329_v3 }
 0x557   : > { %5228 = vmatprep.mubr.f32.mxu1 %v8664_v25  ;;  %6873 = vmatpush1.bf16.msra.mxu1 %v6872_v1  ;;  %v6880_v25 = vpack.c.bf16 %v5307_v48, %v5305_v47  ;;  %v5323_v1 = vld [vmem:[#allocation7 + $0x1170] sm:$0xff]  ;;  %v6900_v47 = vpack.c.bf16 %v5327_v10, %v5325_v32 }
 0x558   : > { %6875 = vmatprep.subr.bf16.mxu1 %v6874_v22  ;;  %v5326_v22 = vld [vmem:[#allocation7 + $0x1188] sm:$0xff]  ;;  %v6896_v42 = vpack.c.bf16 %v5323_v1, %v5321_v9 }
 0x559   : > { %v6898_v2 = vpack.c.bf16 %v5328_v7, %v5326_v22 }
 0x55a   : > { %5229 = vmatmul.mubr.f32.gmra.mrb[12].mxu1 %v8669_v35  ;;  %v5314_v35 = vld [vmem:[#allocation7 + $0x1128] sm:$0xff] }
 0x55b   : > { %5234 = vmatprep.mubr.f32.mxu1 %v5099_v46  ;;  %6877 = vmatpush1.bf16.msra.mxu1 %v6876_v15  ;;  %v6886_v24 = vpack.c.bf16 %v5316_v63, %v5314_v35  ;;  %v5330_v15 = vld [vmem:[#allocation7 + $0x11a8] sm:$0xff]  ;;  %v6906_v46 = vpack.c.bf16 %v5336_v11, %v5334_v51  ;;  %v5273_v35 = vld [vmem:[#allocation2 + $0x30] sm:$0xf8] }
 0x55c   : > { %6879 = vmatprep.subr.bf16.mxu1 %v6878_v38  ;;  %v5332_v38 = vld [vmem:[#allocation7 + $0x11b8] sm:$0xff]  ;;  %v5345_v63 = vrot.slane %v5273_v35, 3 }
 0x55d   : > { %v6902_v48 = vpack.c.bf16 %v5332_v38, %v5330_v15 }
 0x55e   : > { %5235 = vmatmul.mubr.f32.gmra.mrb[14].mxu1 %v5097_v36  ;;  %v6912_v36 = vpack.c.bf16 %v5339_v21, %v5337_v49 }
 0x55f   : > { %5240 = vmatprep.mubr.f32.mxu1 %v5103_v28  ;;  %6881 = vmatpush1.bf16.msra.mxu1 %v6880_v25  ;;  %v5335_v25 = vld [vmem:[#allocation7 + $0x11d0] sm:$0xff]  ;;  %v9138_v28 = vrot.slane %v8574_v54, 3 }
 0x560   : > { %6883 = vmatprep.subr.bf16.mxu1 %v6882_v39  ;;  %v5338_v39 = vld [vmem:[#allocation7 + $0x11e8] sm:$0xff]  ;;  %v6908_v16 = vpack.c.bf16 %v5335_v25, %v5333_v0 }
 0x561   : > { %v6910_v12 = vpack.c.bf16 %v5340_v19, %v5338_v39  ;;  %v9140_v54 = vld [vmem:[#allocation14_spill] sm:$0xff] }
 0x562   : > { %5241 = vmatmul.mubr.f32.gmra.mrb[16].mxu1 %v5101_v17  ;;  %v5276_v17 = vld [vmem:[#allocation2 + $0xd8] sm:$0x7] }
 0x563   : > { %6885 = vmatpush1.bf16.msra.mxu1 %v6884_v45  ;;  %5246 = vmatprep.mubr.f32.mxu1 %v5107_v34  ;;  %v5347_v45 = vsel %vm1461_vm2, %v5345_v63, %v9138_v28  ;;  %v5354_v34 = vsel %vm1461_vm2, %v5349_v6, %v9139_v41 }
 0x564   : > { %6887 = vmatprep.subr.bf16.mxu1 %v6886_v24  ;;  %v7347_v24 = vld [vmem:[#allocation2 + $0xb8] sm:$0xff] }
 0x565   : > { %v5377_v14 = vrot.slane %v7347_v24, 3 }
 0x566   : > { %5247 = vmatmul.mubr.f32.gmra.mrb[18].mxu1 %v5105_v13  ;;  %v5383_v13 = vrot.slane %v5275_v20, 3 }
 0x567   : > { %6889 = vmatpush1.bf16.msra.mxu1 %v6888_v60  ;;  %5471 = vmatprep.mubr.f32.mxu1 %v5350_v52 }
 0x568   : > { %6891 = vmatprep.subr.bf16.mxu1 %v6890_v30  ;;  %v9146_v30 = vld [vmem:[#allocation13_spill] sm:$0xff] }
 0x569   : > { %v9147_v40 = vsub.s32 0, %v9146_v30  ;;  %v9148_v59 = vsub.s32 1, %v9146_v30 }
 0x56b   : > { %6893 = vmatpush1.bf16.msra.mxu1 %v6892_v57  ;;  %v9011_v56 = vrot.slane %v5552_v8, %v9147_v40  ;;  %v9015_v4 = vrot.slane %v5552_v8, %v9148_v59 }
 0x56c   : > { %6895 = vmatprep.subr.bf16.mxu1 %v6894_v55 }
 0x56f   : > { %6897 = vmatpush1.bf16.msra.mxu1 %v6896_v42  ;;  %v9149_v42 = vlaneseq }
 0x570   : > { %6899 = vmatprep.subr.bf16.mxu1 %v6898_v2 }
 0x571   : > { %v9028_v2 = vand.u32 127, %v9149_v42 }
 0x573   : > { %6901 = vmatpush1.bf16.msra.mxu1 %v6900_v47  ;;  %vm5587_vm7 = vcmp.lt.s32.totalorder %v9028_v2, 96 }
 0x574   : > { %6903 = vmatprep.subr.bf16.mxu1 %v6902_v48 }
 0x577   : > { %6905 = vmatpush1.bf16.msra.mxu1 %v6904_v31 }
 0x578   : > { %6907 = vmatprep.subr.bf16.mxu1 %v6906_v46 }
 0x57b   : > { %6909 = vmatpush1.bf16.msra.mxu1 %v6908_v16 }
 0x57c   : > { %6911 = vmatprep.subr.bf16.mxu1 %v6910_v12 }
 0x57f   : > { %6913 = vmatpush1.bf16.msra.mxu1 %v6912_v36 }
 0x582   : > { %5472 = vmatmul.mubr.f32.vlgmr.msra.gmra.mrb[0].mxu1 %v5347_v45 }
 0x583   : > { %5477 = vmatprep.mubr.f32.mxu1 %v5354_v34 }
 0x586   : > { %5478 = vmatmul.mubr.f32.gmra.mrb[2].mxu1 %v8680_v43  ;;  %v7348_v43 = vld [vmem:[#allocation2 + $0xb0] sm:$0xff] }
 0x587   : > { %5483 = vmatprep.mubr.f32.mxu1 %v8685_v23  ;;  %v5375_v23 = vrot.slane %v7348_v43, 3 }
 0x589   : > { %v5376_v5 = vsel %vm1461_vm2, %v9145_v62, %v5375_v23 }
 0x58a   : > { %5484 = vmatmul.mubr.f32.gmra.mrb[4].mxu1 %v8688_v27  ;;  %v9143_v27 = vld [vmem:[#allocation17_spill] sm:$0xff] }
 0x58b   : > { %5489 = vmatprep.mubr.f32.mxu1 %v8691_v53  ;;  %v9144_v53 = vrot.slane %v8614_v33, 3 }
 0x58e   : > { %5490 = vmatmul.mubr.f32.gmra.mrb[6].mxu1 %v8701_v37  ;;  %v5378_v37 = vsel %vm1461_vm2, %v9144_v53, %v5377_v14 }
 0x58f   : > { %5495 = vmatprep.mubr.f32.mxu1 %v8704_v44  ;;  %v5381_v44 = vrot.slane %v8929_v61, 3 }
 0x591   : > { %v5382_v6 = vsel %vm1461_vm2, %v5377_v14, %v5381_v44  ;;  %v5380_v33 = vsel %vm1461_vm2, %v5375_v23, %v5381_v44  ;;  %v5384_v61 = vsel %vm1461_vm2, %v5381_v44, %v5383_v13 }
 0x592   : > { %5496 = vmatmul.mubr.f32.gmra.mrb[8].mxu1 %v8707_v58  ;;  %v5385_v58 = vrot.slane %v5276_v17, 3 }
 0x593   : > { %5501 = vmatprep.mubr.f32.mxu1 %v9140_v54 }
 0x594   : > { %v5386_v60 = vsel %vm1461_vm2, %v5381_v44, %v5385_v58 }
 0x596   : > { %5502 = vmatmul.mubr.f32.gmra.mrb[10].mxu1 %v9141_v50 }
 0x597   : > { %5507 = vmatprep.mubr.f32.mxu1 %v9142_v29 }
 0x59a   : > { %5508 = vmatmul.mubr.f32.gmra.mrb[12].mxu1 %v9143_v27 }
 0x59b   : > { %5513 = vmatprep.mubr.f32.mxu1 %v5378_v37 }
 0x59e   : > { %5514 = vmatmul.mubr.f32.gmra.mrb[14].mxu1 %v5376_v5 }
 0x59f   : > { %5519 = vmatprep.mubr.f32.mxu1 %v5382_v6 }
 0x5a2   : > { %5520 = vmatmul.mubr.f32.gmra.mrb[16].mxu1 %v5380_v33 }
 0x5a3   : > { %5525 = vmatprep.mubr.f32.mxu1 %v5386_v60 }
 0x5a6   : > { %5526 = vmatmul.mubr.f32.gmra.mrb[18].mxu1 %v5384_v61 }
 0x655   : > { %v5473_v18 = vpop.f32.mrb[0].mxu1 }
 0x656   : > { %v5564_v52 = vadd.f32 %v9011_v56, %v5473_v18  ;;  %v5475_v57 = vpop.f32.mrb[1].mxu1 }
 0x657   : > { %v5565_v55 = vadd.f32 %v9015_v4, %v5475_v57 }
 0x658   : > { %7291 = vtanh.f32 %v5564_v52 }
 0x659   : > { %5630 = vst [vmem:[%s9020_s19 + $0x8] sm:$0xff] %v5565_v55  ;;  %v5479_v9 = vpop.f32.mrb[2].mxu1 }
 0x65a   : > { %v5566_v1 = vadd.f32 %v9011_v56, %v5479_v9  ;;  %v5481_v22 = vpop.f32.mrb[3].mxu1 }
 0x65b   : > { %v5567_v7 = vadd.f32 %v9015_v4, %v5481_v22 }
 0x65c   : > { %7293 = vtanh.f32 %v5566_v1 }
 0x65d   : > { %5632 = vst [vmem:[%s9020_s19 + $0x18] sm:$0xff] %v5567_v7  ;;  %v5485_v32 = vpop.f32.mrb[4].mxu1 }
 0x65e   : > { %v5568_v10 = vadd.f32 %v9011_v56, %v5485_v32  ;;  %v5487_v15 = vpop.f32.mrb[5].mxu1 }
 0x65f   : > { %v5569_v38 = vadd.f32 %v9015_v4, %v5487_v15 }
 0x660   : > { %7295 = vtanh.f32 %v5568_v10 }
 0x661   : > { %5634 = vst [vmem:[%s9020_s19 + $0x28] sm:$0xff] %v5569_v38  ;;  %v5491_v47 = vpop.f32.mrb[6].mxu1 }
 0x662   : > { %v7292_v48 = vpop.eup %7291  ;;  %v5570_v3 = vadd.f32 %v9011_v56, %v5491_v47  ;;  %v5493_v26 = vpop.f32.mrb[7].mxu1 }
 0x663   : > { %v5609_v51 = vsel %vm5587_vm7, %v7292_v48, %v5564_v52  ;;  %v5571_v11 = vadd.f32 %v9015_v4, %v5493_v26 }
 0x664   : > { %5629 = vst [vmem:[%s9020_s19] sm:$0xff] %v5609_v51  ;;  %7297 = vtanh.f32 %v5570_v3 }
 0x665   : > { %5636 = vst [vmem:[%s9020_s19 + $0x38] sm:$0xff] %v5571_v11  ;;  %v5497_v31 = vpop.f32.mrb[8].mxu1 }
 0x666   : > { %v7294_v46 = vpop.eup %7293  ;;  %v5572_v0 = vadd.f32 %v9011_v56, %v5497_v31  ;;  %v5499_v25 = vpop.f32.mrb[9].mxu1 }
 0x667   : > { %v5611_v39 = vsel %vm5587_vm7, %v7294_v46, %v5566_v1  ;;  %v5573_v19 = vadd.f32 %v9015_v4, %v5499_v25 }
 0x668   : > { %5631 = vst [vmem:[%s9020_s19 + $0x10] sm:$0xff] %v5611_v39  ;;  %7299 = vtanh.f32 %v5572_v0 }
 0x669   : > { %5638 = vst [vmem:[%s9020_s19 + $0x48] sm:$0xff] %v5573_v19  ;;  %v5503_v16 = vpop.f32.mrb[10].mxu1 }
 0x66a   : > { %v7296_v12 = vpop.eup %7295  ;;  %v5574_v49 = vadd.f32 %v9011_v56, %v5503_v16  ;;  %v5505_v21 = vpop.f32.mrb[11].mxu1 }
 0x66b   : > { %v5613_v36 = vsel %vm5587_vm7, %v7296_v12, %v5568_v10  ;;  %v5575_v35 = vadd.f32 %v9015_v4, %v5505_v21 }
 0x66c   : > { %5633 = vst [vmem:[%s9020_s19 + $0x20] sm:$0xff] %v5613_v36  ;;  %7301 = vtanh.f32 %v5574_v49 }
 0x66d   : > { %5640 = vst [vmem:[%s9020_s19 + $0x58] sm:$0xff] %v5575_v35  ;;  %v5509_v63 = vpop.f32.mrb[12].mxu1 }
 0x66e   : > { %v7298_v28 = vpop.eup %7297  ;;  %v5576_v45 = vadd.f32 %v9011_v56, %v5509_v63  ;;  %v5511_v41 = vpop.f32.mrb[13].mxu1 }
 0x66f   : > { %v5615_v34 = vsel %vm5587_vm7, %v7298_v28, %v5570_v3  ;;  %v5577_v54 = vadd.f32 %v9015_v4, %v5511_v41 }
 0x670   : > { %5635 = vst [vmem:[%s9020_s19 + $0x30] sm:$0xff] %v5615_v34  ;;  %7303 = vtanh.f32 %v5576_v45 }
 0x671   : > { %5642 = vst [vmem:[%s9020_s19 + $0x68] sm:$0xff] %v5577_v54  ;;  %v5515_v50 = vpop.f32.mrb[14].mxu1 }
 0x672   : > { %v7300_v24 = vpop.eup %7299  ;;  %v5578_v14 = vadd.f32 %v9011_v56, %v5515_v50  ;;  %v5517_v29 = vpop.f32.mrb[15].mxu1 }
 0x673   : > { %v5617_v43 = vsel %vm5587_vm7, %v7300_v24, %v5572_v0  ;;  %v5579_v23 = vadd.f32 %v9015_v4, %v5517_v29 }
 0x674   : > { %5637 = vst [vmem:[%s9020_s19 + $0x40] sm:$0xff] %v5617_v43  ;;  %7305 = vtanh.f32 %v5578_v14 }
 0x675   : > { %5644 = vst [vmem:[%s9020_s19 + $0x78] sm:$0xff] %v5579_v23  ;;  %v5521_v17 = vpop.f32.mrb[16].mxu1 }
 0x676   : > { %v7302_v27 = vpop.eup %7301  ;;  %v5580_v53 = vadd.f32 %v9011_v56, %v5521_v17  ;;  %v5523_v37 = vpop.f32.mrb[17].mxu1 }
 0x677   : > { %v5619_v44 = vsel %vm5587_vm7, %v7302_v27, %v5574_v49  ;;  %v5581_v58 = vadd.f32 %v9015_v4, %v5523_v37 }
 0x678   : > { %5639 = vst [vmem:[%s9020_s19 + $0x50] sm:$0xff] %v5619_v44  ;;  %7307 = vtanh.f32 %v5580_v53 }
 0x679   : > { %5646 = vst [vmem:[%s9020_s19 + $0x88] sm:$0xff] %v5581_v58  ;;  %v5527_v20 = vpop.f32.mrb[18].mxu1 }
 0x67a   : > { %v7304_v62 = vpop.eup %7303  ;;  %v5582_v5 = vadd.f32 %v9011_v56, %v5527_v20  ;;  %v5529_v6 = vpop.f32.mrb[19].mxu1 }
 0x67b   : > { %v5621_v13 = vsel %vm5587_vm7, %v7304_v62, %v5576_v45  ;;  %v5583_v60 = vadd.f32 %v9015_v4, %v5529_v6 }
 0x67c   : > { %5641 = vst [vmem:[%s9020_s19 + $0x60] sm:$0xff] %v5621_v13  ;;  %7309 = vtanh.f32 %v5582_v5 }
 0x67d   : > { %5648 = vst [vmem:[%s9020_s19 + $0x98] sm:$0xff] %v5583_v60 }
 0x67e   : > { %v7306_v33 = vpop.eup %7305 }
 0x67f   : > { %v5623_v61 = vsel %vm5587_vm7, %v7306_v33, %v5578_v14 }
 0x680   : > { %5643 = vst [vmem:[%s9020_s19 + $0x70] sm:$0xff] %v5623_v61 }
 0x682   : > { %v7308_v8 = vpop.eup %7307 }
 0x683   : > { %v5625_v30 = vsel %vm5587_vm7, %v7308_v8, %v5580_v53 }
 0x684   : > { %5645 = vst [vmem:[%s9020_s19 + $0x80] sm:$0xff] %v5625_v30 }
 0x686   : > { %v7310_v40 = vpop.eup %7309 }
 0x687   : > { %v5627_v56 = vsel %vm5587_vm7, %v7310_v40, %v5582_v5 }
 0x688   : > { %5647 = vst [vmem:[%s9020_s19 + $0x90] sm:$0xff] %v5627_v56 }
 0x689 PF: > { %s19_s21 = sadd.s32 1, %s7479_s21  }
 0x68a   : > { %p16_p6 = scmp.ge.s32.totalorder %s19_s21, 4  }
 0x68c   :  { %18 = sbr.rel (!%p16_p6) target bundleno = 3 (0x3), region = 91 }
 0x693   :  { %5670 = vsyncpa [#allocation4], 1 }
 0x694   :  { %5672 = vsyncpa [#allocation4 + $0x1], 1 }
 0x695   :  { %5673 = vsyncpa [#allocation6], 1 }
 0x696   :  { %5674 = vsyncpa [#allocation9], 1 }

</bundles_post_ra>
